<compile_context>
chip_gen: v5e
topology: v5e:2x2
jax: 0.10.0
libtpu: 0.0.40
codegen_flags: <defaults>
</compile_context>

<pallas_src>
import functools

import jax
import jax.numpy as jnp
import numpy as np
from jax import lax
from jax.experimental import pallas as pl
from jax.experimental.pallas import tpu as pltpu

_EPS = 1e-5
_LANE = 128


# ----------------------------- small helpers ---------------------------------
def _round_up(x, m):
    return (x + m - 1) // m * m


def _pick_tile(n, cap=8):
    """Largest divisor of n that is <= cap (output-row tile)."""
    for t in range(min(n, cap), 0, -1):
        if n % t == 0:
            return t
    return 1


def _padded_bytes(shape, dtype):
    """Rough VMEM footprint of an array after (sublane, lane) tiling/padding."""
    itemsize = jnp.dtype(dtype).itemsize
    s = list(shape)
    if len(s) >= 1:
        s[-1] = _round_up(s[-1], _LANE)
    if len(s) >= 2:
        s[-2] = _round_up(s[-2], 8 * max(1, 4 // itemsize))
    n = 1
    for d in s:
        n *= d
    return n * itemsize


def _vmem_cap_bytes():
    """~3/4 of physical VMEM: ~96 MiB on v5e/v6e (128 MiB), ~48 MiB on v7x (64 MiB)."""
    try:
        cap = int(pltpu.get_tpu_info().vmem_capacity_bytes)
    except Exception:
        cap = 64 * 2**20          # conservative fallback (v7x)
    return (cap // 4) * 3


# ----------------------------- Pallas kernel ---------------------------------
def _conv_bn_kernel(*refs, stride, relus, has_residual):
    """Fused 3x3 conv(s) + folded-BN affine + optional residual add + optional ReLU.

    One grid step computes one (TH, Wo, TC) output tile of every branch for one image.

    refs = (x, (w, scale, bias) * n_branches, [residual], out * n_branches,
            xpad_scratch, patch_scratch)
      x:      (1, H, W+2, Cin)    bf16 image, W already halo-padded host-side
      w:      (9*Cin, TC)         bf16 weights, tap-major: row = (kh*3 + kw)*Cin + ci
      scale:  (1, TC)             f32 folded BN scale
      bias:   (1, TC)             f32 folded BN bias (includes conv bias)
      res:    (1, TH, Wo, Cres)   bf16 residual (branch 0 only); Cres == TC or < TC
      out:    (1, TH, Wo, TC)
      xpad:   (H+2, W+2, Cin)     bf16 scratch: H-halo-padded image, built per image
      patch:  (TH, Wo, 9*Cin)     bf16 scratch: im2col patch, built per (image, h-tile)
    """
    nb = len(relus)
    x_ref = refs[0]
    wsb = [(refs[1 + 3 * i], refs[2 + 3 * i], refs[3 + 3 * i]) for i in range(nb)]
    pos = 1 + 3 * nb
    res_ref = refs[pos] if has_residual else None
    pos += int(has_residual)
    out_refs = refs[pos:pos + nb]
    xpad_ref = refs[pos + nb]
    patch_ref = refs[pos + nb + 1]

    hb = pl.program_id(1)
    cb = pl.program_id(2)
    _, H, Wp, Cin = x_ref.shape               # Wp = W + 2 (host-side W halo)
    _, TH, Wo, TC = out_refs[0].shape

    # Per image: add the H halo with full, aligned slab stores (no whole-array
    # zero-fill + interior rewrite).  The scratch is reused by all h/c tiles of this
    # image, which is why those grid axes stay "arbitrary".
    @pl.when(jnp.logical_and(hb == 0, cb == 0))
    def _build_padded_image():
        zrow = jnp.zeros((1, Wp, Cin), xpad_ref.dtype)
        xpad_ref[0:1, :, :] = zrow
        xpad_ref[H + 1:H + 2, :, :] = zrow
        xpad_ref[1:H + 1, :, :] = x_ref[0]

    # Per (image, h-tile): build the im2col patch once; reused by every Cout tile and
    # by every fused branch (conv1 + downsample conv3 share it).
    @pl.when(cb == 0)
    def _build_patch():
        rows = (TH - 1) * stride + 3
        row0 = pl.multiple_of(hb * (TH * stride), TH * stride)
        xw = xpad_ref[pl.ds(row0, rows), :, :].astype(jnp.float32)   # (rows, Wp, Cin)
        taps = []
        for kh in range(3):
            for kw in range(3):
                taps.append(xw[kh:kh + (TH - 1) * stride + 1:stride,
                               kw:kw + (Wo - 1) * stride + 1:stride, :]
                            .astype(jnp.bfloat16))                   # (TH, Wo, Cin)
        patch_ref[...] = jnp.concatenate(taps, axis=-1)              # (TH, Wo, 9*Cin)

    patch = patch_ref[...]
    for i, (w_ref, s_ref, b_ref) in enumerate(wsb):
        acc = lax.dot_general(patch, w_ref[...],
                              dimension_numbers=(((2,), (0,)), ((), ())),
                              preferred_element_type=jnp.float32)    # (TH, Wo, TC)
        y = acc * s_ref[0] + b_ref[0]                                # f32 BN epilogue
        if i == 0 and has_residual:
            r = res_ref[0].astype(jnp.float32)                       # (TH, Wo, Cres)
            cres = r.shape[-1]
            if cres < TC:    # unpadded residual: zero-extend the lane padding here
                r = jnp.concatenate(
                    [r, jnp.zeros((TH, Wo, TC - cres), jnp.float32)], axis=-1)
            y = y + r
        if relus[i]:
            y = jnp.maximum(y, 0.0)
        out_refs[i][0] = y.astype(out_refs[i].dtype)


# ----------------------------- wrapper ---------------------------------------
def conv3x3_bn(x_nhwc, branches, *, stride, relus, residual=None, out_dtypes):
    """3x3 convs (padding=1, shared stride) that read one input, each fused with a
    folded BN affine, an optional residual add (branch 0) and an optional ReLU.

    branches: sequence of (w2d, scale, bias) with
        w2d (9*Cin, Cout_pad) bf16,  scale / bias (1, Cout_pad) f32.
    Returns a tuple of NHWC outputs, one per branch, each (N, Ho, Wo, Cout_pad).
    """
    N, H, W, Cin = x_nhwc.shape
    Cout_p = branches[0][0].shape[-1]
    nb = len(branches)
    for (w2d, sc, bi) in branches:
        assert w2d.shape == (9 * Cin, Cout_p)
        assert sc.shape == (1, Cout_p) and bi.shape == (1, Cout_p)

    Ho = (H - 1) // stride + 1
    Wo = (W - 1) // stride + 1

    # MXU-filling tiles (2x256x256 MXUs on v6e/v7x): TC = 256 when it divides Cout_p,
    # and pick the output-row tile so M = TH*Wo >= 256 when possible.
    if Cout_p % 256 == 0:
        TC = 256
    elif Cout_p % _LANE == 0:
        TC = _LANE
    else:
        TC = Cout_p
    th_cap = min(Ho, max(8, -(-256 // max(Wo, 1))))
    TH = _pick_tile(Ho, th_cap)
    grid = (N, Ho // TH, Cout_p // TC)

    # Host-side 1-px halo along W only (2 extra columns, negligible traffic): keeps
    # every in-kernel scratch store a full aligned slab write; H halo added in-kernel.
    x_wp = jnp.pad(x_nhwc, ((0, 0), (0, 0), (1, 1), (0, 0)))
    Wp = W + 2

    in_specs = [pl.BlockSpec((1, H, Wp, Cin), lambda n, h, c: (n, 0, 0, 0))]
    args = [x_wp]
    for (w2d, sc, bi) in branches:
        in_specs += [pl.BlockSpec((9 * Cin, TC), lambda n, h, c: (0, c)),
                     pl.BlockSpec((1, TC), lambda n, h, c: (0, c)),
                     pl.BlockSpec((1, TC), lambda n, h, c: (0, c))]
        args += [w2d, sc, bi]

    has_res = residual is not None
    if has_res:
        Cres = residual.shape[-1]
        if Cres == Cout_p:                 # lane-padded residual: tile along channels
            in_specs.append(pl.BlockSpec((1, TH, Wo, TC), lambda n, h, c: (n, h, 0, c)))
        elif Cres <= TC:                   # unpadded residual: zero-extended in-kernel
            in_specs.append(pl.BlockSpec((1, TH, Wo, Cres), lambda n, h, c: (n, h, 0, 0)))
        else:                              # rare fallback: pad host-side
            residual = jnp.pad(residual, ((0, 0), (0, 0), (0, 0), (0, Cout_p - Cres)))
            in_specs.append(pl.BlockSpec((1, TH, Wo, TC), lambda n, h, c: (n, h, 0, c)))
        args.append(residual)

    out_specs = tuple(pl.BlockSpec((1, TH, Wo, TC), lambda n, h, c: (n, h, 0, c))
                      for _ in range(nb))
    out_shape = tuple(jax.ShapeDtypeStruct((N, Ho, Wo, Cout_p), dt) for dt in out_dtypes)

    scratch_shapes = [pltpu.VMEM((H + 2, Wp, Cin), jnp.bfloat16),      # H-padded image
                      pltpu.VMEM((TH, Wo, 9 * Cin), jnp.bfloat16)]     # im2col patch

    # VMEM budget: scratches + f32 tap/accumulator temporaries + double-buffered blocks.
    rows = (TH - 1) * stride + 3
    scratch_bytes = (_padded_bytes((H + 2, Wp, Cin), jnp.bfloat16)
                     + _padded_bytes((TH, Wo, 9 * Cin), jnp.bfloat16))
    temp_bytes = (_padded_bytes((rows, Wp, Cin), jnp.float32)
                  + 10 * _padded_bytes((TH, Wo, Cin), jnp.float32)
                  + (nb + 1) * _padded_bytes((TH, Wo, TC), jnp.float32))
    block_bytes = (_padded_bytes((1, H, Wp, Cin), x_wp.dtype)
                   + nb * (_padded_bytes((9 * Cin, TC), jnp.bfloat16)
                           + 2 * _padded_bytes((1, TC), jnp.float32))
                   + sum(_padded_bytes((1, TH, Wo, TC), dt) for dt in out_dtypes)
                   + (_padded_bytes((1, TH, Wo, TC), residual.dtype) if has_res else 0))
    est = scratch_bytes + temp_bytes + 2 * block_bytes
    vmem_limit = int(min(_vmem_cap_bytes(), max(32 * 2**20, 2 * est)))

    kernel = functools.partial(_conv_bn_kernel, stride=stride, relus=tuple(relus),
                               has_residual=has_res)
    return pl.pallas_call(
        kernel,
        out_shape=out_shape,
        grid_spec=pltpu.PrefetchScalarGridSpec(
            num_scalar_prefetch=0,
            grid=grid,
            in_specs=in_specs,
            out_specs=out_specs,
            scratch_shapes=scratch_shapes),
        compiler_params=pltpu.CompilerParams(
            # Batch axis is megacore-parallel; h/c stay "arbitrary" because they reuse
            # the per-image padded-input scratch and the per-h-tile im2col patch.
            dimension_semantics=("parallel", "arbitrary", "arbitrary"),
            vmem_limit_bytes=vmem_limit),
    )(*args)


def _prep_conv(w_hwio, conv_bias, bn_stats, cin_p, cout_p):
    """Fold conv bias + eval-mode BatchNorm into per-channel (scale, bias) and pad /
    flatten the weights to (9*cin_p, cout_p) bf16 (tap-major) for the in-kernel matmul."""
    gamma, beta, mean, var = bn_stats
    scale = gamma / jnp.sqrt(var + _EPS)
    bias = beta + (conv_bias - mean) * scale

    _, _, cin, cout = w_hwio.shape
    w = jnp.pad(w_hwio, ((0, 0), (0, 0), (0, cin_p - cin), (0, cout_p - cout)))
    w = w.reshape(9 * cin_p, cout_p).astype(jnp.bfloat16)
    scale = jnp.pad(scale, (0, cout_p - cout)).reshape(1, cout_p).astype(jnp.float32)
    bias = jnp.pad(bias, (0, cout_p - cout)).reshape(1, cout_p).astype(jnp.float32)
    return w, scale, bias


# ----------------------------- ResnetBlock -----------------------------------
def init_resnet_block_params(key, input_nc, output_nc):
    keys = jax.random.split(key, 12)

    def conv_w(k, cin, cout):
        bound = 1.0 / np.sqrt(cin * 9)
        return jax.random.uniform(k, (3, 3, cin, cout), jnp.float32, -bound, bound)

    def conv_b(k, cin, cout):
        bound = 1.0 / np.sqrt(cin * 9)
        return jax.random.uniform(k, (cout,), jnp.float32, -bound, bound)

    def bn_params(k, c):
        k1, k2, k3, k4 = jax.random.split(k, 4)
        gamma = 1.0 + 0.1 * jax.random.normal(k1, (c,), jnp.float32)
        beta = 0.1 * jax.random.normal(k2, (c,), jnp.float32)
        mean = 0.1 * jax.random.normal(k3, (c,), jnp.float32)
        var = 1.0 + 0.1 * jax.random.uniform(k4, (c,), jnp.float32)
        return gamma, beta, mean, var

    p = {}
    p["w1"], p["cb1"] = conv_w(keys[0], input_nc, output_nc), conv_b(keys[1], input_nc, output_nc)
    p["bn1"] = bn_params(keys[2], output_nc)
    p["w2"], p["cb2"] = conv_w(keys[3], output_nc, output_nc), conv_b(keys[4], output_nc, output_nc)
    p["bn2"] = bn_params(keys[5], output_nc)
    p["w3"], p["cb3"] = conv_w(keys[6], input_nc, output_nc), conv_b(keys[7], input_nc, output_nc)
    p["bn3"] = bn_params(keys[8], output_nc)
    return p


def resnet_block_forward(x_nchw, params, input_nc, output_nc, stride):
    down = (stride != 1) or (input_nc != output_nc)
    cout_p = _round_up(output_nc, _LANE)

    x = jnp.transpose(x_nchw, (0, 2, 3, 1)).astype(jnp.bfloat16)   # NCHW -> NHWC, bf16

    br1 = _prep_conv(params["w1"], params["cb1"], params["bn1"], input_nc, cout_p)
    br2 = _prep_conv(params["w2"], params["cb2"], params["bn2"], cout_p, cout_p)

    if down:
        br3 = _prep_conv(params["w3"], params["cb3"], params["bn3"], input_nc, cout_p)
        # conv1 and the downsample conv3 read the same input and share the cached
        # im2col patch: one pallas_call with two outputs (ReLU on branch 0 only).
        h, identity = conv3x3_bn(x, [br1, br3], stride=stride, relus=(True, False),
                                 out_dtypes=(jnp.bfloat16, jnp.bfloat16))
    else:
        (h,) = conv3x3_bn(x, [br1], stride=stride, relus=(True,),
                          out_dtypes=(jnp.bfloat16,))
        identity = x                      # unpadded; zero-extended inside the kernel

    (out,) = conv3x3_bn(h, [br2], stride=1, relus=(True,), residual=identity,
                        out_dtypes=(jnp.bfloat16,))

    out = out[:, :, :, :output_nc]                                  # drop lane padding
    return jnp.transpose(out, (0, 3, 1, 2)).astype(jnp.float32)     # NHWC -> NCHW, f32


# ----------------------------- pure-JAX reference ----------------------------
def _ref_forward(x_nchw, params, input_nc, output_nc, stride):
    down = (stride != 1) or (input_nc != output_nc)
    x = jnp.transpose(x_nchw, (0, 2, 3, 1)).astype(jnp.bfloat16)

    def conv(v, w, b, s):
        y = lax.conv_general_dilated(
            v.astype(jnp.bfloat16), w.astype(jnp.bfloat16), (s, s), ((1, 1), (1, 1)),
            dimension_numbers=("NHWC", "HWIO", "NHWC"),
            preferred_element_type=jnp.float32)
        return y + b

    def bn(v, stats):
        gamma, beta, mean, var = stats
        return gamma * (v - mean) / jnp.sqrt(var + _EPS) + beta

    h = jnp.maximum(bn(conv(x, params["w1"], params["cb1"], stride), params["bn1"]), 0.0)
    h = h.astype(jnp.bfloat16)
    if down:
        identity = bn(conv(x, params["w3"], params["cb3"], stride),
                      params["bn3"]).astype(jnp.bfloat16)
    else:
        identity = x
    out = bn(conv(h, params["w2"], params["cb2"], 1), params["bn2"]) \
        + identity.astype(jnp.float32)
    out = jnp.maximum(out, 0.0)
    return jnp.transpose(out, (0, 3, 1, 2))


# ----------------------------- main -------------------------------------------
if __name__ == "__main__":
    key = jax.random.PRNGKey(0)
    kx, kp = jax.random.split(key)

    N, Cin, Cout, H, W = 2, 4, 8, 16, 16
    stride = 1  # down=True because Cin != Cout (exercises the fused conv1+conv3 path)

    x = jax.random.normal(kx, (N, Cin, H, W), jnp.float32)  # NCHW, like PyTorch
    params = init_resnet_block_params(kp, Cin, Cout)

    fwd = jax.jit(lambda xx, pp: resnet_block_forward(xx, pp, Cin, Cout, stride))
    out = jax.block_until_ready(fwd(x, params))

    ref = jax.block_until_ready(_ref_forward(x, params, Cin, Cout, stride))
    # bf16 activations/weights/outputs with f32 accumulation -> bf16-aware tolerance.
    np.testing.assert_allclose(np.asarray(out, np.float32), np.asarray(ref, np.float32),
                               rtol=2e-2, atol=2e-2)

    print("KERNEL_OK")
</pallas_src>

<mosaic_0001>
module attributes {stable_mosaic.version = 11 : i64} {
  func.func @_conv_bn_kernel(%arg0: i32, %arg1: i32, %arg2: i32, %arg3: memref<1x16x18x4xbf16, #tpu.memory_space<vmem>>, %arg4: memref<36x128xbf16, #tpu.memory_space<vmem>>, %arg5: memref<1x128xf32, #tpu.memory_space<vmem>>, %arg6: memref<1x128xf32, #tpu.memory_space<vmem>>, %arg7: memref<36x128xbf16, #tpu.memory_space<vmem>>, %arg8: memref<1x128xf32, #tpu.memory_space<vmem>>, %arg9: memref<1x128xf32, #tpu.memory_space<vmem>>, %arg10: memref<1x16x16x128xbf16, #tpu.memory_space<vmem>>, %arg11: memref<1x16x16x128xbf16, #tpu.memory_space<vmem>>, %arg12: memref<18x18x4xbf16, #tpu.memory_space<vmem>>, %arg13: memref<16x16x36xbf16, #tpu.memory_space<vmem>>) attributes {dimension_semantics = [#tpu.dimension_semantics<parallel>, #tpu.dimension_semantics<arbitrary>, #tpu.dimension_semantics<arbitrary>], iteration_bounds = array<i64: 2, 1, 1>, scalar_prefetch = 0 : i64, scratch_operands = 2 : i64, tpu.core_type = #tpu.core_type<tc>, window_params = [{transform_indices = @transform_0, window_bounds = array<i64: 1, 16, 18, 4>}, {transform_indices = @transform_1, window_bounds = array<i64: 36, 128>}, {transform_indices = @transform_2, window_bounds = array<i64: 1, 128>}, {transform_indices = @transform_3, window_bounds = array<i64: 1, 128>}, {transform_indices = @transform_4, window_bounds = array<i64: 36, 128>}, {transform_indices = @transform_5, window_bounds = array<i64: 1, 128>}, {transform_indices = @transform_6, window_bounds = array<i64: 1, 128>}, {transform_indices = @transform_7, window_bounds = array<i64: 1, 16, 16, 128>}, {transform_indices = @transform_8, window_bounds = array<i64: 1, 16, 16, 128>}]} {
    %c0_i32 = arith.constant 0 : i32
    %0 = arith.cmpi eq, %arg1, %c0_i32 : i32
    %c0_i32_0 = arith.constant 0 : i32
    %1 = arith.cmpi eq, %arg2, %c0_i32_0 : i32
    %2 = arith.andi %0, %1 : i1
    %3 = arith.extui %2 : i1 to i32
    %c0_i32_1 = arith.constant 0 : i32
    %4 = arith.cmpi ne, %3, %c0_i32_1 : i32
    scf.if %4 {
      %cst_28 = arith.constant 0.000000e+00 : bf16
      %43 = vector.broadcast %cst_28 : bf16 to vector<1x18x4xbf16>
      %c0_29 = arith.constant 0 : index
      %c0_30 = arith.constant 0 : index
      %c0_31 = arith.constant 0 : index
      %44 = vector.load %arg12[%c0_29, %c0_30, %c0_31] : memref<18x18x4xbf16, #tpu.memory_space<vmem>>, vector<1x18x4xbf16>
      tpu.vector_store %arg12[%c0_29, %c0_30, %c0_31], %43 {strides = array<i32>} : memref<18x18x4xbf16, #tpu.memory_space<vmem>>, vector<1x18x4xbf16>,
      %c17 = arith.constant 17 : index
      %c0_32 = arith.constant 0 : index
      %c0_33 = arith.constant 0 : index
      %45 = vector.load %arg12[%c17, %c0_32, %c0_33] : memref<18x18x4xbf16, #tpu.memory_space<vmem>>, vector<1x18x4xbf16>
      tpu.vector_store %arg12[%c17, %c0_32, %c0_33], %43 {strides = array<i32>} : memref<18x18x4xbf16, #tpu.memory_space<vmem>>, vector<1x18x4xbf16>,
      %c0_34 = arith.constant 0 : index
      %c0_35 = arith.constant 0 : index
      %c0_36 = arith.constant 0 : index
      %c0_37 = arith.constant 0 : index
      %46 = vector.load %arg3[%c0_34, %c0_35, %c0_36, %c0_37] : memref<1x16x18x4xbf16, #tpu.memory_space<vmem>>, vector<1x16x18x4xbf16>
      %47 = vector.shape_cast %46 : vector<1x16x18x4xbf16> to vector<16x18x4xbf16>
      %c1 = arith.constant 1 : index
      %c0_38 = arith.constant 0 : index
      %c0_39 = arith.constant 0 : index
      %48 = vector.load %arg12[%c1, %c0_38, %c0_39] : memref<18x18x4xbf16, #tpu.memory_space<vmem>>, vector<16x18x4xbf16>
      tpu.vector_store %arg12[%c1, %c0_38, %c0_39], %47 {strides = array<i32>} : memref<18x18x4xbf16, #tpu.memory_space<vmem>>, vector<16x18x4xbf16>,
    } else {
    }
    %c0_i32_2 = arith.constant 0 : i32
    %5 = arith.cmpi eq, %arg2, %c0_i32_2 : i32
    %6 = arith.extui %5 : i1 to i32
    %c0_i32_3 = arith.constant 0 : i32
    %7 = arith.cmpi ne, %6, %c0_i32_3 : i32
    scf.if %7 {
      %c16_i32 = arith.constant 16 : i32
      %43 = arith.muli %arg1, %c16_i32 : i32
      %44 = tpu.assume_multiple %43, 16 : i32
      %45 = arith.index_cast %44 : i32 to index
      %c0_28 = arith.constant 0 : index
      %c0_29 = arith.constant 0 : index
      %46 = vector.load %arg12[%45, %c0_28, %c0_29] : memref<18x18x4xbf16, #tpu.memory_space<vmem>>, vector<18x18x4xbf16>
      %47 = arith.extf %46 : vector<18x18x4xbf16> to vector<18x18x4xf32>
      %48 = vector.extract_strided_slice %47 {offsets = [0, 0, 0], sizes = [16, 16, 4], strides = [1, 1, 1]} : vector<18x18x4xf32> to vector<16x16x4xf32>
      %49 = arith.truncf %48 : vector<16x16x4xf32> to vector<16x16x4xbf16>
      %50 = vector.extract_strided_slice %47 {offsets = [0, 1, 0], sizes = [16, 16, 4], strides = [1, 1, 1]} : vector<18x18x4xf32> to vector<16x16x4xf32>
      %51 = arith.truncf %50 : vector<16x16x4xf32> to vector<16x16x4xbf16>
      %52 = vector.extract_strided_slice %47 {offsets = [0, 2, 0], sizes = [16, 16, 4], strides = [1, 1, 1]} : vector<18x18x4xf32> to vector<16x16x4xf32>
      %53 = arith.truncf %52 : vector<16x16x4xf32> to vector<16x16x4xbf16>
      %54 = vector.extract_strided_slice %47 {offsets = [1, 0, 0], sizes = [16, 16, 4], strides = [1, 1, 1]} : vector<18x18x4xf32> to vector<16x16x4xf32>
      %55 = arith.truncf %54 : vector<16x16x4xf32> to vector<16x16x4xbf16>
      %56 = vector.extract_strided_slice %47 {offsets = [1, 1, 0], sizes = [16, 16, 4], strides = [1, 1, 1]} : vector<18x18x4xf32> to vector<16x16x4xf32>
      %57 = arith.truncf %56 : vector<16x16x4xf32> to vector<16x16x4xbf16>
      %58 = vector.extract_strided_slice %47 {offsets = [1, 2, 0], sizes = [16, 16, 4], strides = [1, 1, 1]} : vector<18x18x4xf32> to vector<16x16x4xf32>
      %59 = arith.truncf %58 : vector<16x16x4xf32> to vector<16x16x4xbf16>
      %60 = vector.extract_strided_slice %47 {offsets = [2, 0, 0], sizes = [16, 16, 4], strides = [1, 1, 1]} : vector<18x18x4xf32> to vector<16x16x4xf32>
      %61 = arith.truncf %60 : vector<16x16x4xf32> to vector<16x16x4xbf16>
      %62 = vector.extract_strided_slice %47 {offsets = [2, 1, 0], sizes = [16, 16, 4], strides = [1, 1, 1]} : vector<18x18x4xf32> to vector<16x16x4xf32>
      %63 = arith.truncf %62 : vector<16x16x4xf32> to vector<16x16x4xbf16>
      %64 = vector.extract_strided_slice %47 {offsets = [2, 2, 0], sizes = [16, 16, 4], strides = [1, 1, 1]} : vector<18x18x4xf32> to vector<16x16x4xf32>
      %65 = arith.truncf %64 : vector<16x16x4xf32> to vector<16x16x4xbf16>
      %66 = tpu.concatenate %49, %51, %53, %55, %57, %59, %61, %63, %65 in 2 : vector<16x16x4xbf16>, vector<16x16x4xbf16>, vector<16x16x4xbf16>, vector<16x16x4xbf16>, vector<16x16x4xbf16>, vector<16x16x4xbf16>, vector<16x16x4xbf16>, vector<16x16x4xbf16>, vector<16x16x4xbf16> -> vector<16x16x36xbf16>
      %c0_30 = arith.constant 0 : index
      %c0_31 = arith.constant 0 : index
      %c0_32 = arith.constant 0 : index
      %67 = vector.load %arg13[%c0_30, %c0_31, %c0_32] : memref<16x16x36xbf16, #tpu.memory_space<vmem>>, vector<16x16x36xbf16>
      tpu.vector_store %arg13[%c0_30, %c0_31, %c0_32], %66 {strides = array<i32>} : memref<16x16x36xbf16, #tpu.memory_space<vmem>>, vector<16x16x36xbf16>,
    } else {
    }
    %c0 = arith.constant 0 : index
    %c0_4 = arith.constant 0 : index
    %c0_5 = arith.constant 0 : index
    %8 = vector.load %arg13[%c0, %c0_4, %c0_5] : memref<16x16x36xbf16, #tpu.memory_space<vmem>>, vector<16x16x36xbf16>
    %c0_6 = arith.constant 0 : index
    %c0_7 = arith.constant 0 : index
    %9 = vector.load %arg4[%c0_6, %c0_7] : memref<36x128xbf16, #tpu.memory_space<vmem>>, vector<36x128xbf16>
    %cst = arith.constant dense<0.000000e+00> : vector<16x16x128xf32>
    %10 = tpu.matmul %8, %9, %cst {dimension_numbers = #tpu.dot_dimension_numbers<[2], [0], [0, 1], [1], [0, 0, 0, 1, 1, 1], [], []>} : vector<16x16x36xbf16>, vector<36x128xbf16>, vector<16x16x128xf32> -> vector<16x16x128xf32>
    %c0_8 = arith.constant 0 : index
    %c0_9 = arith.constant 0 : index
    %11 = vector.load %arg5[%c0_8, %c0_9] : memref<1x128xf32, #tpu.memory_space<vmem>>, vector<1x128xf32>
    %12 = vector.shape_cast %11 : vector<1x128xf32> to vector<128xf32>
    %13 = vector.shape_cast %12 : vector<128xf32> to vector<1x1x128xf32>
    %14 = vector.broadcast %13 : vector<1x1x128xf32> to vector<16x16x128xf32>
    %15 = arith.mulf %10, %14 : vector<16x16x128xf32>
    %c0_10 = arith.constant 0 : index
    %c0_11 = arith.constant 0 : index
    %16 = vector.load %arg6[%c0_10, %c0_11] : memref<1x128xf32, #tpu.memory_space<vmem>>, vector<1x128xf32>
    %17 = vector.shape_cast %16 : vector<1x128xf32> to vector<128xf32>
    %18 = vector.shape_cast %17 : vector<128xf32> to vector<1x1x128xf32>
    %19 = vector.broadcast %18 : vector<1x1x128xf32> to vector<16x16x128xf32>
    %20 = arith.addf %15, %19 : vector<16x16x128xf32>
    %cst_12 = arith.constant 0.000000e+00 : f32
    %21 = vector.broadcast %cst_12 : f32 to vector<16x16x128xf32>
    %22 = arith.maximumf %20, %21 : vector<16x16x128xf32>
    %23 = arith.truncf %22 : vector<16x16x128xf32> to vector<16x16x128xbf16>
    %c0_13 = arith.constant 0 : index
    %c0_14 = arith.constant 0 : index
    %c0_15 = arith.constant 0 : index
    %c0_16 = arith.constant 0 : index
    %24 = vector.load %arg10[%c0_13, %c0_14, %c0_15, %c0_16] : memref<1x16x16x128xbf16, #tpu.memory_space<vmem>>, vector<1x16x16x128xbf16>
    %25 = vector.shape_cast %24 : vector<1x16x16x128xbf16> to vector<16x16x128xbf16>
    %26 = vector.shape_cast %23 : vector<16x16x128xbf16> to vector<1x16x16x128xbf16>
    tpu.vector_store %arg10[%c0_13, %c0_14, %c0_15, %c0_16], %26 {strides = array<i32>} : memref<1x16x16x128xbf16, #tpu.memory_space<vmem>>, vector<1x16x16x128xbf16>,
    %c0_17 = arith.constant 0 : index
    %c0_18 = arith.constant 0 : index
    %27 = vector.load %arg7[%c0_17, %c0_18] : memref<36x128xbf16, #tpu.memory_space<vmem>>, vector<36x128xbf16>
    %cst_19 = arith.constant dense<0.000000e+00> : vector<16x16x128xf32>
    %28 = tpu.matmul %8, %27, %cst_19 {dimension_numbers = #tpu.dot_dimension_numbers<[2], [0], [0, 1], [1], [0, 0, 0, 1, 1, 1], [], []>} : vector<16x16x36xbf16>, vector<36x128xbf16>, vector<16x16x128xf32> -> vector<16x16x128xf32>
    %c0_20 = arith.constant 0 : index
    %c0_21 = arith.constant 0 : index
    %29 = vector.load %arg8[%c0_20, %c0_21] : memref<1x128xf32, #tpu.memory_space<vmem>>, vector<1x128xf32>
    %30 = vector.shape_cast %29 : vector<1x128xf32> to vector<128xf32>
    %31 = vector.shape_cast %30 : vector<128xf32> to vector<1x1x128xf32>
    %32 = vector.broadcast %31 : vector<1x1x128xf32> to vector<16x16x128xf32>
    %33 = arith.mulf %28, %32 : vector<16x16x128xf32>
    %c0_22 = arith.constant 0 : index
    %c0_23 = arith.constant 0 : index
    %34 = vector.load %arg9[%c0_22, %c0_23] : memref<1x128xf32, #tpu.memory_space<vmem>>, vector<1x128xf32>
    %35 = vector.shape_cast %34 : vector<1x128xf32> to vector<128xf32>
    %36 = vector.shape_cast %35 : vector<128xf32> to vector<1x1x128xf32>
    %37 = vector.broadcast %36 : vector<1x1x128xf32> to vector<16x16x128xf32>
    %38 = arith.addf %33, %37 : vector<16x16x128xf32>
    %39 = arith.truncf %38 : vector<16x16x128xf32> to vector<16x16x128xbf16>
    %c0_24 = arith.constant 0 : index
    %c0_25 = arith.constant 0 : index
    %c0_26 = arith.constant 0 : index
    %c0_27 = arith.constant 0 : index
    %40 = vector.load %arg11[%c0_24, %c0_25, %c0_26, %c0_27] : memref<1x16x16x128xbf16, #tpu.memory_space<vmem>>, vector<1x16x16x128xbf16>
    %41 = vector.shape_cast %40 : vector<1x16x16x128xbf16> to vector<16x16x128xbf16>
    %42 = vector.shape_cast %39 : vector<16x16x128xbf16> to vector<1x16x16x128xbf16>
    tpu.vector_store %arg11[%c0_24, %c0_25, %c0_26, %c0_27], %42 {strides = array<i32>} : memref<1x16x16x128xbf16, #tpu.memory_space<vmem>>, vector<1x16x16x128xbf16>,
    return
  }
  func.func @transform_0(%arg0: i32, %arg1: i32, %arg2: i32) -> (i32, i32, i32, i32) {
    %c0_i32 = arith.constant 0 : i32
    %c0_i32_0 = arith.constant 0 : i32
    %c0_i32_1 = arith.constant 0 : i32
    %c0_i32_2 = arith.constant 0 : i32
    return %arg0, %c0_i32, %c0_i32_0, %c0_i32_1 : i32, i32, i32, i32
  }
  func.func @transform_1(%arg0: i32, %arg1: i32, %arg2: i32) -> (i32, i32) {
    %c0_i32 = arith.constant 0 : i32
    %c0_i32_0 = arith.constant 0 : i32
    return %c0_i32, %arg2 : i32, i32
  }
  func.func @transform_2(%arg0: i32, %arg1: i32, %arg2: i32) -> (i32, i32) {
    %c0_i32 = arith.constant 0 : i32
    %c0_i32_0 = arith.constant 0 : i32
    return %c0_i32, %arg2 : i32, i32
  }
  func.func @transform_3(%arg0: i32, %arg1: i32, %arg2: i32) -> (i32, i32) {
    %c0_i32 = arith.constant 0 : i32
    %c0_i32_0 = arith.constant 0 : i32
    return %c0_i32, %arg2 : i32, i32
  }
  func.func @transform_4(%arg0: i32, %arg1: i32, %arg2: i32) -> (i32, i32) {
    %c0_i32 = arith.constant 0 : i32
    %c0_i32_0 = arith.constant 0 : i32
    return %c0_i32, %arg2 : i32, i32
  }
  func.func @transform_5(%arg0: i32, %arg1: i32, %arg2: i32) -> (i32, i32) {
    %c0_i32 = arith.constant 0 : i32
    %c0_i32_0 = arith.constant 0 : i32
    return %c0_i32, %arg2 : i32, i32
  }
  func.func @transform_6(%arg0: i32, %arg1: i32, %arg2: i32) -> (i32, i32) {
    %c0_i32 = arith.constant 0 : i32
    %c0_i32_0 = arith.constant 0 : i32
    return %c0_i32, %arg2 : i32, i32
  }
  func.func @transform_7(%arg0: i32, %arg1: i32, %arg2: i32) -> (i32, i32, i32, i32) {
    %c0_i32 = arith.constant 0 : i32
    %c0_i32_0 = arith.constant 0 : i32
    return %arg0, %arg1, %c0_i32, %arg2 : i32, i32, i32, i32
  }
  func.func @transform_8(%arg0: i32, %arg1: i32, %arg2: i32) -> (i32, i32, i32, i32) {
    %c0_i32 = arith.constant 0 : i32
    %c0_i32_0 = arith.constant 0 : i32
    return %arg0, %arg1, %c0_i32, %arg2 : i32, i32, i32, i32
  }
}

module attributes {stable_mosaic.version = 11 : i64} {
  func.func @_conv_bn_kernel(%arg0: i32, %arg1: i32, %arg2: i32, %arg3: memref<1x16x18x128xbf16, #tpu.memory_space<vmem>>, %arg4: memref<1152x128xbf16, #tpu.memory_space<vmem>>, %arg5: memref<1x128xf32, #tpu.memory_space<vmem>>, %arg6: memref<1x128xf32, #tpu.memory_space<vmem>>, %arg7: memref<1x16x16x128xbf16, #tpu.memory_space<vmem>>, %arg8: memref<1x16x16x128xbf16, #tpu.memory_space<vmem>>, %arg9: memref<18x18x128xbf16, #tpu.memory_space<vmem>>, %arg10: memref<16x16x1152xbf16, #tpu.memory_space<vmem>>) attributes {dimension_semantics = [#tpu.dimension_semantics<parallel>, #tpu.dimension_semantics<arbitrary>, #tpu.dimension_semantics<arbitrary>], iteration_bounds = array<i64: 2, 1, 1>, scalar_prefetch = 0 : i64, scratch_operands = 2 : i64, tpu.core_type = #tpu.core_type<tc>, window_params = [{transform_indices = @transform_0, window_bounds = array<i64: 1, 16, 18, 128>}, {transform_indices = @transform_1, window_bounds = array<i64: 1152, 128>}, {transform_indices = @transform_2, window_bounds = array<i64: 1, 128>}, {transform_indices = @transform_3, window_bounds = array<i64: 1, 128>}, {transform_indices = @transform_4, window_bounds = array<i64: 1, 16, 16, 128>}, {transform_indices = @transform_5, window_bounds = array<i64: 1, 16, 16, 128>}]} {
    %c0_i32 = arith.constant 0 : i32
    %0 = arith.cmpi eq, %arg1, %c0_i32 : i32
    %c0_i32_0 = arith.constant 0 : i32
    %1 = arith.cmpi eq, %arg2, %c0_i32_0 : i32
    %2 = arith.andi %0, %1 : i1
    %3 = arith.extui %2 : i1 to i32
    %c0_i32_1 = arith.constant 0 : i32
    %4 = arith.cmpi ne, %3, %c0_i32_1 : i32
    scf.if %4 {
      %cst_21 = arith.constant 0.000000e+00 : bf16
      %31 = vector.broadcast %cst_21 : bf16 to vector<1x18x128xbf16>
      %c0_22 = arith.constant 0 : index
      %c0_23 = arith.constant 0 : index
      %c0_24 = arith.constant 0 : index
      %32 = vector.load %arg9[%c0_22, %c0_23, %c0_24] : memref<18x18x128xbf16, #tpu.memory_space<vmem>>, vector<1x18x128xbf16>
      tpu.vector_store %arg9[%c0_22, %c0_23, %c0_24], %31 {strides = array<i32>} : memref<18x18x128xbf16, #tpu.memory_space<vmem>>, vector<1x18x128xbf16>,
      %c17 = arith.constant 17 : index
      %c0_25 = arith.constant 0 : index
      %c0_26 = arith.constant 0 : index
      %33 = vector.load %arg9[%c17, %c0_25, %c0_26] : memref<18x18x128xbf16, #tpu.memory_space<vmem>>, vector<1x18x128xbf16>
      tpu.vector_store %arg9[%c17, %c0_25, %c0_26], %31 {strides = array<i32>} : memref<18x18x128xbf16, #tpu.memory_space<vmem>>, vector<1x18x128xbf16>,
      %c0_27 = arith.constant 0 : index
      %c0_28 = arith.constant 0 : index
      %c0_29 = arith.constant 0 : index
      %c0_30 = arith.constant 0 : index
      %34 = vector.load %arg3[%c0_27, %c0_28, %c0_29, %c0_30] : memref<1x16x18x128xbf16, #tpu.memory_space<vmem>>, vector<1x16x18x128xbf16>
      %35 = vector.shape_cast %34 : vector<1x16x18x128xbf16> to vector<16x18x128xbf16>
      %c1 = arith.constant 1 : index
      %c0_31 = arith.constant 0 : index
      %c0_32 = arith.constant 0 : index
      %36 = vector.load %arg9[%c1, %c0_31, %c0_32] : memref<18x18x128xbf16, #tpu.memory_space<vmem>>, vector<16x18x128xbf16>
      tpu.vector_store %arg9[%c1, %c0_31, %c0_32], %35 {strides = array<i32>} : memref<18x18x128xbf16, #tpu.memory_space<vmem>>, vector<16x18x128xbf16>,
    } else {
    }
    %c0_i32_2 = arith.constant 0 : i32
    %5 = arith.cmpi eq, %arg2, %c0_i32_2 : i32
    %6 = arith.extui %5 : i1 to i32
    %c0_i32_3 = arith.constant 0 : i32
    %7 = arith.cmpi ne, %6, %c0_i32_3 : i32
    scf.if %7 {
      %c16_i32 = arith.constant 16 : i32
      %31 = arith.muli %arg1, %c16_i32 : i32
      %32 = tpu.assume_multiple %31, 16 : i32
      %33 = arith.index_cast %32 : i32 to index
      %c0_21 = arith.constant 0 : index
      %c0_22 = arith.constant 0 : index
      %34 = vector.load %arg9[%33, %c0_21, %c0_22] : memref<18x18x128xbf16, #tpu.memory_space<vmem>>, vector<18x18x128xbf16>
      %35 = arith.extf %34 : vector<18x18x128xbf16> to vector<18x18x128xf32>
      %36 = vector.extract_strided_slice %35 {offsets = [0, 0, 0], sizes = [16, 16, 128], strides = [1, 1, 1]} : vector<18x18x128xf32> to vector<16x16x128xf32>
      %37 = arith.truncf %36 : vector<16x16x128xf32> to vector<16x16x128xbf16>
      %38 = vector.extract_strided_slice %35 {offsets = [0, 1, 0], sizes = [16, 16, 128], strides = [1, 1, 1]} : vector<18x18x128xf32> to vector<16x16x128xf32>
      %39 = arith.truncf %38 : vector<16x16x128xf32> to vector<16x16x128xbf16>
      %40 = vector.extract_strided_slice %35 {offsets = [0, 2, 0], sizes = [16, 16, 128], strides = [1, 1, 1]} : vector<18x18x128xf32> to vector<16x16x128xf32>
      %41 = arith.truncf %40 : vector<16x16x128xf32> to vector<16x16x128xbf16>
      %42 = vector.extract_strided_slice %35 {offsets = [1, 0, 0], sizes = [16, 16, 128], strides = [1, 1, 1]} : vector<18x18x128xf32> to vector<16x16x128xf32>
      %43 = arith.truncf %42 : vector<16x16x128xf32> to vector<16x16x128xbf16>
      %44 = vector.extract_strided_slice %35 {offsets = [1, 1, 0], sizes = [16, 16, 128], strides = [1, 1, 1]} : vector<18x18x128xf32> to vector<16x16x128xf32>
      %45 = arith.truncf %44 : vector<16x16x128xf32> to vector<16x16x128xbf16>
      %46 = vector.extract_strided_slice %35 {offsets = [1, 2, 0], sizes = [16, 16, 128], strides = [1, 1, 1]} : vector<18x18x128xf32> to vector<16x16x128xf32>
      %47 = arith.truncf %46 : vector<16x16x128xf32> to vector<16x16x128xbf16>
      %48 = vector.extract_strided_slice %35 {offsets = [2, 0, 0], sizes = [16, 16, 128], strides = [1, 1, 1]} : vector<18x18x128xf32> to vector<16x16x128xf32>
      %49 = arith.truncf %48 : vector<16x16x128xf32> to vector<16x16x128xbf16>
      %50 = vector.extract_strided_slice %35 {offsets = [2, 1, 0], sizes = [16, 16, 128], strides = [1, 1, 1]} : vector<18x18x128xf32> to vector<16x16x128xf32>
      %51 = arith.truncf %50 : vector<16x16x128xf32> to vector<16x16x128xbf16>
      %52 = vector.extract_strided_slice %35 {offsets = [2, 2, 0], sizes = [16, 16, 128], strides = [1, 1, 1]} : vector<18x18x128xf32> to vector<16x16x128xf32>
      %53 = arith.truncf %52 : vector<16x16x128xf32> to vector<16x16x128xbf16>
      %54 = tpu.concatenate %37, %39, %41, %43, %45, %47, %49, %51, %53 in 2 : vector<16x16x128xbf16>, vector<16x16x128xbf16>, vector<16x16x128xbf16>, vector<16x16x128xbf16>, vector<16x16x128xbf16>, vector<16x16x128xbf16>, vector<16x16x128xbf16>, vector<16x16x128xbf16>, vector<16x16x128xbf16> -> vector<16x16x1152xbf16>
      %c0_23 = arith.constant 0 : index
      %c0_24 = arith.constant 0 : index
      %c0_25 = arith.constant 0 : index
      %55 = vector.load %arg10[%c0_23, %c0_24, %c0_25] : memref<16x16x1152xbf16, #tpu.memory_space<vmem>>, vector<16x16x1152xbf16>
      tpu.vector_store %arg10[%c0_23, %c0_24, %c0_25], %54 {strides = array<i32>} : memref<16x16x1152xbf16, #tpu.memory_space<vmem>>, vector<16x16x1152xbf16>,
    } else {
    }
    %c0 = arith.constant 0 : index
    %c0_4 = arith.constant 0 : index
    %c0_5 = arith.constant 0 : index
    %8 = vector.load %arg10[%c0, %c0_4, %c0_5] : memref<16x16x1152xbf16, #tpu.memory_space<vmem>>, vector<16x16x1152xbf16>
    %c0_6 = arith.constant 0 : index
    %c0_7 = arith.constant 0 : index
    %9 = vector.load %arg4[%c0_6, %c0_7] : memref<1152x128xbf16, #tpu.memory_space<vmem>>, vector<1152x128xbf16>
    %cst = arith.constant dense<0.000000e+00> : vector<16x16x128xf32>
    %10 = tpu.matmul %8, %9, %cst {dimension_numbers = #tpu.dot_dimension_numbers<[2], [0], [0, 1], [1], [0, 0, 0, 1, 1, 1], [], []>} : vector<16x16x1152xbf16>, vector<1152x128xbf16>, vector<16x16x128xf32> -> vector<16x16x128xf32>
    %c0_8 = arith.constant 0 : index
    %c0_9 = arith.constant 0 : index
    %11 = vector.load %arg5[%c0_8, %c0_9] : memref<1x128xf32, #tpu.memory_space<vmem>>, vector<1x128xf32>
    %12 = vector.shape_cast %11 : vector<1x128xf32> to vector<128xf32>
    %13 = vector.shape_cast %12 : vector<128xf32> to vector<1x1x128xf32>
    %14 = vector.broadcast %13 : vector<1x1x128xf32> to vector<16x16x128xf32>
    %15 = arith.mulf %10, %14 : vector<16x16x128xf32>
    %c0_10 = arith.constant 0 : index
    %c0_11 = arith.constant 0 : index
    %16 = vector.load %arg6[%c0_10, %c0_11] : memref<1x128xf32, #tpu.memory_space<vmem>>, vector<1x128xf32>
    %17 = vector.shape_cast %16 : vector<1x128xf32> to vector<128xf32>
    %18 = vector.shape_cast %17 : vector<128xf32> to vector<1x1x128xf32>
    %19 = vector.broadcast %18 : vector<1x1x128xf32> to vector<16x16x128xf32>
    %20 = arith.addf %15, %19 : vector<16x16x128xf32>
    %c0_12 = arith.constant 0 : index
    %c0_13 = arith.constant 0 : index
    %c0_14 = arith.constant 0 : index
    %c0_15 = arith.constant 0 : index
    %21 = vector.load %arg7[%c0_12, %c0_13, %c0_14, %c0_15] : memref<1x16x16x128xbf16, #tpu.memory_space<vmem>>, vector<1x16x16x128xbf16>
    %22 = vector.shape_cast %21 : vector<1x16x16x128xbf16> to vector<16x16x128xbf16>
    %23 = arith.extf %22 : vector<16x16x128xbf16> to vector<16x16x128xf32>
    %24 = arith.addf %20, %23 : vector<16x16x128xf32>
    %cst_16 = arith.constant 0.000000e+00 : f32
    %25 = vector.broadcast %cst_16 : f32 to vector<16x16x128xf32>
    %26 = arith.maximumf %24, %25 : vector<16x16x128xf32>
    %27 = arith.truncf %26 : vector<16x16x128xf32> to vector<16x16x128xbf16>
    %c0_17 = arith.constant 0 : index
    %c0_18 = arith.constant 0 : index
    %c0_19 = arith.constant 0 : index
    %c0_20 = arith.constant 0 : index
    %28 = vector.load %arg8[%c0_17, %c0_18, %c0_19, %c0_20] : memref<1x16x16x128xbf16, #tpu.memory_space<vmem>>, vector<1x16x16x128xbf16>
    %29 = vector.shape_cast %28 : vector<1x16x16x128xbf16> to vector<16x16x128xbf16>
    %30 = vector.shape_cast %27 : vector<16x16x128xbf16> to vector<1x16x16x128xbf16>
    tpu.vector_store %arg8[%c0_17, %c0_18, %c0_19, %c0_20], %30 {strides = array<i32>} : memref<1x16x16x128xbf16, #tpu.memory_space<vmem>>, vector<1x16x16x128xbf16>,
    return
  }
  func.func @transform_0(%arg0: i32, %arg1: i32, %arg2: i32) -> (i32, i32, i32, i32) {
    %c0_i32 = arith.constant 0 : i32
    %c0_i32_0 = arith.constant 0 : i32
    %c0_i32_1 = arith.constant 0 : i32
    %c0_i32_2 = arith.constant 0 : i32
    return %arg0, %c0_i32, %c0_i32_0, %c0_i32_1 : i32, i32, i32, i32
  }
  func.func @transform_1(%arg0: i32, %arg1: i32, %arg2: i32) -> (i32, i32) {
    %c0_i32 = arith.constant 0 : i32
    %c0_i32_0 = arith.constant 0 : i32
    return %c0_i32, %arg2 : i32, i32
  }
  func.func @transform_2(%arg0: i32, %arg1: i32, %arg2: i32) -> (i32, i32) {
    %c0_i32 = arith.constant 0 : i32
    %c0_i32_0 = arith.constant 0 : i32
    return %c0_i32, %arg2 : i32, i32
  }
  func.func @transform_3(%arg0: i32, %arg1: i32, %arg2: i32) -> (i32, i32) {
    %c0_i32 = arith.constant 0 : i32
    %c0_i32_0 = arith.constant 0 : i32
    return %c0_i32, %arg2 : i32, i32
  }
  func.func @transform_4(%arg0: i32, %arg1: i32, %arg2: i32) -> (i32, i32, i32, i32) {
    %c0_i32 = arith.constant 0 : i32
    %c0_i32_0 = arith.constant 0 : i32
    return %arg0, %arg1, %c0_i32, %arg2 : i32, i32, i32, i32
  }
  func.func @transform_5(%arg0: i32, %arg1: i32, %arg2: i32) -> (i32, i32, i32, i32) {
    %c0_i32 = arith.constant 0 : i32
    %c0_i32_0 = arith.constant 0 : i32
    return %arg0, %arg1, %c0_i32, %arg2 : i32, i32, i32, i32
  }
}

</mosaic_0001>

<bundles_post_ra>
// kernel: _lambda_.2
= control target key start
LH: loop header
LB: loop body
LE: loop exit
PB: predicated region body
PF: predicated region fallthrough
CT: control target
= control target key end

     0   :  { %s3277_s27 = smov 0   ;;  %s3279_s28 = smov 0   ;;  %s4424_s0 = inlined_call_operand.vmem [shape: bf16[2,16,18,4], index: 0, kind: input, shape index: {}]   ;;  %s4425_s1 = inlined_call_operand.vmem [shape: bf16[36,128], index: 1, kind: input, shape index: {}]   ;;  %s4426_s2 = inlined_call_operand.vmem [shape: f32[1,128], index: 2, kind: input, shape index: {}]   ;;  %s4427_s3 = inlined_call_operand.vmem [shape: f32[1,128], index: 3, kind: input, shape index: {}]   ;;  %s4428_s4 = inlined_call_operand.vmem [shape: bf16[36,128], index: 4, kind: input, shape index: {}]   ;;  %s4429_s5 = inlined_call_operand.vmem [shape: f32[1,128], index: 5, kind: input, shape index: {}]   ;;  %s4430_s6 = inlined_call_operand.vmem [shape: f32[1,128], index: 6, kind: input, shape index: {}]   ;;  %s4431_s7 = inlined_call_operand.vmem [shape: bf16[2,16,16,128], index: 7, kind: output, shape index: {0}]   ;;  %s4432_s8 = inlined_call_operand.vmem [shape: bf16[2,16,16,128], index: 8, kind: output, shape index: {1}]  }
   0x1   :  { %s3281_s29 = smov 0  }
   0x2 LB: > { %s38_s30 = sadd.s32 1, %s3217_s28  ;;  %p2779_p0 = scmp.ge.s32.totalorder %s3221_s29, 1  ;;  %s3221_s29 = sphi %s3281_s29, %s19_s29   ;;  %s3217_s28 = sphi %s3279_s28, %s4440_s28   ;;  %s3213_s27 = sphi %s3277_s27, %s4439_s27  }
   0x3   : > { %p40_p1 = scmp.ge.s32.totalorder %s38_s30, 2  ;;  %p342_p2 = scmp.lt.s32.totalorder %s3221_s29, 3 }
   0x5   : > { %s4442_s30 = smov (%p40_p1, %s38_s30), 0  ;;  %p343_p3 = pnand %p2779_p0, %p342_p2 }
   0x7   : > { %346 = sbr.rel (%p343_p3) target bundleno = 676 (0x2a4), region = 48 }
   0xc   : > { %vm477_vm0 = vcmask 27648   ;;  %vm480_vm1 = vcmask 24576   ;;  %v3223_v0 = vmov 0   ;;  %p417_p4 = scmp.lt.s32.totalorder %s3213_s27, 1  ;;  %vm880_vm2 = vsmask.f32 7424 }
   0xd   : > { %478 = vst.msk [vmem:[#allocation2] sm:$0xf] %vm477_vm0, %v3223_v0  ;;  %s3224_s13 = smov 4   ;;  %vm1105_vm3 = vcmask 1046528   ;;  %s3225_s14 = smov 8   ;;  %vm1457_vm4 = vcmask 64512  }
   0xe   : > { %479 = vst.msk [vmem:[#allocation2 + $0x4] sm:$0xf] %vm477_vm0, %v3223_v0  ;;  %s4444_s27 = smov (!%p417_p4, %s3213_s27), 1  ;;  %s3226_s15 = smov 12   ;;  %vm1424_vm5 = vcmask 31744   ;;  %vm2014_vm6 = vcmask 1041408  }
   0xf   : > { %481 = vst.msk [vmem:[#allocation2 + $0x8] sm:$0x1] %vm480_vm1, %v3223_v0  ;;  %s3161_s9 = smul.u32 192, %s4444_s27  ;;  %s3227_s16 = smov 24   ;;  %vm1490_vm7 = vcmask 97280   ;;  %vm1523_vm8 = vcmask 130048  }
  0x10   : > { %483 = vst.msk [vmem:[#allocation2 + $0xcc] sm:$0xf] %vm477_vm0, %v3223_v0  ;;  %s3228_s17 = smov 16   ;;  %s3229_s18 = smov 20   ;;  %vm1556_vm9 = vcmask 162816   ;;  %vm1589_vm10 = vcmask 195584  }
  0x11   : > { %484 = vst.msk [vmem:[#allocation2 + $0xd0] sm:$0xf] %vm477_vm0, %v3223_v0  ;;  %s3307_s12 = scalar_lea.vmem %s4424_s0, %s3161_s9  ;;  %s3230_s19 = smov 28   ;;  %vm1622_vm11 = vcmask 228352   ;;  %vm1655_vm12 = vcmask 261120   ;;  %vm1800_vm13 = vcmask 289792  }
  0x12   : > { %485 = vst.msk [vmem:[#allocation2 + $0xd4] sm:$0x1] %vm480_vm1, %v3223_v0  ;;  %v495_v1 = vld [vmem:[%s3307_s12 + $0x24] sm:$0xf]  ;;  %v496_v2 = vld [vmem:[%s3307_s12 + $0x28] sm:$0xf] }
  0x13   : > { %v497_v3 = vld [vmem:[%s3307_s12 + $0x2c] sm:$0x1]  ;;  %544 = vst.msk [vmem:[#allocation2 + $0x30] sm:$0xf] %vm477_vm0, %v495_v1  ;;  %v490_v9 = vld [vmem:[%s3307_s12 + $0x10] sm:$0xf] }
  0x14   : > { %v489_v5 = vld [vmem:[%s3307_s12 + $0xc] sm:$0xf]  ;;  %545 = vst.msk [vmem:[#allocation2 + $0x34] sm:$0xf] %vm477_vm0, %v496_v2  ;;  %v491_v11 = vld [vmem:[%s3307_s12 + $0x14] sm:$0x1] }
  0x15   : > { %v2922_v4 = vld [vmem:[#allocation2] sm:$0xff]   ;;  %546 = vst.msk [vmem:[#allocation2 + $0x38] sm:$0x1] %vm480_vm1, %v497_v3  ;;  %v488_v19 = vld [vmem:[%s3307_s12 + $0x8] sm:$0x1]  ;;  %s3231_s20 = smov 32  }
  0x16   : > { %v2923_v6 = vunpack.c.l.bf16 %v2922_v4  ;;  %v2924_v7 = vunpack.c.h.bf16 %v2922_v4  ;;  %v592_v8 = vld [vmem:[#allocation2 + $0x8] sm:$0x1]  ;;  %538 = vst.msk [vmem:[#allocation2 + $0x18] sm:$0xf] %vm477_vm0, %v489_v5  ;;  %v486_v14 = vld [vmem:[%s3307_s12] sm:$0xf] }
  0x17   : > { %v646_v10 = vunpack.c.l.bf16 %v592_v8  ;;  %539 = vst.msk [vmem:[#allocation2 + $0x1c] sm:$0xf] %vm477_vm0, %v490_v9  ;;  %v487_v16 = vld [vmem:[%s3307_s12 + $0x4] sm:$0xf]  ;;  %v498_v21 = vld [vmem:[%s3307_s12 + $0x30] sm:$0xf] }
  0x18   : > { %v698_v12 = vpack.c.bf16 %v2923_v6, %v2923_v6  ;;  %v699_v13 = vpack.c.bf16 %v2924_v7, %v2924_v7  ;;  %540 = vst.msk [vmem:[#allocation2 + $0x20] sm:$0x1] %vm480_vm1, %v491_v11  ;;  %v499_v22 = vld [vmem:[%s3307_s12 + $0x34] sm:$0xf]  ;;  %v500_v24 = vld [vmem:[%s3307_s12 + $0x38] sm:$0x1] }
  0x19   : > { %v730_v15 = vpack.c.bf16 %v646_v10, %v646_v10  ;;  %535 = vst.msk [vmem:[#allocation2 + $0xc] sm:$0xf] %vm477_vm0, %v486_v14  ;;  %v492_v25 = vld [vmem:[%s3307_s12 + $0x18] sm:$0xf]  ;;  %v493_v28 = vld [vmem:[%s3307_s12 + $0x1c] sm:$0xf] }
  0x1a   : > { %v784_v17 = vunpack.c.l.b16 %v698_v12  ;;  %v785_v18 = vunpack.c.l.b16 %v699_v13  ;;  %536 = vst.msk [vmem:[#allocation2 + $0x10] sm:$0xf] %vm477_vm0, %v487_v16  ;;  %v494_v36 = vld [vmem:[%s3307_s12 + $0x20] sm:$0x1]  ;;  %v501_v41 = vld [vmem:[%s3307_s12 + $0x3c] sm:$0xf] }
  0x1b   : > { %v848_v20 = vunpack.c.l.b16 %v730_v15  ;;  %v3118_v27 = vld [vmem:[#allocation2 + $0x30] sm:$0xff]   ;;  %537 = vst.msk [vmem:[#allocation2 + $0x14] sm:$0x1] %vm480_vm1, %v488_v19  ;;  %v502_v51 = vld [vmem:[%s3307_s12 + $0x40] sm:$0xf]  ;;  %vm1965_vm14 = vcmask 293888  }
  0x1c   : > { %v3327_v23 = vpack.c.b16 %v785_v18, %v784_v17  ;;  %v2931_v31 = vunpack.c.l.bf16 %v3118_v27  ;;  %v2932_v32 = vunpack.c.h.bf16 %v3118_v27  ;;  %v604_v33 = vld [vmem:[#allocation2 + $0x38] sm:$0x1]  ;;  %547 = vst.msk [vmem:[#allocation2 + $0x3c] sm:$0xf] %vm477_vm0, %v498_v21  ;;  %v503_v52 = vld [vmem:[%s3307_s12 + $0x44] sm:$0x1] }
  0x1d   : > { %v3332_v26 = vpack.c.b16 %v848_v20, %v848_v20  ;;  %v658_v35 = vunpack.c.l.bf16 %v604_v33  ;;  %548 = vst.msk [vmem:[#allocation2 + $0x40] sm:$0xf] %vm477_vm0, %v499_v22  ;;  %v507_v57 = vld [vmem:[%s3307_s12 + $0x54] sm:$0xf]  ;;  %v508_v63 = vld [vmem:[%s3307_s12 + $0x58] sm:$0xf] }
  0x1e   : > { %v882_v29 = vshrl.u32 %v3327_v23, 16  ;;  %v884_v30 = vshll.u32 %v3327_v23, 16  ;;  %v706_v38 = vpack.c.bf16 %v2931_v31, %v2931_v31  ;;  %v707_v39 = vpack.c.bf16 %v2932_v32, %v2932_v32  ;;  %v3117_v40 = vld [vmem:[#allocation2 + $0x18] sm:$0xff]   ;;  %549 = vst.msk [vmem:[#allocation2 + $0x44] sm:$0x1] %vm480_vm1, %v500_v24  ;;  %s2899_s23 = sshll.u32 %s4444_s27, 7 }
  0x1f   : > { %v889_v34 = vshll.u32 %v3332_v26, 16  ;;  %v734_v43 = vpack.c.bf16 %v658_v35, %v658_v35  ;;  %v2927_v44 = vunpack.c.l.bf16 %v3117_v40  ;;  %v2928_v45 = vunpack.c.h.bf16 %v3117_v40  ;;  %v598_v46 = vld [vmem:[#allocation2 + $0x20] sm:$0x1]  ;;  %541 = vst.msk [vmem:[#allocation2 + $0x24] sm:$0xf] %vm477_vm0, %v492_v25  ;;  %s4170_s27 = scalar_lea.vmem %s4432_s8, %s2899_s23  ;;  %s4180_s10 = scalar_lea.vmem %s4431_s7, %s2899_s23 }
  0x20   : > { %v886_v37 = vrot.slane %v884_v30, 1  ;;  %v792_v48 = vunpack.c.l.b16 %v706_v38  ;;  %v793_v49 = vunpack.c.l.b16 %v707_v39  ;;  %v652_v50 = vunpack.c.l.bf16 %v598_v46  ;;  %542 = vst.msk [vmem:[#allocation2 + $0x28] sm:$0xf] %vm477_vm0, %v493_v28  ;;  %v509_v4 = vld [vmem:[%s3307_s12 + $0x5c] sm:$0x1] }
  0x21   : > { %v891_v42 = vrot.slane %v889_v34, 1  ;;  %v852_v53 = vunpack.c.l.b16 %v734_v43  ;;  %v702_v54 = vpack.c.bf16 %v2927_v44, %v2927_v44  ;;  %v703_v55 = vpack.c.bf16 %v2928_v45, %v2928_v45  ;;  %v593_v56 = vld [vmem:[#allocation2 + $0xc] sm:$0xff]   ;;  %543 = vst.msk [vmem:[#allocation2 + $0x2c] sm:$0x1] %vm480_vm1, %v494_v36  ;;  %v504_v5 = vld [vmem:[%s3307_s12 + $0x48] sm:$0xf] }
  0x22   : > { %v887_v47 = vor.u32 %v886_v37, %v882_v29  ;;  %v3351_v59 = vpack.c.b16 %v793_v49, %v792_v48  ;;  %v732_v60 = vpack.c.bf16 %v652_v50, %v652_v50  ;;  %v595_v61 = vld [vmem:[#allocation2 + $0x14] sm:$0x1]  ;;  %v647_v62 = vunpack.c.l.bf16 %v593_v56  ;;  %550 = vst.msk [vmem:[#allocation2 + $0x48] sm:$0xf] %vm477_vm0, %v501_v41  ;;  %v505_v11 = vld [vmem:[%s3307_s12 + $0x4c] sm:$0xf] }
  0x23   : > { %v3356_v0 = vpack.c.b16 %v852_v53, %v852_v53  ;;  %v788_v1 = vunpack.c.l.b16 %v702_v54  ;;  %v789_v2 = vunpack.c.l.b16 %v703_v55  ;;  %v648_v3 = vunpack.c.h.bf16 %v593_v56  ;;  %551 = vst.msk [vmem:[#allocation2 + $0x4c] sm:$0xf] %vm477_vm0, %v502_v51  ;;  %v506_v16 = vld [vmem:[%s3307_s12 + $0x50] sm:$0x1]  ;;  %v510_v22 = vld [vmem:[%s3307_s12 + $0x60] sm:$0xf] }
  0x24   : > { %v892_v58 = vsel %vm880_vm2, %v887_v47, %v891_v42  ;;  %v930_v6 = vshrl.u32 %v3351_v59, 16  ;;  %v932_v7 = vshll.u32 %v3351_v59, 16  ;;  %v850_v8 = vunpack.c.l.b16 %v732_v60  ;;  %v605_v10 = vld [vmem:[#allocation2 + $0x3c] sm:$0xff]   ;;  %552 = vst.msk [vmem:[#allocation2 + $0x50] sm:$0x1] %vm480_vm1, %v503_v52 }
  0x25   : > { %1073 = vrot.lane.b32.xlu0 %v892_v58, %s3224_s13  ;;  %v649_v9 = vunpack.c.l.bf16 %v595_v61  ;;  %v937_v12 = vshll.u32 %v3356_v0, 16  ;;  %v3366_v13 = vpack.c.b16 %v789_v2, %v788_v1  ;;  %v700_v14 = vpack.c.bf16 %v647_v62, %v647_v62  ;;  %556 = vst.msk [vmem:[#allocation2 + $0x60] sm:$0xf] %vm477_vm0, %v507_v57  ;;  %v607_v20 = vld [vmem:[#allocation2 + $0x44] sm:$0x1] }
  0x26   : > { %v701_v15 = vpack.c.bf16 %v648_v3, %v648_v3  ;;  %v934_v17 = vrot.slane %v932_v7, 1  ;;  %v3370_v18 = vpack.c.b16 %v850_v8, %v850_v8  ;;  %v659_v21 = vunpack.c.l.bf16 %v605_v10  ;;  %557 = vst.msk [vmem:[#allocation2 + $0x64] sm:$0xf] %vm477_vm0, %v508_v63  ;;  %v511_v33 = vld [vmem:[%s3307_s12 + $0x64] sm:$0xf] }
  0x27   : > { %v731_v19 = vpack.c.bf16 %v649_v9, %v649_v9  ;;  %v939_v24 = vrot.slane %v937_v12, 1  ;;  %v906_v25 = vshrl.u32 %v3366_v13, 16  ;;  %v908_v27 = vshll.u32 %v3366_v13, 16  ;;  %558 = vst.msk [vmem:[#allocation2 + $0x68] sm:$0x1] %vm480_vm1, %v509_v4  ;;  %v599_v38 = vld [vmem:[#allocation2 + $0x24] sm:$0xff]  }
  0x28   : > { %v786_v28 = vunpack.c.l.b16 %v700_v14  ;;  %v935_v29 = vor.u32 %v934_v17, %v930_v6  ;;  %v913_v30 = vshll.u32 %v3370_v18, 16  ;;  %v787_v31 = vunpack.c.l.b16 %v701_v15  ;;  %553 = vst.msk [vmem:[#allocation2 + $0x54] sm:$0xf] %vm477_vm0, %v504_v5  ;;  %v512_v39 = vld [vmem:[%s3307_s12 + $0x68] sm:$0x1] }
  0x29   : > { %v849_v32 = vunpack.c.l.b16 %v731_v19  ;;  %v910_v34 = vrot.slane %v908_v27, 1  ;;  %v660_v35 = vunpack.c.h.bf16 %v605_v10  ;;  %v661_v36 = vunpack.c.l.bf16 %v607_v20  ;;  %554 = vst.msk [vmem:[#allocation2 + $0x58] sm:$0xf] %vm477_vm0, %v505_v11  ;;  %v601_v44 = vld [vmem:[#allocation2 + $0x2c] sm:$0x1] }
  0x2a   : > { %v708_v37 = vpack.c.bf16 %v659_v21, %v659_v21  ;;  %v3383_v40 = vsel %vm880_vm2, %v935_v29, %v939_v24  ;;  %v915_v41 = vrot.slane %v913_v30, 1  ;;  %v3385_v42 = vpack.c.b16 %v787_v31, %v786_v28  ;;  %555 = vst.msk [vmem:[#allocation2 + $0x5c] sm:$0x1] %vm480_vm1, %v506_v16  ;;  %v516_v49 = vld [vmem:[%s3307_s12 + $0x78] sm:$0xf]  ;;  %v3119_v55 = vld [vmem:[#allocation2 + $0x48] sm:$0xff]  }
  0x2b   : > { %v3387_v43 = vpack.c.b16 %v849_v32, %v849_v32  ;;  %1081 = vrot.lane.b32.xlu2 %v3383_v40, %s3224_s13  ;;  %v911_v45 = vor.u32 %v910_v34, %v906_v25  ;;  %v709_v46 = vpack.c.bf16 %v660_v35, %v660_v35  ;;  %v735_v47 = vpack.c.bf16 %v661_v36, %v661_v36  ;;  %v517_v50 = vld [vmem:[%s3307_s12 + $0x7c] sm:$0xf]  ;;  %v518_v61 = vld [vmem:[%s3307_s12 + $0x80] sm:$0x1]  ;;  %v610_v7 = vld [vmem:[#allocation2 + $0x50] sm:$0x1] }
  0x2c   : > { %v794_v48 = vunpack.c.l.b16 %v708_v37  ;;  %559 = vst.msk [vmem:[#allocation2 + $0x6c] sm:$0xf] %vm477_vm0, %v510_v22  ;;  %v894_v51 = vshrl.u32 %v3385_v42, 16  ;;  %v896_v52 = vshll.u32 %v3385_v42, 16  ;;  %v653_v54 = vunpack.c.l.bf16 %v599_v38  ;;  %v513_v8 = vld [vmem:[%s3307_s12 + $0x6c] sm:$0xf] }
  0x2d   : > { %v901_v53 = vshll.u32 %v3387_v43, 16  ;;  %560 = vst.msk [vmem:[#allocation2 + $0x70] sm:$0xf] %vm477_vm0, %v511_v33  ;;  %v3400_v56 = vsel %vm880_vm2, %v911_v45, %v915_v41  ;;  %v795_v57 = vunpack.c.l.b16 %v709_v46  ;;  %v853_v58 = vunpack.c.l.b16 %v735_v47  ;;  %v514_v14 = vld [vmem:[%s3307_s12 + $0x70] sm:$0xf]  ;;  %v3120_v20 = vld [vmem:[#allocation2 + $0x60] sm:$0xff]  }
  0x2e   : > { %v654_v60 = vunpack.c.h.bf16 %v599_v38  ;;  %561 = vst.msk [vmem:[#allocation2 + $0x74] sm:$0x1] %vm480_vm1, %v512_v39  ;;  %1077 = vrot.lane.b32.xlu1 %v3400_v56, %s3224_s13  ;;  %v898_v62 = vrot.slane %v896_v52, 1  ;;  %v655_v1 = vunpack.c.l.bf16 %v601_v44  ;;  %v704_v2 = vpack.c.bf16 %v653_v54, %v653_v54  ;;  %v515_v21 = vld [vmem:[%s3307_s12 + $0x74] sm:$0x1] }
  0x2f   : > { %v903_v63 = vrot.slane %v901_v53, 1  ;;  %565 = vst.msk [vmem:[#allocation2 + $0x84] sm:$0xf] %vm477_vm0, %v516_v49  ;;  %v3407_v3 = vpack.c.b16 %v795_v57, %v794_v48  ;;  %v3409_v4 = vpack.c.b16 %v853_v58, %v853_v58  ;;  %v2935_v6 = vunpack.c.l.bf16 %v3119_v55  ;;  %v616_v28 = vld [vmem:[#allocation2 + $0x68] sm:$0x1] }
  0x30   : > { %v705_v5 = vpack.c.bf16 %v654_v60, %v654_v60  ;;  %566 = vst.msk [vmem:[#allocation2 + $0x88] sm:$0xf] %vm477_vm0, %v517_v50  ;;  %v899_v9 = vor.u32 %v898_v62, %v894_v51  ;;  %v733_v10 = vpack.c.bf16 %v655_v1, %v655_v1  ;;  %v790_v11 = vunpack.c.l.b16 %v704_v2  ;;  %v519_v29 = vld [vmem:[%s3307_s12 + $0x84] sm:$0xf]  ;;  %v520_v34 = vld [vmem:[%s3307_s12 + $0x88] sm:$0xf] }
  0x31   : > { %v2936_v12 = vunpack.c.h.bf16 %v3119_v55  ;;  %567 = vst.msk [vmem:[#allocation2 + $0x8c] sm:$0x1] %vm480_vm1, %v518_v61  ;;  %v942_v15 = vshrl.u32 %v3407_v3, 16  ;;  %v944_v16 = vshll.u32 %v3407_v3, 16  ;;  %v949_v17 = vshll.u32 %v3409_v4, 16  ;;  %v611_v60 = vld [vmem:[#allocation2 + $0x54] sm:$0xff]  }
  0x32   : > { %v791_v19 = vunpack.c.l.b16 %v705_v5  ;;  %v3420_v22 = vsel %vm880_vm2, %v899_v9, %v903_v63  ;;  %v851_v24 = vunpack.c.l.b16 %v733_v10  ;;  %v664_v25 = vunpack.c.l.bf16 %v610_v7  ;;  %562 = vst.msk [vmem:[#allocation2 + $0x78] sm:$0xf] %vm477_vm0, %v513_v8  ;;  %v521_v39 = vld [vmem:[%s3307_s12 + $0x8c] sm:$0x1]  ;;  %v525_v47 = vld [vmem:[%s3307_s12 + $0x9c] sm:$0xf] }
  0x33   : > { %v710_v27 = vpack.c.bf16 %v2935_v6, %v2935_v6  ;;  %1075 = vrot.lane.b32.xlu0 %v3420_v22, %s3224_s13  ;;  %v946_v30 = vrot.slane %v944_v16, 1  ;;  %v951_v31 = vrot.slane %v949_v17, 1  ;;  %v711_v33 = vpack.c.bf16 %v2936_v12, %v2936_v12  ;;  %563 = vst.msk [vmem:[#allocation2 + $0x7c] sm:$0xf] %vm477_vm0, %v514_v14  ;;  %v613_v52 = vld [vmem:[#allocation2 + $0x5c] sm:$0x1] }
  0x34   : > { %v3426_v32 = vpack.c.b16 %v791_v19, %v790_v11  ;;  %v3430_v35 = vpack.c.b16 %v851_v24, %v851_v24  ;;  %v736_v36 = vpack.c.bf16 %v664_v25, %v664_v25  ;;  %v2939_v38 = vunpack.c.l.bf16 %v3120_v20  ;;  %564 = vst.msk [vmem:[#allocation2 + $0x80] sm:$0x1] %vm480_vm1, %v515_v21  ;;  %v526_v53 = vld [vmem:[%s3307_s12 + $0xa0] sm:$0xf]  ;;  %v527_v61 = vld [vmem:[%s3307_s12 + $0xa4] sm:$0x1] }
  0x35   : > { %v796_v37 = vunpack.c.l.b16 %v710_v27  ;;  %v947_v41 = vor.u32 %v946_v30, %v942_v15  ;;  %v797_v46 = vunpack.c.l.b16 %v711_v33  ;;  %568 = vst.msk [vmem:[#allocation2 + $0x90] sm:$0xf] %vm477_vm0, %v519_v29  ;;  %v2940_v50 = vunpack.c.h.bf16 %v3120_v20  ;;  %v522_v5 = vld [vmem:[%s3307_s12 + $0x90] sm:$0xf]  ;;  %v523_v10 = vld [vmem:[%s3307_s12 + $0x94] sm:$0xf] }
  0x36   : > { %v918_v44 = vshrl.u32 %v3426_v32, 16  ;;  %v920_v45 = vshll.u32 %v3426_v32, 16  ;;  %v925_v48 = vshll.u32 %v3430_v35, 16  ;;  %v854_v49 = vunpack.c.l.b16 %v736_v36  ;;  %569 = vst.msk [vmem:[#allocation2 + $0x94] sm:$0xf] %vm477_vm0, %v520_v34  ;;  %v617_v16 = vld [vmem:[#allocation2 + $0x6c] sm:$0xff]  }
  0x37   : > { %v670_v51 = vunpack.c.l.bf16 %v616_v28  ;;  %v3442_v54 = vsel %vm880_vm2, %v947_v41, %v951_v31  ;;  %v3444_v57 = vpack.c.b16 %v797_v46, %v796_v37  ;;  %v714_v58 = vpack.c.bf16 %v2939_v38, %v2939_v38  ;;  %570 = vst.msk [vmem:[#allocation2 + $0x98] sm:$0x1] %vm480_vm1, %v521_v39  ;;  %v524_v17 = vld [vmem:[%s3307_s12 + $0x98] sm:$0x1]  ;;  %v528_v30 = vld [vmem:[%s3307_s12 + $0xa8] sm:$0xf] }
  0x38   : > { %v922_v55 = vrot.slane %v920_v45, 1  ;;  %1083 = vrot.lane.b32.xlu2 %v3442_v54, %s3224_s13  ;;  %v927_v62 = vrot.slane %v925_v48, 1  ;;  %v3450_v63 = vpack.c.b16 %v854_v49, %v854_v49  ;;  %v715_v1 = vpack.c.bf16 %v2940_v50, %v2940_v50  ;;  %574 = vst.msk [vmem:[#allocation2 + $0xa8] sm:$0xf] %vm477_vm0, %v525_v47  ;;  %v619_v36 = vld [vmem:[#allocation2 + $0x74] sm:$0x1] }
  0x39   : > { %v738_v2 = vpack.c.bf16 %v670_v51, %v670_v51  ;;  %v954_v7 = vshrl.u32 %v3444_v57, 16  ;;  %v956_v8 = vshll.u32 %v3444_v57, 16  ;;  %v800_v9 = vunpack.c.l.b16 %v714_v58  ;;  %575 = vst.msk [vmem:[#allocation2 + $0xac] sm:$0xf] %vm477_vm0, %v526_v53  ;;  %v529_v38 = vld [vmem:[%s3307_s12 + $0xac] sm:$0xf] }
  0x3a   : > { %v923_v6 = vor.u32 %v922_v55, %v918_v44  ;;  %v961_v11 = vshll.u32 %v3450_v63, 16  ;;  %v801_v12 = vunpack.c.l.b16 %v715_v1  ;;  %v665_v15 = vunpack.c.l.bf16 %v611_v60  ;;  %576 = vst.msk [vmem:[#allocation2 + $0xb0] sm:$0x1] %vm480_vm1, %v527_v61  ;;  %v623_v46 = vld [vmem:[#allocation2 + $0x84] sm:$0xff]   ;;  %v530_v51 = vld [vmem:[%s3307_s12 + $0xb0] sm:$0x1] }
  0x3b   : > { %v856_v14 = vunpack.c.l.b16 %v738_v2  ;;  %v958_v20 = vrot.slane %v956_v8, 1  ;;  %v666_v21 = vunpack.c.h.bf16 %v611_v60  ;;  %v667_v24 = vunpack.c.l.bf16 %v613_v52  ;;  %571 = vst.msk [vmem:[#allocation2 + $0x9c] sm:$0xf] %vm477_vm0, %v522_v5  ;;  %v625_v1 = vld [vmem:[#allocation2 + $0x8c] sm:$0x1] }
  0x3c   : > { %v3462_v19 = vsel %vm880_vm2, %v923_v6, %v927_v62  ;;  %v963_v25 = vrot.slane %v961_v11, 1  ;;  %v3467_v27 = vpack.c.b16 %v801_v12, %v800_v9  ;;  %v712_v29 = vpack.c.bf16 %v665_v15, %v665_v15  ;;  %572 = vst.msk [vmem:[#allocation2 + $0xa0] sm:$0xf] %vm477_vm0, %v523_v10 }
  0x3d   : > { %1079 = vrot.lane.b32.xlu1 %v3462_v19, %s3224_s13  ;;  %v3469_v28 = vpack.c.b16 %v856_v14, %v856_v14  ;;  %v959_v31 = vor.u32 %v958_v20, %v954_v7  ;;  %v713_v33 = vpack.c.bf16 %v666_v21, %v666_v21  ;;  %v737_v34 = vpack.c.bf16 %v667_v24, %v667_v24  ;;  %v3121_v14 = vld [vmem:[#allocation2 + $0x78] sm:$0xff]  }
  0x3e   : > { %v671_v37 = vunpack.c.l.bf16 %v617_v16  ;;  %573 = vst.msk [vmem:[#allocation2 + $0xa4] sm:$0x1] %vm480_vm1, %v524_v17  ;;  %v978_v39 = vshrl.u32 %v3467_v27, 16  ;;  %v980_v41 = vshll.u32 %v3467_v27, 16  ;;  %v798_v45 = vunpack.c.l.b16 %v712_v29 }
  0x3f   : > { %v985_v44 = vshll.u32 %v3469_v28, 16  ;;  %v3479_v47 = vsel %vm880_vm2, %v959_v31, %v963_v25  ;;  %v799_v48 = vunpack.c.l.b16 %v713_v33  ;;  %v855_v49 = vunpack.c.l.b16 %v737_v34  ;;  %577 = vst.msk [vmem:[#allocation2 + $0xb4] sm:$0xf] %vm477_vm0, %v528_v30  ;;  %v622_v30 = vld [vmem:[#allocation2 + $0x80] sm:$0x1] }
  0x40   : > { %v672_v50 = vunpack.c.h.bf16 %v617_v16  ;;  %1085 = vrot.lane.b32.xlu0 %v3479_v47, %s3224_s13  ;;  %v982_v52 = vrot.slane %v980_v41, 1  ;;  %v673_v55 = vunpack.c.l.bf16 %v619_v36  ;;  %v716_v58 = vpack.c.bf16 %v671_v37, %v671_v37  ;;  %578 = vst.msk [vmem:[#allocation2 + $0xb8] sm:$0xf] %vm477_vm0, %v529_v38 }
  0x41   : > { %v987_v53 = vrot.slane %v985_v44, 1  ;;  %v3486_v60 = vpack.c.b16 %v799_v48, %v798_v45  ;;  %v3488_v61 = vpack.c.b16 %v855_v49, %v855_v49  ;;  %v677_v2 = vunpack.c.l.bf16 %v623_v46  ;;  %579 = vst.msk [vmem:[#allocation2 + $0xbc] sm:$0x1] %vm480_vm1, %v530_v51 }
  0x42   : > { %v717_v62 = vpack.c.bf16 %v672_v50, %v672_v50  ;;  %v983_v5 = vor.u32 %v982_v52, %v978_v39  ;;  %v739_v6 = vpack.c.bf16 %v673_v55, %v673_v55  ;;  %v802_v7 = vunpack.c.l.b16 %v716_v58 }
  0x43   : > { %v678_v8 = vunpack.c.h.bf16 %v623_v46  ;;  %v966_v9 = vshrl.u32 %v3486_v60, 16  ;;  %v968_v10 = vshll.u32 %v3486_v60, 16  ;;  %v973_v11 = vshll.u32 %v3488_v61, 16 }
  0x44   : > { %v803_v12 = vunpack.c.l.b16 %v717_v62  ;;  %v3495_v15 = vsel %vm880_vm2, %v983_v5, %v987_v53  ;;  %v857_v16 = vunpack.c.l.b16 %v739_v6  ;;  %v679_v17 = vunpack.c.l.bf16 %v625_v1  ;;  %v3122_v53 = vld [vmem:[#allocation2 + $0x90] sm:$0xff]  }
  0x45   : > { %v720_v20 = vpack.c.bf16 %v677_v2, %v677_v2  ;;  %1089 = vrot.lane.b32.xlu2 %v3495_v15, %s3224_s13  ;;  %v970_v21 = vrot.slane %v968_v10, 1  ;;  %v975_v24 = vrot.slane %v973_v11, 1  ;;  %v721_v29 = vpack.c.bf16 %v678_v8, %v678_v8  ;;  %v628_v2 = vld [vmem:[#allocation2 + $0x98] sm:$0x1] }
  0x46   : > { %v3499_v25 = vpack.c.b16 %v803_v12, %v802_v7  ;;  %v3501_v31 = vpack.c.b16 %v857_v16, %v857_v16  ;;  %v741_v33 = vpack.c.bf16 %v679_v17, %v679_v17  ;;  %v2943_v36 = vunpack.c.l.bf16 %v3121_v14 }
  0x47   : > { %v806_v34 = vunpack.c.l.b16 %v720_v20  ;;  %v971_v37 = vor.u32 %v970_v21, %v966_v9  ;;  %v807_v41 = vunpack.c.l.b16 %v721_v29  ;;  %v2944_v46 = vunpack.c.h.bf16 %v3121_v14  ;;  %v3123_v14 = vld [vmem:[#allocation2 + $0xa8] sm:$0xff]  }
  0x48   : > { %v990_v38 = vshrl.u32 %v3499_v25, 16  ;;  %v992_v39 = vshll.u32 %v3499_v25, 16  ;;  %v997_v44 = vshll.u32 %v3501_v31, 16  ;;  %v859_v45 = vunpack.c.l.b16 %v741_v33 }
  0x49   : > { %v676_v48 = vunpack.c.l.bf16 %v622_v30  ;;  %v3507_v49 = vsel %vm880_vm2, %v971_v37, %v975_v24  ;;  %v3509_v51 = vpack.c.b16 %v807_v41, %v806_v34  ;;  %v718_v52 = vpack.c.bf16 %v2943_v36, %v2943_v36 }
  0x4a   : > { %v994_v50 = vrot.slane %v992_v39, 1  ;;  %1087 = vrot.lane.b32.xlu1 %v3507_v49, %s3224_s13  ;;  %v999_v55 = vrot.slane %v997_v44, 1  ;;  %v3513_v58 = vpack.c.b16 %v859_v45, %v859_v45  ;;  %v719_v62 = vpack.c.bf16 %v2944_v46, %v2944_v46  ;;  %v634_v39 = vld [vmem:[#allocation2 + $0xb0] sm:$0x1] }
  0x4b   : > { %v740_v1 = vpack.c.bf16 %v676_v48, %v676_v48  ;;  %v1014_v6 = vshrl.u32 %v3509_v51, 16  ;;  %v1016_v7 = vshll.u32 %v3509_v51, 16  ;;  %v804_v8 = vunpack.c.l.b16 %v718_v52  ;;  %v629_v48 = vld [vmem:[#allocation2 + $0x9c] sm:$0xff]  }
  0x4c   : > { %v995_v5 = vor.u32 %v994_v50, %v990_v38  ;;  %v1021_v9 = vshll.u32 %v3513_v58, 16  ;;  %v805_v10 = vunpack.c.l.b16 %v719_v62  ;;  %v2947_v12 = vunpack.c.l.bf16 %v3122_v53 }
  0x4d   : > { %v858_v11 = vunpack.c.l.b16 %v740_v1  ;;  %v1018_v17 = vrot.slane %v1016_v7, 1  ;;  %v2948_v20 = vunpack.c.h.bf16 %v3122_v53  ;;  %v682_v21 = vunpack.c.l.bf16 %v628_v2 }
  0x4e   : > { %v3519_v16 = vsel %vm880_vm2, %v995_v5, %v999_v55  ;;  %v1023_v24 = vrot.slane %v1021_v9, 1  ;;  %v3523_v29 = vpack.c.b16 %v805_v10, %v804_v8  ;;  %v722_v33 = vpack.c.bf16 %v2947_v12, %v2947_v12  ;;  %v631_v9 = vld [vmem:[#allocation2 + $0xa4] sm:$0x1] }
  0x4f   : > { %1091 = vrot.lane.b32.xlu0 %v3519_v16, %s3224_s13  ;;  %v3525_v30 = vpack.c.b16 %v858_v11, %v858_v11  ;;  %v1019_v34 = vor.u32 %v1018_v17, %v1014_v6  ;;  %v723_v36 = vpack.c.bf16 %v2948_v20, %v2948_v20  ;;  %v742_v37 = vpack.c.bf16 %v682_v21, %v682_v21 }
  0x50   : > { %v2951_v38 = vunpack.c.l.bf16 %v3123_v14  ;;  %v1002_v41 = vshrl.u32 %v3523_v29, 16  ;;  %v1004_v44 = vshll.u32 %v3523_v29, 16  ;;  %v808_v46 = vunpack.c.l.b16 %v722_v33 }
  0x51   : > { %v1009_v45 = vshll.u32 %v3525_v30, 16  ;;  %v3531_v50 = vsel %vm880_vm2, %v1019_v34, %v1023_v24  ;;  %v809_v52 = vunpack.c.l.b16 %v723_v36  ;;  %v860_v53 = vunpack.c.l.b16 %v742_v37  ;;  %v635_v34 = vld [vmem:[#allocation2 + $0xb4] sm:$0xff]  }
  0x52   : > { %v2952_v55 = vunpack.c.h.bf16 %v3123_v14  ;;  %1095 = vrot.lane.b32.xlu2 %v3531_v50, %s3224_s13  ;;  %v1006_v62 = vrot.slane %v1004_v44, 1  ;;  %v688_v2 = vunpack.c.l.bf16 %v634_v39  ;;  %v726_v5 = vpack.c.bf16 %v2951_v38, %v2951_v38 }
  0x53   : > { %v1011_v1 = vrot.slane %v1009_v45, 1  ;;  %v3535_v6 = vpack.c.b16 %v809_v52, %v808_v46  ;;  %v3537_v7 = vpack.c.b16 %v860_v53, %v860_v53  ;;  %v683_v10 = vunpack.c.l.bf16 %v629_v48 }
  0x54   : > { %v727_v8 = vpack.c.bf16 %v2952_v55, %v2952_v55  ;;  %v1007_v11 = vor.u32 %v1006_v62, %v1002_v41  ;;  %v744_v12 = vpack.c.bf16 %v688_v2, %v688_v2  ;;  %v812_v17 = vunpack.c.l.b16 %v726_v5 }
  0x55   : > { %v684_v20 = vunpack.c.h.bf16 %v629_v48  ;;  %v1026_v14 = vshrl.u32 %v3535_v6, 16  ;;  %v1028_v21 = vshll.u32 %v3535_v6, 16  ;;  %v1033_v24 = vshll.u32 %v3537_v7, 16  ;;  %v637_v48 = vld [vmem:[#allocation2 + $0xbc] sm:$0x1] }
  0x56   : > { %v813_v33 = vunpack.c.l.b16 %v727_v8  ;;  %v3543_v36 = vsel %vm880_vm2, %v1007_v11, %v1011_v1  ;;  %v862_v37 = vunpack.c.l.b16 %v744_v12  ;;  %v685_v38 = vunpack.c.l.bf16 %v631_v9 }
  0x57   : > { %v724_v39 = vpack.c.bf16 %v683_v10, %v683_v10  ;;  %1093 = vrot.lane.b32.xlu1 %v3543_v36, %s3224_s13  ;;  %v1030_v41 = vrot.slane %v1028_v21, 1  ;;  %v1035_v44 = vrot.slane %v1033_v24, 1  ;;  %v725_v46 = vpack.c.bf16 %v684_v20, %v684_v20 }
  0x58   : > { %v3547_v45 = vpack.c.b16 %v813_v33, %v812_v17  ;;  %v3549_v52 = vpack.c.b16 %v862_v37, %v862_v37  ;;  %v743_v53 = vpack.c.bf16 %v685_v38, %v685_v38  ;;  %v689_v62 = vunpack.c.l.bf16 %v635_v34 }
  0x59   : > { %v810_v55 = vunpack.c.l.b16 %v724_v39  ;;  %v1031_v2 = vor.u32 %v1030_v41, %v1026_v14  ;;  %v811_v8 = vunpack.c.l.b16 %v725_v46  ;;  %v690_v11 = vunpack.c.h.bf16 %v635_v34 }
  0x5a   : > { %v1050_v1 = vshrl.u32 %v3547_v45, 16  ;;  %v1052_v5 = vshll.u32 %v3547_v45, 16  ;;  %v1057_v9 = vshll.u32 %v3549_v52, 16  ;;  %v861_v10 = vunpack.c.l.b16 %v743_v53 }
  0x5b   : > { %v691_v12 = vunpack.c.l.bf16 %v637_v48  ;;  %v3555_v17 = vsel %vm880_vm2, %v1031_v2, %v1035_v44  ;;  %v3557_v21 = vpack.c.b16 %v811_v8, %v810_v55  ;;  %v728_v24 = vpack.c.bf16 %v689_v62, %v689_v62 }
  0x5c   : > { %v1054_v20 = vrot.slane %v1052_v5, 1  ;;  %1097 = vrot.lane.b32.xlu0 %v3555_v17, %s3224_s13  ;;  %v1059_v14 = vrot.slane %v1057_v9, 1  ;;  %v3561_v33 = vpack.c.b16 %v861_v10, %v861_v10  ;;  %v729_v37 = vpack.c.bf16 %v690_v11, %v690_v11 }
  0x5d   : > { %v745_v38 = vpack.c.bf16 %v691_v12, %v691_v12  ;;  %v1038_v41 = vshrl.u32 %v3557_v21, 16  ;;  %v1040_v34 = vshll.u32 %v3557_v21, 16  ;;  %v814_v46 = vunpack.c.l.b16 %v728_v24 }
  0x5e   : > { %v1055_v39 = vor.u32 %v1054_v20, %v1050_v1  ;;  %v1045_v44 = vshll.u32 %v3561_v33, 16  ;;  %v815_v48 = vunpack.c.l.b16 %v729_v37  ;;  %v1109_v9 = vrot.slane %v3385_v42, 1 }
  0x5f   : > { %v863_v53 = vunpack.c.l.b16 %v745_v38  ;;  %v1042_v62 = vrot.slane %v1040_v34, 1  ;;  %v1110_v10 = vrot.slane %v3387_v43, 1  ;;  %v1106_v38 = vrot.slane %v3327_v23, 1 }
  0x60   : > { %v3567_v55 = vsel %vm880_vm2, %v1055_v39, %v1059_v14  ;;  %v1047_v2 = vrot.slane %v1045_v44, 1  ;;  %v3571_v5 = vpack.c.b16 %v815_v48, %v814_v46  ;;  %v1107_v39 = vrot.slane %v3332_v26, 1 }
  0x61   : > { %1101 = vrot.lane.b32.xlu2 %v3567_v55, %s3224_s13  ;;  %v3573_v1 = vpack.c.b16 %v863_v53, %v863_v53  ;;  %v1043_v8 = vor.u32 %v1042_v62, %v1038_v41  ;;  %v1111_v43 = vsel %vm1105_vm3, %v1109_v9, %v1110_v10  ;;  %v1118_v44 = vrot.slane %v3351_v59, 1 }
  0x62   : > { %v1062_v11 = vshrl.u32 %v3571_v5, 16  ;;  %v1064_v12 = vshll.u32 %v3571_v5, 16  ;;  %v1108_v46 = vsel %vm1105_vm3, %v1106_v38, %v1107_v39  ;;  %v1119_v48 = vrot.slane %v3356_v0, 1 }
  0x63   : > { %v1069_v20 = vshll.u32 %v3573_v1, 16  ;;  %v3581_v24 = vsel %vm880_vm2, %v1043_v8, %v1047_v2  ;;  %v1112_v26 = vrot.slane %v3366_v13, 1  ;;  %v1113_v53 = vrot.slane %v3370_v18, 1 }
  0x64   : > { %1099 = vrot.lane.b32.xlu1 %v3581_v24, %s3224_s13  ;;  %v1066_v14 = vrot.slane %v1064_v12, 1  ;;  %v1115_v62 = vrot.slane %v3426_v32, 1  ;;  %v1116_v2 = vrot.slane %v3430_v35, 1  ;;  %v3603_v8 = vsel %vm1105_vm3, %v1118_v44, %v1119_v48 }
  0x65   : > { %v1071_v37 = vrot.slane %v1069_v20, 1  ;;  %v1114_v9 = vsel %vm1105_vm3, %v1112_v26, %v1113_v53  ;;  %v1121_v18 = vrot.slane %v3407_v3, 1  ;;  %v1122_v10 = vrot.slane %v3409_v4, 1 }
  0x66   : > { %v1067_v41 = vor.u32 %v1066_v14, %v1062_v11  ;;  %v3610_v0 = vsel %vm1105_vm3, %v1115_v62, %v1116_v2  ;;  %v1130_v35 = vrot.slane %v3467_v27, 1  ;;  %v1131_v11 = vrot.slane %v3469_v28, 1 }
  0x67   : > { %v3619_v12 = vsel %vm1105_vm3, %v1121_v18, %v1122_v10  ;;  %v1133_v4 = vrot.slane %v3499_v25, 1  ;;  %v1134_v28 = vrot.slane %v3501_v31, 1  ;;  %v1137_v38 = vrot.slane %v3525_v30, 1 }
  0x68   : > { %v3589_v34 = vsel %vm880_vm2, %v1067_v41, %v1071_v37  ;;  %v3626_v20 = vsel %vm1105_vm3, %v1130_v35, %v1131_v11  ;;  %v1136_v37 = vrot.slane %v3523_v29, 1  ;;  %v1140_v41 = vrot.slane %v3513_v58, 1 }
  0x69   : > { %1156 = vrot.lane.b32.xlu2 %v1111_v43, %s3225_s14  ;;  %1103 = vrot.lane.b32.xlu0 %v3589_v34, %s3224_s13  ;;  %v3637_v14 = vsel %vm1105_vm3, %v1133_v4, %v1134_v28  ;;  %v1143_v35 = vrot.slane %v3537_v7, 1 }
  0x6a   : > { %v1138_v31 = vsel %vm1105_vm3, %v1136_v37, %v1137_v38 }
  0x6c   : > { %1154 = vrot.lane.b32.xlu1 %v1108_v46, %s3225_s14 }
  0x71   : > { %1162 = vrot.lane.b32.xlu2 %v3603_v8, %s3225_s14  ;;  %1158 = vrot.lane.b32.xlu0 %v1114_v9, %s3225_s14 }
  0x74   : > { %1160 = vrot.lane.b32.xlu1 %v3610_v0, %s3225_s14 }
  0x79   : > { %1207 = vrot.lane.b32.xlu2 %v3499_v25, %s3226_s15  ;;  %1164 = vrot.lane.b32.xlu0 %v3619_v12, %s3225_s14 }
  0x7c   : > { %1170 = vrot.lane.b32.xlu1 %v3626_v20, %s3225_s14 }
  0x81   : > { %1326 = vrot.lane.b32.xlu2 %v3523_v29, %s3227_s16  ;;  %1254 = vrot.lane.b32.xlu0 %v3519_v16, %s3228_s17 }
  0x84   : > { %1289 = vrot.lane.b32.xlu1 %v3637_v14, %s3229_s18 }
  0x85   : > { %v1082_v39 = vpop.permute.xlu2 %1081 }
  0x89   : > { %1191 = vrot.lane.b32.xlu2 %v3385_v42, %s3226_s15  ;;  %1373 = vrot.lane.b32.xlu0 %v3543_v36, %s3230_s19 }
  0x8c   : > { %1408 = vrot.lane.b32.xlu1 %v1138_v31, %s3231_s20 }
  0x91   : > { %1310 = vrot.lane.b32.xlu2 %v3366_v13, %s3227_s16  ;;  %1238 = vrot.lane.b32.xlu0 %v3420_v22, %s3228_s17  ;;  %v1139_v22 = vrot.slane %v3509_v51, 1 }
  0x92   : > { %v3659_v30 = vpop.permute.xlu2 %1083 }
  0x94   : > { %1273 = vrot.lane.b32.xlu1 %v1111_v43, %s3229_s18  ;;  %v3669_v43 = vsel %vm1105_vm3, %v1139_v22, %v1140_v41  ;;  %v1869_v41 = vld [vmem:[%s4425_s1 + $0x10] sm:$0x3] }
  0x97   : > { %v3677_v44 = vpop.permute.xlu0 %1073 }
  0x99   : > { %1172 = vrot.lane.b32.xlu2 %v3637_v14, %s3225_s14  ;;  %1357 = vrot.lane.b32.xlu0 %v3400_v56, %s3230_s19 }
  0x9c   : > { %1392 = vrot.lane.b32.xlu1 %v1114_v9, %s3231_s20 }
  0x9f   : > { %v3671_v46 = vpop.permute.xlu2 %1089 }
  0xa0   : > { %v1078_v58 = vpop.permute.xlu1 %1077 }
  0xa1   : > { %1291 = vrot.lane.b32.xlu2 %v1138_v31, %s3229_s18  ;;  %1209 = vrot.lane.b32.xlu0 %v3523_v29, %s3226_s15 }
  0xa4   : > { %1256 = vrot.lane.b32.xlu1 %v3543_v36, %s3228_s17 }
  0xa5   : > { %v1076_v48 = vpop.permute.xlu0 %1075 }
  0xa9   : > { %1410 = vrot.lane.b32.xlu2 %v3669_v43, %s3231_s20  ;;  %1328 = vrot.lane.b32.xlu0 %v3509_v51, %s3227_s16 }
  0xac   : > { %1375 = vrot.lane.b32.xlu1 %v3531_v50, %s3230_s19  ;;  %v3682_v36 = vpop.permute.xlu2 %1095 }
  0xaf   : > { %v1080_v26 = vpop.permute.xlu1 %1079 }
  0xb1   : > { %1275 = vrot.lane.b32.xlu2 %v1114_v9, %s3229_s18  ;;  %1193 = vrot.lane.b32.xlu0 %v3366_v13, %s3226_s15 }
  0xb2   : > { %v3696_v62 = vpop.permute.xlu0 %1085 }
  0xb3   : > { %4433 = vst [vmem:[#allocation4_spill] sm:$0xff] %v3696_v62 }
  0xb4   : > { %1240 = vrot.lane.b32.xlu1 %v3400_v56, %s3228_s17  ;;  %v1428_v56 = vsel %vm1424_vm5, %v3385_v42, %v1076_v48  ;;  %v1434_v42 = vsel %vm1424_vm5, %v3351_v59, %v1082_v39  ;;  %v1959_v48 = vunpack.c.l.b16 %v1869_v41  ;;  %v1432_v41 = vsel %vm1424_vm5, %v3426_v32, %v1080_v26 }
  0xb5   : > { %v1436_v26 = vsel %vm1424_vm5, %v3407_v3, %v3659_v30  ;;  %v1146_v30 = vrot.slane %v3561_v33, 1 }
  0xb9   : > { %1394 = vrot.lane.b32.xlu2 %v3610_v0, %s3231_s20  ;;  %1312 = vrot.lane.b32.xlu0 %v3426_v32, %s3227_s16 }
  0xbb   : > { %v3692_v53 = vpop.permute.xlu2 %1101 }
  0xbc   : > { %1359 = vrot.lane.b32.xlu1 %v3462_v19, %s3230_s19  ;;  %v3703_v2 = vpop.permute.xlu1 %1087 }
  0xbd   : > { %4434 = vst [vmem:[#allocation5_spill] sm:$0xff] %v3703_v2 }
  0xc1   : > { %1258 = vrot.lane.b32.xlu2 %v3531_v50, %s3228_s17  ;;  %1174 = vrot.lane.b32.xlu0 %v1138_v31, %s3225_s14  ;;  %v3710_v10 = vpop.permute.xlu0 %1091  ;;  %v1142_v50 = vrot.slane %v3535_v6, 1 }
  0xc3   : > { %v1157_v9 = vpop.permute.xlu2 %1156  ;;  %v3728_v37 = vsel %vm1105_vm3, %v1142_v50, %v1143_v35  ;;  %v1962_v35 = vpack.c.b16 %v1959_v48, %v1959_v48  ;;  %v2919_v48 = vld [vmem:[%s4428_s4] sm:$0xff] }
  0xc4   : > { %v3706_v18 = vsel %vm1457_vm4, %v1428_v56, %v1157_v9  ;;  %1211 = vrot.lane.b32.xlu1 %v3509_v51, %s3226_s15 }
  0xc9   : > { %1377 = vrot.lane.b32.xlu2 %v3555_v17, %s3230_s19  ;;  %1293 = vrot.lane.b32.xlu0 %v3669_v43, %s3229_s18  ;;  %v3725_v28 = vpop.permute.xlu1 %1093 }
  0xcb   : > { %v1163_v11 = vpop.permute.xlu2 %1162 }
  0xcc   : > { %v3721_v4 = vsel %vm1457_vm4, %v1434_v42, %v1163_v11  ;;  %1330 = vrot.lane.b32.xlu1 %v3535_v6, %s3227_s16  ;;  %v1430_v42 = vsel %vm1424_vm5, %v3366_v13, %v1078_v58  ;;  %v2920_v58 = vld [vmem:[%s4428_s4 + $0x8] sm:$0xff] }
  0xce   : > { %v3734_v38 = vpop.permute.xlu0 %1097 }
  0xd1   : > { %1242 = vrot.lane.b32.xlu2 %v3462_v19, %s3228_s17  ;;  %1412 = vrot.lane.b32.xlu0 %v3728_v37, %s3231_s20 }
  0xd3   : > { %v3736_v7 = vpop.permute.xlu2 %1207 }
  0xd4   : > { %1195 = vrot.lane.b32.xlu1 %v3426_v32, %s3226_s15 }
  0xd6   : > { %v3740_v31 = vpop.permute.xlu1 %1099 }
  0xd9   : > { %1361 = vrot.lane.b32.xlu2 %v3383_v40, %s3230_s19  ;;  %1277 = vrot.lane.b32.xlu0 %v3610_v0, %s3229_s18  ;;  %v2279_v0 = vld [vmem:[%s4428_s4 + $0x10] sm:$0x3] }
  0xda   : > { %v2289_v56 = vunpack.c.l.b16 %v2279_v0 }
  0xdb   : > { %v3746_v39 = vpop.permute.xlu2 %1326  ;;  %v3748_v19 = vpop.permute.xlu0 %1103 }
  0xdc   : > { %4435 = vst [vmem:[#allocation6_spill] sm:$0xff] %v3748_v19  ;;  %1314 = vrot.lane.b32.xlu1 %v3351_v59, %s3227_s16  ;;  %v2292_v11 = vpack.c.b16 %v2289_v56, %v2289_v56  ;;  %v2016_v19 = vsel %vm2014_vm6, %v1962_v35, 0  ;;  %v1145_v56 = vrot.slane %v3557_v21, 1 }
  0xdd   : > { %3155 = vmatpush.bf16.msra.mxu2 %v2016_v19  ;;  %2023 = vmatpush.bf16.msra.mxu0 %v2016_v19 }
  0xde   : > { %v3752_v22 = vpop.permute.xlu1 %1154  ;;  %v2296_v62 = vsel %vm2014_vm6, %v2292_v11, 0  ;;  %v3815_v11 = vsel %vm1105_vm3, %v1145_v56, %v1146_v30 }
  0xdf   : > { %3158 = vmatpush.bf16.msra.mxu3 %v2296_v62  ;;  %2303 = vmatpush.bf16.msra.mxu1 %v2296_v62 }
  0xe1   : > { %1213 = vrot.lane.b32.xlu2 %v3535_v6, %s3226_s15  ;;  %1396 = vrot.lane.b32.xlu0 %v3603_v8, %s3231_s20 }
  0xe3   : > { %v3764_v9 = vpop.permute.xlu2 %1191  ;;  %v1159_v50 = vpop.permute.xlu0 %1158  ;;  %3159 = vmatpush.bf16.msra.mxu3 %v2920_v58  ;;  %2304 = vmatpush.bf16.msra.mxu1 %v2920_v58 }
  0xe4   : > { %v3769_v2 = vsel %vm1457_vm4, %v1430_v42, %v1159_v50  ;;  %1176 = vrot.lane.b32.xlu1 %v3669_v43, %s3225_s14  ;;  %v2918_v43 = vld [vmem:[%s4425_s1 + $0x8] sm:$0xff]  ;;  %v1442_v50 = vsel %vm1424_vm5, %v3467_v27, %v3671_v46 }
  0xe5   : > { %3156 = vmatpush.bf16.msra.mxu2 %v2918_v43  ;;  %2024 = vmatpush.bf16.msra.mxu0 %v2918_v43 }
  0xe6   : > { %v1161_v0 = vpop.permute.xlu1 %1160 }
  0xe7   : > { %v3776_v13 = vsel %vm1457_vm4, %v1432_v41, %v1161_v0  ;;  %3160 = vmatpush.bf16.msra.mxu3 %v2919_v48  ;;  %2305 = vmatpush.bf16.msra.mxu1 %v2919_v48 }
  0xe9   : > { %1332 = vrot.lane.b32.xlu2 %v3557_v21, %s3227_s16  ;;  %1260 = vrot.lane.b32.xlu0 %v3555_v17, %s3228_s17  ;;  %v2917_v17 = vld [vmem:[%s4425_s1] sm:$0xff] }
  0xea   : > { %3157 = vmatpush.bf16.msra.mxu2 %v2917_v17  ;;  %2025 = vmatpush.bf16.msra.mxu0 %v2917_v17 }
  0xeb   : > { %v3788_v32 = vpop.permute.xlu2 %1310  ;;  %v1165_v62 = vpop.permute.xlu0 %1164 }
  0xec   : > { %v3794_v19 = vsel %vm1457_vm4, %v1436_v26, %v1165_v62  ;;  %1295 = vrot.lane.b32.xlu1 %v3728_v37, %s3229_s18 }
  0xee   : > { %v1171_v42 = vpop.permute.xlu1 %1170 }
  0xef   : > { %v1475_v35 = vsel %vm1457_vm4, %v1442_v50, %v1171_v42 }
  0xf0   : > { %v1508_v0 = vsel %vm1490_vm7, %v1475_v35, %v3736_v7 }
  0xf1   : > { %1197 = vrot.lane.b32.xlu2 %v3351_v59, %s3226_s15  ;;  %1379 = vrot.lane.b32.xlu0 %v3581_v24, %s3230_s19 }
  0xf3   : > { %v3817_v33 = vpop.permute.xlu2 %1172  ;;  %v1255_v41 = vpop.permute.xlu0 %1254 }
  0xf4   : > { %1414 = vrot.lane.b32.xlu1 %v3815_v11, %s3231_s20  ;;  %v1541_v46 = vsel %vm1523_vm8, %v1508_v0, %v1255_v41 }
  0xf6   : > { %v1290_v59 = vpop.permute.xlu1 %1289 }
  0xf7   : > { %v1574_v43 = vsel %vm1556_vm9, %v1541_v46, %v1290_v59 }
  0xf8   : > { %v1607_v7 = vsel %vm1589_vm10, %v1574_v43, %v3746_v39 }
  0xf9   : > { %1316 = vrot.lane.b32.xlu2 %v3407_v3, %s3227_s16  ;;  %1244 = vrot.lane.b32.xlu0 %v3383_v40, %s3228_s17 }
  0xfb   : > { %v3829_v58 = vpop.permute.xlu2 %1291  ;;  %v1374_v26 = vpop.permute.xlu0 %1373 }
  0xfc   : > { %1279 = vrot.lane.b32.xlu1 %v3603_v8, %s3229_s18  ;;  %v1640_v62 = vsel %vm1622_vm11, %v1607_v7, %v1374_v26  ;;  %v1426_v8 = vsel %vm1424_vm5, %v3327_v23, %v3677_v44  ;;  %v1148_v23 = vrot.slane %v3547_v45, 1  ;;  %v1149_v44 = vrot.slane %v3549_v52, 1 }
  0xfe   : > { %v1409_v17 = vpop.permute.xlu1 %1408  ;;  %v3867_v7 = vsel %vm1105_vm3, %v1148_v23, %v1149_v44 }
  0xff   : > { %v1673_v48 = vsel %vm1655_vm12, %v1640_v62, %v1409_v17 }
 0x100   : > { %v1720_v56 = vunpack.c.l.b16 %v1673_v48  ;;  %v1721_v30 = vunpack.c.h.b16 %v1673_v48 }
 0x101   : > { %1178 = vrot.lane.b32.xlu2 %v3728_v37, %s3225_s14  ;;  %1363 = vrot.lane.b32.xlu0 %v3442_v54, %s3230_s19  ;;  %v1459_v37 = vsel %vm1457_vm4, %v1426_v8, %v3752_v22 }
 0x102   : > { %v1752_v40 = vpack.c.b16 %v1720_v56, %v1720_v56  ;;  %v1753_v39 = vpack.c.b16 %v1721_v30, %v1721_v30  ;;  %v1492_v35 = vsel %vm1490_vm7, %v1459_v37, %v3764_v9 }
 0x103   : > { %v1411_v42 = vpop.permute.xlu2 %1410  ;;  %v1239_v50 = vpop.permute.xlu0 %1238 }
 0x104   : > { %1817 = vst.msk [vmem:[#allocation3 + $0x40] sm:$0xf] %vm1800_vm13, %v1752_v40  ;;  %1398 = vrot.lane.b32.xlu1 %v3619_v12, %s3231_s20  ;;  %v1525_v0 = vsel %vm1523_vm8, %v1492_v35, %v1239_v50  ;;  %v1444_v40 = vsel %vm1424_vm5, %v3499_v25, %v3710_v10  ;;  %v1124_v35 = vrot.slane %v3444_v57, 1  ;;  %v1125_v10 = vrot.slane %v3450_v63, 1 }
 0x105   : > { %1818 = vst.msk [vmem:[#allocation3 + $0x44] sm:$0xf] %vm1800_vm13, %v1753_v39  ;;  %v1477_v39 = vsel %vm1457_vm4, %v1444_v40, %v3817_v33 }
 0x106   : > { %v1274_v41 = vpop.permute.xlu1 %1273 }
 0x107   : > { %v1558_v59 = vsel %vm1556_vm9, %v1525_v0, %v1274_v41 }
 0x108   : > { %v1591_v9 = vsel %vm1589_vm10, %v1558_v59, %v3788_v32 }
 0x109   : > { %1297 = vrot.lane.b32.xlu2 %v3815_v11, %s3229_s18  ;;  %1215 = vrot.lane.b32.xlu0 %v3557_v21, %s3226_s15 }
 0x10b   : > { %v3860_v22 = vpop.permute.xlu2 %1275  ;;  %v1358_v46 = vpop.permute.xlu0 %1357 }
 0x10c   : > { %1262 = vrot.lane.b32.xlu1 %v3581_v24, %s3228_s17  ;;  %v2909_v43 = vld [vmem:[#allocation3 + $0x40] sm:$0xff]  ;;  %v1624_v26 = vsel %vm1622_vm11, %v1591_v9, %v1358_v46  ;;  %v531_v9 = vld [vmem:[%s3307_s12 + $0xb4] sm:$0xf] }
 0x10d   : > { %2865 = vmatmul.msk.bf16.vlgmr.msra.gmra.mxu2 %vm1965_vm14, %v2909_v43  ;;  %2889 = vmatmul.msk.bf16.vlgmr.msra.gmra.mxu3 %vm1965_vm14, %v2909_v43  ;;  %v532_v46 = vld [vmem:[%s3307_s12 + $0xb8] sm:$0xf]  ;;  %580 = vst.msk [vmem:[#allocation2 + $0xc0] sm:$0xf] %vm477_vm0, %v531_v9 }
 0x10e   : > { %v1393_v62 = vpop.permute.xlu1 %1392  ;;  %581 = vst.msk [vmem:[#allocation2 + $0xc4] sm:$0xf] %vm477_vm0, %v532_v46 }
 0x10f   : > { %v1657_v52 = vsel %vm1655_vm12, %v1624_v26, %v1393_v62 }
 0x110   : > { %v1704_v17 = vunpack.c.l.b16 %v1657_v52  ;;  %v1705_v32 = vunpack.c.h.b16 %v1657_v52 }
 0x111   : > { %1416 = vrot.lane.b32.xlu2 %v3867_v7, %s3231_s20  ;;  %1334 = vrot.lane.b32.xlu0 %v3547_v45, %s3227_s16 }
 0x112   : > { %v1736_v24 = vpack.c.b16 %v1704_v17, %v1704_v17  ;;  %v1737_v48 = vpack.c.b16 %v1705_v32, %v1705_v32  ;;  %v533_v17 = vld [vmem:[%s3307_s12 + $0xbc] sm:$0x1] }
 0x113   : > { %v1395_v56 = vpop.permute.xlu2 %1394  ;;  %v1210_v30 = vpop.permute.xlu0 %1209  ;;  %582 = vst.msk [vmem:[#allocation2 + $0xc8] sm:$0x1] %vm480_vm1, %v533_v17 }
 0x114   : > { %1801 = vst.msk [vmem:[#allocation3] sm:$0xf] %vm1800_vm13, %v1736_v24  ;;  %1381 = vrot.lane.b32.xlu1 %v3567_v55, %s3230_s19  ;;  %v1510_v8 = vsel %vm1490_vm7, %v1477_v39, %v1210_v30 }
 0x115   : > { %1802 = vst.msk [vmem:[#allocation3 + $0x4] sm:$0xf] %vm1800_vm13, %v1737_v48 }
 0x116   : > { %v1257_v50 = vpop.permute.xlu1 %1256 }
 0x117   : > { %v1543_v37 = vsel %vm1523_vm8, %v1510_v8, %v1257_v50 }
 0x118   : > { %v1576_v33 = vsel %vm1556_vm9, %v1543_v37, %v3829_v58  ;;  %v1151_v37 = vrot.slane %v3571_v5, 1 }
 0x119   : > { %1281 = vrot.lane.b32.xlu2 %v3619_v12, %s3229_s18  ;;  %1199 = vrot.lane.b32.xlu0 %v3407_v3, %s3226_s15  ;;  %v3901_v12 = vsel %vm1105_vm3, %v1124_v35, %v1125_v10  ;;  %v1152_v35 = vrot.slane %v3573_v1, 1 }
 0x11a   : > { %v640_v46 = vld [vmem:[#allocation2 + $0xc8] sm:$0x1] }
 0x11b   : > { %v3894_v41 = vpop.permute.xlu2 %1258  ;;  %v1329_v0 = vpop.permute.xlu0 %1328 }
 0x11c   : > { %1246 = vrot.lane.b32.xlu1 %v3442_v54, %s3228_s17  ;;  %v2901_v59 = vld [vmem:[#allocation3] sm:$0xff]  ;;  %v1609_v3 = vsel %vm1589_vm10, %v1576_v33, %v1329_v0 }
 0x11d   : > { %2857 = vmatmul.msk.bf16.vlgmr.msra.gmra.mxu0 %vm1965_vm14, %v2901_v59  ;;  %2881 = vmatmul.msk.bf16.vlgmr.msra.gmra.mxu1 %vm1965_vm14, %v2901_v59 }
 0x11e   : > { %v1376_v23 = vpop.permute.xlu1 %1375 }
 0x11f   : > { %v1642_v63 = vsel %vm1622_vm11, %v1609_v3, %v1376_v23  ;;  %v3958_v3 = vsel %vm1105_vm3, %v1151_v37, %v1152_v35 }
 0x120   : > { %v1675_v58 = vsel %vm1655_vm12, %v1642_v63, %v1411_v42  ;;  %v3124_v63 = vld [vmem:[#allocation2 + $0xc0] sm:$0xff]  }
 0x121   : > { %1400 = vrot.lane.b32.xlu2 %v3901_v12, %s3231_s20  ;;  %1318 = vrot.lane.b32.xlu0 %v3444_v57, %s3227_s16  ;;  %v1722_v54 = vunpack.c.l.b16 %v1675_v58  ;;  %v1723_v44 = vunpack.c.h.b16 %v1675_v58 }
 0x123   : > { %v3914_v43 = vpop.permute.xlu2 %1377  ;;  %v1754_v26 = vpack.c.b16 %v1722_v54, %v1722_v54  ;;  %v1755_v62 = vpack.c.b16 %v1723_v44, %v1723_v44  ;;  %v1194_v52 = vpop.permute.xlu0 %1193 }
 0x124   : > { %1365 = vrot.lane.b32.xlu1 %v3479_v47, %s3230_s19  ;;  %v1494_v32 = vsel %vm1490_vm7, %v3706_v18, %v1194_v52 }
 0x125   : > { %1819 = vst.msk [vmem:[#allocation3 + $0x48] sm:$0xf] %vm1800_vm13, %v1754_v26 }
 0x126   : > { %1820 = vst.msk [vmem:[#allocation3 + $0x4c] sm:$0xf] %vm1800_vm13, %v1755_v62  ;;  %v1241_v42 = vpop.permute.xlu1 %1240 }
 0x127   : > { %v1527_v24 = vsel %vm1523_vm8, %v1494_v32, %v1241_v42 }
 0x128   : > { %v1560_v30 = vsel %vm1556_vm9, %v1527_v24, %v3860_v22  ;;  %v1127_v24 = vrot.slane %v3486_v60, 1 }
 0x129   : > { %1264 = vrot.lane.b32.xlu2 %v3567_v55, %s3228_s17  ;;  %1180 = vrot.lane.b32.xlu0 %v3815_v11, %s3225_s14 }
 0x12b   : > { %v3931_v48 = vpop.permute.xlu2 %1242  ;;  %v1313_v40 = vpop.permute.xlu0 %1312 }
 0x12c   : > { %1217 = vrot.lane.b32.xlu1 %v3547_v45, %s3226_s15  ;;  %v1593_v18 = vsel %vm1589_vm10, %v1560_v30, %v1313_v40  ;;  %v1128_v30 = vrot.slane %v3488_v61, 1 }
 0x12d   : > { %v2910_v39 = vld [vmem:[#allocation3 + $0x48] sm:$0xff] }
 0x12e   : > { %v1360_v50 = vpop.permute.xlu1 %1359  ;;  %2866 = vmatmul.msk.bf16.gmra.mxu2 %vm1965_vm14, %v2910_v39  ;;  %2890 = vmatmul.msk.bf16.gmra.mxu3 %vm1965_vm14, %v2910_v39  ;;  %v3990_v37 = vsel %vm1105_vm3, %v1127_v24, %v1128_v30 }
 0x12f   : > { %v1626_v8 = vsel %vm1622_vm11, %v1593_v18, %v1360_v50 }
 0x130   : > { %v1659_v55 = vsel %vm1655_vm12, %v1626_v8, %v1395_v56  ;;  %v1446_v56 = vsel %vm1424_vm5, %v3523_v29, %v3725_v28  ;;  %v2955_v29 = vunpack.c.l.bf16 %v3124_v63  ;;  %v2956_v28 = vunpack.c.h.bf16 %v3124_v63 }
 0x131   : > { %1383 = vrot.lane.b32.xlu2 %v3589_v34, %s3230_s19  ;;  %1299 = vrot.lane.b32.xlu0 %v3867_v7, %s3229_s18  ;;  %v1706_v11 = vunpack.c.l.b16 %v1659_v55  ;;  %v1707_v22 = vunpack.c.h.b16 %v1659_v55 }
 0x132   : > { %v746_v17 = vpack.c.bf16 %v2955_v29, %v2955_v29  ;;  %v747_v42 = vpack.c.bf16 %v2956_v28, %v2956_v28 }
 0x133   : > { %v3948_v10 = vpop.permute.xlu2 %1361  ;;  %v1738_v33 = vpack.c.b16 %v1706_v11, %v1706_v11  ;;  %v1739_v0 = vpack.c.b16 %v1707_v22, %v1707_v22  ;;  %v1175_v59 = vpop.permute.xlu0 %1174 }
 0x134   : > { %1336 = vrot.lane.b32.xlu1 %v3571_v5, %s3227_s16  ;;  %v1479_v23 = vsel %vm1457_vm4, %v1446_v56, %v1175_v59  ;;  %v1188_v18 = vunpack.c.l.b16 %v746_v17  ;;  %v1189_v50 = vunpack.c.l.b16 %v747_v42 }
 0x135   : > { %1803 = vst.msk [vmem:[#allocation3 + $0x8] sm:$0xf] %vm1800_vm13, %v1738_v33 }
 0x136   : > { %1804 = vst.msk [vmem:[#allocation3 + $0xc] sm:$0xf] %vm1800_vm13, %v1739_v0  ;;  %v1212_v1 = vpop.permute.xlu1 %1211  ;;  %v3992_v35 = vpack.c.b16 %v1189_v50, %v1188_v18  ;;  %v1448_v50 = vsel %vm1424_vm5, %v3509_v51, %v3682_v36  ;;  %v643_v51 = vld [vmem:[#allocation2 + $0xd4] sm:$0x1] }
 0x137   : > { %v1512_v58 = vsel %vm1490_vm7, %v1479_v23, %v1212_v1 }
 0x138   : > { %v1545_v44 = vsel %vm1523_vm8, %v1512_v58, %v3894_v41  ;;  %v1229_v23 = vshll.u32 %v3992_v35, 16  ;;  %v1227_v28 = vshrl.u32 %v3992_v35, 16 }
 0x139   : > { %1248 = vrot.lane.b32.xlu2 %v3479_v47, %s3228_s17  ;;  %1418 = vrot.lane.b32.xlu0 %v3958_v3, %s3231_s20  ;;  %v694_v47 = vunpack.c.l.bf16 %v640_v46 }
 0x13b   : > { %v3966_v54 = vpop.permute.xlu2 %1213  ;;  %v1294_v9 = vpop.permute.xlu0 %1293  ;;  %v748_v39 = vpack.c.bf16 %v694_v47, %v694_v47 }
 0x13c   : > { %1201 = vrot.lane.b32.xlu1 %v3444_v57, %s3226_s15  ;;  %v1578_v62 = vsel %vm1556_vm9, %v1545_v44, %v1294_v9  ;;  %v1231_v44 = vrot.slane %v1229_v23, 1 }
 0x13d   : > { %v2902_v26 = vld [vmem:[#allocation3 + $0x8] sm:$0xff]  ;;  %v1224_v61 = vunpack.c.l.b16 %v748_v39 }
 0x13e   : > { %v1331_v52 = vpop.permute.xlu1 %1330  ;;  %2858 = vmatmul.msk.bf16.gmra.mxu0 %vm1965_vm14, %v2902_v26  ;;  %2882 = vmatmul.msk.bf16.gmra.mxu1 %vm1965_vm14, %v2902_v26 }
 0x13f   : > { %v1611_v32 = vsel %vm1589_vm10, %v1578_v62, %v1331_v52  ;;  %v1225_v1 = vpack.c.b16 %v1224_v61, %v1224_v61  ;;  %v1232_v52 = vor.u32 %v1231_v44, %v1227_v28 }
 0x140   : > { %v1644_v41 = vsel %vm1622_vm11, %v1611_v32, %v3914_v43 }
 0x141   : > { %1367 = vrot.lane.b32.xlu2 %v3507_v49, %s3230_s19  ;;  %1283 = vrot.lane.b32.xlu0 %v3901_v12, %s3229_s18  ;;  %v1234_v9 = vshll.u32 %v1225_v1, 16  ;;  %v1271_v62 = vrot.slane %v1225_v1, 1 }
 0x143   : > { %v3984_v40 = vpop.permute.xlu2 %1332  ;;  %v1413_v8 = vpop.permute.xlu0 %1412  ;;  %v1236_v47 = vrot.slane %v1234_v9, 1 }
 0x144   : > { %v1677_v55 = vsel %vm1655_vm12, %v1644_v41, %v1413_v8  ;;  %1320 = vrot.lane.b32.xlu1 %v3486_v60, %s3227_s16 }
 0x145   : > { %v1724_v11 = vunpack.c.l.b16 %v1677_v55  ;;  %v1725_v22 = vunpack.c.h.b16 %v1677_v55  ;;  %v1237_v24 = vsel %vm880_vm2, %v1232_v52, %v1236_v47 }
 0x146   : > { %v1196_v43 = vpop.permute.xlu1 %1195 }
 0x147   : > { %v1756_v33 = vpack.c.b16 %v1724_v11, %v1724_v11  ;;  %v1757_v0 = vpack.c.b16 %v1725_v22, %v1725_v22  ;;  %v1496_v59 = vsel %vm1490_vm7, %v3769_v2, %v1196_v43  ;;  %v641_v11 = vld [vmem:[#allocation2 + $0xcc] sm:$0xff]  }
 0x148   : > { %v1529_v63 = vsel %vm1523_vm8, %v1496_v59, %v3931_v48  ;;  %v695_v36 = vunpack.c.l.bf16 %v641_v11  ;;  %v696_v61 = vunpack.c.h.bf16 %v641_v11  ;;  %v697_v59 = vunpack.c.l.bf16 %v643_v51 }
 0x149   : > { %1219 = vrot.lane.b32.xlu2 %v3571_v5, %s3226_s15  ;;  %1821 = vst.msk [vmem:[#allocation3 + $0x50] sm:$0xf] %vm1800_vm13, %v1756_v33  ;;  %1402 = vrot.lane.b32.xlu0 %v3990_v37, %s3231_s20 }
 0x14a   : > { %1822 = vst.msk [vmem:[#allocation3 + $0x54] sm:$0xf] %vm1800_vm13, %v1757_v0 }
 0x14b   : > { %v4002_v56 = vpop.permute.xlu2 %1197  ;;  %v1278_v58 = vpop.permute.xlu0 %1277 }
 0x14c   : > { %1182 = vrot.lane.b32.xlu1 %v3867_v7, %s3225_s14  ;;  %v1562_v2 = vsel %vm1556_vm9, %v1529_v63, %v1278_v58  ;;  %v1270_v7 = vrot.slane %v3992_v35, 1  ;;  %v750_v63 = vpack.c.bf16 %v696_v61, %v696_v61 }
 0x14e   : > { %v1315_v29 = vpop.permute.xlu1 %1314  ;;  %v4027_v41 = vsel %vm1105_vm3, %v1270_v7, %v1271_v62  ;;  %v1308_v44 = vunpack.c.l.b16 %v750_v63 }
 0x14f   : > { %v1595_v46 = vsel %vm1589_vm10, %v1562_v2, %v1315_v29  ;;  %v751_v29 = vpack.c.bf16 %v697_v59, %v697_v59 }
 0x150   : > { %v1628_v48 = vsel %vm1622_vm11, %v1595_v46, %v3948_v10 }
 0x151   : > { %1338 = vrot.lane.b32.xlu2 %v3992_v35, %s3227_s16  ;;  %1266 = vrot.lane.b32.xlu0 %v3589_v34, %s3228_s17  ;;  %v2911_v26 = vld [vmem:[#allocation3 + $0x50] sm:$0xff] }
 0x152   : > { %2867 = vmatmul.msk.bf16.gmra.mxu2 %vm1965_vm14, %v2911_v26  ;;  %2891 = vmatmul.msk.bf16.gmra.mxu3 %vm1965_vm14, %v2911_v26  ;;  %v1343_v26 = vunpack.c.l.b16 %v751_v29 }
 0x153   : > { %v4019_v17 = vpop.permute.xlu2 %1316  ;;  %v1397_v42 = vpop.permute.xlu0 %1396 }
 0x154   : > { %v1661_v32 = vsel %vm1655_vm12, %v1628_v48, %v1397_v42  ;;  %1301 = vrot.lane.b32.xlu1 %v3958_v3, %s3229_s18 }
 0x155   : > { %v1708_v34 = vunpack.c.l.b16 %v1661_v32  ;;  %v1709_v10 = vunpack.c.h.b16 %v1661_v32  ;;  %v1344_v32 = vpack.c.b16 %v1343_v26, %v1343_v26 }
 0x156   : > { %v1177_v30 = vpop.permute.xlu1 %1176 }
 0x157   : > { %v1740_v39 = vpack.c.b16 %v1708_v34, %v1708_v34  ;;  %v1741_v18 = vpack.c.b16 %v1709_v10, %v1709_v10  ;;  %v1481_v8 = vsel %vm1457_vm4, %v1448_v50, %v1177_v30  ;;  %v1390_v63 = vrot.slane %v1344_v32, 1 }
 0x158   : > { %v1514_v43 = vsel %vm1490_vm7, %v1481_v8, %v3966_v54  ;;  %v749_v54 = vpack.c.bf16 %v695_v36, %v695_v36 }
 0x159   : > { %1420 = vrot.lane.b32.xlu2 %v4027_v41, %s3231_s20  ;;  %1805 = vst.msk [vmem:[#allocation3 + $0x10] sm:$0xf] %vm1800_vm13, %v1740_v39  ;;  %1385 = vrot.lane.b32.xlu0 %v1237_v24, %s3230_s19  ;;  %v1353_v39 = vshll.u32 %v1344_v32, 16 }
 0x15a   : > { %1806 = vst.msk [vmem:[#allocation3 + $0x14] sm:$0xf] %vm1800_vm13, %v1741_v18  ;;  %v1307_v28 = vunpack.c.l.b16 %v749_v54  ;;  %v1498_v18 = vsel %vm1490_vm7, %v3776_v13, %v4002_v56 }
 0x15b   : > { %v4039_v55 = vpop.permute.xlu2 %1178  ;;  %v1261_v22 = vpop.permute.xlu0 %1260 }
 0x15c   : > { %1166 = vrot.lane.b32.xlu1 %v3901_v12, %s3225_s14  ;;  %v1547_v0 = vsel %vm1523_vm8, %v1514_v43, %v1261_v22  ;;  %v1355_v43 = vrot.slane %v1353_v39, 1  ;;  %v4147_v39 = vld [vmem:[%s4427_s3] ss:$0 sm:$0xff] }
 0x15e   : > { %v1296_v33 = vpop.permute.xlu1 %1295 }
 0x15f   : > { %v1580_v1 = vsel %vm1556_vm9, %v1547_v0, %v1296_v33 }
 0x160   : > { %v1613_v12 = vsel %vm1589_vm10, %v1580_v1, %v3984_v40  ;;  %v1309_v40 = vpack.c.b16 %v1308_v44, %v1307_v28 }
 0x161   : > { %1285 = vrot.lane.b32.xlu2 %v3990_v37, %s3229_s18  ;;  %1203 = vrot.lane.b32.xlu0 %v3486_v60, %s3226_s15  ;;  %v2903_v23 = vld [vmem:[#allocation3 + $0x10] sm:$0xff] }
 0x162   : > { %2859 = vmatmul.msk.bf16.gmra.mxu0 %vm1965_vm14, %v2903_v23  ;;  %2883 = vmatmul.msk.bf16.gmra.mxu1 %vm1965_vm14, %v2903_v23  ;;  %v1348_v34 = vshll.u32 %v1309_v40, 16  ;;  %v1346_v10 = vshrl.u32 %v1309_v40, 16  ;;  %v1450_v23 = vsel %vm1424_vm5, %v3535_v6, %v3734_v38  ;;  %v1389_v54 = vrot.slane %v1309_v40, 1 }
 0x163   : > { %v4051_v58 = vpop.permute.xlu2 %1297  ;;  %v1380_v2 = vpop.permute.xlu0 %1379 }
 0x164   : > { %1250 = vrot.lane.b32.xlu1 %v3507_v49, %s3228_s17  ;;  %v1646_v9 = vsel %vm1622_vm11, %v1613_v12, %v1380_v2  ;;  %v1350_v30 = vrot.slane %v1348_v34, 1  ;;  %v1483_v12 = vsel %vm1457_vm4, %v1450_v23, %v4039_v55  ;;  %v1391_v6 = vsel %vm1105_vm3, %v1389_v54, %v1390_v63 }
 0x165   : > { %v1452_v54 = vsel %vm1424_vm5, %v3557_v21, %v3740_v31 }
 0x166   : > { %v1415_v46 = vpop.permute.xlu1 %1414  ;;  %v1351_v22 = vor.u32 %v1350_v30, %v1346_v10 }
 0x167   : > { %v1679_v48 = vsel %vm1655_vm12, %v1646_v9, %v1415_v46 }
 0x168   : > { %v1726_v7 = vunpack.c.l.b16 %v1679_v48  ;;  %v1727_v62 = vunpack.c.h.b16 %v1679_v48  ;;  %v1356_v61 = vsel %vm880_vm2, %v1351_v22, %v1355_v43 }
 0x169   : > { %1404 = vrot.lane.b32.xlu2 %v3626_v20, %s3231_s20  ;;  %1322 = vrot.lane.b32.xlu0 %v3467_v27, %s3227_s16 }
 0x16a   : > { %v1758_v52 = vpack.c.b16 %v1726_v7, %v1726_v7  ;;  %v1759_v47 = vpack.c.b16 %v1727_v62, %v1727_v62 }
 0x16b   : > { %v1245_v49 = vpop.permute.xlu0 %1244  ;;  %v1417_v42 = vpop.permute.xlu2 %1416 }
 0x16c   : > { %1823 = vst.msk [vmem:[#allocation3 + $0x58] sm:$0xf] %vm1800_vm13, %v1758_v52  ;;  %1369 = vrot.lane.b32.xlu1 %v3495_v15, %s3230_s19  ;;  %v1531_v8 = vsel %vm1523_vm8, %v1498_v18, %v1245_v49 }
 0x16d   : > { %1824 = vst.msk [vmem:[#allocation3 + $0x5c] sm:$0xf] %vm1800_vm13, %v1759_v47 }
 0x16e   : > { %v1280_v50 = vpop.permute.xlu1 %1279 }
 0x16f   : > { %v1564_v11 = vsel %vm1556_vm9, %v1531_v8, %v1280_v50  ;;  %v4156_v8 = vld [vmem:[%s4430_s6] ss:$0 sm:$0xff] }
 0x170   : > { %v1597_v51 = vsel %vm1589_vm10, %v1564_v11, %v4019_v17 }
 0x171   : > { %1268 = vrot.lane.b32.xlu2 %v1237_v24, %s3228_s17  ;;  %1184 = vrot.lane.b32.xlu0 %v3958_v3, %s3225_s14 }
 0x173   : > { %v1364_v36 = vpop.permute.xlu0 %1363  ;;  %v1282_v56 = vpop.permute.xlu2 %1281 }
 0x174   : > { %1221 = vrot.lane.b32.xlu1 %v3992_v35, %s3226_s15  ;;  %v2912_v13 = vld [vmem:[#allocation3 + $0x58] sm:$0xff]  ;;  %v1630_v33 = vsel %vm1622_vm11, %v1597_v51, %v1364_v36 }
 0x175   : > { %2868 = vmatmul.msk.bf16.gmra.mxu2 %vm1965_vm14, %v2912_v13  ;;  %2892 = vmatmul.msk.bf16.gmra.mxu3 %vm1965_vm14, %v2912_v13 }
 0x176   : > { %v1399_v0 = vpop.permute.xlu1 %1398 }
 0x177   : > { %v1663_v3 = vsel %vm1655_vm12, %v1630_v33, %v1399_v0 }
 0x178   : > { %v1710_v24 = vunpack.c.l.b16 %v1663_v3  ;;  %v1711_v59 = vunpack.c.h.b16 %v1663_v3 }
 0x179   : > { %1387 = vrot.lane.b32.xlu2 %v1356_v61, %s3230_s19  ;;  %1303 = vrot.lane.b32.xlu0 %v4027_v41, %s3229_s18 }
 0x17a   : > { %v1742_v35 = vpack.c.b16 %v1710_v24, %v1710_v24  ;;  %v1743_v17 = vpack.c.b16 %v1711_v59, %v1711_v59 }
 0x17b   : > { %v1216_v1 = vpop.permute.xlu0 %1215  ;;  %v1401_v29 = vpop.permute.xlu2 %1400 }
 0x17c   : > { %1807 = vst.msk [vmem:[#allocation3 + $0x18] sm:$0xf] %vm1800_vm13, %v1742_v35  ;;  %1340 = vrot.lane.b32.xlu1 %v1309_v40, %s3227_s16  ;;  %v1516_v41 = vsel %vm1490_vm7, %v1483_v12, %v1216_v1 }
 0x17d   : > { %1808 = vst.msk [vmem:[#allocation3 + $0x1c] sm:$0xf] %vm1800_vm13, %v1743_v17 }
 0x17e   : > { %v1263_v2 = vpop.permute.xlu1 %1262 }
 0x17f   : > { %v1549_v28 = vsel %vm1523_vm8, %v1516_v41, %v1263_v2 }
 0x180   : > { %v1582_v38 = vsel %vm1556_vm9, %v1549_v28, %v4051_v58 }
 0x181   : > { %1205 = vrot.lane.b32.xlu2 %v3467_v27, %s3226_s15  ;;  %1168 = vrot.lane.b32.xlu0 %v3990_v37, %s3225_s14 }
 0x183   : > { %v1335_v44 = vpop.permute.xlu0 %1334  ;;  %v4116_v26 = vpop.permute.xlu2 %1264 }
 0x184   : > { %1422 = vrot.lane.b32.xlu1 %v1391_v6, %s3231_s20  ;;  %v2904_v55 = vld [vmem:[#allocation3 + $0x18] sm:$0xff]  ;;  %v1615_v9 = vsel %vm1589_vm10, %v1582_v38, %v1335_v44 }
 0x185   : > { %2860 = vmatmul.msk.bf16.gmra.mxu0 %vm1965_vm14, %v2904_v55  ;;  %2884 = vmatmul.msk.bf16.gmra.mxu1 %vm1965_vm14, %v2904_v55 }
 0x186   : > { %v1382_v46 = vpop.permute.xlu1 %1381 }
 0x187   : > { %v1648_v27 = vsel %vm1622_vm11, %v1615_v9, %v1382_v46 }
 0x188   : > { %v1681_v37 = vsel %vm1655_vm12, %v1648_v27, %v1417_v42  ;;  %v4130_v42 = vld [vmem:[%s4426_s2] ss:$0 sm:$0xff] }
 0x189   : > { %1324 = vrot.lane.b32.xlu2 %v3499_v25, %s3227_s16  ;;  %1252 = vrot.lane.b32.xlu0 %v3495_v15, %s3228_s17  ;;  %v1728_v58 = vunpack.c.l.b16 %v1681_v37  ;;  %v1729_v48 = vunpack.c.h.b16 %v1681_v37 }
 0x18b   : > { %v1760_v7 = vpack.c.b16 %v1728_v58, %v1728_v58  ;;  %v1761_v62 = vpack.c.b16 %v1729_v48, %v1729_v48  ;;  %v1200_v40 = vpop.permute.xlu0 %1199  ;;  %v4133_v34 = vpop.permute.xlu2 %1383 }
 0x18c   : > { %1287 = vrot.lane.b32.xlu1 %v3626_v20, %s3229_s18  ;;  %v1500_v25 = vsel %vm1490_vm7, %v3721_v4, %v1200_v40  ;;  %v4138_v4 = vld [vmem:[%s4429_s5] ss:$0 sm:$0xff] }
 0x18d   : > { %1825 = vst.msk [vmem:[#allocation3 + $0x60] sm:$0xf] %vm1800_vm13, %v1760_v7 }
 0x18e   : > { %1826 = vst.msk [vmem:[#allocation3 + $0x64] sm:$0xf] %vm1800_vm13, %v1761_v62  ;;  %v1247_v52 = vpop.permute.xlu1 %1246 }
 0x18f   : > { %v1533_v15 = vsel %vm1523_vm8, %v1500_v25, %v1247_v52 }
 0x190   : > { %v2067_v47 = vpop.f32.mrf.mxu2  ;;  %v2347_v49 = vpop.f32.mrf.mxu3  ;;  %v1566_v20 = vsel %vm1556_vm9, %v1533_v15, %v1282_v56 }
 0x191   : > { %1371 = vrot.lane.b32.xlu0 %v3519_v16, %s3230_s19  ;;  %v2127_v30 = vmul.f32 %v4130_v42, %v2067_v47 }
 0x193   : > { %v1319_v32 = vpop.permute.xlu0 %1318  ;;  %v2163_v13 = vadd.f32 %v4147_v39, %v2127_v30  ;;  %v1249_v23 = vpop.permute.xlu2 %1248 }
 0x194   : > { %1406 = vrot.lane.b32.xlu1 %v3637_v14, %s3231_s20  ;;  %v1599_v10 = vsel %vm1589_vm10, %v1566_v20, %v1319_v32  ;;  %v2407_v14 = vmul.f32 %v4138_v4, %v2347_v49 }
 0x195   : > { %v2913_v16 = vld [vmem:[#allocation3 + $0x60] sm:$0xff]  ;;  %v2195_v63 = vmax.f32 %v2163_v13, 0.0 }
 0x196   : > { %v1366_v18 = vpop.permute.xlu1 %1365  ;;  %2869 = vmatmul.msk.bf16.gmra.mxu2 %vm1965_vm14, %v2913_v16  ;;  %2893 = vmatmul.msk.bf16.gmra.mxu3 %vm1965_vm14, %v2913_v16  ;;  %v2443_v59 = vadd.f32 %v4156_v8, %v2407_v14 }
 0x197   : > { %v1632_v50 = vsel %vm1622_vm11, %v1599_v10, %v1366_v18 }
 0x198   : > { %v1665_v11 = vsel %vm1655_vm12, %v1632_v50, %v1401_v29  ;;  %v2069_v51 = vpop.f32.mrf.mxu2  ;;  %v2349_v36 = vpop.f32.mrf.mxu3 }
 0x199   : > { %v1712_v22 = vunpack.c.l.b16 %v1665_v11  ;;  %v1713_v43 = vunpack.c.h.b16 %v1665_v11  ;;  %v2128_v56 = vmul.f32 %v4130_v42, %v2069_v51  ;;  %v2408_v61 = vmul.f32 %v4138_v4, %v2349_v36 }
 0x19a   : > { %v2027_v24 = vpop.f32.mrf.mxu0  ;;  %v2307_v1 = vpop.f32.mrf.mxu1 }
 0x19b   : > { %v1744_v33 = vpack.c.b16 %v1712_v22, %v1712_v22  ;;  %v1745_v0 = vpack.c.b16 %v1713_v43, %v1713_v43  ;;  %v1181_v3 = vpop.permute.xlu0 %1180  ;;  %v2164_v35 = vadd.f32 %v4147_v39, %v2128_v56  ;;  %v2444_v17 = vadd.f32 %v4156_v8, %v2408_v61  ;;  %v1368_v25 = vpop.permute.xlu2 %1367 }
 0x19c   : > { %v1485_v29 = vsel %vm1457_vm4, %v1452_v54, %v1181_v3  ;;  %v2111_v6 = vmul.f32 %v4130_v42, %v2027_v24  ;;  %v2391_v31 = vmul.f32 %v4138_v4, %v2307_v1 }
 0x19d   : > { %1809 = vst.msk [vmem:[#allocation3 + $0x20] sm:$0xf] %vm1800_vm13, %v1744_v33  ;;  %v2196_v12 = vmax.f32 %v2164_v35, 0.0  ;;  %v3080_v2 = vpack.c.bf16 %v2444_v17, %v2443_v59 }
 0x19e   : > { %1810 = vst.msk [vmem:[#allocation3 + $0x24] sm:$0xf] %vm1800_vm13, %v1745_v0  ;;  %v1218_v41 = vpop.permute.xlu1 %1217  ;;  %v2147_v9 = vadd.f32 %v4147_v39, %v2111_v6  ;;  %v2427_v40 = vadd.f32 %v4156_v8, %v2391_v31  ;;  %v1454_v31 = vsel %vm1424_vm5, %v3547_v45, %v3692_v53 }
 0x19f   : > { %v3000_v28 = vpack.c.bf16 %v2196_v12, %v2195_v63  ;;  %3147 = vst [vmem:[%s4170_s27 + $0x40] sm:$0xff] %v3080_v2   ;;  %v1518_v21 = vsel %vm1490_vm7, %v1485_v29, %v1218_v41 }
 0x1a0   : > { %v1551_v38 = vsel %vm1523_vm8, %v1518_v21, %v4116_v26  ;;  %v2179_v15 = vmax.f32 %v2147_v9, 0.0 }
 0x1a1   : > { %3132 = vst [vmem:[%s4180_s10 + $0x40] sm:$0xff] %v3000_v28  }
 0x1a2   : > { %v2029_v55 = vpop.f32.mrf.mxu0  ;;  %v2309_v27 = vpop.f32.mrf.mxu1 }
 0x1a3   : > { %v1300_v44 = vpop.permute.xlu0 %1299  ;;  %v2112_v46 = vmul.f32 %v4130_v42, %v2029_v55  ;;  %v2392_v37 = vmul.f32 %v4138_v4, %v2309_v27  ;;  %v1220_v43 = vpop.permute.xlu2 %1219 }
 0x1a4   : > { %v1584_v48 = vsel %vm1556_vm9, %v1551_v38, %v1300_v44 }
 0x1a5   : > { %v2905_v58 = vld [vmem:[#allocation3 + $0x20] sm:$0xff]  ;;  %v2148_v7 = vadd.f32 %v4147_v39, %v2112_v46  ;;  %v2428_v26 = vadd.f32 %v4156_v8, %v2392_v37 }
 0x1a6   : > { %v1337_v62 = vpop.permute.xlu1 %1336  ;;  %2861 = vmatmul.msk.bf16.gmra.mxu0 %vm1965_vm14, %v2905_v58  ;;  %2885 = vmatmul.msk.bf16.gmra.mxu1 %vm1965_vm14, %v2905_v58 }
 0x1a7   : > { %v1617_v52 = vsel %vm1589_vm10, %v1584_v48, %v1337_v62  ;;  %v2180_v47 = vmax.f32 %v2148_v7, 0.0  ;;  %v3040_v49 = vpack.c.bf16 %v2428_v26, %v2427_v40 }
 0x1a8   : > { %v1650_v20 = vsel %vm1622_vm11, %v1617_v52, %v4133_v34 }
 0x1a9   : > { %v2960_v32 = vpack.c.bf16 %v2180_v47, %v2179_v15  ;;  %3041 = vst [vmem:[%s4170_s27] sm:$0xff] %v3040_v49  }
 0x1ab   : > { %v1419_v16 = vpop.permute.xlu0 %1418  ;;  %2961 = vst [vmem:[%s4180_s10] sm:$0xff] %v2960_v32   ;;  %v1339_v63 = vpop.permute.xlu2 %1338 }
 0x1ac   : > { %v1683_v10 = vsel %vm1655_vm12, %v1650_v20, %v1419_v16 }
 0x1ad   : > { %v1730_v30 = vunpack.c.l.b16 %v1683_v10  ;;  %v1731_v18 = vunpack.c.h.b16 %v1683_v10 }
 0x1ae   : > { %v1202_v50 = vpop.permute.xlu1 %1201 }
 0x1af   : > { %v1762_v14 = vpack.c.b16 %v1730_v30, %v1730_v30  ;;  %v1763_v11 = vpack.c.b16 %v1731_v18, %v1731_v18  ;;  %v1502_v22 = vsel %vm1490_vm7, %v3794_v19, %v1202_v50 }
 0x1b0   : > { %v1535_v36 = vsel %vm1523_vm8, %v1502_v22, %v1249_v23 }
 0x1b1   : > { %1827 = vst.msk [vmem:[#allocation3 + $0x68] sm:$0xf] %vm1800_vm13, %v1762_v14  ;;  %v2072_v34 = vpop.f32.mrf.mxu2  ;;  %v2352_v51 = vpop.f32.mrf.mxu3 }
 0x1b2   : > { %1828 = vst.msk [vmem:[#allocation3 + $0x6c] sm:$0xf] %vm1800_vm13, %v1763_v11  ;;  %v2129_v33 = vmul.f32 %v4130_v42, %v2072_v34  ;;  %v2409_v24 = vmul.f32 %v4138_v4, %v2352_v51 }
 0x1b3   : > { %v1284_v13 = vpop.permute.xlu0 %1283  ;;  %v1421_v20 = vpop.permute.xlu2 %1420 }
 0x1b4   : > { %v1568_v56 = vsel %vm1556_vm9, %v1535_v36, %v1284_v13  ;;  %v2165_v17 = vadd.f32 %v4147_v39, %v2129_v33  ;;  %v2445_v38 = vadd.f32 %v4156_v8, %v2409_v24  ;;  %v4436_v24 = vld [vmem:[#allocation4_spill] sm:$0xff] }
 0x1b6   : > { %v1321_v61 = vpop.permute.xlu1 %1320  ;;  %v2197_v55 = vmax.f32 %v2165_v17, 0.0 }
 0x1b7   : > { %v1601_v0 = vsel %vm1589_vm10, %v1568_v56, %v1321_v61 }
 0x1b8   : > { %v1634_v3 = vsel %vm1622_vm11, %v1601_v0, %v1368_v25 }
 0x1b9   : > { %v2914_v19 = vld [vmem:[#allocation3 + $0x68] sm:$0xff]  ;;  %v2074_v59 = vpop.f32.mrf.mxu2  ;;  %v2354_v35 = vpop.f32.mrf.mxu3 }
 0x1ba   : > { %2870 = vmatmul.msk.bf16.gmra.mxu2 %vm1965_vm14, %v2914_v19  ;;  %2894 = vmatmul.msk.bf16.gmra.mxu3 %vm1965_vm14, %v2914_v19  ;;  %v2130_v23 = vmul.f32 %v4130_v42, %v2074_v59  ;;  %v2410_v54 = vmul.f32 %v4138_v4, %v2354_v35  ;;  %v1438_v59 = vsel %vm1424_vm5, %v3444_v57, %v4436_v24 }
 0x1bb   : > { %v1403_v1 = vpop.permute.xlu0 %1402  ;;  %v2032_v2 = vpop.f32.mrf.mxu0 }
 0x1bc   : > { %v1667_v12 = vsel %vm1655_vm12, %v1634_v3, %v1403_v1  ;;  %v2312_v41 = vpop.f32.mrf.mxu1  ;;  %v2166_v6 = vadd.f32 %v4147_v39, %v2130_v23  ;;  %v2446_v21 = vadd.f32 %v4156_v8, %v2410_v54  ;;  %v2113_v7 = vmul.f32 %v4130_v42, %v2032_v2  ;;  %v1286_v3 = vpop.permute.xlu2 %1285 }
 0x1bd   : > { %v1714_v29 = vunpack.c.l.b16 %v1667_v12  ;;  %v1715_v28 = vunpack.c.h.b16 %v1667_v12  ;;  %v2393_v45 = vmul.f32 %v4138_v4, %v2312_v41 }
 0x1be   : > { %v1183_v44 = vpop.permute.xlu1 %1182  ;;  %v2198_v27 = vmax.f32 %v2166_v6, 0.0  ;;  %v3085_v37 = vpack.c.bf16 %v2446_v21, %v2445_v38  ;;  %v2149_v52 = vadd.f32 %v4147_v39, %v2113_v7 }
 0x1bf   : > { %v1746_v9 = vpack.c.b16 %v1714_v29, %v1714_v29  ;;  %v1747_v46 = vpack.c.b16 %v1715_v28, %v1715_v28  ;;  %v1487_v58 = vsel %vm1457_vm4, %v1454_v31, %v1183_v44  ;;  %v2429_v32 = vadd.f32 %v4156_v8, %v2393_v45 }
 0x1c0   : > { %v3005_v48 = vpack.c.bf16 %v2198_v27, %v2197_v55  ;;  %v1520_v53 = vsel %vm1490_vm7, %v1487_v58, %v1220_v43  ;;  %3148 = vst [vmem:[%s4170_s27 + $0x48] sm:$0xff] %v3085_v37   ;;  %v2181_v18 = vmax.f32 %v2149_v52, 0.0 }
 0x1c1   : > { %1811 = vst.msk [vmem:[#allocation3 + $0x28] sm:$0xf] %vm1800_vm13, %v1746_v9 }
 0x1c2   : > { %1812 = vst.msk [vmem:[#allocation3 + $0x2c] sm:$0xf] %vm1800_vm13, %v1747_v46 }
 0x1c3   : > { %3133 = vst [vmem:[%s4180_s10 + $0x48] sm:$0xff] %v3005_v48   ;;  %v1267_v62 = vpop.permute.xlu0 %1266  ;;  %v2034_v40 = vpop.f32.mrf.mxu0 }
 0x1c4   : > { %v2314_v26 = vpop.f32.mrf.mxu1  ;;  %v2114_v25 = vmul.f32 %v4130_v42, %v2034_v40  ;;  %v1553_v47 = vsel %vm1523_vm8, %v1520_v53, %v1267_v62  ;;  %v1405_v12 = vpop.permute.xlu2 %1404 }
 0x1c5   : > { %v2394_v15 = vmul.f32 %v4138_v4, %v2314_v26 }
 0x1c6   : > { %v1302_v49 = vpop.permute.xlu1 %1301  ;;  %v2150_v16 = vadd.f32 %v4147_v39, %v2114_v25 }
 0x1c7   : > { %v2430_v10 = vadd.f32 %v4156_v8, %v2394_v15  ;;  %v1586_v30 = vsel %vm1556_vm9, %v1553_v47, %v1302_v49 }
 0x1c8   : > { %v2182_v50 = vmax.f32 %v2150_v16, 0.0  ;;  %v1619_v11 = vsel %vm1589_vm10, %v1586_v30, %v1339_v63 }
 0x1c9   : > { %v3045_v14 = vpack.c.bf16 %v2430_v10, %v2429_v32  ;;  %v2906_v22 = vld [vmem:[#allocation3 + $0x28] sm:$0xff] }
 0x1ca   : > { %v2965_v43 = vpack.c.bf16 %v2182_v50, %v2181_v18  ;;  %2862 = vmatmul.msk.bf16.gmra.mxu0 %vm1965_vm14, %v2906_v22  ;;  %2886 = vmatmul.msk.bf16.gmra.mxu1 %vm1965_vm14, %v2906_v22  ;;  %v4437_v22 = vld [vmem:[#allocation6_spill] sm:$0xff] }
 0x1cb   : > { %3140 = vst [vmem:[%s4170_s27 + $0x8] sm:$0xff] %v3045_v14   ;;  %v1386_v34 = vpop.permute.xlu0 %1385 }
 0x1cc   : > { %v1652_v51 = vsel %vm1622_vm11, %v1619_v11, %v1386_v34  ;;  %3125 = vst [vmem:[%s4180_s10 + $0x8] sm:$0xff] %v2965_v43   ;;  %v1269_v15 = vpop.permute.xlu2 %1268  ;;  %v1456_v43 = vsel %vm1424_vm5, %v3571_v5, %v4437_v22 }
 0x1cd   : > { %v1685_v36 = vsel %vm1655_vm12, %v1652_v51, %v1421_v20 }
 0x1ce   : > { %v1732_v13 = vunpack.c.l.b16 %v1685_v36  ;;  %v1733_v56 = vunpack.c.h.b16 %v1685_v36  ;;  %v1167_v61 = vpop.permute.xlu1 %1166 }
 0x1cf   : > { %v1471_v35 = vsel %vm1457_vm4, %v1438_v59, %v1167_v61 }
 0x1d0   : > { %v1764_v33 = vpack.c.b16 %v1732_v13, %v1732_v13  ;;  %v1765_v0 = vpack.c.b16 %v1733_v56, %v1733_v56 }
 0x1d2   : > { %1829 = vst.msk [vmem:[#allocation3 + $0x70] sm:$0xf] %vm1800_vm13, %v1764_v33 }
 0x1d3   : > { %1830 = vst.msk [vmem:[#allocation3 + $0x74] sm:$0xf] %vm1800_vm13, %v1765_v0  ;;  %v1204_v19 = vpop.permute.xlu0 %1203 }
 0x1d4   : > { %v1504_v54 = vsel %vm1490_vm7, %v1471_v35, %v1204_v19  ;;  %v1388_v19 = vpop.permute.xlu2 %1387 }
 0x1d5   : > { %v2077_v17 = vpop.f32.mrf.mxu2  ;;  %v2357_v1 = vpop.f32.mrf.mxu3 }
 0x1d6   : > { %v1251_v23 = vpop.permute.xlu1 %1250  ;;  %v2131_v41 = vmul.f32 %v4130_v42, %v2077_v17  ;;  %v2411_v57 = vmul.f32 %v4138_v4, %v2357_v1 }
 0x1d7   : > { %v1537_v63 = vsel %vm1523_vm8, %v1504_v54, %v1251_v23 }
 0x1d8   : > { %v1570_v28 = vsel %vm1556_vm9, %v1537_v63, %v1286_v3  ;;  %v2167_v31 = vadd.f32 %v4147_v39, %v2131_v41  ;;  %v2447_v58 = vadd.f32 %v4156_v8, %v2411_v57 }
 0x1da   : > { %v2915_v2 = vld [vmem:[#allocation3 + $0x70] sm:$0xff]  ;;  %v2199_v53 = vmax.f32 %v2167_v31, 0.0 }
 0x1db   : > { %v1323_v29 = vpop.permute.xlu0 %1322  ;;  %2871 = vmatmul.msk.bf16.gmra.mxu2 %vm1965_vm14, %v2915_v2  ;;  %2895 = vmatmul.msk.bf16.gmra.mxu3 %vm1965_vm14, %v2915_v2 }
 0x1dc   : > { %v1603_v38 = vsel %vm1589_vm10, %v1570_v28, %v1323_v29 }
 0x1dd   : > { %v2079_v6 = vpop.f32.mrf.mxu2  ;;  %v2359_v21 = vpop.f32.mrf.mxu3 }
 0x1de   : > { %v2132_v44 = vmul.f32 %v4130_v42, %v2079_v6  ;;  %v2412_v55 = vmul.f32 %v4138_v4, %v2359_v21  ;;  %v1370_v9 = vpop.permute.xlu1 %1369  ;;  %v4438_v6 = vld [vmem:[#allocation5_spill] sm:$0xff] }
 0x1df   : > { %v2037_v46 = vpop.f32.mrf.mxu0  ;;  %v2317_v27 = vpop.f32.mrf.mxu1  ;;  %v1636_v37 = vsel %vm1622_vm11, %v1603_v38, %v1370_v9  ;;  %v1440_v21 = vsel %vm1424_vm5, %v3486_v60, %v4438_v6 }
 0x1e0   : > { %v2168_v48 = vadd.f32 %v4147_v39, %v2132_v44  ;;  %v2448_v7 = vadd.f32 %v4156_v8, %v2412_v55  ;;  %v1669_v45 = vsel %vm1655_vm12, %v1636_v37, %v1405_v12  ;;  %v2115_v49 = vmul.f32 %v4130_v42, %v2037_v46  ;;  %v1206_v12 = vpop.permute.xlu2 %1205 }
 0x1e1   : > { %v1716_v52 = vunpack.c.l.b16 %v1669_v45  ;;  %v1717_v25 = vunpack.c.h.b16 %v1669_v45  ;;  %v2395_v16 = vmul.f32 %v4138_v4, %v2317_v27 }
 0x1e2   : > { %v2200_v62 = vmax.f32 %v2168_v48, 0.0  ;;  %v3090_v40 = vpack.c.bf16 %v2448_v7, %v2447_v58  ;;  %v2151_v50 = vadd.f32 %v4147_v39, %v2115_v49 }
 0x1e3   : > { %v1185_v26 = vpop.permute.xlu0 %1184  ;;  %v1748_v20 = vpack.c.b16 %v1716_v52, %v1716_v52  ;;  %v1749_v32 = vpack.c.b16 %v1717_v25, %v1717_v25  ;;  %v2431_v34 = vadd.f32 %v4156_v8, %v2395_v16 }
 0x1e4   : > { %v3010_v47 = vpack.c.bf16 %v2200_v62, %v2199_v53  ;;  %3149 = vst [vmem:[%s4170_s27 + $0x50] sm:$0xff] %v3090_v40   ;;  %v1489_v56 = vsel %vm1457_vm4, %v1456_v43, %v1185_v26  ;;  %v2183_v61 = vmax.f32 %v2151_v50, 0.0 }
 0x1e5   : > { %1813 = vst.msk [vmem:[#allocation3 + $0x30] sm:$0xf] %vm1800_vm13, %v1748_v20 }
 0x1e6   : > { %3134 = vst [vmem:[%s4180_s10 + $0x50] sm:$0xff] %v3010_v47   ;;  %v1222_v10 = vpop.permute.xlu1 %1221 }
 0x1e7   : > { %v2039_v30 = vpop.f32.mrf.mxu0  ;;  %v2319_v18 = vpop.f32.mrf.mxu1  ;;  %1814 = vst.msk [vmem:[#allocation3 + $0x34] sm:$0xf] %vm1800_vm13, %v1749_v32  ;;  %v1522_v3 = vsel %vm1490_vm7, %v1489_v56, %v1222_v10 }
 0x1e8   : > { %v2116_v14 = vmul.f32 %v4130_v42, %v2039_v30  ;;  %v2396_v11 = vmul.f32 %v4138_v4, %v2319_v18  ;;  %v1555_v5 = vsel %vm1523_vm8, %v1522_v3, %v1269_v15  ;;  %v1325_v48 = vpop.permute.xlu2 %1324 }
 0x1ea   : > { %v2152_v51 = vadd.f32 %v4147_v39, %v2116_v14  ;;  %v2432_v36 = vadd.f32 %v4156_v8, %v2396_v11 }
 0x1eb   : > { %v1304_v13 = vpop.permute.xlu0 %1303 }
 0x1ec   : > { %v2184_v33 = vmax.f32 %v2152_v51, 0.0  ;;  %v3050_v0 = vpack.c.bf16 %v2432_v36, %v2431_v34  ;;  %v1588_v17 = vsel %vm1556_vm9, %v1555_v5, %v1304_v13 }
 0x1ee   : > { %v2970_v24 = vpack.c.bf16 %v2184_v33, %v2183_v61  ;;  %3141 = vst [vmem:[%s4170_s27 + $0x10] sm:$0xff] %v3050_v0   ;;  %v1341_v59 = vpop.permute.xlu1 %1340  ;;  %v2907_v35 = vld [vmem:[#allocation3 + $0x30] sm:$0xff] }
 0x1ef   : > { %2863 = vmatmul.msk.bf16.gmra.mxu0 %vm1965_vm14, %v2907_v35  ;;  %2887 = vmatmul.msk.bf16.gmra.mxu1 %vm1965_vm14, %v2907_v35  ;;  %v1621_v23 = vsel %vm1589_vm10, %v1588_v17, %v1341_v59 }
 0x1f0   : > { %3126 = vst [vmem:[%s4180_s10 + $0x10] sm:$0xff] %v2970_v24   ;;  %v1654_v63 = vsel %vm1622_vm11, %v1621_v23, %v1388_v19 }
 0x1f3   : > { %v1169_v1 = vpop.permute.xlu0 %1168 }
 0x1f4   : > { %v1473_v55 = vsel %vm1457_vm4, %v1440_v21, %v1169_v1 }
 0x1f5   : > { %v1506_v46 = vsel %vm1490_vm7, %v1473_v55, %v1206_v12 }
 0x1f6   : > { %v1423_v54 = vpop.permute.xlu1 %1422 }
 0x1f7   : > { %v1687_v2 = vsel %vm1655_vm12, %v1654_v63, %v1423_v54 }
 0x1f8   : > { %v1734_v41 = vunpack.c.l.b16 %v1687_v2  ;;  %v1735_v29 = vunpack.c.h.b16 %v1687_v2  ;;  %v2082_v28 = vpop.f32.mrf.mxu2  ;;  %v2362_v57 = vpop.f32.mrf.mxu3 }
 0x1f9   : > { %v2133_v9 = vmul.f32 %v4130_v42, %v2082_v28  ;;  %v2413_v58 = vmul.f32 %v4138_v4, %v2362_v57 }
 0x1fa   : > { %v1766_v31 = vpack.c.b16 %v1734_v41, %v1734_v41  ;;  %v1767_v38 = vpack.c.b16 %v1735_v29, %v1735_v29 }
 0x1fb   : > { %v1253_v44 = vpop.permute.xlu0 %1252  ;;  %v2169_v53 = vadd.f32 %v4147_v39, %v2133_v9  ;;  %v2449_v52 = vadd.f32 %v4156_v8, %v2413_v58 }
 0x1fc   : > { %1831 = vst.msk [vmem:[#allocation3 + $0x78] sm:$0xf] %vm1800_vm13, %v1766_v31  ;;  %v1539_v37 = vsel %vm1523_vm8, %v1506_v46, %v1253_v44 }
 0x1fd   : > { %1832 = vst.msk [vmem:[#allocation3 + $0x7c] sm:$0xf] %vm1800_vm13, %v1767_v38  ;;  %v2201_v16 = vmax.f32 %v2169_v53, 0.0 }
 0x1fe   : > { %v1288_v27 = vpop.permute.xlu1 %1287 }
 0x1ff   : > { %v1572_v60 = vsel %vm1556_vm9, %v1539_v37, %v1288_v27 }
 0x200   : > { %v2084_v7 = vpop.f32.mrf.mxu2  ;;  %v2364_v45 = vpop.f32.mrf.mxu3  ;;  %v1605_v25 = vsel %vm1589_vm10, %v1572_v60, %v1325_v48 }
 0x201   : > { %v2134_v62 = vmul.f32 %v4130_v42, %v2084_v7  ;;  %v2414_v40 = vmul.f32 %v4138_v4, %v2364_v45 }
 0x202   : > { %v2042_v26 = vpop.f32.mrf.mxu0  ;;  %v2322_v20 = vpop.f32.mrf.mxu1 }
 0x203   : > { %v1372_v15 = vpop.permute.xlu0 %1371  ;;  %v2170_v47 = vadd.f32 %v4147_v39, %v2134_v62  ;;  %v2450_v49 = vadd.f32 %v4156_v8, %v2414_v40  ;;  %v2117_v11 = vmul.f32 %v4130_v42, %v2042_v26  ;;  %v2397_v51 = vmul.f32 %v4138_v4, %v2322_v20 }
 0x204   : > { %v2916_v32 = vld [vmem:[#allocation3 + $0x78] sm:$0xff]  ;;  %v1638_v18 = vsel %vm1622_vm11, %v1605_v25, %v1372_v15 }
 0x205   : > { %v2202_v10 = vmax.f32 %v2170_v47, 0.0  ;;  %v3095_v30 = vpack.c.bf16 %v2450_v49, %v2449_v52  ;;  %2872 = vmatmul.msk.bf16.gmra.mxu2 %vm1965_vm14, %v2916_v32  ;;  %2896 = vmatmul.msk.bf16.gmra.mxu3 %vm1965_vm14, %v2916_v32  ;;  %v2153_v61 = vadd.f32 %v4147_v39, %v2117_v11  ;;  %v2433_v24 = vadd.f32 %v4156_v8, %v2397_v51 }
 0x206   : > { %v1407_v50 = vpop.permute.xlu1 %1406 }
 0x207   : > { %v3015_v14 = vpack.c.bf16 %v2202_v10, %v2201_v16  ;;  %3150 = vst [vmem:[%s4170_s27 + $0x58] sm:$0xff] %v3095_v30   ;;  %v1671_v22 = vsel %vm1655_vm12, %v1638_v18, %v1407_v50  ;;  %v2185_v5 = vmax.f32 %v2153_v61, 0.0 }
 0x208   : > { %v1718_v43 = vunpack.c.l.b16 %v1671_v22  ;;  %v1719_v34 = vunpack.c.h.b16 %v1671_v22 }
 0x209   : > { %3135 = vst [vmem:[%s4180_s10 + $0x58] sm:$0xff] %v3015_v14  }
 0x20a   : > { %v1750_v36 = vpack.c.b16 %v1718_v43, %v1718_v43  ;;  %v1751_v13 = vpack.c.b16 %v1719_v34, %v1719_v34  ;;  %v2044_v56 = vpop.f32.mrf.mxu0  ;;  %v2324_v0 = vpop.f32.mrf.mxu1 }
 0x20b   : > { %v2118_v33 = vmul.f32 %v4130_v42, %v2044_v56  ;;  %v2398_v3 = vmul.f32 %v4138_v4, %v2324_v0 }
 0x20c   : > { %1815 = vst.msk [vmem:[#allocation3 + $0x38] sm:$0xf] %vm1800_vm13, %v1750_v36 }
 0x20d   : > { %1816 = vst.msk [vmem:[#allocation3 + $0x3c] sm:$0xf] %vm1800_vm13, %v1751_v13  ;;  %v2154_v19 = vadd.f32 %v4147_v39, %v2118_v33  ;;  %v2434_v59 = vadd.f32 %v4156_v8, %v2398_v3 }
 0x20f   : > { %v2186_v35 = vmax.f32 %v2154_v19, 0.0  ;;  %v3055_v17 = vpack.c.bf16 %v2434_v59, %v2433_v24 }
 0x211   : > { %v2975_v1 = vpack.c.bf16 %v2186_v35, %v2185_v5  ;;  %3142 = vst [vmem:[%s4170_s27 + $0x18] sm:$0xff] %v3055_v17  }
 0x213   : > { %3127 = vst [vmem:[%s4180_s10 + $0x18] sm:$0xff] %v2975_v1  }
 0x214   : > { %v2908_v23 = vld [vmem:[#allocation3 + $0x38] sm:$0xff] }
 0x215   : > { %2864 = vmatmul.msk.bf16.gmra.mxu0 %vm1965_vm14, %v2908_v23  ;;  %2888 = vmatmul.msk.bf16.gmra.mxu1 %vm1965_vm14, %v2908_v23 }
 0x219   : > { %v2087_v54 = vpop.f32.mrf.mxu2  ;;  %v2367_v63 = vpop.f32.mrf.mxu3 }
 0x21a   : > { %v2135_v12 = vmul.f32 %v4130_v42, %v2087_v54  ;;  %v2415_v2 = vmul.f32 %v4138_v4, %v2367_v63 }
 0x21c   : > { %v2171_v28 = vadd.f32 %v4147_v39, %v2135_v12  ;;  %v2451_v38 = vadd.f32 %v4156_v8, %v2415_v2 }
 0x21e   : > { %v2203_v9 = vmax.f32 %v2171_v28, 0.0 }
 0x221   : > { %v2089_v41 = vpop.f32.mrf.mxu2  ;;  %v2369_v29 = vpop.f32.mrf.mxu3 }
 0x222   : > { %v2136_v57 = vmul.f32 %v4130_v42, %v2089_v41  ;;  %v2416_v6 = vmul.f32 %v4138_v4, %v2369_v29 }
 0x223   : > { %v2047_v21 = vpop.f32.mrf.mxu0  ;;  %v2327_v31 = vpop.f32.mrf.mxu1 }
 0x224   : > { %v2172_v44 = vadd.f32 %v4147_v39, %v2136_v57  ;;  %v2452_v55 = vadd.f32 %v4156_v8, %v2416_v6  ;;  %v2119_v58 = vmul.f32 %v4130_v42, %v2047_v21  ;;  %v2399_v48 = vmul.f32 %v4138_v4, %v2327_v31 }
 0x226   : > { %v2204_v46 = vmax.f32 %v2172_v44, 0.0  ;;  %v3100_v27 = vpack.c.bf16 %v2452_v55, %v2451_v38  ;;  %v2155_v45 = vadd.f32 %v4147_v39, %v2119_v58  ;;  %v2435_v40 = vadd.f32 %v4156_v8, %v2399_v48 }
 0x228   : > { %v3020_v37 = vpack.c.bf16 %v2204_v46, %v2203_v9  ;;  %3151 = vst [vmem:[%s4170_s27 + $0x60] sm:$0xff] %v3100_v27   ;;  %v2187_v25 = vmax.f32 %v2155_v45, 0.0 }
 0x22a   : > { %3136 = vst [vmem:[%s4180_s10 + $0x60] sm:$0xff] %v3020_v37  }
 0x22b   : > { %v2049_v60 = vpop.f32.mrf.mxu0  ;;  %v2329_v7 = vpop.f32.mrf.mxu1 }
 0x22c   : > { %v2120_v53 = vmul.f32 %v4130_v42, %v2049_v60  ;;  %v2400_v62 = vmul.f32 %v4138_v4, %v2329_v7 }
 0x22e   : > { %v2156_v26 = vadd.f32 %v4147_v39, %v2120_v53  ;;  %v2436_v52 = vadd.f32 %v4156_v8, %v2400_v62 }
 0x230   : > { %v2188_v15 = vmax.f32 %v2156_v26, 0.0  ;;  %v3060_v47 = vpack.c.bf16 %v2436_v52, %v2435_v40 }
 0x232   : > { %v2980_v49 = vpack.c.bf16 %v2188_v15, %v2187_v25  ;;  %3143 = vst [vmem:[%s4170_s27 + $0x20] sm:$0xff] %v3060_v47  }
 0x234   : > { %3128 = vst [vmem:[%s4180_s10 + $0x20] sm:$0xff] %v2980_v49  }
 0x23d   : > { %v2092_v20 = vpop.f32.mrf.mxu2  ;;  %v2372_v32 = vpop.f32.mrf.mxu3 }
 0x23e   : > { %v2137_v16 = vmul.f32 %v4130_v42, %v2092_v20  ;;  %v2417_v10 = vmul.f32 %v4138_v4, %v2372_v32 }
 0x240   : > { %v2173_v50 = vadd.f32 %v4147_v39, %v2137_v16  ;;  %v2453_v34 = vadd.f32 %v4156_v8, %v2417_v10 }
 0x242   : > { %v2205_v13 = vmax.f32 %v2173_v50, 0.0 }
 0x245   : > { %v2094_v30 = vpop.f32.mrf.mxu2  ;;  %v2374_v18 = vpop.f32.mrf.mxu3 }
 0x246   : > { %v2138_v14 = vmul.f32 %v4130_v42, %v2094_v30  ;;  %v2418_v11 = vmul.f32 %v4138_v4, %v2374_v18 }
 0x247   : > { %v2052_v22 = vpop.f32.mrf.mxu0  ;;  %v2332_v43 = vpop.f32.mrf.mxu1 }
 0x248   : > { %v2174_v51 = vadd.f32 %v4147_v39, %v2138_v14  ;;  %v2454_v36 = vadd.f32 %v4156_v8, %v2418_v11  ;;  %v2121_v0 = vmul.f32 %v4130_v42, %v2052_v22  ;;  %v2401_v3 = vmul.f32 %v4138_v4, %v2332_v43 }
 0x24a   : > { %v2206_v56 = vmax.f32 %v2174_v51, 0.0  ;;  %v3105_v61 = vpack.c.bf16 %v2454_v36, %v2453_v34  ;;  %v2157_v59 = vadd.f32 %v4147_v39, %v2121_v0  ;;  %v2437_v17 = vadd.f32 %v4156_v8, %v2401_v3 }
 0x24c   : > { %v3025_v33 = vpack.c.bf16 %v2206_v56, %v2205_v13  ;;  %3152 = vst [vmem:[%s4170_s27 + $0x68] sm:$0xff] %v3105_v61   ;;  %v2189_v54 = vmax.f32 %v2157_v59, 0.0 }
 0x24e   : > { %3137 = vst [vmem:[%s4180_s10 + $0x68] sm:$0xff] %v3025_v33  }
 0x24f   : > { %v2054_v19 = vpop.f32.mrf.mxu0  ;;  %v2334_v24 = vpop.f32.mrf.mxu1 }
 0x250   : > { %v2122_v5 = vmul.f32 %v4130_v42, %v2054_v19  ;;  %v2402_v35 = vmul.f32 %v4138_v4, %v2334_v24 }
 0x252   : > { %v2158_v1 = vadd.f32 %v4147_v39, %v2122_v5  ;;  %v2438_v23 = vadd.f32 %v4156_v8, %v2402_v35 }
 0x254   : > { %v2190_v63 = vmax.f32 %v2158_v1, 0.0  ;;  %v3065_v12 = vpack.c.bf16 %v2438_v23, %v2437_v17 }
 0x256   : > { %v2985_v2 = vpack.c.bf16 %v2190_v63, %v2189_v54  ;;  %3144 = vst [vmem:[%s4170_s27 + $0x28] sm:$0xff] %v3065_v12  }
 0x258   : > { %3129 = vst [vmem:[%s4180_s10 + $0x28] sm:$0xff] %v2985_v2  }
 0x25e   : > { %v2097_v41 = vpop.f32.mrf.mxu2  ;;  %v2377_v29 = vpop.f32.mrf.mxu3 }
 0x25f   : > { %v2139_v28 = vmul.f32 %v4130_v42, %v2097_v41  ;;  %v2419_v57 = vmul.f32 %v4138_v4, %v2377_v29 }
 0x261   : > { %v2175_v31 = vadd.f32 %v4147_v39, %v2139_v28  ;;  %v2455_v55 = vadd.f32 %v4156_v8, %v2419_v57 }
 0x263   : > { %v2207_v27 = vmax.f32 %v2175_v31, 0.0 }
 0x266   : > { %v2099_v6 = vpop.f32.mrf.mxu2  ;;  %v2379_v21 = vpop.f32.mrf.mxu3 }
 0x267   : > { %v2140_v38 = vmul.f32 %v4130_v42, %v2099_v6  ;;  %v2420_v44 = vmul.f32 %v4138_v4, %v2379_v21 }
 0x269   : > { %v2176_v9 = vadd.f32 %v4147_v39, %v2140_v38  ;;  %v2456_v46 = vadd.f32 %v4156_v8, %v2420_v44 }
 0x26b   : > { %v2208_v37 = vmax.f32 %v2176_v9, 0.0  ;;  %v3110_v58 = vpack.c.bf16 %v2456_v46, %v2455_v55 }
 0x26c   : > { %v2057_v60 = vpop.f32.mrf.mxu0  ;;  %v2337_v7 = vpop.f32.mrf.mxu1 }
 0x26d   : > { %v3030_v48 = vpack.c.bf16 %v2208_v37, %v2207_v27  ;;  %3153 = vst [vmem:[%s4170_s27 + $0x70] sm:$0xff] %v3110_v58   ;;  %v2123_v45 = vmul.f32 %v4130_v42, %v2057_v60  ;;  %v2403_v53 = vmul.f32 %v4138_v4, %v2337_v7 }
 0x26f   : > { %3138 = vst [vmem:[%s4180_s10 + $0x70] sm:$0xff] %v3030_v48   ;;  %v2159_v26 = vadd.f32 %v4147_v39, %v2123_v45  ;;  %v2439_v15 = vadd.f32 %v4156_v8, %v2403_v53 }
 0x271   : > { %v2191_v20 = vmax.f32 %v2159_v26, 0.0 }
 0x274   : > { %v2059_v62 = vpop.f32.mrf.mxu0  ;;  %v2339_v40 = vpop.f32.mrf.mxu1 }
 0x275   : > { %v2124_v52 = vmul.f32 %v4130_v42, %v2059_v62  ;;  %v2404_v25 = vmul.f32 %v4138_v4, %v2339_v40 }
 0x277   : > { %v2160_v47 = vadd.f32 %v4147_v39, %v2124_v52  ;;  %v2440_v49 = vadd.f32 %v4156_v8, %v2404_v25 }
 0x279   : > { %v2192_v32 = vmax.f32 %v2160_v47, 0.0  ;;  %v3070_v16 = vpack.c.bf16 %v2440_v49, %v2439_v15 }
 0x27b   : > { %v2990_v10 = vpack.c.bf16 %v2192_v32, %v2191_v20  ;;  %3145 = vst [vmem:[%s4170_s27 + $0x30] sm:$0xff] %v3070_v16  }
 0x27d   : > { %3130 = vst [vmem:[%s4180_s10 + $0x30] sm:$0xff] %v2990_v10  }
 0x288   : > { %v2102_v30 = vpop.f32.mrf.mxu2  ;;  %v2382_v18 = vpop.f32.mrf.mxu3 }
 0x289   : > { %v2141_v50 = vmul.f32 %v4130_v42, %v2102_v30  ;;  %v2421_v14 = vmul.f32 %v4138_v4, %v2382_v18 }
 0x28b   : > { %v2177_v43 = vadd.f32 %v4147_v39, %v2141_v50  ;;  %v2457_v56 = vadd.f32 %v4156_v8, %v2421_v14 }
 0x28d   : > { %v2209_v0 = vmax.f32 %v2177_v43, 0.0 }
 0x290   : > { %v2104_v11 = vpop.f32.mrf.mxu2  ;;  %v2384_v22 = vpop.f32.mrf.mxu3 }
 0x291   : > { %v2142_v34 = vmul.f32 %v4130_v42, %v2104_v11  ;;  %v2422_v51 = vmul.f32 %v4138_v4, %v2384_v22 }
 0x292   : > { %v2062_v36 = vpop.f32.mrf.mxu0  ;;  %v2342_v13 = vpop.f32.mrf.mxu1 }
 0x293   : > { %v2178_v61 = vadd.f32 %v4147_v39, %v2142_v34  ;;  %v2458_v33 = vadd.f32 %v4156_v8, %v2422_v51  ;;  %v2125_v59 = vmul.f32 %v4130_v42, %v2062_v36  ;;  %v2405_v5 = vmul.f32 %v4138_v4, %v2342_v13 }
 0x295   : > { %v2210_v3 = vmax.f32 %v2178_v61, 0.0  ;;  %v3115_v19 = vpack.c.bf16 %v2458_v33, %v2457_v56  ;;  %v2161_v1 = vadd.f32 %v4147_v39, %v2125_v59  ;;  %v2441_v63 = vadd.f32 %v4156_v8, %v2405_v5 }
 0x297   : > { %v3035_v24 = vpack.c.bf16 %v2210_v3, %v2209_v0  ;;  %3154 = vst [vmem:[%s4170_s27 + $0x78] sm:$0xff] %v3115_v19   ;;  %v2193_v41 = vmax.f32 %v2161_v1, 0.0 }
 0x299   : > { %3139 = vst [vmem:[%s4180_s10 + $0x78] sm:$0xff] %v3035_v24  }
 0x29a   : > { %v2064_v35 = vpop.f32.mrf.mxu0  ;;  %v2344_v17 = vpop.f32.mrf.mxu1 }
 0x29b   : > { %v2126_v23 = vmul.f32 %v4130_v42, %v2064_v35  ;;  %v2406_v54 = vmul.f32 %v4138_v4, %v2344_v17 }
 0x29d   : > { %v2162_v12 = vadd.f32 %v4147_v39, %v2126_v23  ;;  %v2442_v2 = vadd.f32 %v4156_v8, %v2406_v54 }
 0x29f   : > { %v2194_v29 = vmax.f32 %v2162_v12, 0.0  ;;  %v3075_v28 = vpack.c.bf16 %v2442_v2, %v2441_v63 }
 0x2a1   : > { %v2995_v57 = vpack.c.bf16 %v2194_v29, %v2193_v41  ;;  %3146 = vst [vmem:[%s4170_s27 + $0x38] sm:$0xff] %v3075_v28  }
 0x2a3   : > { %3131 = vst [vmem:[%s4180_s10 + $0x38] sm:$0xff] %v2995_v57  }
 0x2a4 PF: > { %s19_s29 = sadd.s32 1, %s3221_s29   ;;  %s4439_s27 = smov %s3217_s28 }
 0x2a5   : > { %p16_p5 = scmp.ge.s32.totalorder %s19_s29, 4   ;;  %s4440_s28 = smov %s4442_s30 }
 0x2a7   :  { %18 = sbr.rel (!%p16_p5) target bundleno = 2 (0x2), region = 119 }

// kernel: _lambda_.3
= control target key start
LH: loop header
LB: loop body
LE: loop exit
PB: predicated region body
PF: predicated region fallthrough
CT: control target
= control target key end

     0   :  { %s5678_s18 = smov 0   ;;  %s5680_s19 = smov 0   ;;  %s7019_s0 = inlined_call_operand.vmem [shape: bf16[2,16,18,128], index: 0, kind: input, shape index: {}]   ;;  %s7020_s1 = inlined_call_operand.vmem [shape: bf16[1152,128], index: 1, kind: input, shape index: {}]   ;;  %s7021_s2 = inlined_call_operand.vmem [shape: f32[1,128], index: 2, kind: input, shape index: {}]   ;;  %s7022_s3 = inlined_call_operand.vmem [shape: f32[1,128], index: 3, kind: input, shape index: {}]   ;;  %s7023_s4 = inlined_call_operand.vmem [shape: bf16[2,16,16,128], index: 4, kind: input, shape index: {}]   ;;  %s7024_s5 = inlined_call_operand.vmem [shape: bf16[2,16,16,128], index: 5, kind: output, shape index: {}]  }
   0x1   :  { %s5682_s20 = smov 0  }
   0x2 LB: > { %s34_s21 = sadd.s32 1, %s5641_s19  ;;  %p4261_p0 = scmp.ge.s32.totalorder %s5645_s20, 1  ;;  %s5645_s20 = sphi %s5682_s20, %s15_s20   ;;  %s5641_s19 = sphi %s5680_s19, %s7235_s19   ;;  %s5637_s18 = sphi %s5678_s18, %s7234_s18  }
   0x3   : > { %p36_p1 = scmp.ge.s32.totalorder %s34_s21, 2  ;;  %p258_p2 = scmp.lt.s32.totalorder %s5645_s20, 3 }
   0x5   : > { %s7237_s21 = smov (%p36_p1, %s34_s21), 0  ;;  %p259_p3 = pnand %p4261_p0, %p258_p2 }
   0x7   : > { %262 = sbr.rel (%p259_p3) target bundleno = 814 (0x32e), region = 40 }
   0xc   : > { %v5286_v0 = vld [vmem:[%s7020_s1 + $0x38] sm:$0xff]  ;;  %p317_p4 = scmp.lt.s32.totalorder %s5637_s18, 1  ;;  %v5285_v1 = vld [vmem:[%s7020_s1 + $0x30] sm:$0xff]  ;;  %v5647_v2 = vmov 0   ;;  %v5284_v3 = vld [vmem:[%s7020_s1 + $0x28] sm:$0xff]  ;;  %vm961_vm1 = vcmask 1046528  }
   0xd   : > { %5569 = vmatpush.bf16.msra.mxu1 %v5286_v0  ;;  %5570 = vmatpush.bf16.msra.mxu2 %v5286_v0  ;;  %367 = vst [vmem:[#allocation2] sm:$0xf] %v5647_v2  ;;  %v5283_v9 = vld [vmem:[%s7020_s1 + $0x20] sm:$0xff]  ;;  %v5282_v21 = vld [vmem:[%s7020_s1 + $0x18] sm:$0xff]  ;;  %v5281_v37 = vld [vmem:[%s7020_s1 + $0x10] sm:$0xff] }
   0xe   : > { %s7239_s18 = smov (!%p317_p4, %s5637_s18), 1  ;;  %5571 = vmatpush.bf16.msra.mxu3 %v5286_v0  ;;  %3024 = vmatpush.bf16.msra.mxu0 %v5286_v0  ;;  %368 = vst [vmem:[#allocation2 + $0x4] sm:$0xf] %v5647_v2  ;;  %vm768_vm0 = vsmask.f32 7424  ;;  %v5280_v58 = vld [vmem:[%s7020_s1 + $0x8] sm:$0xff] }
   0xf   : > { %s5593_s26 = smul.u32 192, %s7239_s18  ;;  %369 = vst [vmem:[#allocation2 + $0x8] sm:$0x1] %v5647_v2  ;;  %s5133_s28 = sshll.u32 %s7239_s18, 7 }
  0x10   : > { %371 = vst [vmem:[#allocation2 + $0xcc] sm:$0xf] %v5647_v2  ;;  %s6830_s9 = scalar_lea.vmem %s7023_s4, %s5133_s28  ;;  %s6853_s14 = scalar_lea.vmem %s7024_s5, %s5133_s28 }
  0x11   : > { %5572 = vmatpush.bf16.msra.mxu1 %v5285_v1  ;;  %5573 = vmatpush.bf16.msra.mxu2 %v5285_v1  ;;  %s5711_s6 = scalar_lea.vmem %s7019_s0, %s5593_s26  ;;  %372 = vst [vmem:[#allocation2 + $0xd0] sm:$0xf] %v5647_v2 }
  0x12   : > { %5574 = vmatpush.bf16.msra.mxu3 %v5285_v1  ;;  %3025 = vmatpush.bf16.msra.mxu0 %v5285_v1  ;;  %v383_v4 = vld [vmem:[%s5711_s6 + $0x24] sm:$0xff]   ;;  %v385_v5 = vld [vmem:[%s5711_s6 + $0x2c] sm:$0x1]  ;;  %v395_v6 = vld [vmem:[%s5711_s6 + $0x54] sm:$0xff]   ;;  %373 = vst [vmem:[#allocation2 + $0xd4] sm:$0x1] %v5647_v2 }
  0x13   : > { %432 = vst [vmem:[#allocation2 + $0x30] sm:$0xff] %v383_v4   ;;  %v397_v7 = vld [vmem:[%s5711_s6 + $0x5c] sm:$0x1]  ;;  %v407_v8 = vld [vmem:[%s5711_s6 + $0x84] sm:$0xff]   ;;  %v409_v10 = vld [vmem:[%s5711_s6 + $0x8c] sm:$0x1] }
  0x14   : > { %434 = vst [vmem:[#allocation2 + $0x38] sm:$0x1] %v385_v5  ;;  %v386_v15 = vld [vmem:[%s5711_s6 + $0x30] sm:$0xff]   ;;  %v388_v17 = vld [vmem:[%s5711_s6 + $0x38] sm:$0x1]  ;;  %v398_v20 = vld [vmem:[%s5711_s6 + $0x60] sm:$0xff]  }
  0x15   : > { %5575 = vmatpush.bf16.msra.mxu1 %v5284_v3  ;;  %5576 = vmatpush.bf16.msra.mxu2 %v5284_v3  ;;  %444 = vst [vmem:[#allocation2 + $0x60] sm:$0xff] %v395_v6   ;;  %v5352_v11 = vld [vmem:[#allocation2] sm:$0xff]   ;;  %v400_v23 = vld [vmem:[%s5711_s6 + $0x68] sm:$0x1]  ;;  %v410_v27 = vld [vmem:[%s5711_s6 + $0x90] sm:$0xff]  }
  0x16   : > { %5577 = vmatpush.bf16.msra.mxu3 %v5284_v3  ;;  %3026 = vmatpush.bf16.msra.mxu0 %v5284_v3  ;;  %446 = vst [vmem:[#allocation2 + $0x68] sm:$0x1] %v397_v7  ;;  %v5353_v12 = vunpack.c.l.bf16 %v5352_v11  ;;  %v5354_v13 = vunpack.c.h.bf16 %v5352_v11  ;;  %v480_v14 = vld [vmem:[#allocation2 + $0x8] sm:$0x1]  ;;  %v412_v32 = vld [vmem:[%s5711_s6 + $0x98] sm:$0x1] }
  0x17   : > { %456 = vst [vmem:[#allocation2 + $0x90] sm:$0xff] %v407_v8   ;;  %v534_v16 = vunpack.c.l.bf16 %v480_v14  ;;  %v374_v36 = vld [vmem:[%s5711_s6] sm:$0xff]   ;;  %v376_v43 = vld [vmem:[%s5711_s6 + $0x8] sm:$0x1] }
  0x18   : > { %458 = vst [vmem:[#allocation2 + $0x98] sm:$0x1] %v409_v10  ;;  %v5724_v18 = vpack.c.bf16 %v5353_v12, %v5353_v12  ;;  %v5726_v19 = vpack.c.bf16 %v5354_v13, %v5354_v13  ;;  %v389_v11 = vld [vmem:[%s5711_s6 + $0x3c] sm:$0xff]  }
  0x19   : > { %5578 = vmatpush.bf16.msra.mxu1 %v5283_v9  ;;  %5579 = vmatpush.bf16.msra.mxu2 %v5283_v9  ;;  %v618_v22 = vpack.c.bf16 %v534_v16, %v534_v16  ;;  %435 = vst [vmem:[#allocation2 + $0x3c] sm:$0xff] %v386_v15   ;;  %v5279_v12 = vld [vmem:[%s7020_s1] sm:$0xff] }
  0x1a   : > { %5580 = vmatpush.bf16.msra.mxu3 %v5283_v9  ;;  %3027 = vmatpush.bf16.msra.mxu0 %v5283_v9  ;;  %v5532_v24 = vld [vmem:[#allocation2 + $0x30] sm:$0xff]   ;;  %v672_v25 = vunpack.c.l.b16 %v5724_v18  ;;  %v673_v26 = vunpack.c.l.b16 %v5726_v19  ;;  %437 = vst [vmem:[#allocation2 + $0x44] sm:$0x1] %v388_v17 }
  0x1b   : > { %v5361_v28 = vunpack.c.l.bf16 %v5532_v24  ;;  %v5362_v29 = vunpack.c.h.bf16 %v5532_v24  ;;  %v492_v30 = vld [vmem:[#allocation2 + $0x38] sm:$0x1]  ;;  %v720_v31 = vunpack.c.l.b16 %v618_v22  ;;  %447 = vst [vmem:[#allocation2 + $0x6c] sm:$0xff] %v398_v20  }
  0x1c   : > { %v546_v33 = vunpack.c.l.bf16 %v492_v30  ;;  %v5534_v34 = vld [vmem:[#allocation2 + $0x60] sm:$0xff]   ;;  %v5741_v35 = vpack.c.b16 %v673_v26, %v672_v25  ;;  %449 = vst [vmem:[#allocation2 + $0x74] sm:$0x1] %v400_v23 }
  0x1d   : > { %5581 = vmatpush.bf16.msra.mxu1 %v5282_v21  ;;  %5582 = vmatpush.bf16.msra.mxu2 %v5282_v21  ;;  %v594_v38 = vpack.c.bf16 %v5361_v28, %v5361_v28  ;;  %v595_v39 = vpack.c.bf16 %v5362_v29, %v5362_v29  ;;  %v5369_v40 = vunpack.c.l.bf16 %v5534_v34  ;;  %v5370_v41 = vunpack.c.h.bf16 %v5534_v34  ;;  %v504_v42 = vld [vmem:[#allocation2 + $0x68] sm:$0x1]  ;;  %459 = vst [vmem:[#allocation2 + $0x9c] sm:$0xff] %v410_v27   ;;  %v5302_v29 = vld [vmem:[%s7020_s1 + $0xb8] sm:$0xff] }
  0x1e   : > { %5583 = vmatpush.bf16.msra.mxu3 %v5282_v21  ;;  %3028 = vmatpush.bf16.msra.mxu0 %v5282_v21  ;;  %v622_v44 = vpack.c.bf16 %v546_v33, %v546_v33  ;;  %v558_v45 = vunpack.c.l.bf16 %v504_v42  ;;  %v5536_v46 = vld [vmem:[#allocation2 + $0x90] sm:$0xff]   ;;  %v5748_v47 = vpack.c.b16 %v720_v31, %v720_v31  ;;  %v770_v48 = vshrl.u32 %v5741_v35, 16  ;;  %461 = vst [vmem:[#allocation2 + $0xa4] sm:$0x1] %v412_v32  ;;  %v5310_v31 = vld [vmem:[%s7020_s1 + $0xf8] sm:$0xff] }
  0x1f   : > { %v5751_v49 = vunpack.c.l.b16 %v594_v38  ;;  %v5753_v50 = vunpack.c.l.b16 %v595_v39  ;;  %v602_v51 = vpack.c.bf16 %v5369_v40, %v5369_v40  ;;  %v603_v52 = vpack.c.bf16 %v5370_v41, %v5370_v41  ;;  %v516_v53 = vld [vmem:[#allocation2 + $0x98] sm:$0x1]  ;;  %423 = vst [vmem:[#allocation2 + $0xc] sm:$0xff] %v374_v36   ;;  %v401_v32 = vld [vmem:[%s5711_s6 + $0x6c] sm:$0xff]  }
  0x20   : > { %v724_v54 = vunpack.c.l.b16 %v622_v44  ;;  %v626_v55 = vpack.c.bf16 %v558_v45, %v558_v45  ;;  %v5377_v56 = vunpack.c.l.bf16 %v5536_v46  ;;  %v5378_v57 = vunpack.c.h.bf16 %v5536_v46  ;;  %425 = vst [vmem:[#allocation2 + $0x14] sm:$0x1] %v376_v43  ;;  %v5793_v23 = vld [vmem:[#allocation2 + $0x3c] sm:$0xff]   ;;  %v391_v44 = vld [vmem:[%s5711_s6 + $0x44] sm:$0x1] }
  0x21   : > { %5584 = vmatpush.bf16.msra.mxu1 %v5281_v37  ;;  %5585 = vmatpush.bf16.msra.mxu2 %v5281_v37  ;;  %v5760_v59 = vpack.c.b16 %v5753_v50, %v5751_v49  ;;  %v5762_v60 = vunpack.c.l.b16 %v602_v51  ;;  %v5764_v61 = vunpack.c.l.b16 %v603_v52  ;;  %v570_v62 = vunpack.c.l.bf16 %v516_v53  ;;  %438 = vst [vmem:[#allocation2 + $0x48] sm:$0xff] %v389_v11   ;;  %v5294_v38 = vld [vmem:[%s7020_s1 + $0x78] sm:$0xff]  ;;  %v403_v45 = vld [vmem:[%s5711_s6 + $0x74] sm:$0x1] }
  0x22   : > { %5586 = vmatpush.bf16.msra.mxu3 %v5281_v37  ;;  %3029 = vmatpush.bf16.msra.mxu0 %v5281_v37  ;;  %v5766_v63 = vpack.c.b16 %v724_v54, %v724_v54  ;;  %v728_v0 = vunpack.c.l.b16 %v626_v55  ;;  %v610_v1 = vpack.c.bf16 %v5377_v56, %v5377_v56  ;;  %v611_v2 = vpack.c.bf16 %v5378_v57, %v5378_v57  ;;  %v5318_v39 = vld [vmem:[%s7020_s1 + $0x138] sm:$0xff]  ;;  %v495_v54 = vld [vmem:[#allocation2 + $0x44] sm:$0x1] }
  0x23   : > { %v818_v3 = vshrl.u32 %v5760_v59, 16  ;;  %v820_v4 = vshll.u32 %v5760_v59, 16  ;;  %v5772_v5 = vpack.c.b16 %v5764_v61, %v5762_v60  ;;  %v630_v6 = vpack.c.bf16 %v570_v62, %v570_v62  ;;  %440 = vst [vmem:[#allocation2 + $0x50] sm:$0x1] %v391_v44  ;;  %v413_v55 = vld [vmem:[%s5711_s6 + $0x9c] sm:$0xff]   ;;  %v5309_v62 = vld [vmem:[%s7020_s1 + $0xf0] sm:$0xff] }
  0x24   : > { %v825_v7 = vshll.u32 %v5766_v63, 16  ;;  %v5775_v8 = vpack.c.b16 %v728_v0, %v728_v0  ;;  %v5777_v9 = vunpack.c.l.b16 %v610_v1  ;;  %v5779_v10 = vunpack.c.l.b16 %v611_v2  ;;  %450 = vst [vmem:[#allocation2 + $0x78] sm:$0xff] %v401_v32   ;;  %v517_v32 = vld [vmem:[#allocation2 + $0x9c] sm:$0xff]  }
  0x25   : > { %5587 = vmatpush.bf16.msra.mxu1 %v5280_v58  ;;  %5588 = vmatpush.bf16.msra.mxu2 %v5280_v58  ;;  %v822_v13 = vrot.slane %v820_v4, 1  ;;  %v866_v14 = vshrl.u32 %v5772_v5, 16  ;;  %v868_v15 = vshll.u32 %v5772_v5, 16  ;;  %v732_v16 = vunpack.c.l.b16 %v630_v6  ;;  %v5293_v4 = vld [vmem:[%s7020_s1 + $0x70] sm:$0xff]  ;;  %452 = vst [vmem:[#allocation2 + $0x80] sm:$0x1] %v403_v45 }
  0x26   : > { %7098 = vst [vmem:[#allocation4_spill] sm:$0xff] %v5777_v9  ;;  %5589 = vmatpush.bf16.msra.mxu3 %v5280_v58  ;;  %3030 = vmatpush.bf16.msra.mxu0 %v5280_v58  ;;  %v827_v17 = vrot.slane %v825_v7, 1  ;;  %v873_v20 = vshll.u32 %v5775_v8, 16  ;;  %v5790_v21 = vpack.c.b16 %v5779_v10, %v5777_v9  ;;  %v772_v22 = vshll.u32 %v5741_v35, 16  ;;  %v5301_v58 = vld [vmem:[%s7020_s1 + $0xb0] sm:$0xff] }
  0x27   : > { %7099 = vst [vmem:[#allocation5_spill] sm:$0xff] %v5779_v10  ;;  %v823_v24 = vor.u32 %v822_v13, %v818_v3  ;;  %v870_v27 = vrot.slane %v868_v15, 1  ;;  %v5795_v28 = vpack.c.b16 %v732_v16, %v732_v16  ;;  %v777_v30 = vshll.u32 %v5748_v47, 16 }
  0x28   : > { %7100 = vst [vmem:[#allocation6_spill] sm:$0xff] %v5790_v21  ;;  %v875_v33 = vrot.slane %v873_v20, 1  ;;  %v914_v34 = vshrl.u32 %v5790_v21, 16  ;;  %v916_v36 = vshll.u32 %v5790_v21, 16  ;;  %v774_v37 = vrot.slane %v772_v22, 1 }
  0x29   : > { %7101 = vst [vmem:[#allocation7_spill] sm:$0xff] %v5795_v28  ;;  %5590 = vmatpush.bf16.msra.mxu1 %v5279_v12  ;;  %5591 = vmatpush.bf16.msra.mxu2 %v5279_v12  ;;  %v5814_v40 = vsel %vm768_vm0, %v823_v24, %v827_v17  ;;  %v871_v41 = vor.u32 %v870_v27, %v866_v14  ;;  %v921_v42 = vshll.u32 %v5795_v28, 16  ;;  %v779_v43 = vrot.slane %v777_v30, 1  ;;  %v505_v17 = vld [vmem:[#allocation2 + $0x6c] sm:$0xff]   ;;  %v507_v24 = vld [vmem:[#allocation2 + $0x74] sm:$0x1] }
  0x2a   : > { %5592 = vmatpush.bf16.msra.mxu3 %v5279_v12  ;;  %3031 = vmatpush.bf16.msra.mxu0 %v5279_v12  ;;  %v7036_v46 = vunpack.c.l.b16 %v5814_v40  ;;  %v7035_v51 = vunpack.c.h.b16 %v5814_v40  ;;  %v918_v52 = vrot.slane %v916_v36, 1  ;;  %v775_v53 = vor.u32 %v774_v37, %v770_v48  ;;  %462 = vst [vmem:[#allocation2 + $0xa8] sm:$0xff] %v413_v55  }
  0x2b   : > { %v5825_v56 = vsel %vm768_vm0, %v871_v41, %v875_v33  ;;  %v923_v57 = vrot.slane %v921_v42, 1  ;;  %v547_v0 = vunpack.c.l.bf16 %v5793_v23  ;;  %v548_v11 = vunpack.c.h.bf16 %v5793_v23 }
  0x2c   : > { %7102 = vst [vmem:[#allocation8_spill] sm:$0xff] %v5825_v56  ;;  %v1150_v48 = vpack.c.b16 %v7036_v46, %v5751_v49  ;;  %v1154_v1 = vpack.c.b16 %v7035_v51, %v5753_v50  ;;  %v7032_v2 = vunpack.c.l.b16 %v5825_v56  ;;  %v7027_v3 = vunpack.c.h.b16 %v5825_v56 }
  0x2d   : > { %3202 = vmatpush.bf16.msrb.mxu2 %v5302_v29  ;;  %3113 = vmatpush.bf16.msrb.mxu1 %v5294_v38  ;;  %v919_v6 = vor.u32 %v918_v52, %v914_v34  ;;  %v780_v7 = vsel %vm768_vm0, %v775_v53, %v779_v43  ;;  %v549_v12 = vunpack.c.l.bf16 %v495_v54  ;;  %v596_v22 = vpack.c.bf16 %v547_v0, %v547_v0  ;;  %v519_v38 = vld [vmem:[#allocation2 + $0xa4] sm:$0x1]  ;;  %v5300_v54 = vld [vmem:[%s7020_s1 + $0xa8] sm:$0xff] }
  0x2e   : > { %3291 = vmatpush.bf16.msrb.mxu3 %v5310_v31  ;;  %3380 = vmatpush.bf16.msrb.mxu0 %v5318_v39  ;;  %1432 = vst [vmem:[#allocation3 + $0x120] sm:$0xff] %v1150_v48  ;;  %v1182_v13 = vpack.c.b16 %v7032_v2, %v5762_v60  ;;  %v1186_v14 = vpack.c.b16 %v7027_v3, %v5764_v61  ;;  %v1056_v15 = vunpack.c.l.b16 %v780_v7  ;;  %v1062_v16 = vunpack.c.h.b16 %v780_v7 }
  0x2f   : > { %1437 = vst [vmem:[#allocation3 + $0x144] sm:$0xff] %v1154_v1  ;;  %v5854_v20 = vsel %vm768_vm0, %v919_v6, %v923_v57  ;;  %v597_v23 = vpack.c.bf16 %v548_v11, %v548_v11  ;;  %v623_v33 = vpack.c.bf16 %v549_v12, %v549_v12  ;;  %v5864_v34 = vunpack.c.l.b16 %v596_v22  ;;  %v481_v11 = vld [vmem:[#allocation2 + $0xc] sm:$0xff]  }
  0x30   : > { %7103 = vst [vmem:[#allocation9_spill] sm:$0xff] %v5854_v20  ;;  %v7026_v27 = vunpack.c.l.b16 %v5854_v20  ;;  %v7025_v29 = vunpack.c.h.b16 %v5854_v20  ;;  %v1128_v30 = vpack.c.b16 %v1056_v15, %v672_v25  ;;  %v5862_v31 = vpack.c.b16 %v1062_v16, %v673_v26 }
  0x31   : > { %3203 = vmatpush.bf16.msrb.mxu2 %v5301_v58  ;;  %1415 = vst [vmem:[#allocation3 + $0xa8] sm:$0xff] %v1150_v48  ;;  %3114 = vmatpush.bf16.msrb.mxu1 %v5293_v4  ;;  %v5866_v36 = vunpack.c.l.b16 %v597_v23  ;;  %v559_v37 = vunpack.c.l.bf16 %v505_v17  ;;  %v560_v25 = vunpack.c.h.bf16 %v505_v17  ;;  %v561_v26 = vunpack.c.l.bf16 %v507_v24  ;;  %v483_v24 = vld [vmem:[#allocation2 + $0x14] sm:$0x1] }
  0x32   : > { %3292 = vmatpush.bf16.msrb.mxu3 %v5309_v62  ;;  %1420 = vst [vmem:[#allocation3 + $0xcc] sm:$0xff] %v1154_v1  ;;  %v1214_v18 = vpack.c.b16 %v7026_v27, %v5777_v9  ;;  %v1218_v19 = vpack.c.b16 %v7025_v29, %v5779_v10  ;;  %v725_v39 = vunpack.c.l.b16 %v623_v33  ;;  %v571_v43 = vunpack.c.l.bf16 %v517_v32  ;;  %v498_v29 = vld [vmem:[#allocation2 + $0x50] sm:$0x1] }
  0x33   : > { %1472 = vst [vmem:[#allocation3 + $0x240] sm:$0xff] %v1182_v13  ;;  %v5876_v41 = vpack.c.b16 %v5866_v36, %v5864_v34  ;;  %v604_v42 = vpack.c.bf16 %v559_v37, %v559_v37  ;;  %v605_v44 = vpack.c.bf16 %v560_v25, %v560_v25  ;;  %v627_v45 = vpack.c.bf16 %v561_v26, %v561_v26 }
  0x34   : > { %1477 = vst [vmem:[#allocation3 + $0x264] sm:$0xff] %v1186_v14  ;;  %v572_v52 = vunpack.c.h.bf16 %v517_v32  ;;  %v573_v53 = vunpack.c.l.bf16 %v519_v38  ;;  %v5881_v57 = vpack.c.b16 %v725_v39, %v725_v39  ;;  %v612_v6 = vpack.c.bf16 %v571_v43, %v571_v43 }
  0x35   : > { %1455 = vst [vmem:[#allocation3 + $0x1c8] sm:$0xff] %v1182_v13  ;;  %v4413_v55 = vld [vmem:[#allocation3 + $0x120] sm:$0xf]  ;;  %v830_v58 = vshrl.u32 %v5876_v41, 16  ;;  %v832_v62 = vshll.u32 %v5876_v41, 16  ;;  %v5885_v0 = vunpack.c.l.b16 %v604_v42  ;;  %v5887_v1 = vunpack.c.l.b16 %v605_v44  ;;  %3204 = vmatpush.bf16.msrb.mxu2 %v5300_v54 }
  0x36   : > { %1460 = vst [vmem:[#allocation3 + $0x1ec] sm:$0xff] %v1186_v14  ;;  %v5175_v48 = vld [vmem:[#allocation3 + $0x140] sm:$0xf0]  ;;  %v729_v4 = vunpack.c.l.b16 %v627_v45  ;;  %v613_v7 = vpack.c.bf16 %v572_v52, %v572_v52  ;;  %v837_v14 = vshll.u32 %v5881_v57, 16  ;;  %v631_v15 = vpack.c.bf16 %v573_v53, %v573_v53  ;;  %v415_v54 = vld [vmem:[%s5711_s6 + $0xa4] sm:$0x1] }
  0x37   : > { %7104 = vst [vmem:[#allocation10_spill] sm:$0xff] %v5885_v0  ;;  %v4414_v12 = vor.u32 %v5175_v48, %v4413_v55  ;;  %v834_v13 = vrot.slane %v832_v62, 1  ;;  %v5892_v16 = vpack.c.b16 %v5887_v1, %v5885_v0  ;;  %v5896_v22 = vunpack.c.l.b16 %v612_v6  ;;  %v5292_v6 = vld [vmem:[%s7020_s1 + $0x68] sm:$0xff] }
  0x38   : > { %1512 = vst [vmem:[#allocation3 + $0x360] sm:$0xff] %v1214_v18  ;;  %v5894_v17 = vpack.c.b16 %v729_v4, %v729_v4  ;;  %v5898_v23 = vunpack.c.l.b16 %v613_v7  ;;  %v839_v37 = vrot.slane %v837_v14, 1  ;;  %v733_v38 = vunpack.c.l.b16 %v631_v15  ;;  %v5308_v4 = vld [vmem:[%s7020_s1 + $0xe8] sm:$0xff]  ;;  %v5299_v15 = vld [vmem:[%s7020_s1 + $0xa0] sm:$0xff]  ;;  %3115 = vmatpush.bf16.msrb.mxu1 %v5292_v6 }
  0x39   : > { %7105 = vst [vmem:[#allocation11_spill] sm:$0xff] %v5887_v1  ;;  %3052 = vmatmul.bf16.vlgmr.msra.gmra.mxu1 %v4414_v12  ;;  %v835_v33 = vor.u32 %v834_v13, %v830_v58  ;;  %v535_v25 = vunpack.c.l.bf16 %v481_v11  ;;  %v878_v39 = vshrl.u32 %v5892_v16, 16  ;;  %v880_v42 = vshll.u32 %v5892_v16, 16  ;;  %3293 = vmatpush.bf16.msrb.mxu3 %v5308_v4 }
  0x3a   : > { %1517 = vst [vmem:[#allocation3 + $0x384] sm:$0xff] %v1218_v19  ;;  %v4557_v32 = vld [vmem:[#allocation3 + $0x240] sm:$0xf]  ;;  %v885_v43 = vshll.u32 %v5894_v17, 16  ;;  %v5906_v44 = vpack.c.b16 %v5898_v23, %v5896_v22  ;;  %v5912_v52 = vpack.c.b16 %v733_v38, %v733_v38  ;;  %v536_v53 = vunpack.c.h.bf16 %v481_v11  ;;  %3205 = vmatpush.bf16.msrb.mxu2 %v5299_v15 }
  0x3b   : > { %1495 = vst [vmem:[#allocation3 + $0x2e8] sm:$0xff] %v1214_v18  ;;  %v377_v18 = vld [vmem:[%s5711_s6 + $0xc] sm:$0xff]   ;;  %v5211_v26 = vld [vmem:[#allocation3 + $0x260] sm:$0xf0]  ;;  %v882_v62 = vrot.slane %v880_v42, 1  ;;  %v537_v14 = vunpack.c.l.bf16 %v483_v24  ;;  %v5307_v24 = vld [vmem:[%s7020_s1 + $0xe0] sm:$0xff] }
  0x3c   : > { %7106 = vst [vmem:[#allocation12_spill] sm:$0xff] %v5892_v16  ;;  %v4558_v45 = vor.u32 %v5211_v26, %v4557_v32  ;;  %v887_v48 = vrot.slane %v885_v43, 1  ;;  %v926_v11 = vshrl.u32 %v5906_v44, 16  ;;  %v928_v12 = vshll.u32 %v5906_v44, 16 }
  0x3d   : > { %7107 = vst [vmem:[#allocation13_spill] sm:$0xff] %v5894_v17  ;;  %v933_v13 = vshll.u32 %v5912_v52, 16  ;;  %v883_v38 = vor.u32 %v882_v62, %v878_v39  ;;  %v619_v39 = vpack.c.bf16 %v537_v14, %v537_v14  ;;  %v5316_v62 = vld [vmem:[%s7020_s1 + $0x128] sm:$0xff]  ;;  %3294 = vmatpush.bf16.msrb.mxu3 %v5307_v24 }
  0x3e   : > { %7108 = vst [vmem:[#allocation14_spill] sm:$0xff] %v5896_v22  ;;  %3072 = vmatmul.bf16.vlgmr.msra.gmra.mxu2 %v4558_v45  ;;  %v930_v42 = vrot.slane %v928_v12, 1  ;;  %v589_v45 = vpack.c.bf16 %v536_v53, %v536_v53  ;;  %v5291_v53 = vld [vmem:[%s7020_s1 + $0x60] sm:$0xff]  ;;  %v379_v12 = vld [vmem:[%s5711_s6 + $0x14] sm:$0x1] }
  0x3f   : > { %7109 = vst [vmem:[#allocation15_spill] sm:$0xff] %v5898_v23  ;;  %v4701_v7 = vld [vmem:[#allocation3 + $0x360] sm:$0xf]  ;;  %v935_v43 = vrot.slane %v933_v13, 1  ;;  %v5944_v27 = vsel %vm768_vm0, %v883_v38, %v887_v48  ;;  %v721_v14 = vunpack.c.l.b16 %v619_v39  ;;  %3116 = vmatpush.bf16.msrb.mxu1 %v5291_v53 }
  0x40   : > { %1500 = vst [vmem:[#allocation3 + $0x30c] sm:$0xff] %v1218_v19  ;;  %v5910_v19 = vsel %vm768_vm0, %v835_v33, %v839_v37  ;;  %v7030_v48 = vunpack.c.l.b16 %v5944_v27  ;;  %v931_v6 = vor.u32 %v930_v42, %v926_v11 }
  0x41   : > { %1392 = vst [vmem:[#allocation3] sm:$0xff] %v1128_v30  ;;  %v5914_v30 = vld [vmem:[#allocation2 + $0x48] sm:$0xff]   ;;  %v7034_v55 = vunpack.c.l.b16 %v5910_v19  ;;  %v7033_v58 = vunpack.c.h.b16 %v5910_v19  ;;  %v5247_v32 = vld [vmem:[#allocation3 + $0x380] sm:$0xf0] }
  0x42   : > { %7110 = vst [vmem:[#allocation16_spill] sm:$0xff] %v5906_v44  ;;  %v4702_v26 = vor.u32 %v5247_v32, %v4701_v7  ;;  %v5365_v4 = vunpack.c.l.bf16 %v5914_v30  ;;  %v5957_v7 = vunpack.c.l.b16 %v589_v45  ;;  %v5366_v15 = vunpack.c.h.bf16 %v5914_v30 }
  0x43   : > { %1397 = vst [vmem:[#allocation3 + $0x24] sm:$0xff] %v5862_v31  ;;  %v5317_v31 = vld [vmem:[%s7020_s1 + $0x130] sm:$0xff]  ;;  %v1158_v33 = vpack.c.b16 %v7034_v55, %v5864_v34  ;;  %v1162_v37 = vpack.c.b16 %v7033_v58, %v5866_v36  ;;  %v552_v32 = vunpack.c.l.bf16 %v498_v29  ;;  %v1190_v3 = vpack.c.b16 %v7030_v48, %v5885_v0 }
  0x44   : > { %7111 = vst [vmem:[#allocation17_spill] sm:$0xff] %v5912_v52  ;;  %3381 = vmatpush.bf16.msrb.mxu0 %v5317_v31  ;;  %3092 = vmatmul.bf16.vlgmr.msra.gmra.mxu3 %v4702_v26  ;;  %v7029_v31 = vunpack.c.h.b16 %v5944_v27  ;;  %v598_v38 = vpack.c.bf16 %v5365_v4, %v5365_v4  ;;  %v5968_v42 = vsel %vm768_vm0, %v931_v6, %v935_v43  ;;  %v510_v4 = vld [vmem:[#allocation2 + $0x80] sm:$0x1] }
  0x45   : > { %426 = vst [vmem:[#allocation2 + $0x18] sm:$0xff] %v377_v18   ;;  %v588_v18 = vpack.c.bf16 %v535_v25, %v535_v25  ;;  %v7031_v30 = vunpack.c.h.b16 %v5968_v42  ;;  %v599_v24 = vpack.c.bf16 %v5366_v15, %v5366_v15  ;;  %v624_v45 = vpack.c.bf16 %v552_v32, %v552_v32 }
  0x46   : > { %464 = vst [vmem:[#allocation2 + $0xb0] sm:$0x1] %v415_v54  ;;  %v1194_v11 = vpack.c.b16 %v7029_v31, %v5887_v1  ;;  %v5978_v39 = vunpack.c.l.b16 %v598_v38  ;;  %v564_v31 = vunpack.c.l.bf16 %v510_v4  ;;  %v394_v4 = vld [vmem:[%s5711_s6 + $0x50] sm:$0x1] }
  0x47   : > { %1442 = vst [vmem:[#allocation3 + $0x168] sm:$0xff] %v1158_v33  ;;  %v5946_v25 = vunpack.c.l.b16 %v588_v18  ;;  %v5535_v18 = vld [vmem:[#allocation2 + $0x78] sm:$0xff]   ;;  %v5991_v15 = vunpack.c.l.b16 %v599_v24  ;;  %v726_v32 = vunpack.c.l.b16 %v624_v45 }
  0x48   : > { %7112 = vst [vmem:[#allocation18_spill] sm:$0xff] %v5944_v27  ;;  %v4269_v54 = vld [vmem:[#allocation3] sm:$0xf]  ;;  %3382 = vmatpush.bf16.msrb.mxu0 %v5316_v62  ;;  %v5373_v43 = vunpack.c.l.bf16 %v5535_v18  ;;  %v1226_v62 = vpack.c.b16 %v7031_v30, %v5898_v23  ;;  %v5374_v38 = vunpack.c.h.bf16 %v5535_v18  ;;  %v628_v55 = vpack.c.bf16 %v564_v31, %v564_v31 }
  0x49   : > { %1447 = vst [vmem:[#allocation3 + $0x18c] sm:$0xff] %v1162_v37  ;;  %v5974_v29 = vpack.c.b16 %v5957_v7, %v5946_v25  ;;  %v5998_v24 = vpack.c.b16 %v726_v32, %v726_v32  ;;  %v5298_v31 = vld [vmem:[%s7020_s1 + $0x98] sm:$0xff] }
  0x4a   : > { %v5139_v13 = vld [vmem:[#allocation3 + $0x20] sm:$0xf0]  ;;  %1425 = vst [vmem:[#allocation3 + $0xf0] sm:$0xff] %v1158_v33  ;;  %v7028_v33 = vunpack.c.l.b16 %v5968_v42  ;;  %v606_v48 = vpack.c.bf16 %v5373_v43, %v5373_v43  ;;  %v392_v43 = vld [vmem:[%s5711_s6 + $0x48] sm:$0xff]   ;;  %3206 = vmatpush.bf16.msrb.mxu2 %v5298_v31  ;;  %v418_v31 = vld [vmem:[%s5711_s6 + $0xb0] sm:$0x1] }
  0x4b   : > { %v4270_v26 = vor.u32 %v5139_v13, %v4269_v54  ;;  %1430 = vst [vmem:[#allocation3 + $0x114] sm:$0xff] %v1162_v37  ;;  %v5976_v37 = vpack.c.b16 %v721_v14, %v721_v14  ;;  %v5980_v54 = vld [vmem:[#allocation2 + $0xa8] sm:$0xff]   ;;  %v782_v53 = vshrl.u32 %v5974_v29, 16 }
  0x4c   : > { %7113 = vst [vmem:[#allocation19_spill] sm:$0xff] %v5968_v42  ;;  %v1222_v6 = vpack.c.b16 %v7028_v33, %v5896_v22  ;;  %v5381_v30 = vunpack.c.l.bf16 %v5980_v54  ;;  %v5382_v32 = vunpack.c.h.bf16 %v5980_v54 }
  0x4d   : > { %428 = vst [vmem:[#allocation2 + $0x20] sm:$0x1] %v379_v12  ;;  %3032 = vmatmul.bf16.vlgmr.msra.gmra.mxu0 %v4270_v26  ;;  %v784_v12 = vshll.u32 %v5974_v29, 16  ;;  %v789_v14 = vshll.u32 %v5976_v37, 16  ;;  %v522_v45 = vld [vmem:[#allocation2 + $0xb0] sm:$0x1] }
  0x4e   : > { %1482 = vst [vmem:[#allocation3 + $0x288] sm:$0xff] %v1190_v3  ;;  %v4449_v13 = vld [vmem:[#allocation3 + $0x168] sm:$0xf] }
  0x4f   : > { %1487 = vst [vmem:[#allocation3 + $0x2ac] sm:$0xff] %v1194_v11  ;;  %v786_v33 = vrot.slane %v784_v12, 1  ;;  %v791_v58 = vrot.slane %v789_v14, 1  ;;  %v6000_v12 = vunpack.c.l.b16 %v606_v48 }
  0x50   : > { %1465 = vst [vmem:[#allocation3 + $0x210] sm:$0xff] %v1190_v3  ;;  %v5184_v26 = vld [vmem:[#allocation3 + $0x188] sm:$0xf0]  ;;  %v5996_v3 = vpack.c.b16 %v5991_v15, %v5978_v39 }
  0x51   : > { %1470 = vst [vmem:[#allocation3 + $0x234] sm:$0xff] %v1194_v11  ;;  %v4450_v2 = vor.u32 %v5184_v26, %v4449_v13  ;;  %v787_v18 = vor.u32 %v786_v33, %v782_v53  ;;  %v607_v11 = vpack.c.bf16 %v5374_v38, %v5374_v38  ;;  %v849_v26 = vshll.u32 %v5998_v24, 16  ;;  %v404_v38 = vld [vmem:[%s5711_s6 + $0x78] sm:$0xff]  }
  0x52   : > { %1522 = vst [vmem:[#allocation3 + $0x3a8] sm:$0xff] %v1222_v6  ;;  %v842_v13 = vshrl.u32 %v5996_v3, 16  ;;  %v844_v14 = vshll.u32 %v5996_v3, 16  ;;  %v576_v53 = vunpack.c.l.bf16 %v522_v45  ;;  %v614_v45 = vpack.c.bf16 %v5381_v30, %v5381_v30 }
  0x53   : > { %1527 = vst [vmem:[#allocation3 + $0x3cc] sm:$0xff] %v1226_v62  ;;  %3057 = vmatmul.bf16.gmra.mxu1 %v4450_v2  ;;  %v6012_v33 = vsel %vm768_vm0, %v787_v18, %v791_v58  ;;  %v6014_v2 = vunpack.c.l.b16 %v607_v11  ;;  %v851_v23 = vrot.slane %v849_v26, 1  ;;  %v5531_v18 = vld [vmem:[#allocation2 + $0x18] sm:$0xff]   ;;  %v615_v26 = vpack.c.bf16 %v5382_v32, %v5382_v32 }
  0x54   : > { %7114 = vst [vmem:[#allocation20_spill] sm:$0xff] %v6000_v12  ;;  %v7042_v46 = vunpack.c.l.b16 %v6012_v33  ;;  %v7043_v54 = vunpack.c.h.b16 %v6012_v33  ;;  %v846_v42 = vrot.slane %v844_v14, 1  ;;  %v632_v52 = vpack.c.bf16 %v576_v53, %v576_v53  ;;  %v486_v32 = vld [vmem:[#allocation2 + $0x20] sm:$0x1]  ;;  %v380_v53 = vld [vmem:[%s5711_s6 + $0x18] sm:$0xff]  }
  0x55   : > { %1505 = vst [vmem:[#allocation3 + $0x330] sm:$0xff] %v1222_v6  ;;  %v4593_v48 = vld [vmem:[#allocation3 + $0x288] sm:$0xf]  ;;  %v730_v6 = vunpack.c.l.b16 %v628_v55  ;;  %v6022_v58 = vpack.c.b16 %v6014_v2, %v6000_v12 }
  0x56   : > { %1510 = vst [vmem:[#allocation3 + $0x354] sm:$0xff] %v1226_v62  ;;  %v5220_v51 = vld [vmem:[#allocation3 + $0x2a8] sm:$0xf0]  ;;  %v416_v62 = vld [vmem:[%s5711_s6 + $0xa8] sm:$0xff]   ;;  %v1138_v11 = vpack.c.b16 %v7042_v46, %v5946_v25  ;;  %v1143_v14 = vpack.c.b16 %v7043_v54, %v5957_v7  ;;  %v734_v9 = vunpack.c.l.b16 %v632_v52  ;;  %v5306_v52 = vld [vmem:[%s7020_s1 + $0xd8] sm:$0xff] }
  0x57   : > { %7115 = vst [vmem:[#allocation21_spill] sm:$0xff] %v6014_v2  ;;  %v4594_v22 = vor.u32 %v5220_v51, %v4593_v48  ;;  %v6024_v55 = vpack.c.b16 %v730_v6, %v730_v6  ;;  %v406_v51 = vld [vmem:[%s5711_s6 + $0x80] sm:$0x1]  ;;  %v890_v6 = vshrl.u32 %v6022_v58, 16  ;;  %v892_v30 = vshll.u32 %v6022_v58, 16  ;;  %3295 = vmatpush.bf16.msrb.mxu3 %v5306_v52 }
  0x58   : > { %441 = vst [vmem:[#allocation2 + $0x54] sm:$0xff] %v392_v43   ;;  %v847_v43 = vor.u32 %v846_v42, %v842_v13  ;;  %v6040_v42 = vunpack.c.l.b16 %v614_v45  ;;  %v6042_v13 = vunpack.c.l.b16 %v615_v26  ;;  %v5358_v45 = vunpack.c.h.bf16 %v5531_v18  ;;  %v5290_v26 = vld [vmem:[%s7020_s1 + $0x58] sm:$0xff] }
  0x59   : > { %7116 = vst [vmem:[#allocation22_spill] sm:$0xff] %v6022_v58  ;;  %3077 = vmatmul.bf16.gmra.mxu2 %v4594_v22  ;;  %v4737_v48 = vld [vmem:[#allocation3 + $0x3a8] sm:$0xf]  ;;  %v5357_v22 = vunpack.c.l.bf16 %v5531_v18  ;;  %v894_v10 = vrot.slane %v892_v30, 1  ;;  %v5297_v30 = vld [vmem:[%s7020_s1 + $0x90] sm:$0xff]  ;;  %3117 = vmatpush.bf16.msrb.mxu1 %v5290_v26 }
  0x5a   : > { %7117 = vst [vmem:[#allocation23_spill] sm:$0xff] %v6024_v55  ;;  %v5256_v46 = vld [vmem:[#allocation3 + $0x3c8] sm:$0xf0]  ;;  %v6038_v54 = vsel %vm768_vm0, %v847_v43, %v851_v23  ;;  %v6049_v23 = vpack.c.b16 %v6042_v13, %v6040_v42  ;;  %v540_v43 = vunpack.c.l.bf16 %v486_v32  ;;  %v591_v32 = vpack.c.bf16 %v5358_v45, %v5358_v45  ;;  %3207 = vmatpush.bf16.msrb.mxu2 %v5297_v30 }
  0x5b   : > { %443 = vst [vmem:[#allocation2 + $0x5c] sm:$0x1] %v394_v4  ;;  %v897_v4 = vshll.u32 %v6024_v55, 16  ;;  %v7050_v44 = vunpack.c.l.b16 %v6038_v54  ;;  %v7049_v20 = vunpack.c.h.b16 %v6038_v54  ;;  %v5315_v18 = vld [vmem:[%s7020_s1 + $0x120] sm:$0xff] }
  0x5c   : > { %453 = vst [vmem:[#allocation2 + $0x84] sm:$0xff] %v404_v38   ;;  %v4738_v38 = vor.u32 %v5256_v46, %v4737_v48  ;;  %v938_v48 = vshrl.u32 %v6049_v23, 16  ;;  %3383 = vmatpush.bf16.msrb.mxu0 %v5315_v18  ;;  %v6090_v18 = vunpack.c.l.b16 %v591_v32 }
  0x5d   : > { %465 = vst [vmem:[#allocation2 + $0xb4] sm:$0xff] %v416_v62   ;;  %v899_v62 = vrot.slane %v897_v4, 1  ;;  %v1166_v46 = vpack.c.b16 %v7050_v44, %v5978_v39 }
  0x5e   : > { %1402 = vst [vmem:[#allocation3 + $0x48] sm:$0xff] %v1138_v11  ;;  %3097 = vmatmul.bf16.gmra.mxu3 %v4738_v38  ;;  %v1170_v11 = vpack.c.b16 %v7049_v20, %v5991_v15  ;;  %v620_v38 = vpack.c.bf16 %v540_v43, %v540_v43 }
  0x5f   : > { %7118 = vst [vmem:[#allocation24_spill] sm:$0xff] %v6040_v42 }
  0x60   : > { %7119 = vst [vmem:[#allocation25_spill] sm:$0xff] %v6042_v13  ;;  %v722_v44 = vunpack.c.l.b16 %v620_v38 }
  0x61   : > { %1407 = vst [vmem:[#allocation3 + $0x6c] sm:$0xff] %v1143_v14  ;;  %v895_v14 = vor.u32 %v894_v10, %v890_v6  ;;  %v940_v10 = vshll.u32 %v6049_v23, 16  ;;  %v590_v6 = vpack.c.bf16 %v5357_v22, %v5357_v22  ;;  %v499_v22 = vld [vmem:[#allocation2 + $0x54] sm:$0xff]  }
  0x62   : > { %7120 = vst [vmem:[#allocation26_spill] sm:$0xff] %v6049_v23  ;;  %v501_v23 = vld [vmem:[#allocation2 + $0x5c] sm:$0x1]  ;;  %v6102_v38 = vpack.c.b16 %v722_v44, %v722_v44 }
  0x63   : > { %455 = vst [vmem:[#allocation2 + $0x8c] sm:$0x1] %v406_v51  ;;  %v6066_v51 = vpack.c.b16 %v734_v9, %v734_v9  ;;  %v6074_v4 = vsel %vm768_vm0, %v895_v14, %v899_v62  ;;  %v5305_v9 = vld [vmem:[%s7020_s1 + $0xd0] sm:$0xff]  ;;  %v942_v62 = vrot.slane %v940_v10, 1  ;;  %v6088_v52 = vunpack.c.l.b16 %v590_v6  ;;  %v511_v28 = vld [vmem:[#allocation2 + $0x84] sm:$0xff]  }
  0x64   : > { %467 = vst [vmem:[#allocation2 + $0xbc] sm:$0x1] %v418_v31  ;;  %v5314_v31 = vld [vmem:[%s7020_s1 + $0x118] sm:$0xff]  ;;  %v5289_v14 = vld [vmem:[%s7020_s1 + $0x50] sm:$0xff]  ;;  %v7123_v26 = vunpack.c.l.b16 %v6074_v4  ;;  %v7124_v30 = vunpack.c.h.b16 %v6074_v4  ;;  %3296 = vmatpush.bf16.msrb.mxu3 %v5305_v9 }
  0x65   : > { %7121 = vst [vmem:[#allocation27_spill] sm:$0xff] %v6066_v51  ;;  %v945_v45 = vshll.u32 %v6066_v51, 16  ;;  %v4305_v43 = vld [vmem:[#allocation3 + $0x48] sm:$0xf]  ;;  %v943_v21 = vor.u32 %v942_v62, %v938_v48  ;;  %v6100_v32 = vpack.c.b16 %v6090_v18, %v6088_v52  ;;  %3384 = vmatpush.bf16.msrb.mxu0 %v5314_v31  ;;  %3118 = vmatpush.bf16.msrb.mxu1 %v5289_v14  ;;  %v565_v48 = vunpack.c.l.bf16 %v511_v28 }
  0x66   : > { %429 = vst [vmem:[#allocation2 + $0x24] sm:$0xff] %v380_v53   ;;  %v553_v53 = vunpack.c.l.bf16 %v499_v22  ;;  %v1198_v10 = vpack.c.b16 %v7123_v26, %v6000_v12  ;;  %v1202_v51 = vpack.c.b16 %v7124_v30, %v6014_v2  ;;  %v382_v31 = vld [vmem:[%s5711_s6 + $0x20] sm:$0x1]  ;;  %v566_v12 = vunpack.c.h.bf16 %v511_v28 }
  0x67   : > { %1452 = vst [vmem:[#allocation3 + $0x1b0] sm:$0xff] %v1166_v46  ;;  %v794_v44 = vshrl.u32 %v6100_v32, 16  ;;  %v796_v9 = vshll.u32 %v6100_v32, 16  ;;  %v608_v27 = vpack.c.bf16 %v565_v48, %v565_v48 }
  0x68   : > { %7122 = vst [vmem:[#allocation28_spill] sm:$0xff] %v6074_v4  ;;  %v5148_v20 = vld [vmem:[#allocation3 + $0x68] sm:$0xf0]  ;;  %v555_v4 = vunpack.c.l.bf16 %v501_v23  ;;  %v600_v30 = vpack.c.bf16 %v553_v53, %v553_v53  ;;  %v609_v1 = vpack.c.bf16 %v566_v12, %v566_v12 }
  0x69   : > { %1457 = vst [vmem:[#allocation3 + $0x1d4] sm:$0xff] %v1170_v11  ;;  %v4306_v6 = vor.u32 %v5148_v20, %v4305_v43  ;;  %v798_v2 = vrot.slane %v796_v9, 1 }
  0x6a   : > { %1435 = vst [vmem:[#allocation3 + $0x138] sm:$0xff] %v1166_v46  ;;  %v947_v46 = vrot.slane %v945_v45, 1  ;;  %v625_v14 = vpack.c.bf16 %v555_v4, %v555_v4  ;;  %v6113_v23 = vunpack.c.l.b16 %v600_v30  ;;  %v513_v53 = vld [vmem:[#allocation2 + $0x8c] sm:$0x1]  ;;  %v6134_v48 = vunpack.c.l.b16 %v609_v1 }
  0x6b   : > { %1440 = vst [vmem:[#allocation3 + $0x15c] sm:$0xff] %v1170_v11  ;;  %v554_v11 = vunpack.c.h.bf16 %v499_v22  ;;  %3037 = vmatmul.bf16.gmra.mxu0 %v4306_v6  ;;  %v799_v30 = vor.u32 %v798_v2, %v794_v44  ;;  %v6132_v2 = vunpack.c.l.b16 %v608_v27  ;;  %v525_v12 = vld [vmem:[#allocation2 + $0xbc] sm:$0x1]  ;;  %v5296_v1 = vld [vmem:[%s7020_s1 + $0x88] sm:$0xff] }
  0x6c   : > { %1492 = vst [vmem:[#allocation3 + $0x2d0] sm:$0xff] %v1198_v10  ;;  %v6105_v26 = vsel %vm768_vm0, %v943_v21, %v947_v46  ;;  %v801_v21 = vshll.u32 %v6102_v38, 16  ;;  %v727_v4 = vunpack.c.l.b16 %v625_v14  ;;  %3208 = vmatpush.bf16.msrb.mxu2 %v5296_v1 }
  0x6d   : > { %7125 = vst [vmem:[#allocation29_spill] sm:$0xff] %v6105_v26  ;;  %v7064_v20 = vunpack.c.l.b16 %v6105_v26  ;;  %v7065_v62 = vunpack.c.h.b16 %v6105_v26  ;;  %v601_v45 = vpack.c.bf16 %v554_v11, %v554_v11  ;;  %v6143_v27 = vpack.c.b16 %v6134_v48, %v6132_v2 }
  0x6e   : > { %1497 = vst [vmem:[#allocation3 + $0x2f4] sm:$0xff] %v1202_v51  ;;  %v4485_v22 = vld [vmem:[#allocation3 + $0x1b0] sm:$0xf]  ;;  %v803_v58 = vrot.slane %v801_v21, 1  ;;  %v6127_v9 = vpack.c.b16 %v727_v4, %v727_v4 }
  0x6f   : > { %1475 = vst [vmem:[#allocation3 + $0x258] sm:$0xff] %v1198_v10  ;;  %v1230_v46 = vpack.c.b16 %v7064_v20, %v6040_v42  ;;  %v1234_v6 = vpack.c.b16 %v7065_v62, %v6042_v13  ;;  %v523_v10 = vld [vmem:[#allocation2 + $0xb4] sm:$0xff]   ;;  %v6121_v11 = vunpack.c.l.b16 %v601_v45  ;;  %v902_v62 = vshrl.u32 %v6143_v27, 16 }
  0x70   : > { %v5193_v43 = vld [vmem:[#allocation3 + $0x1d0] sm:$0xf0]  ;;  %1480 = vst [vmem:[#allocation3 + $0x27c] sm:$0xff] %v1202_v51  ;;  %v567_v51 = vunpack.c.l.bf16 %v513_v53  ;;  %v577_v28 = vunpack.c.l.bf16 %v523_v10  ;;  %v6130_v45 = vsel %vm768_vm0, %v799_v30, %v803_v58  ;;  %v861_v58 = vshll.u32 %v6127_v9, 16 }
  0x71   : > { %v4486_v55 = vor.u32 %v5193_v43, %v4485_v22  ;;  %431 = vst [vmem:[#allocation2 + $0x2c] sm:$0x1] %v382_v31  ;;  %v6125_v20 = vpack.c.b16 %v6121_v11, %v6113_v23  ;;  %v578_v22 = vunpack.c.h.bf16 %v523_v10  ;;  %v7071_v44 = vunpack.c.l.b16 %v6130_v45 }
  0x72   : > { %1532 = vst [vmem:[#allocation3 + $0x3f0] sm:$0xff] %v1230_v46  ;;  %v629_v31 = vpack.c.bf16 %v567_v51, %v567_v51  ;;  %v7076_v14 = vunpack.c.h.b16 %v6130_v45  ;;  %v579_v51 = vunpack.c.l.bf16 %v525_v12  ;;  %v904_v26 = vshll.u32 %v6143_v27, 16 }
  0x73   : > { %3062 = vmatmul.bf16.gmra.mxu1 %v4486_v55  ;;  %1537 = vst [vmem:[#allocation3 + $0x414] sm:$0xff] %v1234_v6  ;;  %v4629_v21 = vld [vmem:[#allocation3 + $0x2d0] sm:$0xf]  ;;  %v854_v53 = vshrl.u32 %v6125_v20, 16  ;;  %v856_v43 = vshll.u32 %v6125_v20, 16  ;;  %v616_v0 = vpack.c.bf16 %v577_v28, %v577_v28 }
  0x74   : > { %1515 = vst [vmem:[#allocation3 + $0x378] sm:$0xff] %v1230_v46  ;;  %v731_v10 = vunpack.c.l.b16 %v629_v31  ;;  %v1136_v4 = vpack.c.b16 %v7076_v14, %v6090_v18  ;;  %v863_v31 = vrot.slane %v861_v58, 1  ;;  %v633_v17 = vpack.c.bf16 %v579_v51, %v579_v51  ;;  %v5304_v28 = vld [vmem:[%s7020_s1 + $0xc8] sm:$0xff] }
  0x75   : > { %v5229_v55 = vld [vmem:[#allocation3 + $0x2f0] sm:$0xf0]  ;;  %1520 = vst [vmem:[#allocation3 + $0x39c] sm:$0xff] %v1234_v6  ;;  %v1131_v6 = vpack.c.b16 %v7071_v44, %v6088_v52  ;;  %v858_v30 = vrot.slane %v856_v43, 1  ;;  %v617_v44 = vpack.c.bf16 %v578_v22, %v578_v22  ;;  %v906_v43 = vrot.slane %v904_v26, 1  ;;  %v5313_v26 = vld [vmem:[%s7020_s1 + $0x110] sm:$0xff]  ;;  %3297 = vmatpush.bf16.msrb.mxu3 %v5304_v28 }
  0x76   : > { %v4630_v46 = vor.u32 %v5229_v55, %v4629_v21  ;;  %7126 = vst [vmem:[#allocation30_spill] sm:$0xff] %v6143_v27  ;;  %v487_v21 = vld [vmem:[#allocation2 + $0x24] sm:$0xff]   ;;  %v6154_v55 = vpack.c.b16 %v731_v10, %v731_v10  ;;  %v6162_v27 = vunpack.c.l.b16 %v616_v0  ;;  %v735_v1 = vunpack.c.l.b16 %v633_v17  ;;  %3385 = vmatpush.bf16.msrb.mxu0 %v5313_v26 }
  0x77   : > { %1395 = vst [vmem:[#allocation3 + $0x18] sm:$0xff] %v1131_v6  ;;  %v859_v42 = vor.u32 %v858_v30, %v854_v53  ;;  %v542_v58 = vunpack.c.h.bf16 %v487_v21  ;;  %v6164_v53 = vunpack.c.l.b16 %v617_v44  ;;  %v5295_v44 = vld [vmem:[%s7020_s1 + $0x80] sm:$0xff] }
  0x78   : > { %3082 = vmatmul.bf16.gmra.mxu2 %v4630_v46  ;;  %v489_v16 = vld [vmem:[#allocation2 + $0x2c] sm:$0x1]  ;;  %1400 = vst [vmem:[#allocation3 + $0x3c] sm:$0xff] %v1136_v4  ;;  %v909_v12 = vshll.u32 %v6154_v55, 16  ;;  %v541_v46 = vunpack.c.l.bf16 %v487_v21  ;;  %v5287_v26 = vld [vmem:[%s7020_s1 + $0x40] sm:$0xff] }
  0x79   : > { %v4773_v13 = vld [vmem:[#allocation3 + $0x3f0] sm:$0xf]  ;;  %1412 = vst [vmem:[#allocation3 + $0x90] sm:$0xff] %v1131_v6  ;;  %v6160_v14 = vsel %vm768_vm0, %v859_v42, %v863_v31  ;;  %v6182_v6 = vpack.c.b16 %v6164_v53, %v6162_v27  ;;  %v543_v30 = vunpack.c.l.bf16 %v489_v16  ;;  %v593_v31 = vpack.c.bf16 %v542_v58, %v542_v58  ;;  %v5303_v16 = vld [vmem:[%s7020_s1 + $0xc0] sm:$0xff]  ;;  %3209 = vmatpush.bf16.msrb.mxu2 %v5295_v44 }
  0x7a   : > { %v5265_v56 = vld [vmem:[#allocation3 + $0x410] sm:$0xf0]  ;;  %1417 = vst [vmem:[#allocation3 + $0xb4] sm:$0xff] %v1136_v4  ;;  %v7079_v42 = vunpack.c.l.b16 %v6160_v14  ;;  %v7078_v0 = vunpack.c.h.b16 %v6160_v14  ;;  %v911_v22 = vrot.slane %v909_v12, 1  ;;  %v592_v51 = vpack.c.bf16 %v541_v46, %v541_v46  ;;  %3298 = vmatpush.bf16.msrb.mxu3 %v5303_v16 }
  0x7b   : > { %v4774_v10 = vor.u32 %v5265_v56, %v4773_v13  ;;  %v5288_v56 = vld [vmem:[%s7020_s1 + $0x48] sm:$0xff]  ;;  %v907_v13 = vor.u32 %v906_v43, %v902_v62  ;;  %7127 = vst [vmem:[#allocation31_spill] sm:$0xff] %v6182_v6  ;;  %v6201_v46 = vpack.c.b16 %v735_v1, %v735_v1  ;;  %v952_v58 = vshll.u32 %v6182_v6, 16 }
  0x7c   : > { %v5312_v4 = vld [vmem:[%s7020_s1 + $0x108] sm:$0xff]  ;;  %v1174_v62 = vpack.c.b16 %v7079_v42, %v6113_v23  ;;  %v1178_v21 = vpack.c.b16 %v7078_v0, %v6121_v11  ;;  %3119 = vmatpush.bf16.msrb.mxu1 %v5288_v56  ;;  %v621_v28 = vpack.c.bf16 %v543_v30, %v543_v30  ;;  %v962_v0 = vrot.slane %v5741_v35, 1  ;;  %v5311_v30 = vld [vmem:[%s7020_s1 + $0x100] sm:$0xff] }
  0x7d   : > { %3102 = vmatmul.bf16.gmra.mxu3 %v4774_v10  ;;  %v6194_v17 = vsel %vm768_vm0, %v907_v13, %v911_v22  ;;  %7129 = vst [vmem:[#allocation33_spill] sm:$0xff] %v6201_v46  ;;  %v950_v10 = vshrl.u32 %v6182_v6, 16  ;;  %v6208_v13 = vunpack.c.l.b16 %v592_v51  ;;  %v6210_v22 = vunpack.c.l.b16 %v593_v31  ;;  %3386 = vmatpush.bf16.msrb.mxu0 %v5312_v4 }
  0x7e   : > { %7128 = vst [vmem:[#allocation32_spill] sm:$0xff] %v6194_v17  ;;  %v7080_v43 = vunpack.c.l.b16 %v6194_v17  ;;  %v7081_v12 = vunpack.c.h.b16 %v6194_v17  ;;  %v957_v1 = vshll.u32 %v6201_v46, 16  ;;  %v954_v31 = vrot.slane %v952_v58, 1 }
  0x7f   : > { %1462 = vst [vmem:[#allocation3 + $0x1f8] sm:$0xff] %v1174_v62  ;;  %v723_v35 = vunpack.c.l.b16 %v621_v28  ;;  %v6225_v42 = vpack.c.b16 %v6210_v22, %v6208_v13  ;;  %v963_v4 = vrot.slane %v5748_v47, 1 }
  0x80   : > { %1467 = vst [vmem:[#allocation3 + $0x21c] sm:$0xff] %v1178_v21  ;;  %v1206_v56 = vpack.c.b16 %v7080_v43, %v6132_v2  ;;  %v1210_v44 = vpack.c.b16 %v7081_v12, %v6134_v48  ;;  %v4341_v51 = vld [vmem:[#allocation3 + $0x90] sm:$0xf]  ;;  %v959_v12 = vrot.slane %v957_v1, 1  ;;  %3120 = vmatpush.bf16.msrb.mxu1 %v5287_v26  ;;  %v955_v6 = vor.u32 %v954_v31, %v950_v10 }
  0x81   : > { %1445 = vst [vmem:[#allocation3 + $0x180] sm:$0xff] %v1174_v62  ;;  %v5157_v43 = vld [vmem:[#allocation3 + $0xb0] sm:$0xf0]  ;;  %v6228_v17 = vpack.c.b16 %v723_v35, %v723_v35  ;;  %v965_v62 = vrot.slane %v5974_v29, 1  ;;  %v806_v58 = vshrl.u32 %v6225_v42, 16  ;;  %v808_v28 = vshll.u32 %v6225_v42, 16  ;;  %3387 = vmatpush.bf16.msrb.mxu0 %v5311_v30 }
  0x82   : > { %1450 = vst [vmem:[#allocation3 + $0x1a4] sm:$0xff] %v1178_v21  ;;  %v4342_v46 = vor.u32 %v5157_v43, %v4341_v51  ;;  %v964_v16 = vsel %vm961_vm1, %v962_v0, %v963_v4  ;;  %v966_v21 = vrot.slane %v5976_v37, 1  ;;  %v6236_v47 = vsel %vm768_vm0, %v955_v6, %v959_v12  ;;  %v5334_v29 = vld [vmem:[%s7020_s1 + $0x1b8] sm:$0xff] }
  0x83   : > { %1502 = vst [vmem:[#allocation3 + $0x318] sm:$0xff] %v1206_v56  ;;  %v813_v43 = vshll.u32 %v6228_v17, 16  ;;  %v1057_v10 = vunpack.c.l.b16 %v964_v16  ;;  %v7087_v1 = vunpack.c.l.b16 %v6236_v47  ;;  %v7086_v0 = vunpack.c.h.b16 %v6236_v47  ;;  %3558 = vmatpush.bf16.msra.mxu2 %v5334_v29 }
  0x84   : > { %1507 = vst [vmem:[#allocation3 + $0x33c] sm:$0xff] %v1210_v44  ;;  %3042 = vmatmul.bf16.gmra.mxu0 %v4342_v46  ;;  %v810_v30 = vrot.slane %v808_v28, 1  ;;  %v1063_v37 = vunpack.c.h.b16 %v964_v16  ;;  %v967_v12 = vsel %vm961_vm1, %v965_v62, %v966_v21  ;;  %v968_v4 = vrot.slane %v6100_v32, 1  ;;  %v5342_v16 = vld [vmem:[%s7020_s1 + $0x1f8] sm:$0xff] }
  0x85   : > { %1485 = vst [vmem:[#allocation3 + $0x2a0] sm:$0xff] %v1206_v56  ;;  %v815_v56 = vrot.slane %v813_v43, 1  ;;  %v1129_v6 = vpack.c.b16 %v5946_v25, %v1057_v10  ;;  %v1238_v31 = vpack.c.b16 %v7087_v1, %v6162_v27  ;;  %v5326_v21 = vld [vmem:[%s7020_s1 + $0x178] sm:$0xff]  ;;  %v1059_v29 = vunpack.c.l.b16 %v967_v12  ;;  %3647 = vmatpush.bf16.msra.mxu3 %v5342_v16 }
  0x86   : > { %v4521_v26 = vld [vmem:[#allocation3 + $0x1f8] sm:$0xf]  ;;  %1490 = vst [vmem:[#allocation3 + $0x2c4] sm:$0xff] %v1210_v44  ;;  %v1242_v44 = vpack.c.b16 %v7086_v0, %v6164_v53  ;;  %v811_v35 = vor.u32 %v810_v30, %v806_v58  ;;  %v1134_v62 = vpack.c.b16 %v5957_v7, %v1063_v37  ;;  %v969_v58 = vrot.slane %v6102_v38, 1  ;;  %v5350_v7 = vld [vmem:[%s7020_s1 + $0x238] sm:$0xff]  ;;  %3469 = vmatpush.bf16.msra.mxu1 %v5326_v21 }
  0x87   : > { %v5202_v46 = vld [vmem:[#allocation3 + $0x218] sm:$0xf0]  ;;  %1393 = vst [vmem:[#allocation3 + $0x8] sm:$0xff] %v1129_v6  ;;  %v1065_v30 = vunpack.c.h.b16 %v967_v12  ;;  %3736 = vmatpush.bf16.msra.mxu0 %v5350_v7  ;;  %v7131_v12 = vunpack.c.h.b16 %v6012_v33  ;;  %v7132_v7 = vunpack.c.l.b16 %v6130_v45 }
  0x88   : > { %v4522_v51 = vor.u32 %v5202_v46, %v4521_v26  ;;  %1542 = vst [vmem:[#allocation3 + $0x438] sm:$0xff] %v1238_v31  ;;  %v6254_v25 = vsel %vm768_vm0, %v811_v35, %v815_v56  ;;  %v970_v46 = vsel %vm961_vm1, %v968_v4, %v969_v58  ;;  %v7130_v56 = vunpack.c.l.b16 %v6012_v33  ;;  %v5135_v4 = vld [vmem:[#allocation3 + $0x4] sm:$0xf]  ;;  %v4271_v58 = vld [vmem:[#allocation3 + $0x24] sm:$0xf0] }
  0x89   : > { %1547 = vst [vmem:[#allocation3 + $0x45c] sm:$0xff] %v1242_v44  ;;  %v1068_v32 = vunpack.c.l.b16 %v6254_v25  ;;  %v1070_v10 = vunpack.c.h.b16 %v6254_v25  ;;  %v1061_v35 = vunpack.c.l.b16 %v970_v46  ;;  %v1144_v16 = vpack.c.b16 %v6090_v18, %v1065_v30 }
  0x8a   : > { %3067 = vmatmul.bf16.gmra.mxu1 %v4522_v51  ;;  %v4665_v28 = vld [vmem:[#allocation3 + $0x318] sm:$0xf]  ;;  %1525 = vst [vmem:[#allocation3 + $0x3c0] sm:$0xff] %v1238_v31  ;;  %v1130_v6 = vpack.c.b16 %v1059_v29, %v7130_v56  ;;  %v1135_v51 = vpack.c.b16 %v1065_v30, %v7131_v12  ;;  %v972_v12 = vrot.slane %v6228_v17, 1  ;;  %v974_v25 = vrot.slane %v5760_v59, 1 }
  0x8b   : > { %v5238_v43 = vld [vmem:[#allocation3 + $0x338] sm:$0xf0]  ;;  %1530 = vst [vmem:[#allocation3 + $0x3e4] sm:$0xff] %v1242_v44  ;;  %v1141_v38 = vpack.c.b16 %v1068_v32, %v6208_v13  ;;  %v1146_v37 = vpack.c.b16 %v1070_v10, %v6210_v22  ;;  %v1139_v44 = vpack.c.b16 %v6088_v52, %v1059_v29  ;;  %v4274_v52 = vor.u32 %v5135_v4, %v4271_v58  ;;  %v4307_v58 = vld [vmem:[#allocation3 + $0x6c] sm:$0xf0] }
  0x8c   : > { %v4666_v26 = vor.u32 %v5238_v43, %v4665_v28  ;;  %1398 = vst [vmem:[#allocation3 + $0x2c] sm:$0xff] %v1134_v62  ;;  %v1067_v62 = vunpack.c.h.b16 %v970_v46  ;;  %v1132_v43 = vpack.c.b16 %v1061_v35, %v1061_v35 }
  0x8d   : > { %1422 = vst [vmem:[#allocation3 + $0xd8] sm:$0xff] %v1141_v38 }
  0x8e   : > { %3087 = vmatmul.bf16.gmra.mxu2 %v4666_v26  ;;  %1427 = vst [vmem:[#allocation3 + $0xfc] sm:$0xff] %v1146_v37  ;;  %v1137_v33 = vpack.c.b16 %v1067_v62, %v1067_v62  ;;  %v1140_v26 = vpack.c.b16 %v1061_v35, %v7132_v7  ;;  %v4277_v29 = vld [vmem:[#allocation3 + $0x8] sm:$0xf] }
  0x8f   : > { %v4809_v31 = vld [vmem:[#allocation3 + $0x438] sm:$0xf]  ;;  %1405 = vst [vmem:[#allocation3 + $0x60] sm:$0xff] %v1141_v38 }
  0x90   : > { %v5274_v28 = vld [vmem:[#allocation3 + $0x458] sm:$0xf0]  ;;  %1410 = vst [vmem:[#allocation3 + $0x84] sm:$0xff] %v1146_v37  ;;  %v7133_v37 = vunpack.c.h.b16 %v6130_v45 }
  0x91   : > { %v4810_v21 = vor.u32 %v5274_v28, %v4809_v31  ;;  %1394 = vst [vmem:[#allocation3 + $0x10] sm:$0xff] %v1130_v6  ;;  %v971_v6 = vrot.slane %v6225_v42, 1  ;;  %v1148_v31 = vpack.c.b16 %v6208_v13, %v1061_v35  ;;  %v5136_v42 = vld [vmem:[#allocation3 + $0xc] sm:$0xf] }
  0x92   : > { %1399 = vst [vmem:[#allocation3 + $0x34] sm:$0xff] %v1135_v51  ;;  %v1145_v18 = vpack.c.b16 %v1067_v62, %v7133_v37  ;;  %v5144_v35 = vld [vmem:[#allocation3 + $0x4c] sm:$0xf]  ;;  %v5349_v37 = vld [vmem:[%s7020_s1 + $0x230] sm:$0xff] }
  0x93   : > { %3107 = vmatmul.bf16.gmra.mxu3 %v4810_v21  ;;  %1403 = vst [vmem:[#allocation3 + $0x50] sm:$0xff] %v1139_v44  ;;  %v5140_v46 = vld [vmem:[#allocation3 + $0x28] sm:$0xf0]  ;;  %v1152_v44 = vpack.c.b16 %v6210_v22, %v1067_v62  ;;  %v973_v45 = vsel %vm961_vm1, %v971_v6, %v972_v12  ;;  %v4279_v21 = vld [vmem:[#allocation3 + $0x2c] sm:$0xf0]  ;;  %v4310_v7 = vor.u32 %v5144_v35, %v4307_v58  ;;  %v7134_v12 = vunpack.c.l.b16 %v5814_v40 }
  0x94   : > { %v4377_v38 = vld [vmem:[#allocation3 + $0xd8] sm:$0xf]  ;;  %1408 = vst [vmem:[#allocation3 + $0x74] sm:$0xff] %v1144_v16  ;;  %v4278_v51 = vor.u32 %v5140_v46, %v4277_v29  ;;  %v6291_v28 = vunpack.c.l.b16 %v973_v45  ;;  %v6293_v16 = vunpack.c.h.b16 %v973_v45  ;;  %v4282_v22 = vor.u32 %v5136_v42, %v4279_v21  ;;  %3737 = vmatpush.bf16.msra.mxu0 %v5349_v37 }
  0x95   : > { %v5166_v30 = vld [vmem:[#allocation3 + $0xf8] sm:$0xf0]  ;;  %1396 = vst [vmem:[#allocation3 + $0x20] sm:$0xf] %v1132_v43  ;;  %v4343_v21 = vld [vmem:[#allocation3 + $0xb4] sm:$0xf0] }
  0x96   : > { %v4378_v56 = vor.u32 %v5166_v30, %v4377_v38  ;;  %1401 = vst [vmem:[#allocation3 + $0x44] sm:$0xf] %v1137_v33  ;;  %v1149_v17 = vpack.c.b16 %v6291_v28, %v1068_v32  ;;  %v1153_v13 = vpack.c.b16 %v6293_v16, %v1070_v10  ;;  %v5333_v43 = vld [vmem:[%s7020_s1 + $0x1b0] sm:$0xff]  ;;  %v975_v10 = vrot.slane %v5766_v63, 1  ;;  %v4379_v37 = vld [vmem:[#allocation3 + $0xfc] sm:$0xf0] }
  0x97   : > { %1404 = vst [vmem:[#allocation3 + $0x58] sm:$0xff] %v1140_v26  ;;  %3559 = vmatpush.bf16.msra.mxu2 %v5333_v43  ;;  %v5325_v29 = vld [vmem:[%s7020_s1 + $0x170] sm:$0xff]  ;;  %v1156_v59 = vpack.c.b16 %v5751_v49, %v6291_v28  ;;  %v1160_v63 = vpack.c.b16 %v5753_v50, %v6293_v16  ;;  %v7135_v50 = vunpack.c.h.b16 %v5814_v40 }
  0x98   : > { %3047 = vmatmul.bf16.gmra.mxu0 %v4378_v56  ;;  %1409 = vst [vmem:[#allocation3 + $0x7c] sm:$0xff] %v1145_v18  ;;  %v4285_v62 = vld [vmem:[#allocation3 + $0x10] sm:$0xf]  ;;  %v976_v18 = vsel %vm961_vm1, %v974_v25, %v975_v10  ;;  %3470 = vmatpush.bf16.msra.mxu1 %v5325_v29  ;;  %v5162_v29 = vld [vmem:[#allocation3 + $0xdc] sm:$0xf] }
  0x99   : > { %1413 = vst [vmem:[#allocation3 + $0x98] sm:$0xff] %v1148_v31  ;;  %v5141_v4 = vld [vmem:[#allocation3 + $0x30] sm:$0xf0]  ;;  %v6320_v30 = vunpack.c.l.b16 %v976_v18  ;;  %v6322_v46 = vunpack.c.h.b16 %v976_v18  ;;  %v4382_v18 = vor.u32 %v5162_v29, %v4379_v37 }
  0x9a   : > { %3121 = vmatmul.bf16.vlgmr.msrb.gmra.mxu1 %v4274_v52  ;;  %1418 = vst [vmem:[#allocation3 + $0xbc] sm:$0xff] %v1152_v44  ;;  %v4286_v33 = vor.u32 %v5141_v4, %v4285_v62  ;;  %v4313_v26 = vld [vmem:[#allocation3 + $0x50] sm:$0xf]  ;;  %v5341_v52 = vld [vmem:[%s7020_s1 + $0x1f0] sm:$0xff]  ;;  %v5145_v56 = vld [vmem:[#allocation3 + $0x54] sm:$0xf] }
  0x9b   : > { %1414 = vst [vmem:[#allocation3 + $0xa0] sm:$0xff] %v1149_v17  ;;  %v5149_v32 = vld [vmem:[#allocation3 + $0x70] sm:$0xf0]  ;;  %3648 = vmatpush.bf16.msra.mxu3 %v5341_v52  ;;  %v4315_v6 = vld [vmem:[#allocation3 + $0x74] sm:$0xf0]  ;;  %v1157_v49 = vpack.c.b16 %v6320_v30, %v7134_v12  ;;  %v977_v62 = vrot.slane %v5876_v41, 1  ;;  %v1164_v58 = vpack.c.b16 %v5864_v34, %v6320_v30  ;;  %v1168_v43 = vpack.c.b16 %v5866_v36, %v6322_v46 }
  0x9c   : > { %1419 = vst [vmem:[#allocation3 + $0xc4] sm:$0xff] %v1153_v13  ;;  %v4314_v38 = vor.u32 %v5149_v32, %v4313_v26  ;;  %v4318_v31 = vor.u32 %v5145_v56, %v4315_v6  ;;  %v5153_v44 = vld [vmem:[#allocation3 + $0x94] sm:$0xf]  ;;  %v978_v4 = vrot.slane %v5881_v57, 1  ;;  %v7136_v32 = vunpack.c.l.b16 %v5910_v19 }
  0x9d   : > { %1423 = vst [vmem:[#allocation3 + $0xe0] sm:$0xff] %v1156_v59  ;;  %v4346_v13 = vor.u32 %v5153_v44, %v4343_v21  ;;  %v7137_v34 = vunpack.c.h.b16 %v5910_v19  ;;  %v5332_v59 = vld [vmem:[%s7020_s1 + $0x1a8] sm:$0xff]  ;;  %v980_v19 = vrot.slane %v5996_v3, 1  ;;  %v981_v12 = vrot.slane %v5998_v24, 1 }
  0x9e   : > { %3210 = vmatmul.bf16.vlgmr.msrb.gmra.mxu2 %v4278_v51  ;;  %1428 = vst [vmem:[#allocation3 + $0x104] sm:$0xff] %v1160_v63  ;;  %v1161_v51 = vpack.c.b16 %v6322_v46, %v7135_v50  ;;  %v4321_v45 = vld [vmem:[#allocation3 + $0x58] sm:$0xf]  ;;  %v5340_v50 = vld [vmem:[%s7020_s1 + $0x1e8] sm:$0xff] }
  0x9f   : > { %1424 = vst [vmem:[#allocation3 + $0xe8] sm:$0xff] %v1157_v49  ;;  %v5150_v42 = vld [vmem:[#allocation3 + $0x78] sm:$0xf0]  ;;  %3560 = vmatpush.bf16.msra.mxu2 %v5332_v59  ;;  %3649 = vmatpush.bf16.msra.mxu3 %v5340_v50 }
  0xa0   : > { %1429 = vst [vmem:[#allocation3 + $0x10c] sm:$0xff] %v1161_v51  ;;  %v4322_v17 = vor.u32 %v5150_v42, %v4321_v45  ;;  %v5154_v41 = vld [vmem:[#allocation3 + $0x9c] sm:$0xf]  ;;  %v5324_v51 = vld [vmem:[%s7020_s1 + $0x168] sm:$0xff]  ;;  %v982_v45 = vsel %vm961_vm1, %v980_v19, %v981_v12  ;;  %v7141_v19 = vunpack.c.h.b16 %v6160_v14 }
  0xa1   : > { %v5158_v35 = vld [vmem:[#allocation3 + $0xb8] sm:$0xf0]  ;;  %1433 = vst [vmem:[#allocation3 + $0x128] sm:$0xff] %v1164_v58  ;;  %v4351_v57 = vld [vmem:[#allocation3 + $0xbc] sm:$0xf0]  ;;  %3471 = vmatpush.bf16.msra.mxu1 %v5324_v51  ;;  %v6368_v42 = vunpack.c.l.b16 %v982_v45  ;;  %v6370_v21 = vunpack.c.h.b16 %v982_v45 }
  0xa2   : > { %1438 = vst [vmem:[#allocation3 + $0x14c] sm:$0xff] %v1168_v43  ;;  %v4354_v36 = vor.u32 %v5154_v41, %v4351_v57  ;;  %v5171_v58 = vld [vmem:[#allocation3 + $0x124] sm:$0xf]  ;;  %v4415_v43 = vld [vmem:[#allocation3 + $0x144] sm:$0xf0] }
  0xa3   : > { %3299 = vmatmul.bf16.vlgmr.msrb.gmra.mxu3 %v4282_v22  ;;  %v4349_v22 = vld [vmem:[#allocation3 + $0x98] sm:$0xf]  ;;  %v5159_v52 = vld [vmem:[#allocation3 + $0xc0] sm:$0xf0]  ;;  %v1180_v37 = vpack.c.b16 %v6113_v23, %v6368_v42  ;;  %v1184_v59 = vpack.c.b16 %v6121_v11, %v6370_v21 }
  0xa4   : > { %v4350_v40 = vor.u32 %v5158_v35, %v4349_v22  ;;  %v4385_v56 = vld [vmem:[#allocation3 + $0xe0] sm:$0xf]  ;;  %v7139_v22 = vunpack.c.h.b16 %v6038_v54 }
  0xa5   : > { %v5167_v6 = vld [vmem:[#allocation3 + $0x100] sm:$0xf0]  ;;  %1453 = vst [vmem:[#allocation3 + $0x1b8] sm:$0xff] %v1180_v37 }
  0xa6   : > { %v4386_v49 = vor.u32 %v5167_v6, %v4385_v56  ;;  %v1177_v35 = vpack.c.b16 %v6370_v21, %v7139_v22  ;;  %v7140_v56 = vunpack.c.l.b16 %v6160_v14  ;;  %1458 = vst [vmem:[#allocation3 + $0x1dc] sm:$0xff] %v1184_v59  ;;  %v5331_v14 = vld [vmem:[%s7020_s1 + $0x1a0] sm:$0xff] }
  0xa7   : > { %3561 = vmatpush.bf16.msra.mxu2 %v5331_v14 }
  0xa8   : > { %3388 = vmatmul.bf16.vlgmr.msrb.gmra.mxu0 %v4286_v33  ;;  %v979_v33 = vsel %vm961_vm1, %v977_v62, %v978_v4  ;;  %1449 = vst [vmem:[#allocation3 + $0x19c] sm:$0xff] %v1177_v35  ;;  %v4393_v4 = vld [vmem:[#allocation3 + $0xe8] sm:$0xf] }
  0xa9   : > { %v6339_v26 = vunpack.c.h.b16 %v979_v33 }
  0xaa   : > { %3126 = vmatmul.bf16.gmra.mxu1 %v4310_v7  ;;  %v6337_v7 = vunpack.c.l.b16 %v979_v33 }
  0xab   : > { %v1169_v10 = vpack.c.b16 %v6339_v26, %v7137_v34  ;;  %v1176_v24 = vpack.c.b16 %v5991_v15, %v6339_v26  ;;  %v5176_v34 = vld [vmem:[#allocation3 + $0x148] sm:$0xf0] }
  0xac   : > { %v1165_v25 = vpack.c.b16 %v6337_v7, %v7136_v32  ;;  %v1172_v3 = vpack.c.b16 %v5978_v39, %v6337_v7  ;;  %v7138_v39 = vunpack.c.l.b16 %v6038_v54  ;;  %v4418_v32 = vor.u32 %v5171_v58, %v4415_v43  ;;  %v5339_v58 = vld [vmem:[%s7020_s1 + $0x1e0] sm:$0xff] }
  0xad   : > { %1439 = vst [vmem:[#allocation3 + $0x154] sm:$0xff] %v1169_v10  ;;  %v983_v54 = vrot.slane %v6125_v20, 1  ;;  %v984_v10 = vrot.slane %v6127_v9, 1  ;;  %v5172_v9 = vld [vmem:[#allocation3 + $0x12c] sm:$0xf]  ;;  %3650 = vmatpush.bf16.msra.mxu3 %v5339_v58 }
  0xae   : > { %3215 = vmatmul.bf16.gmra.mxu2 %v4314_v38  ;;  %1434 = vst [vmem:[#allocation3 + $0x130] sm:$0xff] %v1165_v25  ;;  %v4357_v38 = vld [vmem:[#allocation3 + $0xa0] sm:$0xf]  ;;  %v1173_v15 = vpack.c.b16 %v6368_v42, %v7138_v39  ;;  %v4421_v25 = vld [vmem:[#allocation3 + $0x128] sm:$0xf] }
  0xaf   : > { %v4358_v63 = vor.u32 %v5159_v52, %v4357_v38  ;;  %1443 = vst [vmem:[#allocation3 + $0x170] sm:$0xff] %v1172_v3  ;;  %v985_v52 = vsel %vm961_vm1, %v983_v54, %v984_v10  ;;  %v4451_v3 = vld [vmem:[#allocation3 + $0x18c] sm:$0xf0]  ;;  %v5323_v43 = vld [vmem:[%s7020_s1 + $0x160] sm:$0xff]  ;;  %v5194_v14 = vld [vmem:[#allocation3 + $0x1d8] sm:$0xf0] }
  0xb0   : > { %1448 = vst [vmem:[#allocation3 + $0x194] sm:$0xff] %v1176_v24  ;;  %v6395_v20 = vunpack.c.h.b16 %v985_v52  ;;  %3472 = vmatpush.bf16.msra.mxu1 %v5323_v43  ;;  %v7150_v43 = vld [vmem:[#allocation10_spill] sm:$0xff] }
  0xb1   : > { %1444 = vst [vmem:[#allocation3 + $0x178] sm:$0xff] %v1173_v15 }
  0xb2   : > { %v1185_v12 = vpack.c.b16 %v6395_v20, %v7141_v19 }
  0xb3   : > { %3304 = vmatmul.bf16.gmra.mxu3 %v4318_v31  ;;  %v5348_v31 = vld [vmem:[%s7020_s1 + $0x228] sm:$0xff] }
  0xb4   : > { %3738 = vmatpush.bf16.msra.mxu0 %v5348_v31  ;;  %1459 = vst [vmem:[#allocation3 + $0x1e4] sm:$0xff] %v1185_v12  ;;  %v5177_v51 = vld [vmem:[#allocation3 + $0x150] sm:$0xf0]  ;;  %v5180_v31 = vld [vmem:[#allocation3 + $0x16c] sm:$0xf] }
  0xb5   : > { %v4429_v50 = vld [vmem:[#allocation3 + $0x130] sm:$0xf] }
  0xb6   : > { %v6365_v44 = vpop.f32.mrf.mxu1  ;;  %v4430_v45 = vor.u32 %v5177_v51, %v4429_v50  ;;  %v4457_v39 = vld [vmem:[#allocation3 + $0x170] sm:$0xf]  ;;  %v5181_v54 = vld [vmem:[#allocation3 + $0x174] sm:$0xf]  ;;  %v4487_v50 = vld [vmem:[#allocation3 + $0x1d4] sm:$0xf0] }
  0xb7   : > { %v5185_v15 = vld [vmem:[#allocation3 + $0x190] sm:$0xf0]  ;;  %v4459_v10 = vld [vmem:[#allocation3 + $0x194] sm:$0xf0] }
  0xb8   : > { %3393 = vmatmul.bf16.gmra.mxu0 %v4322_v17  ;;  %v5163_v17 = vld [vmem:[#allocation3 + $0xe4] sm:$0xf] }
  0xba   : > { %3131 = vmatmul.bf16.gmra.mxu1 %v4346_v13  ;;  %v4387_v13 = vld [vmem:[#allocation3 + $0x104] sm:$0xf0] }
  0xbb   : > { %v4390_v62 = vor.u32 %v5163_v17, %v4387_v13  ;;  %v4454_v13 = vor.u32 %v5180_v31, %v4451_v3  ;;  %v4493_v3 = vld [vmem:[#allocation3 + $0x1b8] sm:$0xf] }
  0xbe   : > { %3220 = vmatmul.bf16.gmra.mxu2 %v4350_v40  ;;  %v5168_v40 = vld [vmem:[#allocation3 + $0x108] sm:$0xf0]  ;;  %v6380_v41 = vpop.f32.mrf.mxu1 }
  0xbf   : > { %v4394_v57 = vor.u32 %v5168_v40, %v4393_v4  ;;  %v987_v4 = vrot.slane %v5775_v8, 1  ;;  %v4458_v40 = vor.u32 %v5185_v15, %v4457_v39  ;;  %v1192_v8 = vpack.c.b16 %v5764_v61, %v6395_v20  ;;  %v7148_v15 = vld [vmem:[#allocation13_spill] sm:$0xff] }
  0xc1   : > { %v6378_v33 = vpop.f32.mrf.mxu2  ;;  %1468 = vst [vmem:[#allocation3 + $0x224] sm:$0xff] %v1192_v8 }
  0xc3   : > { %3309 = vmatmul.bf16.gmra.mxu3 %v4354_v36  ;;  %v4422_v36 = vor.u32 %v5176_v34, %v4421_v25 }
  0xc7   : > { %v6387_v29 = vpop.f32.mrf.mxu3 }
  0xc8   : > { %3398 = vmatmul.bf16.gmra.mxu0 %v4358_v63  ;;  %v6393_v63 = vunpack.c.l.b16 %v985_v52 }
  0xc9   : > { %v6403_v23 = vpop.f32.mrf.mxu2 }
  0xca   : > { %3136 = vmatmul.bf16.gmra.mxu1 %v4382_v18  ;;  %v6384_v38 = vpop.f32.mrf.mxu0  ;;  %v4423_v18 = vld [vmem:[#allocation3 + $0x14c] sm:$0xf0]  ;;  %v1181_v6 = vpack.c.b16 %v6393_v63, %v7140_v56  ;;  %v4465_v56 = vld [vmem:[#allocation3 + $0x178] sm:$0xf] }
  0xcb   : > { %v4426_v11 = vor.u32 %v5172_v9, %v4423_v18  ;;  %v4462_v18 = vor.u32 %v5181_v54, %v4459_v10 }
  0xcc   : > { %1454 = vst [vmem:[#allocation3 + $0x1c0] sm:$0xff] %v1181_v6  ;;  %v5186_v6 = vld [vmem:[#allocation3 + $0x198] sm:$0xf0] }
  0xcd   : > { %v4466_v51 = vor.u32 %v5186_v6, %v4465_v56 }
  0xce   : > { %3225 = vmatmul.bf16.gmra.mxu2 %v4386_v49 }
  0xcf   : > { %v6412_v17 = vpop.f32.mrf.mxu3 }
  0xd0   : > { %v6405_v49 = vpop.f32.mrf.mxu1  ;;  %7142 = vst [vmem:[#allocation34_spill] sm:$0xff] %v6412_v17 }
  0xd2   : > { %v6407_v24 = vpop.f32.mrf.mxu0 }
  0xd3   : > { %3314 = vmatmul.bf16.gmra.mxu3 %v4390_v62  ;;  %v986_v62 = vrot.slane %v5772_v5, 1  ;;  %v1188_v5 = vpack.c.b16 %v5762_v60, %v6393_v63 }
  0xd5   : > { %1463 = vst [vmem:[#allocation3 + $0x200] sm:$0xff] %v1188_v5 }
  0xd8   : > { %3403 = vmatmul.bf16.gmra.mxu0 %v4394_v57  ;;  %v6416_v35 = vpop.f32.mrf.mxu1  ;;  %v5347_v57 = vld [vmem:[%s7020_s1 + $0x220] sm:$0xff] }
  0xd9   : > { %3739 = vmatpush.bf16.msra.mxu0 %v5347_v57 }
  0xda   : > { %3141 = vmatmul.bf16.gmra.mxu1 %v4418_v32  ;;  %v988_v32 = vsel %vm961_vm1, %v986_v62, %v987_v4  ;;  %v990_v62 = vrot.slane %v7148_v15, 1 }
  0xdb   : > { %v6434_v25 = vunpack.c.l.b16 %v988_v32  ;;  %v6436_v34 = vunpack.c.h.b16 %v988_v32  ;;  %v7151_v32 = vld [vmem:[#allocation11_spill] sm:$0xff] }
  0xdc   : > { %v6414_v22 = vpop.f32.mrf.mxu2 }
  0xdd   : > { %v1196_v57 = vpack.c.b16 %v7150_v43, %v6434_v25  ;;  %v1200_v5 = vpack.c.b16 %v7151_v32, %v6436_v34  ;;  %v5203_v43 = vld [vmem:[#allocation3 + $0x220] sm:$0xf0]  ;;  %v7158_v32 = vld [vmem:[#allocation22_spill] sm:$0xff] }
  0xde   : > { %3230 = vmatmul.bf16.gmra.mxu2 %v4422_v36  ;;  %v7143_v36 = vld [vmem:[#allocation8_spill] sm:$0xff] }
  0xdf   : > { %v7144_v52 = vunpack.c.l.b16 %v7143_v36  ;;  %v7145_v59 = vunpack.c.h.b16 %v7143_v36  ;;  %1473 = vst [vmem:[#allocation3 + $0x248] sm:$0xff] %v1196_v57  ;;  %v5330_v57 = vld [vmem:[%s7020_s1 + $0x198] sm:$0xff] }
  0xe0   : > { %1478 = vst [vmem:[#allocation3 + $0x26c] sm:$0xff] %v1200_v5  ;;  %3562 = vmatpush.bf16.msra.mxu2 %v5330_v57  ;;  %v992_v5 = vrot.slane %v7158_v32, 1  ;;  %v7165_v57 = vld [vmem:[#allocation28_spill] sm:$0xff] }
  0xe1   : > { %v1189_v37 = vpack.c.b16 %v6434_v25, %v7144_v52  ;;  %v1193_v60 = vpack.c.b16 %v6436_v34, %v7145_v59  ;;  %v6446_v61 = vpop.f32.mrf.mxu3  ;;  %v5190_v52 = vld [vmem:[#allocation3 + $0x1bc] sm:$0xf]  ;;  %v7154_v59 = vld [vmem:[#allocation18_spill] sm:$0xff]  ;;  %v7166_v32 = vunpack.c.l.b16 %v7165_v57 }
  0xe2   : > { %7146 = vst [vmem:[#allocation8_spill] sm:$0xff] %v6446_v61  ;;  %v7156_v56 = vunpack.c.h.b16 %v7154_v59 }
  0xe3   : > { %3319 = vmatmul.bf16.gmra.mxu3 %v4426_v11  ;;  %1464 = vst [vmem:[#allocation3 + $0x208] sm:$0xff] %v1189_v37  ;;  %v5189_v11 = vld [vmem:[#allocation3 + $0x1b4] sm:$0xf]  ;;  %v4495_v37 = vld [vmem:[#allocation3 + $0x1dc] sm:$0xf0] }
  0xe4   : > { %1469 = vst [vmem:[#allocation3 + $0x22c] sm:$0xff] %v1193_v60  ;;  %v6448_v19 = vpop.f32.mrf.mxu2  ;;  %v4490_v31 = vor.u32 %v5189_v11, %v4487_v50  ;;  %v7155_v60 = vunpack.c.l.b16 %v7154_v59  ;;  %v4498_v11 = vor.u32 %v5190_v52, %v4495_v37  ;;  %v4501_v50 = vld [vmem:[#allocation3 + $0x1c0] sm:$0xf]  ;;  %v7159_v52 = vld [vmem:[#allocation23_spill] sm:$0xff] }
  0xe5   : > { %v993_v37 = vrot.slane %v7159_v52, 1  ;;  %v7167_v52 = vunpack.c.h.b16 %v7165_v57 }
  0xe8   : > { %3408 = vmatmul.bf16.gmra.mxu0 %v4430_v45  ;;  %v6444_v9 = vpop.f32.mrf.mxu0 }
  0xe9   : > { %v6456_v4 = vpop.f32.mrf.mxu3 }
  0xea   : > { %3146 = vmatmul.bf16.gmra.mxu1 %v4454_v13  ;;  %v7147_v13 = vld [vmem:[#allocation12_spill] sm:$0xff] }
  0xeb   : > { %v989_v39 = vrot.slane %v7147_v13, 1  ;;  %7149 = vst [vmem:[#allocation12_spill] sm:$0xff] %v6456_v4 }
  0xed   : > { %v991_v58 = vsel %vm961_vm1, %v989_v39, %v990_v62 }
  0xee   : > { %3235 = vmatmul.bf16.gmra.mxu2 %v4458_v40  ;;  %v4494_v40 = vor.u32 %v5194_v14, %v4493_v3  ;;  %v6463_v8 = vunpack.c.l.b16 %v991_v58  ;;  %v6465_v54 = vunpack.c.h.b16 %v991_v58  ;;  %v5198_v3 = vld [vmem:[#allocation3 + $0x1fc] sm:$0xf]  ;;  %v4523_v14 = vld [vmem:[#allocation3 + $0x21c] sm:$0xf0] }
  0xef   : > { %v4526_v15 = vor.u32 %v5198_v3, %v4523_v14  ;;  %v4529_v58 = vld [vmem:[#allocation3 + $0x200] sm:$0xf] }
  0xf0   : > { %v6450_v12 = vpop.f32.mrf.mxu1  ;;  %v6452_v45 = vpop.f32.mrf.mxu0  ;;  %7152 = vst [vmem:[#allocation13_spill] sm:$0xff] %v6463_v8  ;;  %v1201_v6 = vpack.c.b16 %v6465_v54, %v7156_v56  ;;  %v4530_v59 = vor.u32 %v5203_v43, %v4529_v58  ;;  %v994_v56 = vsel %vm961_vm1, %v992_v5, %v993_v37  ;;  %v5199_v58 = vld [vmem:[#allocation3 + $0x204] sm:$0xf]  ;;  %v4531_v43 = vld [vmem:[#allocation3 + $0x224] sm:$0xf0] }
  0xf1   : > { %7153 = vst [vmem:[#allocation10_spill] sm:$0xff] %v6465_v54  ;;  %v6501_v3 = vunpack.c.l.b16 %v994_v56  ;;  %v6503_v14 = vunpack.c.h.b16 %v994_v56 }
  0xf2   : > { %1479 = vst [vmem:[#allocation3 + $0x274] sm:$0xff] %v1201_v6  ;;  %v7160_v6 = vld [vmem:[#allocation20_spill] sm:$0xff] }
  0xf3   : > { %3324 = vmatmul.bf16.gmra.mxu3 %v4462_v18  ;;  %v1197_v18 = vpack.c.b16 %v6463_v8, %v7155_v60  ;;  %v5338_v60 = vld [vmem:[%s7020_s1 + $0x1d8] sm:$0xff]  ;;  %7162 = vst [vmem:[#allocation18_spill] sm:$0xff] %v6501_v3  ;;  %v1205_v5 = vpack.c.b16 %v6501_v3, %v7166_v32  ;;  %v1209_v37 = vpack.c.b16 %v6503_v14, %v7167_v52  ;;  %v4559_v32 = vld [vmem:[#allocation3 + $0x264] sm:$0xf0] }
  0xf4   : > { %3651 = vmatpush.bf16.msra.mxu3 %v5338_v60  ;;  %7163 = vst [vmem:[#allocation22_spill] sm:$0xff] %v6503_v14 }
  0xf5   : > { %1474 = vst [vmem:[#allocation3 + $0x250] sm:$0xff] %v1197_v18  ;;  %v5322_v18 = vld [vmem:[%s7020_s1 + $0x158] sm:$0xff] }
  0xf6   : > { %3473 = vmatpush.bf16.msra.mxu1 %v5322_v18  ;;  %v5346_v18 = vld [vmem:[%s7020_s1 + $0x218] sm:$0xff]  ;;  %1484 = vst [vmem:[#allocation3 + $0x298] sm:$0xff] %v1205_v5 }
  0xf7   : > { %3740 = vmatpush.bf16.msra.mxu0 %v5346_v18  ;;  %1489 = vst [vmem:[#allocation3 + $0x2bc] sm:$0xff] %v1209_v37  ;;  %v996_v37 = vrot.slane %v6154_v55, 1  ;;  %v7172_v55 = vld [vmem:[#allocation32_spill] sm:$0xff] }
  0xf8   : > { %3413 = vmatmul.bf16.gmra.mxu0 %v4466_v51  ;;  %v6469_v36 = vpop.f32.mrf.mxu1 }
  0xfa   : > { %3151 = vmatmul.bf16.gmra.mxu1 %v4490_v31  ;;  %v5195_v31 = vld [vmem:[#allocation3 + $0x1e0] sm:$0xf0] }
  0xfb   : > { %v6467_v10 = vpop.f32.mrf.mxu2  ;;  %v4502_v39 = vor.u32 %v5195_v31, %v4501_v50  ;;  %v7161_v50 = vld [vmem:[#allocation21_spill] sm:$0xff] }
  0xfc   : > { %v1208_v31 = vpack.c.b16 %v7161_v50, %v6465_v54  ;;  %v5207_v50 = vld [vmem:[#allocation3 + $0x244] sm:$0xf] }
  0xfd   : > { %v4562_v52 = vor.u32 %v5207_v50, %v4559_v32  ;;  %v4567_v32 = vld [vmem:[#allocation3 + $0x26c] sm:$0xf0] }
  0xfe   : > { %3240 = vmatmul.bf16.gmra.mxu2 %v4494_v40  ;;  %1488 = vst [vmem:[#allocation3 + $0x2b4] sm:$0xff] %v1208_v31 }
 0x100   : > { %v6479_v13 = vpop.f32.mrf.mxu3 }
 0x101   : > { %v6477_v51 = vpop.f32.mrf.mxu0  ;;  %7157 = vst [vmem:[#allocation11_spill] sm:$0xff] %v6479_v13  ;;  %v5212_v13 = vld [vmem:[#allocation3 + $0x268] sm:$0xf0] }
 0x103   : > { %3329 = vmatmul.bf16.gmra.mxu3 %v4498_v11  ;;  %v6481_v62 = vpop.f32.mrf.mxu2  ;;  %v1204_v11 = vpack.c.b16 %v7160_v6, %v6463_v8  ;;  %v4537_v6 = vld [vmem:[#allocation3 + $0x208] sm:$0xf] }
 0x105   : > { %1483 = vst [vmem:[#allocation3 + $0x290] sm:$0xff] %v1204_v11  ;;  %v5204_v11 = vld [vmem:[#allocation3 + $0x228] sm:$0xf0] }
 0x106   : > { %v4538_v57 = vor.u32 %v5204_v11, %v4537_v6  ;;  %v1212_v6 = vpack.c.b16 %v6132_v2, %v6501_v3  ;;  %v1216_v11 = vpack.c.b16 %v6134_v48, %v6503_v14  ;;  %v4595_v14 = vld [vmem:[#allocation3 + $0x2ac] sm:$0xf0] }
 0x107   : > { %v6483_v40 = vpop.f32.mrf.mxu1 }
 0x108   : > { %3418 = vmatmul.bf16.gmra.mxu0 %v4502_v39  ;;  %1493 = vst [vmem:[#allocation3 + $0x2d8] sm:$0xff] %v1212_v6 }
 0x109   : > { %v6505_v39 = vpop.f32.mrf.mxu0  ;;  %1498 = vst [vmem:[#allocation3 + $0x2fc] sm:$0xff] %v1216_v11  ;;  %v5221_v11 = vld [vmem:[#allocation3 + $0x2b0] sm:$0xf0] }
 0x10a   : > { %3156 = vmatmul.bf16.gmra.mxu1 %v4526_v15  ;;  %v6507_v15 = vpop.f32.mrf.mxu3 }
 0x10b   : > { %7164 = vst [vmem:[#allocation23_spill] sm:$0xff] %v6507_v15  ;;  %v4565_v15 = vld [vmem:[#allocation3 + $0x248] sm:$0xf] }
 0x10c   : > { %v4566_v18 = vor.u32 %v5212_v13, %v4565_v15  ;;  %v7174_v15 = vunpack.c.h.b16 %v7172_v55  ;;  %v4601_v54 = vld [vmem:[#allocation3 + $0x290] sm:$0xf] }
 0x10e   : > { %3245 = vmatmul.bf16.gmra.mxu2 %v4530_v59  ;;  %v4534_v59 = vor.u32 %v5199_v58, %v4531_v43  ;;  %v7169_v43 = vld [vmem:[#allocation30_spill] sm:$0xff] }
 0x10f   : > { %v6515_v60 = vpop.f32.mrf.mxu1  ;;  %v995_v5 = vrot.slane %v7169_v43, 1  ;;  %v4637_v17 = vld [vmem:[#allocation3 + $0x2d8] sm:$0xf] }
 0x111   : > { %v6520_v56 = vpop.f32.mrf.mxu2 }
 0x113   : > { %3334 = vmatmul.bf16.gmra.mxu3 %v4534_v59  ;;  %v997_v59 = vsel %vm961_vm1, %v995_v5, %v996_v37 }
 0x114   : > { %v6536_v50 = vunpack.c.l.b16 %v997_v59 }
 0x115   : > { %v6522_v0 = vpop.f32.mrf.mxu0 }
 0x116   : > { %v6524_v4 = vpop.f32.mrf.mxu3  ;;  %7170 = vst [vmem:[#allocation21_spill] sm:$0xff] %v6536_v50 }
 0x117   : > { %v3122_v1 = vpop.f32.mrf.mxu1  ;;  %7168 = vst [vmem:[#allocation20_spill] sm:$0xff] %v6524_v4  ;;  %v5213_v4 = vld [vmem:[#allocation3 + $0x270] sm:$0xf0] }
 0x118   : > { %v3123_v31 = vadd.f32 %v3122_v1, %v6384_v38  ;;  %3423 = vmatmul.bf16.gmra.mxu0 %v4538_v57  ;;  %v6538_v1 = vunpack.c.h.b16 %v997_v59  ;;  %v5208_v38 = vld [vmem:[#allocation3 + $0x24c] sm:$0xf]  ;;  %v7173_v57 = vunpack.c.l.b16 %v7172_v55  ;;  %v4573_v59 = vld [vmem:[#allocation3 + $0x250] sm:$0xf] }
 0x119   : > { %v6527_v58 = vpop.f32.mrf.mxu2  ;;  %v4570_v37 = vor.u32 %v5208_v38, %v4567_v32  ;;  %v4574_v55 = vor.u32 %v5213_v4, %v4573_v59  ;;  %v5337_v59 = vld [vmem:[%s7020_s1 + $0x1d0] sm:$0xff] }
 0x11a   : > { %3161 = vmatmul.bf16.gmra.mxu1 %v4562_v52  ;;  %7171 = vst [vmem:[#allocation28_spill] sm:$0xff] %v6538_v1  ;;  %v1213_v13 = vpack.c.b16 %v6536_v50, %v7173_v57  ;;  %v1217_v52 = vpack.c.b16 %v6538_v1, %v7174_v15  ;;  %v5216_v57 = vld [vmem:[#allocation3 + $0x28c] sm:$0xf]  ;;  %3652 = vmatpush.bf16.msra.mxu3 %v5337_v59  ;;  %v5345_v59 = vld [vmem:[%s7020_s1 + $0x210] sm:$0xff] }
 0x11b   : > { %v4598_v15 = vor.u32 %v5216_v57, %v4595_v14  ;;  %v4602_v14 = vor.u32 %v5221_v11, %v4601_v54  ;;  %v5321_v57 = vld [vmem:[%s7020_s1 + $0x150] sm:$0xff]  ;;  %3741 = vmatpush.bf16.msra.mxu0 %v5345_v59 }
 0x11c   : > { %1494 = vst [vmem:[#allocation3 + $0x2e0] sm:$0xff] %v1213_v13  ;;  %3474 = vmatpush.bf16.msra.mxu1 %v5321_v57 }
 0x11d   : > { %v6546_v2 = vpop.f32.mrf.mxu0  ;;  %1499 = vst [vmem:[#allocation3 + $0x304] sm:$0xff] %v1217_v52 }
 0x11e   : > { %3250 = vmatmul.bf16.gmra.mxu2 %v4566_v18  ;;  %v6548_v48 = vpop.f32.mrf.mxu3 }
 0x11f   : > { %v3124_v43 = vpop.f32.mrf.mxu1  ;;  %7175 = vst [vmem:[#allocation30_spill] sm:$0xff] %v6548_v48 }
 0x120   : > { %v3125_v5 = vadd.f32 %v3124_v43, %v6407_v24  ;;  %v5329_v24 = vld [vmem:[%s7020_s1 + $0x190] sm:$0xff] }
 0x121   : > { %v3211_v18 = vpop.f32.mrf.mxu2  ;;  %3563 = vmatpush.bf16.msra.mxu2 %v5329_v24  ;;  %v5217_v24 = vld [vmem:[#allocation3 + $0x294] sm:$0xf] }
 0x122   : > { %v3212_v6 = vadd.f32 %v3211_v18, %v3123_v31  ;;  %v7176_v31 = vld [vmem:[#allocation6_spill] sm:$0xff]  ;;  %v7177_v18 = vld [vmem:[#allocation7_spill] sm:$0xff] }
 0x123   : > { %3339 = vmatmul.bf16.gmra.mxu3 %v4570_v37  ;;  %v998_v43 = vrot.slane %v7176_v31, 1  ;;  %v999_v37 = vrot.slane %v7177_v18, 1 }
 0x125   : > { %v3389_v3 = vpop.f32.mrf.mxu0 }
 0x126   : > { %v3300_v13 = vpop.f32.mrf.mxu3 }
 0x127   : > { %v3127_v61 = vpop.f32.mrf.mxu1  ;;  %v3301_v32 = vadd.f32 %v3300_v13, %v3212_v6  ;;  %v7179_v6 = vld [vmem:[#allocation4_spill] sm:$0xff]  ;;  %v4603_v13 = vld [vmem:[#allocation3 + $0x2b4] sm:$0xf0] }
 0x128   : > { %v3128_v38 = vadd.f32 %v3127_v61, %v6444_v9  ;;  %3428 = vmatmul.bf16.gmra.mxu0 %v4574_v55  ;;  %v1000_v9 = vsel %vm961_vm1, %v998_v43, %v999_v37  ;;  %v1220_v55 = vpack.c.b16 %v7179_v6, %v6536_v50  ;;  %v4606_v6 = vor.u32 %v5217_v24, %v4603_v13 }
 0x129   : > { %v3213_v52 = vpop.f32.mrf.mxu2  ;;  %v6564_v61 = vadd.f32 %v3389_v3, %v3301_v32  ;;  %v6572_v11 = vunpack.c.h.b16 %v1000_v9 }
 0x12a   : > { %v3214_v4 = vadd.f32 %v3213_v52, %v3125_v5  ;;  %3166 = vmatmul.bf16.gmra.mxu1 %v4598_v15  ;;  %v7180_v5 = vld [vmem:[#allocation5_spill] sm:$0xff]  ;;  %v6570_v15 = vunpack.c.l.b16 %v1000_v9  ;;  %1503 = vst [vmem:[#allocation3 + $0x320] sm:$0xff] %v1220_v55 }
 0x12b   : > { %7178 = vst [vmem:[#allocation32_spill] sm:$0xff] %v6564_v61  ;;  %v1224_v54 = vpack.c.b16 %v7180_v5, %v6538_v1  ;;  %v7181_v52 = vld [vmem:[#allocation9_spill] sm:$0xff]  ;;  %v4609_v5 = vld [vmem:[#allocation3 + $0x298] sm:$0xf] }
 0x12c   : > { %v7182_v31 = vunpack.c.l.b16 %v7181_v52  ;;  %v7183_v32 = vunpack.c.h.b16 %v7181_v52  ;;  %v4631_v61 = vld [vmem:[#allocation3 + $0x2f4] sm:$0xf0] }
 0x12d   : > { %v3391_v18 = vpop.f32.mrf.mxu0  ;;  %1508 = vst [vmem:[#allocation3 + $0x344] sm:$0xff] %v1224_v54 }
 0x12e   : > { %3255 = vmatmul.bf16.gmra.mxu2 %v4602_v14  ;;  %v1221_v3 = vpack.c.b16 %v6570_v15, %v7182_v31  ;;  %v1225_v43 = vpack.c.b16 %v6572_v11, %v7183_v32  ;;  %v3302_v57 = vpop.f32.mrf.mxu3  ;;  %v5222_v31 = vld [vmem:[#allocation3 + $0x2b8] sm:$0xf0]  ;;  %v5225_v32 = vld [vmem:[#allocation3 + $0x2d4] sm:$0xf] }
 0x12f   : > { %v3129_v37 = vpop.f32.mrf.mxu1  ;;  %v3303_v9 = vadd.f32 %v3302_v57, %v3214_v4  ;;  %v4610_v1 = vor.u32 %v5222_v31, %v4609_v5  ;;  %v4634_v50 = vor.u32 %v5225_v32, %v4631_v61  ;;  %v7189_v5 = vld [vmem:[#allocation15_spill] sm:$0xff] }
 0x130   : > { %v3130_v14 = vadd.f32 %v3129_v37, %v6452_v45  ;;  %1504 = vst [vmem:[#allocation3 + $0x328] sm:$0xff] %v1221_v3  ;;  %v5230_v45 = vld [vmem:[#allocation3 + $0x2f8] sm:$0xf0] }
 0x131   : > { %v3216_v55 = vpop.f32.mrf.mxu2  ;;  %1509 = vst [vmem:[#allocation3 + $0x34c] sm:$0xff] %v1225_v43  ;;  %v6584_v48 = vadd.f32 %v3391_v18, %v3303_v9  ;;  %v7185_v43 = vld [vmem:[#allocation16_spill] sm:$0xff]  ;;  %v4638_v18 = vor.u32 %v5230_v45, %v4637_v17  ;;  %v5226_v31 = vld [vmem:[#allocation3 + $0x2dc] sm:$0xf] }
 0x132   : > { %v3217_v52 = vadd.f32 %v3216_v55, %v3128_v38  ;;  %v1001_v37 = vrot.slane %v7185_v43, 1  ;;  %v7186_v38 = vld [vmem:[#allocation17_spill] sm:$0xff] }
 0x133   : > { %7184 = vst [vmem:[#allocation6_spill] sm:$0xff] %v6584_v48  ;;  %3344 = vmatmul.bf16.gmra.mxu3 %v4606_v6  ;;  %v1002_v59 = vrot.slane %v7186_v38, 1  ;;  %v7188_v6 = vld [vmem:[#allocation14_spill] sm:$0xff] }
 0x134   : > { %v1228_v55 = vpack.c.b16 %v7188_v6, %v6570_v15  ;;  %v5234_v6 = vld [vmem:[#allocation3 + $0x31c] sm:$0xf]  ;;  %v5239_v48 = vld [vmem:[#allocation3 + $0x340] sm:$0xf0] }
 0x135   : > { %v3394_v54 = vpop.f32.mrf.mxu0  ;;  %v1003_v9 = vsel %vm961_vm1, %v1001_v37, %v1002_v59  ;;  %v4645_v59 = vld [vmem:[#allocation3 + $0x2e0] sm:$0xf] }
 0x136   : > { %v3305_v3 = vpop.f32.mrf.mxu3  ;;  %1513 = vst [vmem:[#allocation3 + $0x368] sm:$0xff] %v1228_v55  ;;  %v4667_v55 = vld [vmem:[#allocation3 + $0x33c] sm:$0xf0] }
 0x137   : > { %v3132_v8 = vpop.f32.mrf.mxu1  ;;  %v3306_v24 = vadd.f32 %v3305_v3, %v3217_v52  ;;  %v6598_v52 = vunpack.c.h.b16 %v1003_v9 }
 0x138   : > { %v3133_v4 = vadd.f32 %v3132_v8, %v6477_v51  ;;  %3433 = vmatmul.bf16.gmra.mxu0 %v4610_v1  ;;  %v1232_v8 = vpack.c.b16 %v7189_v5, %v6572_v11  ;;  %v6596_v51 = vunpack.c.l.b16 %v1003_v9  ;;  %v4639_v1 = vld [vmem:[#allocation3 + $0x2fc] sm:$0xf0]  ;;  %v5231_v9 = vld [vmem:[#allocation3 + $0x300] sm:$0xf0] }
 0x139   : > { %v3218_v13 = vpop.f32.mrf.mxu2  ;;  %v6590_v61 = vadd.f32 %v3394_v54, %v3306_v24  ;;  %v4642_v37 = vor.u32 %v5226_v31, %v4639_v1 }
 0x13a   : > { %v3219_v57 = vadd.f32 %v3218_v13, %v3130_v14  ;;  %3171 = vmatmul.bf16.gmra.mxu1 %v4634_v50  ;;  %v7190_v50 = vld [vmem:[#allocation19_spill] sm:$0xff]  ;;  %1518 = vst [vmem:[#allocation3 + $0x38c] sm:$0xff] %v1232_v8 }
 0x13b   : > { %7187 = vst [vmem:[#allocation7_spill] sm:$0xff] %v6590_v61  ;;  %v7191_v17 = vunpack.c.l.b16 %v7190_v50  ;;  %v7192_v32 = vunpack.c.h.b16 %v7190_v50  ;;  %v4646_v50 = vor.u32 %v5231_v9, %v4645_v59  ;;  %v4673_v61 = vld [vmem:[#allocation3 + $0x320] sm:$0xf] }
 0x13d   : > { %v1229_v14 = vpack.c.b16 %v6596_v51, %v7191_v17  ;;  %v1233_v54 = vpack.c.b16 %v6598_v52, %v7192_v32  ;;  %v3396_v45 = vpop.f32.mrf.mxu0  ;;  %v4670_v17 = vor.u32 %v5234_v6, %v4667_v55  ;;  %v5235_v55 = vld [vmem:[#allocation3 + $0x324] sm:$0xf] }
 0x13e   : > { %3260 = vmatmul.bf16.gmra.mxu2 %v4638_v18  ;;  %v3307_v24 = vpop.f32.mrf.mxu3 }
 0x13f   : > { %v3134_v3 = vpop.f32.mrf.mxu1  ;;  %1514 = vst [vmem:[#allocation3 + $0x370] sm:$0xff] %v1229_v14  ;;  %v3308_v43 = vadd.f32 %v3307_v24, %v3219_v57  ;;  %v7193_v14 = vld [vmem:[#allocation26_spill] sm:$0xff] }
 0x140   : > { %v3135_v13 = vadd.f32 %v3134_v3, %v6505_v39  ;;  %1519 = vst [vmem:[#allocation3 + $0x394] sm:$0xff] %v1233_v54  ;;  %v5328_v39 = vld [vmem:[%s7020_s1 + $0x188] sm:$0xff]  ;;  %v1004_v54 = vrot.slane %v7193_v14, 1 }
 0x141   : > { %v3221_v38 = vpop.f32.mrf.mxu2  ;;  %v6607_v5 = vadd.f32 %v3396_v45, %v3308_v43  ;;  %3564 = vmatpush.bf16.msra.mxu2 %v5328_v39  ;;  %v7194_v45 = vld [vmem:[#allocation27_spill] sm:$0xff]  ;;  %v4674_v43 = vor.u32 %v5239_v48, %v4673_v61  ;;  %v5344_v14 = vld [vmem:[%s7020_s1 + $0x208] sm:$0xff] }
 0x142   : > { %v3222_v18 = vadd.f32 %v3221_v38, %v3133_v4  ;;  %v1005_v3 = vrot.slane %v7194_v45, 1  ;;  %v5320_v38 = vld [vmem:[%s7020_s1 + $0x148] sm:$0xff]  ;;  %3742 = vmatpush.bf16.msra.mxu0 %v5344_v14 }
 0x143   : > { %3349 = vmatmul.bf16.gmra.mxu3 %v4642_v37  ;;  %v5336_v37 = vld [vmem:[%s7020_s1 + $0x1c8] sm:$0xff]  ;;  %3475 = vmatpush.bf16.msra.mxu1 %v5320_v38  ;;  %v4681_v38 = vld [vmem:[#allocation3 + $0x328] sm:$0xf] }
 0x144   : > { %3653 = vmatpush.bf16.msra.mxu3 %v5336_v37 }
 0x145   : > { %v3399_v32 = vpop.f32.mrf.mxu0 }
 0x146   : > { %v3310_v57 = vpop.f32.mrf.mxu3 }
 0x147   : > { %v3137_v8 = vpop.f32.mrf.mxu1  ;;  %v3311_v4 = vadd.f32 %v3310_v57, %v3222_v18  ;;  %v7196_v18 = vld [vmem:[#allocation24_spill] sm:$0xff] }
 0x148   : > { %v3138_v31 = vadd.f32 %v3137_v8, %v6522_v0  ;;  %3438 = vmatmul.bf16.gmra.mxu0 %v4646_v50  ;;  %v1006_v0 = vsel %vm961_vm1, %v1004_v54, %v1005_v3  ;;  %v1236_v9 = vpack.c.b16 %v7196_v18, %v6596_v51  ;;  %v4675_v50 = vld [vmem:[#allocation3 + $0x344] sm:$0xf0]  ;;  %v5240_v18 = vld [vmem:[#allocation3 + $0x348] sm:$0xf0] }
 0x149   : > { %v3223_v1 = vpop.f32.mrf.mxu2  ;;  %v6622_v59 = vadd.f32 %v3399_v32, %v3311_v4  ;;  %v6628_v61 = vunpack.c.l.b16 %v1006_v0  ;;  %v6630_v6 = vunpack.c.h.b16 %v1006_v0 }
 0x14a   : > { %v3224_v24 = vadd.f32 %v3223_v1, %v3135_v13  ;;  %3176 = vmatmul.bf16.gmra.mxu1 %v4670_v17  ;;  %v7197_v13 = vld [vmem:[#allocation25_spill] sm:$0xff]  ;;  %1523 = vst [vmem:[#allocation3 + $0x3b0] sm:$0xff] %v1236_v9  ;;  %v5243_v9 = vld [vmem:[#allocation3 + $0x364] sm:$0xf] }
 0x14b   : > { %7195 = vst [vmem:[#allocation4_spill] sm:$0xff] %v6622_v59  ;;  %v1240_v48 = vpack.c.b16 %v7197_v13, %v6598_v52  ;;  %v7200_v17 = vld [vmem:[#allocation29_spill] sm:$0xff] }
 0x14c   : > { %7198 = vst [vmem:[#allocation5_spill] sm:$0xff] %v6628_v61  ;;  %v7201_v8 = vunpack.c.l.b16 %v7200_v17  ;;  %v7202_v39 = vunpack.c.h.b16 %v7200_v17  ;;  %v4703_v13 = vld [vmem:[#allocation3 + $0x384] sm:$0xf0] }
 0x14d   : > { %7199 = vst [vmem:[#allocation9_spill] sm:$0xff] %v6630_v6  ;;  %v3401_v4 = vpop.f32.mrf.mxu0  ;;  %v4709_v59 = vld [vmem:[#allocation3 + $0x368] sm:$0xf] }
 0x14e   : > { %3265 = vmatmul.bf16.gmra.mxu2 %v4674_v43  ;;  %v1237_v32 = vpack.c.b16 %v6628_v61, %v7201_v8  ;;  %v1241_v57 = vpack.c.b16 %v6630_v6, %v7202_v39  ;;  %1528 = vst [vmem:[#allocation3 + $0x3d4] sm:$0xff] %v1240_v48  ;;  %v3312_v54 = vpop.f32.mrf.mxu3  ;;  %v4678_v43 = vor.u32 %v5235_v55, %v4675_v50  ;;  %v419_v8 = vld [vmem:[%s5711_s6 + $0xb4] sm:$0xff]   ;;  %v421_v55 = vld [vmem:[%s5711_s6 + $0xbc] sm:$0x1] }
 0x14f   : > { %v3139_v1 = vpop.f32.mrf.mxu1  ;;  %v3313_v3 = vadd.f32 %v3312_v54, %v3224_v24  ;;  %v4682_v48 = vor.u32 %v5240_v18, %v4681_v38  ;;  %v4706_v39 = vor.u32 %v5243_v9, %v4703_v13  ;;  %v5248_v24 = vld [vmem:[#allocation3 + $0x388] sm:$0xf0]  ;;  %468 = vst [vmem:[#allocation2 + $0xc0] sm:$0xff] %v419_v8   ;;  %v1244_v18 = vpack.c.b16 %v6162_v27, %v6628_v61 }
 0x150   : > { %v3140_v45 = vadd.f32 %v3139_v1, %v6546_v2  ;;  %1524 = vst [vmem:[#allocation3 + $0x3b8] sm:$0xff] %v1237_v32  ;;  %v7205_v54 = vld [vmem:[#allocation33_spill] sm:$0xff]  ;;  %v1248_v9 = vpack.c.b16 %v6164_v53, %v6630_v6 }
 0x151   : > { %v3226_v37 = vpop.f32.mrf.mxu2  ;;  %1529 = vst [vmem:[#allocation3 + $0x3dc] sm:$0xff] %v1241_v57  ;;  %v6642_v17 = vadd.f32 %v3401_v4, %v3313_v3  ;;  %v4710_v3 = vor.u32 %v5248_v24, %v4709_v59  ;;  %v5244_v8 = vld [vmem:[#allocation3 + $0x36c] sm:$0xf]  ;;  %v7207_v59 = vunpack.c.l.b16 %v6236_v47 }
 0x152   : > { %v3227_v0 = vadd.f32 %v3226_v37, %v3138_v31  ;;  %470 = vst [vmem:[#allocation2 + $0xc8] sm:$0x1] %v421_v55  ;;  %v7204_v31 = vld [vmem:[#allocation31_spill] sm:$0xff]  ;;  %v1008_v37 = vrot.slane %v7205_v54, 1 }
 0x153   : > { %7203 = vst [vmem:[#allocation16_spill] sm:$0xff] %v6642_v17  ;;  %3354 = vmatmul.bf16.gmra.mxu3 %v4678_v43  ;;  %v1007_v14 = vrot.slane %v7204_v31, 1  ;;  %v5252_v17 = vld [vmem:[#allocation3 + $0x3ac] sm:$0xf] }
 0x154   : > { %1533 = vst [vmem:[#allocation3 + $0x3f8] sm:$0xff] %v1244_v18  ;;  %v4717_v18 = vld [vmem:[#allocation3 + $0x370] sm:$0xf] }
 0x155   : > { %v3404_v2 = vpop.f32.mrf.mxu0  ;;  %v1009_v43 = vsel %vm961_vm1, %v1007_v14, %v1008_v37  ;;  %1538 = vst [vmem:[#allocation3 + $0x41c] sm:$0xff] %v1248_v9  ;;  %v4739_v9 = vld [vmem:[#allocation3 + $0x3cc] sm:$0xf0] }
 0x156   : > { %v3315_v50 = vpop.f32.mrf.mxu3  ;;  %v6657_v13 = vunpack.c.h.b16 %v1009_v43  ;;  %v5538_v27 = vld [vmem:[#allocation2 + $0xc0] sm:$0xff]  }
 0x157   : > { %v3142_v32 = vpop.f32.mrf.mxu1  ;;  %v3316_v57 = vadd.f32 %v3315_v50, %v3227_v0  ;;  %v6655_v0 = vunpack.c.l.b16 %v1009_v43  ;;  %v5385_v53 = vunpack.c.l.bf16 %v5538_v27  ;;  %v5386_v50 = vunpack.c.h.bf16 %v5538_v27 }
 0x158   : > { %3443 = vmatmul.bf16.gmra.mxu0 %v4682_v48  ;;  %v4711_v48 = vld [vmem:[#allocation3 + $0x38c] sm:$0xf0]  ;;  %v3143_v31 = vadd.f32 %v3142_v32, %v6365_v44 }
 0x159   : > { %v3228_v1 = vpop.f32.mrf.mxu2  ;;  %v6649_v38 = vadd.f32 %v3404_v2, %v3316_v57  ;;  %v528_v57 = vld [vmem:[#allocation2 + $0xc8] sm:$0x1]  ;;  %v4714_v37 = vor.u32 %v5244_v8, %v4711_v48  ;;  %v634_v43 = vpack.c.bf16 %v5385_v53, %v5385_v53  ;;  %v4742_v8 = vor.u32 %v5252_v17, %v4739_v9 }
 0x15a   : > { %v3229_v4 = vadd.f32 %v3228_v1, %v3140_v45  ;;  %3181 = vmatmul.bf16.gmra.mxu1 %v4706_v39  ;;  %v1245_v45 = vpack.c.b16 %v6655_v0, %v7207_v59  ;;  %v7208_v39 = vunpack.c.h.b16 %v6236_v47  ;;  %v582_v14 = vunpack.c.l.bf16 %v528_v57  ;;  %v4745_v48 = vld [vmem:[#allocation3 + $0x3b0] sm:$0xf]  ;;  %v5327_v57 = vld [vmem:[%s7020_s1 + $0x180] sm:$0xff] }
 0x15b   : > { %7206 = vst [vmem:[#allocation17_spill] sm:$0xff] %v6649_v38  ;;  %v635_v47 = vpack.c.bf16 %v5386_v50, %v5386_v50  ;;  %v5249_v38 = vld [vmem:[#allocation3 + $0x390] sm:$0xf0]  ;;  %v6666_v6 = vunpack.c.l.b16 %v634_v43  ;;  %3565 = vmatpush.bf16.msra.mxu2 %v5327_v57 }
 0x15c   : > { %v1249_v2 = vpack.c.b16 %v6657_v13, %v7208_v39  ;;  %1534 = vst [vmem:[#allocation3 + $0x400] sm:$0xff] %v1245_v45  ;;  %v636_v39 = vpack.c.bf16 %v582_v14, %v582_v14  ;;  %v5257_v50 = vld [vmem:[#allocation3 + $0x3d0] sm:$0xf0] }
 0x15d   : > { %v3406_v24 = vpop.f32.mrf.mxu0  ;;  %v6668_v27 = vunpack.c.l.b16 %v635_v47  ;;  %v4746_v47 = vor.u32 %v5257_v50, %v4745_v48 }
 0x15e   : > { %3270 = vmatmul.bf16.gmra.mxu2 %v4710_v3  ;;  %v3317_v1 = vpop.f32.mrf.mxu3  ;;  %1539 = vst [vmem:[#allocation3 + $0x424] sm:$0xff] %v1249_v2  ;;  %v1015_v44 = vunpack.c.l.b16 %v636_v39  ;;  %v5319_v39 = vld [vmem:[%s7020_s1 + $0x140] sm:$0xff] }
 0x15f   : > { %v3144_v55 = vpop.f32.mrf.mxu1  ;;  %v3318_v54 = vadd.f32 %v3317_v1, %v3229_v4  ;;  %v1016_v32 = vpack.c.b16 %v6668_v27, %v6666_v6  ;;  %v4718_v4 = vor.u32 %v5249_v38, %v4717_v18  ;;  %v5335_v18 = vld [vmem:[%s7020_s1 + $0x1c0] sm:$0xff]  ;;  %3476 = vmatpush.bf16.msra.mxu1 %v5319_v39  ;;  %v4753_v39 = vld [vmem:[#allocation3 + $0x3b8] sm:$0xf] }
 0x160   : > { %v1017_v45 = vpack.c.b16 %v1015_v44, %v1015_v44  ;;  %v3145_v14 = vadd.f32 %v3144_v55, %v6380_v41  ;;  %3654 = vmatpush.bf16.msra.mxu3 %v5335_v18  ;;  %v1252_v44 = vpack.c.b16 %v6666_v6, %v6655_v0 }
 0x161   : > { %v3231_v3 = vpop.f32.mrf.mxu2  ;;  %v6670_v61 = vadd.f32 %v3406_v24, %v3318_v54  ;;  %v1019_v1 = vshrl.u32 %v1016_v32, 16  ;;  %v1030_v17 = vrot.slane %v1016_v32, 1 }
 0x162   : > { %v3232_v59 = vadd.f32 %v3231_v3, %v3143_v31  ;;  %v1021_v31 = vshll.u32 %v1016_v32, 16  ;;  %v1026_v54 = vshll.u32 %v1017_v45, 16  ;;  %v1031_v41 = vrot.slane %v1017_v45, 1  ;;  %v5253_v45 = vld [vmem:[#allocation3 + $0x3b4] sm:$0xf]  ;;  %1543 = vst [vmem:[#allocation3 + $0x440] sm:$0xff] %v1252_v44 }
 0x163   : > { %3359 = vmatmul.bf16.gmra.mxu3 %v4714_v37  ;;  %v1256_v32 = vpack.c.b16 %v6668_v27, %v6657_v13  ;;  %v4775_v44 = vld [vmem:[#allocation3 + $0x414] sm:$0xf0] }
 0x164   : > { %v1023_v38 = vrot.slane %v1021_v31, 1  ;;  %v1028_v9 = vrot.slane %v1026_v54, 1 }
 0x165   : > { %v3409_v2 = vpop.f32.mrf.mxu0  ;;  %1548 = vst [vmem:[#allocation3 + $0x464] sm:$0xff] %v1256_v32 }
 0x166   : > { %v3320_v24 = vpop.f32.mrf.mxu3  ;;  %v1024_v55 = vor.u32 %v1023_v38, %v1019_v1 }
 0x167   : > { %v3147_v53 = vpop.f32.mrf.mxu1  ;;  %v3321_v37 = vadd.f32 %v3320_v24, %v3232_v59 }
 0x168   : > { %3448 = vmatmul.bf16.gmra.mxu0 %v4718_v4  ;;  %v1032_v4 = vsel %vm961_vm1, %v1030_v17, %v1031_v41 }
 0x169   : > { %v3233_v3 = vpop.f32.mrf.mxu2  ;;  %v6684_v59 = vadd.f32 %v3409_v2, %v3321_v37  ;;  %v6694_v48 = vunpack.c.l.b16 %v1032_v4  ;;  %v6696_v50 = vunpack.c.h.b16 %v1032_v4  ;;  %v4747_v2 = vld [vmem:[#allocation3 + $0x3d4] sm:$0xf0]  ;;  %v3148_v37 = vadd.f32 %v3147_v53, %v6405_v49 }
 0x16a   : > { %v3234_v43 = vadd.f32 %v3233_v3, %v3145_v14  ;;  %3186 = vmatmul.bf16.gmra.mxu1 %v4742_v8  ;;  %v6692_v8 = vsel %vm768_vm0, %v1024_v55, %v1028_v9  ;;  %v5343_v14 = vld [vmem:[%s7020_s1 + $0x200] sm:$0xff]  ;;  %v5258_v9 = vld [vmem:[#allocation3 + $0x3d8] sm:$0xf0]  ;;  %v5261_v55 = vld [vmem:[#allocation3 + $0x3f4] sm:$0xf] }
 0x16b   : > { %7209 = vst [vmem:[#allocation14_spill] sm:$0xff] %v6684_v59  ;;  %v7096_v57 = vunpack.c.l.b16 %v6692_v8  ;;  %v7097_v1 = vunpack.c.h.b16 %v6692_v8  ;;  %3743 = vmatpush.bf16.msra.mxu0 %v5343_v14  ;;  %v4754_v53 = vor.u32 %v5258_v9, %v4753_v39  ;;  %v4778_v32 = vor.u32 %v5261_v55, %v4775_v44  ;;  %v4781_v59 = vld [vmem:[#allocation3 + $0x3f8] sm:$0xf] }
 0x16d   : > { %v3411_v31 = vpop.f32.mrf.mxu0  ;;  %v1253_v3 = vpack.c.b16 %v6694_v48, %v7096_v57  ;;  %v1257_v38 = vpack.c.b16 %v6696_v50, %v7097_v1  ;;  %v5266_v1 = vld [vmem:[#allocation3 + $0x418] sm:$0xf0] }
 0x16e   : > { %3275 = vmatmul.bf16.gmra.mxu2 %v4746_v47  ;;  %v3322_v54 = vpop.f32.mrf.mxu3  ;;  %v4750_v47 = vor.u32 %v5253_v45, %v4747_v2 }
 0x16f   : > { %v3149_v24 = vpop.f32.mrf.mxu1  ;;  %v3323_v17 = vadd.f32 %v3322_v54, %v3234_v43  ;;  %1544 = vst [vmem:[#allocation3 + $0x448] sm:$0xff] %v1253_v3 }
 0x170   : > { %1549 = vst [vmem:[#allocation3 + $0x46c] sm:$0xff] %v1257_v38  ;;  %v3150_v45 = vadd.f32 %v3149_v24, %v6416_v35  ;;  %v4783_v38 = vld [vmem:[#allocation3 + $0x41c] sm:$0xf0] }
 0x171   : > { %v3236_v18 = vpop.f32.mrf.mxu2  ;;  %v6710_v49 = vadd.f32 %v3411_v31, %v3323_v17  ;;  %v5262_v31 = vld [vmem:[#allocation3 + $0x3fc] sm:$0xf]  ;;  %v4789_v35 = vld [vmem:[#allocation3 + $0x400] sm:$0xf] }
 0x172   : > { %v3237_v41 = vadd.f32 %v3236_v18, %v3148_v37  ;;  %v4782_v37 = vor.u32 %v5266_v1, %v4781_v59  ;;  %v4786_v55 = vor.u32 %v5262_v31, %v4783_v38 }
 0x173   : > { %3364 = vmatmul.bf16.gmra.mxu3 %v4750_v47 }
 0x175   : > { %v3414_v4 = vpop.f32.mrf.mxu0 }
 0x176   : > { %v3325_v43 = vpop.f32.mrf.mxu3 }
 0x177   : > { %v3152_v57 = vpop.f32.mrf.mxu1  ;;  %v3326_v2 = vadd.f32 %v3325_v43, %v3237_v41  ;;  %v5267_v41 = vld [vmem:[#allocation3 + $0x420] sm:$0xf0]  ;;  %v4811_v43 = vld [vmem:[#allocation3 + $0x45c] sm:$0xf0] }
 0x178   : > { %3453 = vmatmul.bf16.gmra.mxu0 %v4754_v53  ;;  %v3153_v39 = vadd.f32 %v3152_v57, %v6450_v12  ;;  %v5270_v53 = vld [vmem:[#allocation3 + $0x43c] sm:$0xf]  ;;  %v4790_v59 = vor.u32 %v5267_v41, %v4789_v35 }
 0x179   : > { %v3238_v14 = vpop.f32.mrf.mxu2  ;;  %v6713_v3 = vadd.f32 %v3414_v4, %v3326_v2  ;;  %v4814_v1 = vor.u32 %v5270_v53, %v4811_v43  ;;  %v4817_v2 = vld [vmem:[#allocation3 + $0x440] sm:$0xf]  ;;  %v4825_v43 = vld [vmem:[#allocation3 + $0x448] sm:$0xf] }
 0x17a   : > { %v3239_v54 = vadd.f32 %v3238_v14, %v3150_v45  ;;  %3191 = vmatmul.bf16.gmra.mxu1 %v4778_v32  ;;  %v5275_v14 = vld [vmem:[#allocation3 + $0x460] sm:$0xf0] }
 0x17b   : > { %v4818_v38 = vor.u32 %v5275_v14, %v4817_v2  ;;  %v4287_v2 = vld [vmem:[#allocation3 + $0x34] sm:$0xf0] }
 0x17d   : > { %v3416_v17 = vpop.f32.mrf.mxu0 }
 0x17e   : > { %3280 = vmatmul.bf16.gmra.mxu2 %v4782_v37  ;;  %v3327_v18 = vpop.f32.mrf.mxu3 }
 0x17f   : > { %v3154_v47 = vpop.f32.mrf.mxu1  ;;  %v3328_v9 = vadd.f32 %v3327_v18, %v3239_v54 }
 0x180   : > { %v3155_v12 = vadd.f32 %v3154_v47, %v6469_v36 }
 0x181   : > { %v3241_v44 = vpop.f32.mrf.mxu2  ;;  %v6716_v32 = vadd.f32 %v3416_v17, %v3328_v9  ;;  %v5271_v17 = vld [vmem:[#allocation3 + $0x444] sm:$0xf]  ;;  %v1142_v9 = vpack.c.b16 %v6291_v28, %v6291_v28 }
 0x182   : > { %v3242_v24 = vadd.f32 %v3241_v44, %v3153_v39  ;;  %v4819_v39 = vld [vmem:[#allocation3 + $0x464] sm:$0xf0] }
 0x183   : > { %3369 = vmatmul.bf16.gmra.mxu3 %v4786_v55  ;;  %v1147_v55 = vpack.c.b16 %v6293_v16, %v6293_v16  ;;  %1406 = vst [vmem:[#allocation3 + $0x68] sm:$0xf] %v1142_v9  ;;  %v4822_v41 = vor.u32 %v5271_v17, %v4819_v39 }
 0x185   : > { %v3419_v4 = vpop.f32.mrf.mxu0  ;;  %1411 = vst [vmem:[#allocation3 + $0x8c] sm:$0xf] %v1147_v55  ;;  %v5138_v55 = vld [vmem:[#allocation3 + $0x1c] sm:$0xf] }
 0x186   : > { %v3330_v37 = vpop.f32.mrf.mxu3 }
 0x187   : > { %v3157_v45 = vpop.f32.mrf.mxu1  ;;  %v3331_v57 = vadd.f32 %v3330_v37, %v3242_v24 }
 0x188   : > { %3458 = vmatmul.bf16.gmra.mxu0 %v4790_v59  ;;  %v3158_v47 = vadd.f32 %v3157_v45, %v6483_v40 }
 0x189   : > { %v3243_v54 = vpop.f32.mrf.mxu2  ;;  %v6719_v18 = vadd.f32 %v3419_v4, %v3331_v57  ;;  %v5137_v4 = vld [vmem:[#allocation3 + $0x14] sm:$0xf]  ;;  %v4293_v57 = vld [vmem:[#allocation3 + $0x18] sm:$0xf] }
 0x18a   : > { %v3244_v31 = vadd.f32 %v3243_v54, %v3155_v12  ;;  %3196 = vmatmul.bf16.gmra.mxu1 %v4814_v1  ;;  %v5276_v1 = vld [vmem:[#allocation3 + $0x468] sm:$0xf0]  ;;  %v4290_v16 = vor.u32 %v5137_v4, %v4287_v2  ;;  %v5142_v54 = vld [vmem:[#allocation3 + $0x38] sm:$0xf0]  ;;  %v5143_v2 = vld [vmem:[#allocation3 + $0x40] sm:$0xf0] }
 0x18b   : > { %v4826_v28 = vor.u32 %v5276_v1, %v4825_v43  ;;  %v4294_v39 = vor.u32 %v5142_v54, %v4293_v57  ;;  %v4301_v1 = vld [vmem:[#allocation3 + $0x20] sm:$0xf] }
 0x18d   : > { %v3421_v44 = vpop.f32.mrf.mxu0 }
 0x18e   : > { %3285 = vmatmul.bf16.gmra.mxu2 %v4818_v38  ;;  %v3332_v36 = vpop.f32.mrf.mxu3 }
 0x18f   : > { %v3159_v35 = vpop.f32.mrf.mxu1  ;;  %v3333_v24 = vadd.f32 %v3332_v36, %v3244_v31  ;;  %v1151_v36 = vpack.c.b16 %v6320_v30, %v6320_v30  ;;  %v4302_v30 = vor.u32 %v5143_v2, %v4301_v1  ;;  %v4337_v1 = vld [vmem:[#allocation3 + $0x68] sm:$0xf]  ;;  %v5152_v2 = vld [vmem:[#allocation3 + $0x88] sm:$0xf0] }
 0x190   : > { %v3160_v45 = vadd.f32 %v3159_v35, %v6515_v60 }
 0x191   : > { %v3246_v53 = vpop.f32.mrf.mxu2  ;;  %v6726_v14 = vadd.f32 %v3421_v44, %v3333_v24  ;;  %v4295_v44 = vld [vmem:[#allocation3 + $0x3c] sm:$0xf0]  ;;  %1416 = vst [vmem:[#allocation3 + $0xb0] sm:$0xf] %v1151_v36  ;;  %v4331_v36 = vld [vmem:[#allocation3 + $0x84] sm:$0xf0] }
 0x192   : > { %v3247_v59 = vadd.f32 %v3246_v53, %v3158_v47  ;;  %v1155_v47 = vpack.c.b16 %v6322_v46, %v6322_v46  ;;  %v4298_v43 = vor.u32 %v5138_v55, %v4295_v44  ;;  %v5147_v44 = vld [vmem:[#allocation3 + $0x64] sm:$0xf] }
 0x193   : > { %3374 = vmatmul.bf16.gmra.mxu3 %v4822_v41 }
 0x194   : > { %1421 = vst [vmem:[#allocation3 + $0xd4] sm:$0xf] %v1155_v47  ;;  %v1159_v47 = vpack.c.b16 %v6337_v7, %v6337_v7  ;;  %v4338_v7 = vor.u32 %v5152_v2, %v4337_v1  ;;  %v4395_v2 = vld [vmem:[#allocation3 + $0x10c] sm:$0xf0] }
 0x195   : > { %v3424_v37 = vpop.f32.mrf.mxu0 }
 0x196   : > { %v3335_v40 = vpop.f32.mrf.mxu3  ;;  %1426 = vst [vmem:[#allocation3 + $0xf8] sm:$0xf] %v1159_v47  ;;  %v1171_v47 = vpack.c.b16 %v6370_v21, %v6370_v21 }
 0x197   : > { %v3162_v12 = vpop.f32.mrf.mxu1  ;;  %v3336_v31 = vadd.f32 %v3335_v40, %v3247_v59  ;;  %v4329_v40 = vld [vmem:[#allocation3 + $0x60] sm:$0xf] }
 0x198   : > { %3463 = vmatmul.bf16.gmra.mxu0 %v4826_v28  ;;  %v3163_v35 = vadd.f32 %v3162_v12, %v6378_v33  ;;  %v5146_v28 = vld [vmem:[#allocation3 + $0x5c] sm:$0xf]  ;;  %1441 = vst [vmem:[#allocation3 + $0x164] sm:$0xf] %v1171_v47 }
 0x199   : > { %v3248_v38 = vpop.f32.mrf.mxu2  ;;  %v6729_v9 = vadd.f32 %v3424_v37, %v3336_v31 }
 0x19a   : > { %v3249_v17 = vadd.f32 %v3248_v38, %v3160_v45  ;;  %3477 = vmatmul.bf16.vlgmr.msra.gmra.mxu1 %v4290_v16  ;;  %v4323_v16 = vld [vmem:[#allocation3 + $0x7c] sm:$0xf0]  ;;  %v5151_v45 = vld [vmem:[#allocation3 + $0x80] sm:$0xf0] }
 0x19b   : > { %v4326_v46 = vor.u32 %v5146_v28, %v4323_v16  ;;  %v5155_v28 = vld [vmem:[#allocation3 + $0xa4] sm:$0xf]  ;;  %v4359_v16 = vld [vmem:[#allocation3 + $0xc4] sm:$0xf0]  ;;  %v5161_v1 = vld [vmem:[#allocation3 + $0xd0] sm:$0xf0] }
 0x19d   : > { %v3426_v24 = vpop.f32.mrf.mxu0 }
 0x19e   : > { %3566 = vmatmul.bf16.vlgmr.msra.gmra.mxu2 %v4294_v39  ;;  %v3337_v60 = vpop.f32.mrf.mxu3  ;;  %v4330_v39 = vor.u32 %v5151_v45, %v4329_v40  ;;  %v4365_v40 = vld [vmem:[#allocation3 + $0xa8] sm:$0xf]  ;;  %v5160_v45 = vld [vmem:[#allocation3 + $0xc8] sm:$0xf0] }
 0x19f   : > { %v3164_v41 = vpop.f32.mrf.mxu1  ;;  %v3338_v53 = vadd.f32 %v3337_v60, %v3249_v17 }
 0x1a0   : > { %v3165_v12 = vadd.f32 %v3164_v41, %v6403_v23 }
 0x1a1   : > { %v3251_v59 = vpop.f32.mrf.mxu2  ;;  %v6736_v37 = vadd.f32 %v3426_v24, %v3338_v53  ;;  %v1163_v24 = vpack.c.b16 %v6339_v26, %v6339_v26  ;;  %v4362_v26 = vor.u32 %v5155_v28, %v4359_v16 }
 0x1a2   : > { %v3252_v4 = vadd.f32 %v3251_v59, %v3163_v35 }
 0x1a3   : > { %3655 = vmatmul.bf16.vlgmr.msra.gmra.mxu3 %v4298_v43  ;;  %v4334_v43 = vor.u32 %v5147_v44, %v4331_v36  ;;  %1431 = vst [vmem:[#allocation3 + $0x11c] sm:$0xf] %v1163_v24  ;;  %v4367_v44 = vld [vmem:[#allocation3 + $0xcc] sm:$0xf0]  ;;  %v1167_v36 = vpack.c.b16 %v6368_v42, %v6368_v42 }
 0x1a5   : > { %v3429_v57 = vpop.f32.mrf.mxu0  ;;  %1436 = vst [vmem:[#allocation3 + $0x140] sm:$0xf] %v1167_v36 }
 0x1a6   : > { %v3340_v33 = vpop.f32.mrf.mxu3 }
 0x1a7   : > { %v3167_v54 = vpop.f32.mrf.mxu1  ;;  %v3341_v31 = vadd.f32 %v3340_v33, %v3252_v4 }
 0x1a8   : > { %3744 = vmatmul.bf16.vlgmr.msra.gmra.mxu0 %v4302_v30  ;;  %v3168_v41 = vadd.f32 %v3167_v54, %v6414_v22 }
 0x1a9   : > { %v3253_v38 = vpop.f32.mrf.mxu2  ;;  %v6739_v55 = vadd.f32 %v3429_v57, %v3341_v31 }
 0x1aa   : > { %v3254_v17 = vadd.f32 %v3253_v38, %v3165_v12  ;;  %3482 = vmatmul.bf16.gmra.mxu1 %v4326_v46  ;;  %v4366_v38 = vor.u32 %v5160_v45, %v4365_v40 }
 0x1ad   : > { %v3431_v60 = vpop.f32.mrf.mxu0 }
 0x1ae   : > { %3571 = vmatmul.bf16.gmra.mxu2 %v4330_v39  ;;  %v3342_v23 = vpop.f32.mrf.mxu3  ;;  %v5156_v39 = vld [vmem:[#allocation3 + $0xac] sm:$0xf] }
 0x1af   : > { %v3169_v35 = vpop.f32.mrf.mxu1  ;;  %v3343_v53 = vadd.f32 %v3342_v23, %v3254_v17 }
 0x1b0   : > { %v3170_v54 = vadd.f32 %v3169_v35, %v6448_v19 }
 0x1b1   : > { %v3256_v59 = vpop.f32.mrf.mxu2  ;;  %v6746_v30 = vadd.f32 %v3431_v60, %v3343_v53 }
 0x1b2   : > { %v3257_v4 = vadd.f32 %v3256_v59, %v3168_v41  ;;  %v4370_v41 = vor.u32 %v5156_v39, %v4367_v44  ;;  %v1179_v39 = vpack.c.b16 %v6395_v20, %v6395_v20 }
 0x1b3   : > { %3660 = vmatmul.bf16.gmra.mxu3 %v4334_v43  ;;  %v4373_v43 = vld [vmem:[#allocation3 + $0xb0] sm:$0xf] }
 0x1b4   : > { %v4374_v42 = vor.u32 %v5161_v1, %v4373_v43  ;;  %1451 = vst [vmem:[#allocation3 + $0x1ac] sm:$0xf] %v1179_v39  ;;  %v4431_v43 = vld [vmem:[#allocation3 + $0x154] sm:$0xf0] }
 0x1b5   : > { %v3434_v46 = vpop.f32.mrf.mxu0 }
 0x1b6   : > { %v3345_v22 = vpop.f32.mrf.mxu3 }
 0x1b7   : > { %v3172_v57 = vpop.f32.mrf.mxu1  ;;  %v3346_v33 = vadd.f32 %v3345_v22, %v3257_v4  ;;  %v5164_v4 = vld [vmem:[#allocation3 + $0xec] sm:$0xf] }
 0x1b8   : > { %3749 = vmatmul.bf16.gmra.mxu0 %v4338_v7  ;;  %v3173_v35 = vadd.f32 %v3172_v57, %v6467_v10  ;;  %v4398_v21 = vor.u32 %v5164_v4, %v4395_v2  ;;  %v4437_v2 = vld [vmem:[#allocation3 + $0x138] sm:$0xf] }
 0x1b9   : > { %v3258_v12 = vpop.f32.mrf.mxu2  ;;  %v6749_v17 = vadd.f32 %v3434_v46, %v3346_v33  ;;  %v5169_v46 = vld [vmem:[#allocation3 + $0x110] sm:$0xf0] }
 0x1ba   : > { %v3259_v31 = vadd.f32 %v3258_v12, %v3170_v54  ;;  %3487 = vmatmul.bf16.gmra.mxu1 %v4362_v26  ;;  %v4401_v26 = vld [vmem:[#allocation3 + $0xf0] sm:$0xf]  ;;  %v5165_v12 = vld [vmem:[#allocation3 + $0xf4] sm:$0xf] }
 0x1bb   : > { %v4402_v54 = vor.u32 %v5169_v46, %v4401_v26 }
 0x1bd   : > { %v3436_v24 = vpop.f32.mrf.mxu0 }
 0x1be   : > { %3576 = vmatmul.bf16.gmra.mxu2 %v4366_v38  ;;  %v3347_v19 = vpop.f32.mrf.mxu3  ;;  %v1175_v38 = vpack.c.b16 %v6393_v63, %v6393_v63 }
 0x1bf   : > { %v3174_v60 = vpop.f32.mrf.mxu1  ;;  %v3348_v23 = vadd.f32 %v3347_v19, %v3259_v31  ;;  %v4403_v31 = vld [vmem:[#allocation3 + $0x114] sm:$0xf0] }
 0x1c0   : > { %v3175_v57 = vadd.f32 %v3174_v60, %v6481_v62  ;;  %1446 = vst [vmem:[#allocation3 + $0x188] sm:$0xf] %v1175_v38  ;;  %v4406_v60 = vor.u32 %v5165_v12, %v4403_v31 }
 0x1c1   : > { %v3261_v53 = vpop.f32.mrf.mxu2  ;;  %v6756_v28 = vadd.f32 %v3436_v24, %v3348_v23 }
 0x1c2   : > { %v3262_v59 = vadd.f32 %v3261_v53, %v3173_v35  ;;  %v4409_v35 = vld [vmem:[#allocation3 + $0xf8] sm:$0xf]  ;;  %v5173_v53 = vld [vmem:[#allocation3 + $0x134] sm:$0xf] }
 0x1c3   : > { %3665 = vmatmul.bf16.gmra.mxu3 %v4370_v41  ;;  %v5170_v41 = vld [vmem:[#allocation3 + $0x118] sm:$0xf0]  ;;  %v4434_v20 = vor.u32 %v5173_v53, %v4431_v43  ;;  %v5187_v53 = vld [vmem:[#allocation3 + $0x1a0] sm:$0xf0]  ;;  %v7210_v43 = vld [vmem:[#allocation34_spill] sm:$0xff] }
 0x1c4   : > { %v4410_v63 = vor.u32 %v5170_v41, %v4409_v35  ;;  %v4473_v41 = vld [vmem:[#allocation3 + $0x180] sm:$0xf] }
 0x1c5   : > { %v3439_v16 = vpop.f32.mrf.mxu0 }
 0x1c6   : > { %v3350_v10 = vpop.f32.mrf.mxu3 }
 0x1c7   : > { %v3177_v7 = vpop.f32.mrf.mxu1  ;;  %v3351_v40 = vadd.f32 %v3350_v10, %v3262_v59 }
 0x1c8   : > { %3754 = vmatmul.bf16.gmra.mxu0 %v4374_v42  ;;  %v3178_v47 = vadd.f32 %v3177_v7, %v6520_v56  ;;  %v5178_v42 = vld [vmem:[#allocation3 + $0x158] sm:$0xf0] }
 0x1c9   : > { %v3263_v45 = vpop.f32.mrf.mxu2  ;;  %v6759_v33 = vadd.f32 %v3439_v16, %v3351_v40  ;;  %v4438_v46 = vor.u32 %v5178_v42, %v4437_v2  ;;  %v4439_v40 = vld [vmem:[#allocation3 + $0x15c] sm:$0xf0]  ;;  %v4474_v2 = vor.u32 %v5187_v53, %v4473_v41  ;;  %v5196_v41 = vld [vmem:[#allocation3 + $0x1e8] sm:$0xf0] }
 0x1ca   : > { %v3264_v22 = vadd.f32 %v3263_v45, %v3175_v57  ;;  %3492 = vmatmul.bf16.gmra.mxu1 %v4398_v21  ;;  %v5174_v57 = vld [vmem:[#allocation3 + $0x13c] sm:$0xf]  ;;  %v1183_v45 = vpack.c.b16 %v6434_v25, %v6434_v25  ;;  %v7214_v53 = vld [vmem:[#allocation12_spill] sm:$0xff] }
 0x1cb   : > { %v4442_v39 = vor.u32 %v5174_v57, %v4439_v40 }
 0x1cc   : > { %1456 = vst [vmem:[#allocation3 + $0x1d0] sm:$0xf] %v1183_v45 }
 0x1cd   : > { %v3441_v44 = vpop.f32.mrf.mxu0 }
 0x1ce   : > { %3581 = vmatmul.bf16.gmra.mxu2 %v4402_v54  ;;  %v3352_v62 = vpop.f32.mrf.mxu3 }
 0x1cf   : > { %v3179_v36 = vpop.f32.mrf.mxu1  ;;  %v3353_v24 = vadd.f32 %v3352_v62, %v3264_v22  ;;  %v1187_v22 = vpack.c.b16 %v6436_v34, %v6436_v34 }
 0x1d0   : > { %v3180_v21 = vadd.f32 %v3179_v36, %v6527_v58  ;;  %v4445_v36 = vld [vmem:[#allocation3 + $0x140] sm:$0xf] }
 0x1d1   : > { %v3266_v19 = vpop.f32.mrf.mxu2  ;;  %v6766_v59 = vadd.f32 %v3441_v44, %v3353_v24  ;;  %1461 = vst [vmem:[#allocation3 + $0x1f4] sm:$0xf] %v1187_v22  ;;  %v5182_v24 = vld [vmem:[#allocation3 + $0x17c] sm:$0xf]  ;;  %v7213_v22 = vld [vmem:[#allocation8_spill] sm:$0xff] }
 0x1d2   : > { %v3267_v23 = vadd.f32 %v3266_v19, %v3178_v47  ;;  %v5179_v47 = vld [vmem:[#allocation3 + $0x160] sm:$0xf0] }
 0x1d3   : > { %3670 = vmatmul.bf16.gmra.mxu3 %v4406_v60  ;;  %v4467_v60 = vld [vmem:[#allocation3 + $0x19c] sm:$0xf0]  ;;  %v4446_v25 = vor.u32 %v5179_v47, %v4445_v36  ;;  %v5191_v36 = vld [vmem:[#allocation3 + $0x1c4] sm:$0xf] }
 0x1d4   : > { %v4470_v34 = vor.u32 %v5182_v24, %v4467_v60 }
 0x1d5   : > { %v3444_v1 = vpop.f32.mrf.mxu0 }
 0x1d6   : > { %v3355_v56 = vpop.f32.mrf.mxu3 }
 0x1d7   : > { %v3182_v4 = vpop.f32.mrf.mxu1  ;;  %v3356_v16 = vadd.f32 %v3355_v56, %v3267_v23  ;;  %v5183_v56 = vld [vmem:[#allocation3 + $0x184] sm:$0xf] }
 0x1d8   : > { %3759 = vmatmul.bf16.gmra.mxu0 %v4410_v63  ;;  %v3183_v31 = vadd.f32 %v3182_v4, %v6387_v29 }
 0x1d9   : > { %v3268_v7 = vpop.f32.mrf.mxu2  ;;  %v6769_v10 = vadd.f32 %v3444_v1, %v3356_v16  ;;  %v7211_v16 = vld [vmem:[#allocation13_spill] sm:$0xff] }
 0x1da   : > { %v3269_v26 = vadd.f32 %v3268_v7, %v3180_v21  ;;  %3497 = vmatmul.bf16.gmra.mxu1 %v4434_v20  ;;  %v4475_v21 = vld [vmem:[#allocation3 + $0x1a4] sm:$0xf0]  ;;  %v1191_v7 = vpack.c.b16 %v7211_v16, %v7211_v16 }
 0x1dc   : > { %1466 = vst [vmem:[#allocation3 + $0x218] sm:$0xf] %v1191_v7  ;;  %v7216_v7 = vld [vmem:[#allocation22_spill] sm:$0xff] }
 0x1dd   : > { %v3446_v54 = vpop.f32.mrf.mxu0 }
 0x1de   : > { %3586 = vmatmul.bf16.gmra.mxu2 %v4438_v46  ;;  %v3357_v58 = vpop.f32.mrf.mxu3 }
 0x1df   : > { %v3184_v12 = vpop.f32.mrf.mxu1  ;;  %v3358_v38 = vadd.f32 %v3357_v58, %v3269_v26  ;;  %v7212_v26 = vld [vmem:[#allocation10_spill] sm:$0xff]  ;;  %v4478_v58 = vor.u32 %v5183_v56, %v4475_v21 }
 0x1e0   : > { %v3185_v63 = vadd.f32 %v3184_v12, %v7210_v43  ;;  %v1195_v46 = vpack.c.b16 %v7212_v26, %v7212_v26  ;;  %v4511_v56 = vld [vmem:[#allocation3 + $0x1ec] sm:$0xf0]  ;;  %v1203_v26 = vpack.c.b16 %v7216_v7, %v7216_v7 }
 0x1e1   : > { %v3271_v44 = vpop.f32.mrf.mxu2  ;;  %v6776_v19 = vadd.f32 %v3446_v54, %v3358_v38  ;;  %v4481_v38 = vld [vmem:[#allocation3 + $0x188] sm:$0xf]  ;;  %v7215_v21 = vld [vmem:[#allocation18_spill] sm:$0xff] }
 0x1e2   : > { %v3272_v62 = vadd.f32 %v3271_v44, %v3183_v31  ;;  %1471 = vst [vmem:[#allocation3 + $0x23c] sm:$0xf] %v1195_v46  ;;  %v5188_v44 = vld [vmem:[#allocation3 + $0x1a8] sm:$0xf0]  ;;  %v1199_v16 = vpack.c.b16 %v7215_v21, %v7215_v21  ;;  %v4547_v21 = vld [vmem:[#allocation3 + $0x234] sm:$0xf0] }
 0x1e3   : > { %3675 = vmatmul.bf16.gmra.mxu3 %v4442_v39  ;;  %v4482_v24 = vor.u32 %v5188_v44, %v4481_v38  ;;  %1481 = vst [vmem:[#allocation3 + $0x284] sm:$0xf] %v1203_v26  ;;  %v5200_v44 = vld [vmem:[#allocation3 + $0x20c] sm:$0xf]  ;;  %v7220_v26 = vld [vmem:[#allocation28_spill] sm:$0xff] }
 0x1e4   : > { %1476 = vst [vmem:[#allocation3 + $0x260] sm:$0xf] %v1199_v16  ;;  %v7219_v16 = vld [vmem:[#allocation21_spill] sm:$0xff] }
 0x1e5   : > { %v3449_v35 = vpop.f32.mrf.mxu0  ;;  %v1207_v7 = vpack.c.b16 %v7219_v16, %v7219_v16 }
 0x1e6   : > { %v3360_v29 = vpop.f32.mrf.mxu3 }
 0x1e7   : > { %v3187_v23 = vpop.f32.mrf.mxu1  ;;  %v3361_v20 = vadd.f32 %v3360_v29, %v3272_v62  ;;  %v4503_v62 = vld [vmem:[#allocation3 + $0x1e4] sm:$0xf0]  ;;  %1486 = vst [vmem:[#allocation3 + $0x2a8] sm:$0xf] %v1207_v7  ;;  %v5210_v7 = vld [vmem:[#allocation3 + $0x25c] sm:$0xf] }
 0x1e8   : > { %3764 = vmatmul.bf16.gmra.mxu0 %v4446_v25  ;;  %v3188_v54 = vadd.f32 %v3187_v23, %v7213_v22  ;;  %v4506_v60 = vor.u32 %v5191_v36, %v4503_v62  ;;  %v4539_v36 = vld [vmem:[#allocation3 + $0x22c] sm:$0xf0] }
 0x1e9   : > { %v3273_v1 = vpop.f32.mrf.mxu2  ;;  %v6779_v42 = vadd.f32 %v3449_v35, %v3361_v20  ;;  %v4509_v35 = vld [vmem:[#allocation3 + $0x1c8] sm:$0xf] }
 0x1ea   : > { %v3274_v4 = vadd.f32 %v3273_v1, %v3185_v63  ;;  %3502 = vmatmul.bf16.gmra.mxu1 %v4470_v34  ;;  %v4510_v1 = vor.u32 %v5196_v41, %v4509_v35  ;;  %v4545_v41 = vld [vmem:[#allocation3 + $0x210] sm:$0xf] }
 0x1ed   : > { %v3451_v57 = vpop.f32.mrf.mxu0 }
 0x1ee   : > { %3591 = vmatmul.bf16.gmra.mxu2 %v4474_v2  ;;  %v3362_v45 = vpop.f32.mrf.mxu3  ;;  %v5192_v2 = vld [vmem:[#allocation3 + $0x1cc] sm:$0xf] }
 0x1ef   : > { %v3189_v40 = vpop.f32.mrf.mxu1  ;;  %v3363_v12 = vadd.f32 %v3362_v45, %v3274_v4  ;;  %v7217_v45 = vld [vmem:[#allocation11_spill] sm:$0xff] }
 0x1f0   : > { %v3190_v29 = vadd.f32 %v3189_v40, %v7214_v53  ;;  %v7218_v53 = vld [vmem:[#allocation23_spill] sm:$0xff] }
 0x1f1   : > { %v3276_v31 = vpop.f32.mrf.mxu2  ;;  %v6786_v47 = vadd.f32 %v3451_v57, %v3363_v12  ;;  %v4514_v12 = vor.u32 %v5192_v2, %v4511_v56  ;;  %v5201_v56 = vld [vmem:[#allocation3 + $0x214] sm:$0xf] }
 0x1f2   : > { %v3277_v39 = vadd.f32 %v3276_v31, %v3188_v54  ;;  %v4517_v31 = vld [vmem:[#allocation3 + $0x1d0] sm:$0xf] }
 0x1f3   : > { %3680 = vmatmul.bf16.gmra.mxu3 %v4478_v58 }
 0x1f5   : > { %v3454_v25 = vpop.f32.mrf.mxu0 }
 0x1f6   : > { %v3365_v23 = vpop.f32.mrf.mxu3 }
 0x1f7   : > { %v3192_v34 = vpop.f32.mrf.mxu1  ;;  %v3366_v43 = vadd.f32 %v3365_v23, %v3277_v39  ;;  %v5197_v39 = vld [vmem:[#allocation3 + $0x1f0] sm:$0xf0] }
 0x1f8   : > { %3769 = vmatmul.bf16.gmra.mxu0 %v4482_v24  ;;  %v3193_v22 = vadd.f32 %v3192_v34, %v7217_v45  ;;  %v4518_v24 = vor.u32 %v5197_v39, %v4517_v31  ;;  %v5205_v23 = vld [vmem:[#allocation3 + $0x230] sm:$0xf0] }
 0x1f9   : > { %v3278_v63 = vpop.f32.mrf.mxu2  ;;  %v6789_v4 = vadd.f32 %v3454_v25, %v3366_v43 }
 0x1fa   : > { %v3279_v20 = vadd.f32 %v3278_v63, %v3190_v29  ;;  %3507 = vmatmul.bf16.gmra.mxu1 %v4506_v60  ;;  %v4542_v60 = vor.u32 %v5200_v44, %v4539_v36  ;;  %v5206_v44 = vld [vmem:[#allocation3 + $0x238] sm:$0xf0]  ;;  %v5209_v36 = vld [vmem:[#allocation3 + $0x254] sm:$0xf] }
 0x1fd   : > { %v3456_v46 = vpop.f32.mrf.mxu0 }
 0x1fe   : > { %3596 = vmatmul.bf16.gmra.mxu2 %v4510_v1  ;;  %v3367_v40 = vpop.f32.mrf.mxu3  ;;  %v4546_v1 = vor.u32 %v5205_v23, %v4545_v41 }
 0x1ff   : > { %v3194_v57 = vpop.f32.mrf.mxu1  ;;  %v3368_v54 = vadd.f32 %v3367_v40, %v3279_v20 }
 0x200   : > { %v3195_v29 = vadd.f32 %v3194_v57, %v7218_v53  ;;  %v4581_v53 = vld [vmem:[#allocation3 + $0x258] sm:$0xf] }
 0x201   : > { %v3281_v58 = vpop.f32.mrf.mxu2  ;;  %v6796_v62 = vadd.f32 %v3456_v46, %v3368_v54  ;;  %v1211_v46 = vpack.c.b16 %v7220_v26, %v7220_v26  ;;  %v4583_v26 = vld [vmem:[#allocation3 + $0x27c] sm:$0xf0] }
 0x202   : > { %v3282_v38 = vadd.f32 %v3281_v58, %v3193_v22  ;;  %v7221_v22 = vld [vmem:[#allocation20_spill] sm:$0xff]  ;;  %v4550_v58 = vor.u32 %v5201_v56, %v4547_v21 }
 0x203   : > { %3685 = vmatmul.bf16.gmra.mxu3 %v4514_v12  ;;  %1491 = vst [vmem:[#allocation3 + $0x2cc] sm:$0xf] %v1211_v46  ;;  %v1215_v46 = vpack.c.b16 %v6570_v15, %v6570_v15 }
 0x205   : > { %v3459_v25 = vpop.f32.mrf.mxu0  ;;  %1496 = vst [vmem:[#allocation3 + $0x2f0] sm:$0xf] %v1215_v46  ;;  %v5219_v46 = vld [vmem:[#allocation3 + $0x2a4] sm:$0xf] }
 0x206   : > { %v3370_v34 = vpop.f32.mrf.mxu3 }
 0x207   : > { %v3197_v35 = vpop.f32.mrf.mxu1  ;;  %v3371_v43 = vadd.f32 %v3370_v34, %v3282_v38  ;;  %v4553_v38 = vld [vmem:[#allocation3 + $0x218] sm:$0xf] }
 0x208   : > { %3774 = vmatmul.bf16.gmra.mxu0 %v4518_v24  ;;  %v3198_v54 = vadd.f32 %v3197_v35, %v7221_v22  ;;  %v4575_v24 = vld [vmem:[#allocation3 + $0x274] sm:$0xf0] }
 0x209   : > { %v3283_v63 = vpop.f32.mrf.mxu2  ;;  %v6799_v2 = vadd.f32 %v3459_v25, %v3371_v43  ;;  %v4554_v25 = vor.u32 %v5206_v44, %v4553_v38  ;;  %v4578_v41 = vor.u32 %v5209_v36, %v4575_v24  ;;  %v7222_v43 = vld [vmem:[#allocation30_spill] sm:$0xff]  ;;  %v7223_v38 = vld [vmem:[#allocation32_spill] sm:$0xff]  ;;  %v5218_v36 = vld [vmem:[#allocation3 + $0x29c] sm:$0xf] }
 0x20a   : > { %v3284_v20 = vadd.f32 %v3283_v63, %v3195_v29  ;;  %3512 = vmatmul.bf16.gmra.mxu1 %v4542_v60  ;;  %v5214_v29 = vld [vmem:[#allocation3 + $0x278] sm:$0xf0]  ;;  %v5215_v44 = vld [vmem:[#allocation3 + $0x280] sm:$0xf0]  ;;  %v4611_v24 = vld [vmem:[#allocation3 + $0x2bc] sm:$0xf0] }
 0x20b   : > { %v4582_v21 = vor.u32 %v5214_v29, %v4581_v53  ;;  %v4617_v29 = vld [vmem:[#allocation3 + $0x2a0] sm:$0xf] }
 0x20d   : > { %v3461_v40 = vpop.f32.mrf.mxu0 }
 0x20e   : > { %3601 = vmatmul.bf16.gmra.mxu2 %v4546_v1  ;;  %v3372_v57 = vpop.f32.mrf.mxu3 }
 0x20f   : > { %v3199_v45 = vpop.f32.mrf.mxu1  ;;  %v3373_v12 = vadd.f32 %v3372_v57, %v3284_v20 }
 0x210   : > { %v3200_v63 = vadd.f32 %v3199_v45, %v7222_v43 }
 0x211   : > { %v3286_v31 = vpop.f32.mrf.mxu2  ;;  %v6806_v60 = vadd.f32 %v3461_v40, %v3373_v12  ;;  %v1219_v40 = vpack.c.b16 %v6572_v11, %v6572_v11  ;;  %v4586_v12 = vor.u32 %v5210_v7, %v4583_v26 }
 0x212   : > { %v3287_v39 = vadd.f32 %v3286_v31, %v3198_v54  ;;  %v4589_v31 = vld [vmem:[#allocation3 + $0x260] sm:$0xf] }
 0x213   : > { %3690 = vmatmul.bf16.gmra.mxu3 %v4550_v58  ;;  %1501 = vst [vmem:[#allocation3 + $0x314] sm:$0xf] %v1219_v40  ;;  %v4590_v11 = vor.u32 %v5215_v44, %v4589_v31  ;;  %v4619_v40 = vld [vmem:[#allocation3 + $0x2c4] sm:$0xf0] }
 0x214   : > { %v5388_v31 = vld [vmem:[%s6830_s9] sm:$0xff]   ;;  %v4622_v44 = vor.u32 %v5219_v46, %v4619_v40 }
 0x215   : > { %v3464_v23 = vpop.f32.mrf.mxu0  ;;  %v4653_v40 = vld [vmem:[#allocation3 + $0x2e8] sm:$0xf] }
 0x216   : > { %v3375_v35 = vpop.f32.mrf.mxu3 }
 0x217   : > { %v3478_v34 = vpop.f32.mrf.mxu1  ;;  %v3376_v20 = vadd.f32 %v3375_v35, %v3287_v39  ;;  %v5223_v35 = vld [vmem:[#allocation3 + $0x2c0] sm:$0xf0] }
 0x218   : > { %3779 = vmatmul.bf16.gmra.mxu0 %v4554_v25  ;;  %v3479_v39 = vadd.f32 %v3478_v34, %v7223_v38  ;;  %v4618_v34 = vor.u32 %v5223_v35, %v4617_v29  ;;  %v5227_v29 = vld [vmem:[#allocation3 + $0x2e4] sm:$0xf]  ;;  %v4647_v35 = vld [vmem:[#allocation3 + $0x304] sm:$0xf0] }
 0x219   : > { %v3288_v1 = vpop.f32.mrf.mxu2  ;;  %v6809_v16 = vadd.f32 %v3464_v23, %v3376_v20 }
 0x21a   : > { %v3289_v56 = vadd.f32 %v3288_v1, %v3200_v63  ;;  %3517 = vmatmul.bf16.gmra.mxu1 %v4578_v41  ;;  %v4614_v41 = vor.u32 %v5218_v36, %v4611_v24 }
 0x21d   : > { %v3466_v57 = vpop.f32.mrf.mxu0 }
 0x21e   : > { %3606 = vmatmul.bf16.gmra.mxu2 %v4582_v21  ;;  %v3377_v45 = vpop.f32.mrf.mxu3  ;;  %v7224_v21 = vld [vmem:[#allocation6_spill] sm:$0xff] }
 0x21f   : > { %v3480_v22 = vpop.f32.mrf.mxu1  ;;  %v3378_v54 = vadd.f32 %v3377_v45, %v3289_v56  ;;  %v6822_v56 = vld [vmem:[%s7021_s2] ss:$0 sm:$0xff]  ;;  %v1227_v45 = vpack.c.b16 %v6598_v52, %v6598_v52  ;;  %v5389_v52 = vunpack.c.l.bf16 %v5388_v31 }
 0x220   : > { %v3481_v7 = vadd.f32 %v3480_v22, %v7224_v21  ;;  %v6840_v22 = vld [vmem:[%s7022_s3] ss:$0 sm:$0xff] }
 0x221   : > { %v3567_v58 = vpop.f32.mrf.mxu2  ;;  %v6816_v25 = vadd.f32 %v3466_v57, %v3378_v54  ;;  %v1223_v57 = vpack.c.b16 %v6596_v51, %v6596_v51  ;;  %1511 = vst [vmem:[#allocation3 + $0x35c] sm:$0xf] %v1227_v45  ;;  %v4625_v51 = vld [vmem:[#allocation3 + $0x2a8] sm:$0xf] }
 0x222   : > { %v3568_v15 = vadd.f32 %v3567_v58, %v3479_v39 }
 0x223   : > { %3695 = vmatmul.bf16.gmra.mxu3 %v4586_v12  ;;  %1506 = vst [vmem:[#allocation3 + $0x338] sm:$0xf] %v1223_v57  ;;  %v5232_v57 = vld [vmem:[#allocation3 + $0x308] sm:$0xf0] }
 0x225   : > { %v3745_v23 = vpop.f32.mrf.mxu0 }
 0x226   : > { %v3656_v43 = vpop.f32.mrf.mxu3 }
 0x227   : > { %v3483_v53 = vpop.f32.mrf.mxu1  ;;  %v3657_v63 = vadd.f32 %v3656_v43, %v3568_v15 }
 0x228   : > { %3784 = vmatmul.bf16.gmra.mxu0 %v4590_v11  ;;  %v7225_v11 = vld [vmem:[#allocation7_spill] sm:$0xff] }
 0x229   : > { %v3569_v20 = vpop.f32.mrf.mxu2  ;;  %v3746_v1 = vadd.f32 %v3745_v23, %v3657_v63  ;;  %v5224_v23 = vld [vmem:[#allocation3 + $0x2c8] sm:$0xf0]  ;;  %v5390_v63 = vunpack.c.h.bf16 %v5388_v31 }
 0x22a   : > { %3522 = vmatmul.bf16.gmra.mxu1 %v4614_v41  ;;  %v3570_v26 = vadd.f32 %v3569_v20, %v3481_v7  ;;  %v3484_v41 = vadd.f32 %v3483_v53, %v7225_v11  ;;  %v7226_v11 = vld [vmem:[#allocation5_spill] sm:$0xff] }
 0x22b   : > { %v3829_v54 = vmul.f32 %v6822_v56, %v3746_v1  ;;  %v4650_v1 = vor.u32 %v5227_v29, %v4647_v35 }
 0x22d   : > { %v3747_v12 = vpop.f32.mrf.mxu0  ;;  %v3865_v24 = vadd.f32 %v6840_v22, %v3829_v54 }
 0x22e   : > { %3611 = vmatmul.bf16.gmra.mxu2 %v4618_v34  ;;  %v3658_v38 = vpop.f32.mrf.mxu3  ;;  %v4626_v34 = vor.u32 %v5224_v23, %v4625_v51  ;;  %v7227_v23 = vld [vmem:[#allocation9_spill] sm:$0xff] }
 0x22f   : > { %v3485_v58 = vpop.f32.mrf.mxu1  ;;  %v3659_v39 = vadd.f32 %v3658_v38, %v3570_v26  ;;  %v3961_v21 = vadd.f32 %v5389_v52, %v3865_v24  ;;  %v4654_v38 = vor.u32 %v5232_v57, %v4653_v40  ;;  %v5228_v52 = vld [vmem:[#allocation3 + $0x2ec] sm:$0xf]  ;;  %v1235_v29 = vpack.c.b16 %v7227_v23, %v7227_v23  ;;  %v7228_v57 = vld [vmem:[#allocation4_spill] sm:$0xff] }
 0x231   : > { %v3572_v36 = vpop.f32.mrf.mxu2  ;;  %v3748_v15 = vadd.f32 %v3747_v12, %v3659_v39  ;;  %v3993_v31 = vmax.f32 %v3961_v21, 0.0  ;;  %1521 = vst [vmem:[#allocation3 + $0x3a4] sm:$0xf] %v1235_v29  ;;  %v4661_v21 = vld [vmem:[#allocation3 + $0x2f0] sm:$0xf] }
 0x232   : > { %v3573_v20 = vadd.f32 %v3572_v36, %v3484_v41  ;;  %v3486_v36 = vadd.f32 %v3485_v58, %v6607_v5  ;;  %v1231_v41 = vpack.c.b16 %v7226_v11, %v7226_v11  ;;  %v4689_v11 = vld [vmem:[#allocation3 + $0x330] sm:$0xf] }
 0x233   : > { %v3830_v43 = vmul.f32 %v6822_v56, %v3748_v15  ;;  %3700 = vmatmul.bf16.gmra.mxu3 %v4622_v44  ;;  %v4655_v15 = vld [vmem:[#allocation3 + $0x30c] sm:$0xf0] }
 0x234   : > { %1516 = vst [vmem:[#allocation3 + $0x380] sm:$0xf] %v1231_v41  ;;  %v5241_v41 = vld [vmem:[#allocation3 + $0x350] sm:$0xf0] }
 0x235   : > { %v3866_v7 = vadd.f32 %v6840_v22, %v3830_v43  ;;  %v3750_v26 = vpop.f32.mrf.mxu0  ;;  %v5539_v43 = vld [vmem:[%s6830_s9 + $0x8] sm:$0xff]  }
 0x236   : > { %v3661_v45 = vpop.f32.mrf.mxu3 }
 0x237   : > { %v3488_v46 = vpop.f32.mrf.mxu1  ;;  %v3962_v53 = vadd.f32 %v5390_v63, %v3866_v7  ;;  %v3662_v54 = vadd.f32 %v3661_v45, %v3573_v20 }
 0x238   : > { %3789 = vmatmul.bf16.gmra.mxu0 %v4626_v34  ;;  %v4658_v34 = vor.u32 %v5228_v52, %v4655_v15  ;;  %v3489_v45 = vadd.f32 %v3488_v46, %v7228_v57  ;;  %v4691_v57 = vld [vmem:[#allocation3 + $0x354] sm:$0xf0] }
 0x239   : > { %v3574_v12 = vpop.f32.mrf.mxu2  ;;  %v3994_v39 = vmax.f32 %v3962_v53, 0.0  ;;  %v3751_v44 = vadd.f32 %v3750_v26, %v3662_v54  ;;  %v5393_v26 = vunpack.c.l.bf16 %v5539_v43  ;;  %v5233_v53 = vld [vmem:[#allocation3 + $0x310] sm:$0xf0]  ;;  %v5236_v54 = vld [vmem:[#allocation3 + $0x32c] sm:$0xf] }
 0x23a   : > { %3527 = vmatmul.bf16.gmra.mxu1 %v4650_v1  ;;  %v3575_v24 = vadd.f32 %v3574_v12, %v3486_v36  ;;  %v4683_v12 = vld [vmem:[#allocation3 + $0x34c] sm:$0xf0] }
 0x23b   : > { %v5454_v51 = vpack.c.bf16 %v3994_v39, %v3993_v31  ;;  %v3831_v5 = vmul.f32 %v6822_v56, %v3751_v44  ;;  %v5394_v31 = vunpack.c.h.bf16 %v5539_v43  ;;  %v4662_v44 = vor.u32 %v5233_v53, %v4661_v21 }
 0x23c   : > { %v4686_v36 = vor.u32 %v5236_v54, %v4683_v12  ;;  %v1243_v53 = vpack.c.b16 %v6657_v13, %v6657_v13  ;;  %v5540_v54 = vld [vmem:[%s6830_s9 + $0x10] sm:$0xff]  }
 0x23d   : > { %5455 = vst [vmem:[%s6853_s14] sm:$0xff] %v5454_v51   ;;  %v3752_v58 = vpop.f32.mrf.mxu0  ;;  %v3867_v7 = vadd.f32 %v6840_v22, %v3831_v5  ;;  %v4719_v13 = vld [vmem:[#allocation3 + $0x394] sm:$0xf0] }
 0x23e   : > { %3616 = vmatmul.bf16.gmra.mxu2 %v4654_v38  ;;  %v3663_v63 = vpop.f32.mrf.mxu3  ;;  %1531 = vst [vmem:[#allocation3 + $0x3ec] sm:$0xf] %v1243_v53 }
 0x23f   : > { %v3490_v35 = vpop.f32.mrf.mxu1  ;;  %v3664_v20 = vadd.f32 %v3663_v63, %v3575_v24  ;;  %v3963_v51 = vadd.f32 %v5393_v26, %v3867_v7 }
 0x241   : > { %v3577_v1 = vpop.f32.mrf.mxu2  ;;  %v3753_v40 = vadd.f32 %v3752_v58, %v3664_v20  ;;  %v4690_v58 = vor.u32 %v5241_v41, %v4689_v11  ;;  %v3995_v43 = vmax.f32 %v3963_v51, 0.0  ;;  %v5397_v51 = vunpack.c.l.bf16 %v5540_v54  ;;  %v7230_v11 = vld [vmem:[#allocation17_spill] sm:$0xff]  ;;  %v5242_v41 = vld [vmem:[#allocation3 + $0x358] sm:$0xf0] }
 0x242   : > { %v3578_v39 = vadd.f32 %v3577_v1, %v3489_v45  ;;  %v1239_v45 = vpack.c.b16 %v6655_v0, %v6655_v0 }
 0x243   : > { %v3832_v38 = vmul.f32 %v6822_v56, %v3753_v40  ;;  %3705 = vmatmul.bf16.gmra.mxu3 %v4658_v34  ;;  %v7229_v34 = vld [vmem:[#allocation16_spill] sm:$0xff]  ;;  %v5237_v40 = vld [vmem:[#allocation3 + $0x334] sm:$0xf] }
 0x244   : > { %v3491_v1 = vadd.f32 %v3490_v35, %v7229_v34  ;;  %1526 = vst [vmem:[#allocation3 + $0x3c8] sm:$0xf] %v1239_v45 }
 0x245   : > { %v3868_v24 = vadd.f32 %v6840_v22, %v3832_v38  ;;  %v3755_v52 = vpop.f32.mrf.mxu0 }
 0x246   : > { %v3666_v23 = vpop.f32.mrf.mxu3 }
 0x247   : > { %v3493_v15 = vpop.f32.mrf.mxu1  ;;  %v3964_v29 = vadd.f32 %v5394_v31, %v3868_v24  ;;  %v3667_v46 = vadd.f32 %v3666_v23, %v3578_v39  ;;  %v4694_v39 = vor.u32 %v5237_v40, %v4691_v57  ;;  %v4697_v24 = vld [vmem:[#allocation3 + $0x338] sm:$0xf]  ;;  %v5245_v23 = vld [vmem:[#allocation3 + $0x374] sm:$0xf] }
 0x248   : > { %3794 = vmatmul.bf16.gmra.mxu0 %v4662_v44  ;;  %v3494_v0 = vadd.f32 %v3493_v15, %v7230_v11  ;;  %v531_v11 = vld [vmem:[#allocation2 + $0xd4] sm:$0x1] }
 0x249   : > { %v3579_v5 = vpop.f32.mrf.mxu2  ;;  %v3996_v63 = vmax.f32 %v3964_v29, 0.0  ;;  %v3756_v20 = vadd.f32 %v3755_v52, %v3667_v46  ;;  %v5398_v46 = vunpack.c.h.bf16 %v5540_v54 }
 0x24a   : > { %3532 = vmatmul.bf16.gmra.mxu1 %v4686_v36  ;;  %v3580_v7 = vadd.f32 %v3579_v5, %v3491_v1 }
 0x24b   : > { %v5459_v21 = vpack.c.bf16 %v3996_v63, %v3995_v43  ;;  %v3833_v26 = vmul.f32 %v6822_v56, %v3756_v20  ;;  %v4698_v43 = vor.u32 %v5242_v41, %v4697_v24  ;;  %v4722_v63 = vor.u32 %v5245_v23, %v4719_v13  ;;  %v5246_v23 = vld [vmem:[#allocation3 + $0x37c] sm:$0xf]  ;;  %v4727_v13 = vld [vmem:[#allocation3 + $0x39c] sm:$0xf0] }
 0x24c   : > { %v7232_v24 = vunpack.c.h.b16 %v6692_v8 }
 0x24d   : > { %5554 = vst [vmem:[%s6853_s14 + $0x8] sm:$0xff] %v5459_v21   ;;  %v3757_v12 = vpop.f32.mrf.mxu0  ;;  %v3869_v36 = vadd.f32 %v6840_v22, %v3833_v26  ;;  %v4725_v21 = vld [vmem:[#allocation3 + $0x378] sm:$0xf] }
 0x24e   : > { %3621 = vmatmul.bf16.gmra.mxu2 %v4690_v58  ;;  %v3668_v31 = vpop.f32.mrf.mxu3 }
 0x24f   : > { %v3495_v38 = vpop.f32.mrf.mxu1  ;;  %v3669_v35 = vadd.f32 %v3668_v31, %v3580_v7  ;;  %v3965_v58 = vadd.f32 %v5397_v51, %v3869_v36  ;;  %v5250_v7 = vld [vmem:[#allocation3 + $0x398] sm:$0xf0]  ;;  %v7231_v36 = vunpack.c.l.b16 %v6692_v8  ;;  %v5541_v8 = vld [vmem:[%s6830_s9 + $0x18] sm:$0xff]  }
 0x250   : > { %v3496_v53 = vadd.f32 %v3495_v38, %v6670_v61  ;;  %v4726_v54 = vor.u32 %v5250_v7, %v4725_v21  ;;  %v585_v38 = vunpack.c.l.bf16 %v531_v11 }
 0x251   : > { %v3582_v44 = vpop.f32.mrf.mxu2  ;;  %v3758_v52 = vadd.f32 %v3757_v12, %v3669_v35  ;;  %v3997_v45 = vmax.f32 %v3965_v58, 0.0  ;;  %v529_v12 = vld [vmem:[#allocation2 + $0xcc] sm:$0xff]   ;;  %v1246_v51 = vpack.c.b16 %v7231_v36, %v6666_v6  ;;  %v1251_v6 = vpack.c.b16 %v6696_v50, %v6696_v50 }
 0x252   : > { %v3583_v5 = vadd.f32 %v3582_v44, %v3494_v0  ;;  %v584_v44 = vunpack.c.h.bf16 %v529_v12 }
 0x253   : > { %v3834_v29 = vmul.f32 %v6822_v56, %v3758_v52  ;;  %3710 = vmatmul.bf16.gmra.mxu3 %v4694_v39  ;;  %v583_v39 = vunpack.c.l.bf16 %v529_v12  ;;  %v1250_v52 = vpack.c.b16 %v7232_v24, %v6668_v27  ;;  %1535 = vst [vmem:[#allocation3 + $0x408] sm:$0xff] %v1246_v51  ;;  %v5402_v51 = vunpack.c.h.bf16 %v5541_v8 }
 0x254   : > { %1541 = vst [vmem:[#allocation3 + $0x434] sm:$0xf] %v1251_v6  ;;  %v5259_v6 = vld [vmem:[#allocation3 + $0x3e0] sm:$0xf0] }
 0x255   : > { %v3870_v20 = vadd.f32 %v6840_v22, %v3834_v29  ;;  %v3760_v34 = vpop.f32.mrf.mxu0  ;;  %v6885_v41 = vpack.c.bf16 %v583_v39, %v583_v39  ;;  %v1247_v29 = vpack.c.b16 %v6694_v48, %v6694_v48  ;;  %1540 = vst [vmem:[#allocation3 + $0x42c] sm:$0xff] %v1250_v52  ;;  %v4730_v48 = vor.u32 %v5246_v23, %v4727_v13 }
 0x256   : > { %v3671_v26 = vpop.f32.mrf.mxu3 }
 0x257   : > { %v3498_v1 = vpop.f32.mrf.mxu1  ;;  %v3966_v40 = vadd.f32 %v5398_v46, %v3870_v20  ;;  %v3672_v15 = vadd.f32 %v3671_v26, %v3583_v5  ;;  %v6891_v46 = vpack.c.bf16 %v584_v44, %v584_v44  ;;  %1536 = vst [vmem:[#allocation3 + $0x410] sm:$0xf] %v1247_v29  ;;  %v5401_v26 = vunpack.c.l.bf16 %v5541_v8 }
 0x258   : > { %3799 = vmatmul.bf16.gmra.mxu0 %v4698_v43  ;;  %v639_v43 = vpack.c.bf16 %v585_v38, %v585_v38 }
 0x259   : > { %v3584_v57 = vpop.f32.mrf.mxu2  ;;  %v3998_v31 = vmax.f32 %v3966_v40, 0.0  ;;  %v3761_v35 = vadd.f32 %v3760_v34, %v3672_v15  ;;  %v1036_v34 = vunpack.c.l.b16 %v6891_v46  ;;  %v4733_v40 = vld [vmem:[#allocation3 + $0x380] sm:$0xf]  ;;  %v5251_v15 = vld [vmem:[#allocation3 + $0x3a0] sm:$0xf0] }
 0x25a   : > { %3537 = vmatmul.bf16.gmra.mxu1 %v4722_v63  ;;  %v3585_v61 = vadd.f32 %v3584_v57, %v3496_v53  ;;  %v1035_v63 = vunpack.c.l.b16 %v6885_v41  ;;  %v1038_v50 = vunpack.c.l.b16 %v639_v43  ;;  %v4734_v24 = vor.u32 %v5251_v15, %v4733_v40 }
 0x25b   : > { %v5464_v0 = vpack.c.bf16 %v3998_v31, %v3997_v45  ;;  %v3835_v27 = vmul.f32 %v6822_v56, %v3761_v35  ;;  %v5254_v31 = vld [vmem:[#allocation3 + $0x3bc] sm:$0xf]  ;;  %v4755_v35 = vld [vmem:[#allocation3 + $0x3dc] sm:$0xf0] }
 0x25c   : > { %v1039_v57 = vpack.c.b16 %v1036_v34, %v1035_v63  ;;  %v1040_v39 = vpack.c.b16 %v1038_v50, %v1038_v50  ;;  %v4758_v11 = vor.u32 %v5254_v31, %v4755_v35 }
 0x25d   : > { %5555 = vst [vmem:[%s6853_s14 + $0x10] sm:$0xff] %v5464_v0   ;;  %v3762_v5 = vpop.f32.mrf.mxu0  ;;  %v3871_v45 = vadd.f32 %v6840_v22, %v3835_v27 }
 0x25e   : > { %3626 = vmatmul.bf16.gmra.mxu2 %v4726_v54  ;;  %v3673_v20 = vpop.f32.mrf.mxu3  ;;  %v7233_v54 = vld [vmem:[#allocation14_spill] sm:$0xff]  ;;  %v1044_v44 = vshll.u32 %v1039_v57, 16  ;;  %v1042_v0 = vshrl.u32 %v1039_v57, 16  ;;  %v1049_v38 = vshll.u32 %v1040_v39, 16  ;;  %v1054_v50 = vrot.slane %v1040_v39, 1 }
 0x25f   : > { %v3500_v58 = vpop.f32.mrf.mxu1  ;;  %v3674_v21 = vadd.f32 %v3673_v20, %v3585_v61  ;;  %v3499_v12 = vadd.f32 %v3498_v1, %v7233_v54  ;;  %v3967_v41 = vadd.f32 %v5401_v26, %v3871_v45  ;;  %v4761_v1 = vld [vmem:[#allocation3 + $0x3c0] sm:$0xf] }
 0x260   : > { %v1046_v61 = vrot.slane %v1044_v44, 1  ;;  %v1051_v8 = vrot.slane %v1049_v38, 1 }
 0x261   : > { %v3587_v7 = vpop.f32.mrf.mxu2  ;;  %v3763_v53 = vadd.f32 %v3762_v5, %v3674_v21  ;;  %v1053_v21 = vrot.slane %v1039_v57, 1  ;;  %v3999_v26 = vmax.f32 %v3967_v41, 0.0 }
 0x262   : > { %v3588_v52 = vadd.f32 %v3587_v7, %v3499_v12  ;;  %v1047_v27 = vor.u32 %v1046_v61, %v1042_v0  ;;  %v4762_v7 = vor.u32 %v5259_v6, %v4761_v1  ;;  %v5542_v61 = vld [vmem:[%s6830_s9 + $0x20] sm:$0xff]  }
 0x263   : > { %v3836_v36 = vmul.f32 %v6822_v56, %v3763_v53  ;;  %3715 = vmatmul.bf16.gmra.mxu3 %v4730_v48  ;;  %v3501_v48 = vadd.f32 %v3500_v58, %v6710_v49  ;;  %v1055_v12 = vsel %vm961_vm1, %v1053_v21, %v1054_v50  ;;  %v5255_v49 = vld [vmem:[#allocation3 + $0x3c4] sm:$0xf]  ;;  %v4763_v58 = vld [vmem:[#allocation3 + $0x3e4] sm:$0xf0]  ;;  %v5260_v6 = vld [vmem:[#allocation3 + $0x3e8] sm:$0xf0] }
 0x264   : > { %v1052_v45 = vsel %vm768_vm0, %v1047_v27, %v1051_v8  ;;  %v1125_v57 = vunpack.c.l.b16 %v1055_v12  ;;  %v1127_v44 = vunpack.c.h.b16 %v1055_v12  ;;  %v4769_v1 = vld [vmem:[#allocation3 + $0x3c8] sm:$0xf]  ;;  %v5406_v8 = vunpack.c.h.bf16 %v5542_v61 }
 0x265   : > { %v3872_v23 = vadd.f32 %v6840_v22, %v3836_v36  ;;  %v3765_v13 = vpop.f32.mrf.mxu0  ;;  %v1124_v53 = vunpack.c.l.b16 %v1052_v45  ;;  %v1126_v54 = vunpack.c.h.b16 %v1052_v45  ;;  %v4797_v45 = vld [vmem:[#allocation3 + $0x408] sm:$0xf] }
 0x266   : > { %v3676_v46 = vpop.f32.mrf.mxu3  ;;  %v1259_v0 = vpack.c.b16 %v1127_v44, %v1127_v44 }
 0x267   : > { %v3503_v29 = vpop.f32.mrf.mxu1  ;;  %v3968_v5 = vadd.f32 %v5402_v51, %v3872_v23  ;;  %v3677_v43 = vadd.f32 %v3676_v46, %v3588_v52  ;;  %v1254_v36 = vpack.c.b16 %v1124_v53, %v1035_v63  ;;  %v1258_v39 = vpack.c.b16 %v1126_v54, %v1036_v34  ;;  %v5268_v53 = vld [vmem:[#allocation3 + $0x428] sm:$0xf0] }
 0x268   : > { %3804 = vmatmul.bf16.gmra.mxu0 %v4734_v24  ;;  %v4766_v23 = vor.u32 %v5255_v49, %v4763_v58  ;;  %v5405_v34 = vunpack.c.l.bf16 %v5542_v61  ;;  %v3504_v27 = vadd.f32 %v3503_v29, %v6713_v3  ;;  %1551 = vst [vmem:[#allocation3 + $0x47c] sm:$0xf] %v1259_v0  ;;  %v5543_v61 = vld [vmem:[%s6830_s9 + $0x28] sm:$0xff]  }
 0x269   : > { %v3589_v20 = vpop.f32.mrf.mxu2  ;;  %v4000_v40 = vmax.f32 %v3968_v5, 0.0  ;;  %v3766_v15 = vadd.f32 %v3765_v13, %v3677_v43  ;;  %1545 = vst [vmem:[#allocation3 + $0x450] sm:$0xff] %v1254_v36  ;;  %v5263_v5 = vld [vmem:[#allocation3 + $0x404] sm:$0xf]  ;;  %v4791_v43 = vld [vmem:[#allocation3 + $0x424] sm:$0xf0] }
 0x26a   : > { %3542 = vmatmul.bf16.gmra.mxu1 %v4758_v11  ;;  %v3590_v35 = vadd.f32 %v3589_v20, %v3501_v48  ;;  %v1255_v11 = vpack.c.b16 %v1125_v57, %v1125_v57  ;;  %1550 = vst [vmem:[#allocation3 + $0x474] sm:$0xff] %v1258_v39  ;;  %v4770_v48 = vor.u32 %v5260_v6, %v4769_v1  ;;  %v5264_v39 = vld [vmem:[#allocation3 + $0x40c] sm:$0xf]  ;;  %v4805_v1 = vld [vmem:[#allocation3 + $0x410] sm:$0xf] }
 0x26b   : > { %v5469_v31 = vpack.c.bf16 %v4000_v40, %v3999_v26  ;;  %v3837_v51 = vmul.f32 %v6822_v56, %v3766_v15 }
 0x26c   : > { %1546 = vst [vmem:[#allocation3 + $0x458] sm:$0xf] %v1255_v11 }
 0x26d   : > { %5556 = vst [vmem:[%s6853_s14 + $0x18] sm:$0xff] %v5469_v31   ;;  %v3767_v24 = vpop.f32.mrf.mxu0  ;;  %v3873_v63 = vadd.f32 %v6840_v22, %v3837_v51  ;;  %v4798_v31 = vor.u32 %v5268_v53, %v4797_v45  ;;  %v4799_v51 = vld [vmem:[#allocation3 + $0x42c] sm:$0xf0] }
 0x26e   : > { %3631 = vmatmul.bf16.gmra.mxu2 %v4762_v7  ;;  %v3678_v38 = vpop.f32.mrf.mxu3  ;;  %v4794_v7 = vor.u32 %v5263_v5, %v4791_v43  ;;  %v5410_v43 = vunpack.c.h.bf16 %v5543_v61 }
 0x26f   : > { %v3505_v52 = vpop.f32.mrf.mxu1  ;;  %v3679_v41 = vadd.f32 %v3678_v38, %v3590_v35  ;;  %v3969_v50 = vadd.f32 %v5405_v34, %v3873_v63  ;;  %v5409_v63 = vunpack.c.l.bf16 %v5543_v61  ;;  %v5269_v34 = vld [vmem:[#allocation3 + $0x430] sm:$0xf0] }
 0x270   : > { %v3506_v49 = vadd.f32 %v3505_v52, %v6716_v32 }
 0x271   : > { %v3592_v13 = vpop.f32.mrf.mxu2  ;;  %v3768_v46 = vadd.f32 %v3767_v24, %v3679_v41  ;;  %v4001_v35 = vmax.f32 %v3969_v50, 0.0  ;;  %v5277_v45 = vld [vmem:[#allocation3 + $0x470] sm:$0xf0] }
 0x272   : > { %v3593_v21 = vadd.f32 %v3592_v13, %v3504_v27  ;;  %v4827_v27 = vld [vmem:[#allocation3 + $0x46c] sm:$0xf0] }
 0x273   : > { %v3838_v20 = vmul.f32 %v6822_v56, %v3768_v46  ;;  %3720 = vmatmul.bf16.gmra.mxu3 %v4766_v23  ;;  %v4802_v23 = vor.u32 %v5264_v39, %v4799_v51  ;;  %v5272_v46 = vld [vmem:[#allocation3 + $0x44c] sm:$0xf] }
 0x275   : > { %v3874_v26 = vadd.f32 %v6840_v22, %v3838_v20  ;;  %v3770_v40 = vpop.f32.mrf.mxu0 }
 0x276   : > { %v3681_v54 = vpop.f32.mrf.mxu3 }
 0x277   : > { %v3508_v15 = vpop.f32.mrf.mxu1  ;;  %v3970_v3 = vadd.f32 %v5406_v8, %v3874_v26  ;;  %v3682_v29 = vadd.f32 %v3681_v54, %v3593_v21  ;;  %v4806_v8 = vor.u32 %v5269_v34, %v4805_v1  ;;  %v4830_v21 = vor.u32 %v5272_v46, %v4827_v27 }
 0x278   : > { %3809 = vmatmul.bf16.gmra.mxu0 %v4770_v48  ;;  %v3509_v52 = vadd.f32 %v3508_v15, %v6719_v18 }
 0x279   : > { %v3594_v12 = vpop.f32.mrf.mxu2  ;;  %v4002_v57 = vmax.f32 %v3970_v3, 0.0  ;;  %v3771_v44 = vadd.f32 %v3770_v40, %v3682_v29  ;;  %v4833_v40 = vld [vmem:[#allocation3 + $0x450] sm:$0xf] }
 0x27a   : > { %3547 = vmatmul.bf16.gmra.mxu1 %v4794_v7  ;;  %v3595_v36 = vadd.f32 %v3594_v12, %v3506_v49  ;;  %v4834_v3 = vor.u32 %v5277_v45, %v4833_v40  ;;  %v5273_v49 = vld [vmem:[#allocation3 + $0x454] sm:$0xf] }
 0x27b   : > { %v5474_v58 = vpack.c.bf16 %v4002_v57, %v4001_v35  ;;  %v3839_v24 = vmul.f32 %v6822_v56, %v3771_v44 }
 0x27d   : > { %5557 = vst [vmem:[%s6853_s14 + $0x20] sm:$0xff] %v5474_v58   ;;  %v3772_v11 = vpop.f32.mrf.mxu0  ;;  %v3875_v6 = vadd.f32 %v6840_v22, %v3839_v24  ;;  %v4835_v58 = vld [vmem:[#allocation3 + $0x474] sm:$0xf0] }
 0x27e   : > { %3636 = vmatmul.bf16.gmra.mxu2 %v4798_v31  ;;  %v3683_v38 = vpop.f32.mrf.mxu3  ;;  %v5544_v24 = vld [vmem:[%s6830_s9 + $0x30] sm:$0xff]  }
 0x27f   : > { %v3510_v0 = vpop.f32.mrf.mxu1  ;;  %v3684_v41 = vadd.f32 %v3683_v38, %v3595_v36  ;;  %v3971_v48 = vadd.f32 %v5409_v63, %v3875_v6  ;;  %v4838_v38 = vor.u32 %v5273_v49, %v4835_v58  ;;  %v5278_v6 = vld [vmem:[#allocation3 + $0x478] sm:$0xf0] }
 0x280   : > { %v3511_v35 = vadd.f32 %v3510_v0, %v6726_v14  ;;  %v4841_v0 = vld [vmem:[#allocation3 + $0x458] sm:$0xf] }
 0x281   : > { %v3597_v13 = vpop.f32.mrf.mxu2  ;;  %v3773_v32 = vadd.f32 %v3772_v11, %v3684_v41  ;;  %v4003_v29 = vmax.f32 %v3971_v48, 0.0  ;;  %v4842_v34 = vor.u32 %v5278_v6, %v4841_v0 }
 0x282   : > { %v3598_v20 = vadd.f32 %v3597_v13, %v3509_v52  ;;  %v5413_v13 = vunpack.c.l.bf16 %v5544_v24 }
 0x283   : > { %v3840_v5 = vmul.f32 %v6822_v56, %v3773_v32  ;;  %3725 = vmatmul.bf16.gmra.mxu3 %v4802_v23  ;;  %v5414_v32 = vunpack.c.h.bf16 %v5544_v24 }
 0x285   : > { %v3876_v7 = vadd.f32 %v6840_v22, %v3840_v5  ;;  %v3775_v50 = vpop.f32.mrf.mxu0 }
 0x286   : > { %v3686_v53 = vpop.f32.mrf.mxu3 }
 0x287   : > { %v3513_v26 = vpop.f32.mrf.mxu1  ;;  %v3972_v18 = vadd.f32 %v5410_v43, %v3876_v7  ;;  %v3687_v15 = vadd.f32 %v3686_v53, %v3598_v20 }
 0x288   : > { %3814 = vmatmul.bf16.gmra.mxu0 %v4806_v8  ;;  %v3514_v14 = vadd.f32 %v3513_v26, %v6729_v9 }
 0x289   : > { %v3599_v54 = vpop.f32.mrf.mxu2  ;;  %v4004_v12 = vmax.f32 %v3972_v18, 0.0  ;;  %v3776_v31 = vadd.f32 %v3775_v50, %v3687_v15 }
 0x28a   : > { %3552 = vmatmul.bf16.gmra.mxu1 %v4830_v21  ;;  %v3600_v44 = vadd.f32 %v3599_v54, %v3511_v35  ;;  %v5545_v54 = vld [vmem:[%s6830_s9 + $0x38] sm:$0xff]  }
 0x28b   : > { %v5479_v57 = vpack.c.bf16 %v4004_v12, %v4003_v29  ;;  %v3841_v36 = vmul.f32 %v6822_v56, %v3776_v31  ;;  %v5417_v35 = vunpack.c.l.bf16 %v5545_v54 }
 0x28d   : > { %5558 = vst [vmem:[%s6853_s14 + $0x28] sm:$0xff] %v5479_v57   ;;  %v3777_v39 = vpop.f32.mrf.mxu0  ;;  %v3877_v23 = vadd.f32 %v6840_v22, %v3841_v36 }
 0x28e   : > { %3641 = vmatmul.bf16.gmra.mxu2 %v4834_v3  ;;  %v3688_v11 = vpop.f32.mrf.mxu3 }
 0x28f   : > { %v3515_v51 = vpop.f32.mrf.mxu1  ;;  %v3689_v61 = vadd.f32 %v3688_v11, %v3600_v44  ;;  %v3973_v46 = vadd.f32 %v5413_v13, %v3877_v23 }
 0x290   : > { %v3516_v26 = vadd.f32 %v3515_v51, %v6736_v37  ;;  %v5418_v37 = vunpack.c.h.bf16 %v5545_v54 }
 0x291   : > { %v3602_v41 = vpop.f32.mrf.mxu2  ;;  %v3778_v1 = vadd.f32 %v3777_v39, %v3689_v61  ;;  %v4005_v9 = vmax.f32 %v3973_v46, 0.0 }
 0x292   : > { %v3603_v52 = vadd.f32 %v3602_v41, %v3514_v14 }
 0x293   : > { %v3842_v63 = vmul.f32 %v6822_v56, %v3778_v1  ;;  %3730 = vmatmul.bf16.gmra.mxu3 %v4838_v38 }
 0x295   : > { %v3878_v27 = vadd.f32 %v6840_v22, %v3842_v63  ;;  %v3780_v5 = vpop.f32.mrf.mxu0 }
 0x296   : > { %v3691_v20 = vpop.f32.mrf.mxu3 }
 0x297   : > { %v3518_v43 = vpop.f32.mrf.mxu1  ;;  %v3974_v8 = vadd.f32 %v5414_v32, %v3878_v27  ;;  %v3692_v21 = vadd.f32 %v3691_v20, %v3603_v52  ;;  %v5546_v52 = vld [vmem:[%s6830_s9 + $0x40] sm:$0xff]  }
 0x298   : > { %3819 = vmatmul.bf16.gmra.mxu0 %v4842_v34  ;;  %v3519_v44 = vadd.f32 %v3518_v43, %v6739_v55  ;;  %v5421_v43 = vunpack.c.l.bf16 %v5546_v52 }
 0x299   : > { %v3604_v48 = vpop.f32.mrf.mxu2  ;;  %v4006_v7 = vmax.f32 %v3974_v8, 0.0  ;;  %v3781_v50 = vadd.f32 %v3780_v5, %v3692_v21 }
 0x29a   : > { %v3605_v45 = vadd.f32 %v3604_v48, %v3516_v26 }
 0x29b   : > { %v5484_v40 = vpack.c.bf16 %v4006_v7, %v4005_v9  ;;  %v3843_v53 = vmul.f32 %v6822_v56, %v3781_v50 }
 0x29d   : > { %5559 = vst [vmem:[%s6853_s14 + $0x30] sm:$0xff] %v5484_v40   ;;  %v3782_v18 = vpop.f32.mrf.mxu0  ;;  %v3879_v31 = vadd.f32 %v6840_v22, %v3843_v53 }
 0x29e   : > { %v3693_v3 = vpop.f32.mrf.mxu3 }
 0x29f   : > { %v3520_v15 = vpop.f32.mrf.mxu1  ;;  %v3694_v29 = vadd.f32 %v3693_v3, %v3605_v45  ;;  %v3975_v36 = vadd.f32 %v5417_v35, %v3879_v31 }
 0x2a0   : > { %v3521_v55 = vadd.f32 %v3520_v15, %v6746_v30  ;;  %v5422_v30 = vunpack.c.h.bf16 %v5546_v52 }
 0x2a1   : > { %v3607_v12 = vpop.f32.mrf.mxu2  ;;  %v3783_v57 = vadd.f32 %v3782_v18, %v3694_v29  ;;  %v4007_v23 = vmax.f32 %v3975_v36, 0.0 }
 0x2a2   : > { %v3608_v58 = vadd.f32 %v3607_v12, %v3519_v44  ;;  %v5547_v44 = vld [vmem:[%s6830_s9 + $0x48] sm:$0xff]  }
 0x2a3   : > { %v3844_v49 = vmul.f32 %v6822_v56, %v3783_v57 }
 0x2a5   : > { %v3880_v39 = vadd.f32 %v6840_v22, %v3844_v49  ;;  %v3785_v51 = vpop.f32.mrf.mxu0 }
 0x2a6   : > { %v3696_v11 = vpop.f32.mrf.mxu3 }
 0x2a7   : > { %v3523_v24 = vpop.f32.mrf.mxu1  ;;  %v3976_v61 = vadd.f32 %v5418_v37, %v3880_v39  ;;  %v3697_v38 = vadd.f32 %v3696_v11, %v3608_v58  ;;  %v5425_v39 = vunpack.c.l.bf16 %v5547_v44 }
 0x2a8   : > { %v3524_v8 = vadd.f32 %v3523_v24, %v6749_v17 }
 0x2a9   : > { %v3609_v41 = vpop.f32.mrf.mxu2  ;;  %v4008_v13 = vmax.f32 %v3976_v61, 0.0  ;;  %v3786_v1 = vadd.f32 %v3785_v51, %v3697_v38 }
 0x2aa   : > { %v3610_v0 = vadd.f32 %v3609_v41, %v3521_v55 }
 0x2ab   : > { %v5489_v14 = vpack.c.bf16 %v4008_v13, %v4007_v23  ;;  %v3845_v6 = vmul.f32 %v6822_v56, %v3786_v1 }
 0x2ad   : > { %5560 = vst [vmem:[%s6853_s14 + $0x38] sm:$0xff] %v5489_v14   ;;  %v3787_v63 = vpop.f32.mrf.mxu0  ;;  %v3881_v5 = vadd.f32 %v6840_v22, %v3845_v6 }
 0x2ae   : > { %v3698_v34 = vpop.f32.mrf.mxu3 }
 0x2af   : > { %v3525_v32 = vpop.f32.mrf.mxu1  ;;  %v3699_v46 = vadd.f32 %v3698_v34, %v3610_v0  ;;  %v3977_v9 = vadd.f32 %v5421_v43, %v3881_v5  ;;  %v5548_v43 = vld [vmem:[%s6830_s9 + $0x50] sm:$0xff]  }
 0x2b0   : > { %v3526_v17 = vadd.f32 %v3525_v32, %v6756_v28  ;;  %v5426_v28 = vunpack.c.h.bf16 %v5547_v44 }
 0x2b1   : > { %v3612_v27 = vpop.f32.mrf.mxu2  ;;  %v3788_v20 = vadd.f32 %v3787_v63, %v3699_v46  ;;  %v4009_v15 = vmax.f32 %v3977_v9, 0.0 }
 0x2b2   : > { %v3613_v48 = vadd.f32 %v3612_v27, %v3524_v8 }
 0x2b3   : > { %v3846_v21 = vmul.f32 %v6822_v56, %v3788_v20 }
 0x2b5   : > { %v3882_v7 = vadd.f32 %v6840_v22, %v3846_v21  ;;  %v3790_v50 = vpop.f32.mrf.mxu0 }
 0x2b6   : > { %v3701_v40 = vpop.f32.mrf.mxu3 }
 0x2b7   : > { %v3528_v26 = vpop.f32.mrf.mxu1  ;;  %v3978_v45 = vadd.f32 %v5422_v30, %v3882_v7  ;;  %v3702_v53 = vadd.f32 %v3701_v40, %v3613_v48  ;;  %v5429_v48 = vunpack.c.l.bf16 %v5548_v43 }
 0x2b8   : > { %v3529_v24 = vadd.f32 %v3528_v26, %v6759_v33 }
 0x2b9   : > { %v3614_v18 = vpop.f32.mrf.mxu2  ;;  %v4010_v54 = vmax.f32 %v3978_v45, 0.0  ;;  %v3791_v3 = vadd.f32 %v3790_v50, %v3702_v53 }
 0x2ba   : > { %v3615_v12 = vadd.f32 %v3614_v18, %v3526_v17 }
 0x2bb   : > { %v5494_v29 = vpack.c.bf16 %v4010_v54, %v4009_v15  ;;  %v3847_v31 = vmul.f32 %v6822_v56, %v3791_v3 }
 0x2bd   : > { %5561 = vst [vmem:[%s6853_s14 + $0x40] sm:$0xff] %v5494_v29   ;;  %v3792_v35 = vpop.f32.mrf.mxu0  ;;  %v3883_v36 = vadd.f32 %v6840_v22, %v3847_v31 }
 0x2be   : > { %v3703_v49 = vpop.f32.mrf.mxu3 }
 0x2bf   : > { %v3530_v57 = vpop.f32.mrf.mxu1  ;;  %v3704_v37 = vadd.f32 %v3703_v49, %v3615_v12  ;;  %v3979_v38 = vadd.f32 %v5425_v39, %v3883_v36 }
 0x2c0   : > { %v3531_v33 = vadd.f32 %v3530_v57, %v6766_v59  ;;  %v5430_v59 = vunpack.c.h.bf16 %v5548_v43 }
 0x2c1   : > { %v3617_v58 = vpop.f32.mrf.mxu2  ;;  %v3793_v51 = vadd.f32 %v3792_v35, %v3704_v37  ;;  %v4011_v6 = vmax.f32 %v3979_v38, 0.0 }
 0x2c2   : > { %v3618_v61 = vadd.f32 %v3617_v58, %v3529_v24  ;;  %v5549_v58 = vld [vmem:[%s6830_s9 + $0x58] sm:$0xff]  }
 0x2c3   : > { %v3848_v11 = vmul.f32 %v6822_v56, %v3793_v51 }
 0x2c5   : > { %v3884_v41 = vadd.f32 %v6840_v22, %v3848_v11  ;;  %v3795_v23 = vpop.f32.mrf.mxu0  ;;  %v5433_v11 = vunpack.c.l.bf16 %v5549_v58 }
 0x2c6   : > { %v3706_v1 = vpop.f32.mrf.mxu3 }
 0x2c7   : > { %v3533_v13 = vpop.f32.mrf.mxu1  ;;  %v3980_v55 = vadd.f32 %v5426_v28, %v3884_v41  ;;  %v3707_v14 = vadd.f32 %v3706_v1, %v3618_v61 }
 0x2c8   : > { %v3534_v7 = vadd.f32 %v3533_v13, %v6769_v10 }
 0x2c9   : > { %v3619_v0 = vpop.f32.mrf.mxu2  ;;  %v4012_v63 = vmax.f32 %v3980_v55, 0.0  ;;  %v3796_v32 = vadd.f32 %v3795_v23, %v3707_v14 }
 0x2ca   : > { %v3620_v34 = vadd.f32 %v3619_v0, %v3531_v33 }
 0x2cb   : > { %v5499_v52 = vpack.c.bf16 %v4012_v63, %v4011_v6  ;;  %v3849_v46 = vmul.f32 %v6822_v56, %v3796_v32 }
 0x2cd   : > { %5562 = vst [vmem:[%s6853_s14 + $0x48] sm:$0xff] %v5499_v52   ;;  %v3797_v27 = vpop.f32.mrf.mxu0  ;;  %v3885_v30 = vadd.f32 %v6840_v22, %v3849_v46  ;;  %v6973_v46 = vld [vmem:[%s7021_s2] ss:$0 sm:$0xff] }
 0x2ce   : > { %v3708_v20 = vpop.f32.mrf.mxu3 }
 0x2cf   : > { %v3535_v5 = vpop.f32.mrf.mxu1  ;;  %v3709_v8 = vadd.f32 %v3708_v20, %v3620_v34  ;;  %v3981_v40 = vadd.f32 %v5429_v48, %v3885_v30  ;;  %v5550_v20 = vld [vmem:[%s6830_s9 + $0x60] sm:$0xff]  }
 0x2d0   : > { %v3536_v10 = vadd.f32 %v3535_v5, %v6776_v19  ;;  %v5434_v19 = vunpack.c.h.bf16 %v5549_v58 }
 0x2d1   : > { %v3622_v21 = vpop.f32.mrf.mxu2  ;;  %v3798_v9 = vadd.f32 %v3797_v27, %v3709_v8  ;;  %v4013_v29 = vmax.f32 %v3981_v40, 0.0 }
 0x2d2   : > { %v3623_v26 = vadd.f32 %v3622_v21, %v3534_v7 }
 0x2d3   : > { %v3850_v50 = vmul.f32 %v6822_v56, %v3798_v9  ;;  %v5437_v9 = vunpack.c.l.bf16 %v5550_v20 }
 0x2d5   : > { %v3886_v45 = vadd.f32 %v6840_v22, %v3850_v50  ;;  %v3800_v53 = vpop.f32.mrf.mxu0 }
 0x2d6   : > { %v3711_v15 = vpop.f32.mrf.mxu3 }
 0x2d7   : > { %v3538_v18 = vpop.f32.mrf.mxu1  ;;  %v3982_v54 = vadd.f32 %v5430_v59, %v3886_v45  ;;  %v3712_v3 = vadd.f32 %v3711_v15, %v3623_v26  ;;  %v5438_v59 = vunpack.c.h.bf16 %v5550_v20  ;;  %v6983_v45 = vld [vmem:[%s7022_s3] ss:$0 sm:$0xff] }
 0x2d8   : > { %v3539_v61 = vadd.f32 %v3538_v18, %v6779_v42 }
 0x2d9   : > { %v3624_v17 = vpop.f32.mrf.mxu2  ;;  %v4014_v12 = vmax.f32 %v3982_v54, 0.0  ;;  %v3801_v31 = vadd.f32 %v3800_v53, %v3712_v3 }
 0x2da   : > { %v3625_v57 = vadd.f32 %v3624_v17, %v3536_v10 }
 0x2db   : > { %v5504_v35 = vpack.c.bf16 %v4014_v12, %v4013_v29  ;;  %v3851_v44 = vmul.f32 %v6822_v56, %v3801_v31 }
 0x2dd   : > { %5563 = vst [vmem:[%s6853_s14 + $0x50] sm:$0xff] %v5504_v35   ;;  %v3802_v49 = vpop.f32.mrf.mxu0  ;;  %v3887_v24 = vadd.f32 %v6840_v22, %v3851_v44 }
 0x2de   : > { %v3713_v36 = vpop.f32.mrf.mxu3 }
 0x2df   : > { %v3540_v37 = vpop.f32.mrf.mxu1  ;;  %v3714_v39 = vadd.f32 %v3713_v36, %v3625_v57  ;;  %v3983_v23 = vadd.f32 %v5433_v11, %v3887_v24 }
 0x2e0   : > { %v3541_v42 = vadd.f32 %v3540_v37, %v6786_v47 }
 0x2e1   : > { %v3627_v51 = vpop.f32.mrf.mxu2  ;;  %v3803_v28 = vadd.f32 %v3802_v49, %v3714_v39  ;;  %v4015_v32 = vmax.f32 %v3983_v23, 0.0  ;;  %v5551_v49 = vld [vmem:[%s6830_s9 + $0x68] sm:$0xff]  }
 0x2e2   : > { %v3628_v41 = vadd.f32 %v3627_v51, %v3539_v61  ;;  %v5441_v51 = vunpack.c.l.bf16 %v5551_v49 }
 0x2e3   : > { %v3852_v38 = vmul.f32 %v6822_v56, %v3803_v28 }
 0x2e5   : > { %v3888_v13 = vadd.f32 %v6840_v22, %v3852_v38  ;;  %v3805_v1 = vpop.f32.mrf.mxu0 }
 0x2e6   : > { %v3716_v14 = vpop.f32.mrf.mxu3 }
 0x2e7   : > { %v3543_v55 = vpop.f32.mrf.mxu1  ;;  %v3984_v0 = vadd.f32 %v5434_v19, %v3888_v13  ;;  %v3717_v6 = vadd.f32 %v3716_v14, %v3628_v41 }
 0x2e8   : > { %v3544_v7 = vadd.f32 %v3543_v55, %v6789_v4 }
 0x2e9   : > { %v3629_v63 = vpop.f32.mrf.mxu2  ;;  %v4016_v33 = vmax.f32 %v3984_v0, 0.0  ;;  %v3806_v52 = vadd.f32 %v3805_v1, %v3717_v6 }
 0x2ea   : > { %v3630_v56 = vadd.f32 %v3629_v63, %v3541_v42 }
 0x2eb   : > { %v5509_v34 = vpack.c.bf16 %v4016_v33, %v4015_v32  ;;  %v3853_v27 = vmul.f32 %v6973_v46, %v3806_v52 }
 0x2ed   : > { %5564 = vst [vmem:[%s6853_s14 + $0x58] sm:$0xff] %v5509_v34   ;;  %v3807_v5 = vpop.f32.mrf.mxu0  ;;  %v3889_v48 = vadd.f32 %v6840_v22, %v3853_v27 }
 0x2ee   : > { %v3718_v8 = vpop.f32.mrf.mxu3 }
 0x2ef   : > { %v3545_v43 = vpop.f32.mrf.mxu1  ;;  %v3719_v21 = vadd.f32 %v3718_v8, %v3630_v56  ;;  %v3985_v40 = vadd.f32 %v5437_v9, %v3889_v48  ;;  %v5552_v56 = vld [vmem:[%s6830_s9 + $0x70] sm:$0xff]  }
 0x2f0   : > { %v3546_v31 = vadd.f32 %v3545_v43, %v6796_v62  ;;  %v5442_v62 = vunpack.c.h.bf16 %v5551_v49  ;;  %v5445_v8 = vunpack.c.l.bf16 %v5552_v56 }
 0x2f1   : > { %v3632_v30 = vpop.f32.mrf.mxu2  ;;  %v3808_v47 = vadd.f32 %v3807_v5, %v3719_v21  ;;  %v4017_v17 = vmax.f32 %v3985_v40, 0.0 }
 0x2f2   : > { %v3633_v26 = vadd.f32 %v3632_v30, %v3544_v7 }
 0x2f3   : > { %v3854_v50 = vmul.f32 %v6973_v46, %v3808_v47 }
 0x2f5   : > { %v3890_v53 = vadd.f32 %v6983_v45, %v3854_v50  ;;  %v3810_v18 = vpop.f32.mrf.mxu0 }
 0x2f6   : > { %v3721_v22 = vpop.f32.mrf.mxu3 }
 0x2f7   : > { %v3986_v15 = vadd.f32 %v5438_v59, %v3890_v53  ;;  %v3722_v54 = vadd.f32 %v3721_v22, %v3633_v26  ;;  %v3548_v4 = vpop.f32.mrf.mxu1 }
 0x2f8   : > { %v3549_v11 = vadd.f32 %v3548_v4, %v6799_v2 }
 0x2f9   : > { %v3634_v3 = vpop.f32.mrf.mxu2  ;;  %v4018_v29 = vmax.f32 %v3986_v15, 0.0  ;;  %v3811_v12 = vadd.f32 %v3810_v18, %v3722_v54 }
 0x2fa   : > { %v3635_v35 = vadd.f32 %v3634_v3, %v3546_v31 }
 0x2fb   : > { %v5514_v10 = vpack.c.bf16 %v4018_v29, %v4017_v17  ;;  %v3855_v57 = vmul.f32 %v6973_v46, %v3811_v12  ;;  %v5553_v29 = vld [vmem:[%s6830_s9 + $0x78] sm:$0xff]  }
 0x2fd   : > { %5565 = vst [vmem:[%s6853_s14 + $0x60] sm:$0xff] %v5514_v10   ;;  %v3812_v44 = vpop.f32.mrf.mxu0  ;;  %v3891_v39 = vadd.f32 %v6983_v45, %v3855_v57  ;;  %v5449_v57 = vunpack.c.l.bf16 %v5553_v29 }
 0x2fe   : > { %v3723_v37 = vpop.f32.mrf.mxu3 }
 0x2ff   : > { %v3724_v58 = vadd.f32 %v3723_v37, %v3635_v35  ;;  %v3550_v28 = vpop.f32.mrf.mxu1  ;;  %v3987_v19 = vadd.f32 %v5441_v51, %v3891_v39  ;;  %v5450_v37 = vunpack.c.h.bf16 %v5553_v29 }
 0x300   : > { %v3551_v2 = vadd.f32 %v3550_v28, %v6806_v60  ;;  %v5446_v60 = vunpack.c.h.bf16 %v5552_v56 }
 0x301   : > { %v3637_v36 = vpop.f32.mrf.mxu2  ;;  %v3813_v24 = vadd.f32 %v3812_v44, %v3724_v58  ;;  %v4019_v0 = vmax.f32 %v3987_v19, 0.0 }
 0x302   : > { %v3638_v38 = vadd.f32 %v3637_v36, %v3549_v11 }
 0x303   : > { %v3856_v61 = vmul.f32 %v6973_v46, %v3813_v24 }
 0x305   : > { %v3892_v41 = vadd.f32 %v6983_v45, %v3856_v61  ;;  %v3815_v23 = vpop.f32.mrf.mxu0 }
 0x306   : > { %v3726_v13 = vpop.f32.mrf.mxu3 }
 0x307   : > { %v3988_v1 = vadd.f32 %v5442_v62, %v3892_v41  ;;  %v3727_v55 = vadd.f32 %v3726_v13, %v3638_v38  ;;  %v3553_v52 = vpop.f32.mrf.mxu1 }
 0x308   : > { %v3554_v30 = vadd.f32 %v3553_v52, %v6809_v16 }
 0x309   : > { %v3639_v14 = vpop.f32.mrf.mxu2  ;;  %v4020_v6 = vmax.f32 %v3988_v1, 0.0  ;;  %v3816_v63 = vadd.f32 %v3815_v23, %v3727_v55 }
 0x30a   : > { %v3640_v33 = vadd.f32 %v3639_v14, %v3551_v2 }
 0x30b   : > { %v5519_v32 = vpack.c.bf16 %v4020_v6, %v4019_v0  ;;  %v3857_v42 = vmul.f32 %v6973_v46, %v3816_v63 }
 0x30d   : > { %5566 = vst [vmem:[%s6853_s14 + $0x68] sm:$0xff] %v5519_v32   ;;  %v3817_v34 = vpop.f32.mrf.mxu0  ;;  %v3893_v20 = vadd.f32 %v6983_v45, %v3857_v42 }
 0x30e   : > { %v3728_v27 = vpop.f32.mrf.mxu3 }
 0x30f   : > { %v3729_v5 = vadd.f32 %v3728_v27, %v3640_v33  ;;  %v3989_v47 = vadd.f32 %v5445_v8, %v3893_v20  ;;  %v3555_v50 = vpop.f32.mrf.mxu1 }
 0x310   : > { %v3556_v16 = vadd.f32 %v3555_v50, %v6816_v25 }
 0x311   : > { %v3642_v43 = vpop.f32.mrf.mxu2  ;;  %v3818_v21 = vadd.f32 %v3817_v34, %v3729_v5  ;;  %v4021_v22 = vmax.f32 %v3989_v47, 0.0 }
 0x312   : > { %v3643_v9 = vadd.f32 %v3642_v43, %v3554_v30 }
 0x313   : > { %v3858_v48 = vmul.f32 %v6973_v46, %v3818_v21 }
 0x315   : > { %v3894_v7 = vadd.f32 %v6983_v45, %v3858_v48  ;;  %v3820_v59 = vpop.f32.mrf.mxu0 }
 0x316   : > { %v3731_v26 = vpop.f32.mrf.mxu3 }
 0x317   : > { %v3990_v40 = vadd.f32 %v5446_v60, %v3894_v7  ;;  %v3732_v53 = vadd.f32 %v3731_v26, %v3643_v9 }
 0x319   : > { %v3644_v18 = vpop.f32.mrf.mxu2  ;;  %v4022_v15 = vmax.f32 %v3990_v40, 0.0  ;;  %v3821_v54 = vadd.f32 %v3820_v59, %v3732_v53 }
 0x31a   : > { %v3645_v4 = vadd.f32 %v3644_v18, %v3556_v16 }
 0x31b   : > { %v5524_v3 = vpack.c.bf16 %v4022_v15, %v4021_v22  ;;  %v3859_v17 = vmul.f32 %v6973_v46, %v3821_v54 }
 0x31d   : > { %5567 = vst [vmem:[%s6853_s14 + $0x70] sm:$0xff] %v5524_v3   ;;  %v3822_v10 = vpop.f32.mrf.mxu0  ;;  %v3895_v35 = vadd.f32 %v6983_v45, %v3859_v17 }
 0x31e   : > { %v3733_v12 = vpop.f32.mrf.mxu3 }
 0x31f   : > { %v3734_v31 = vadd.f32 %v3733_v12, %v3645_v4  ;;  %v3991_v58 = vadd.f32 %v5449_v57, %v3895_v35 }
 0x321   : > { %v3823_v44 = vadd.f32 %v3822_v10, %v3734_v31  ;;  %v4023_v39 = vmax.f32 %v3991_v58, 0.0 }
 0x323   : > { %v3860_v49 = vmul.f32 %v6973_v46, %v3823_v44 }
 0x325   : > { %v3896_v25 = vadd.f32 %v6983_v45, %v3860_v49 }
 0x327   : > { %v3992_v36 = vadd.f32 %v5450_v37, %v3896_v25 }
 0x329   : > { %v4024_v51 = vmax.f32 %v3992_v36, 0.0 }
 0x32b   : > { %v5529_v24 = vpack.c.bf16 %v4024_v51, %v4023_v39 }
 0x32d   : > { %5568 = vst [vmem:[%s6853_s14 + $0x78] sm:$0xff] %v5529_v24  }
 0x32e PF: > { %s15_s20 = sadd.s32 1, %s5645_s20   ;;  %s7234_s18 = smov %s5641_s19 }
 0x32f   : > { %p12_p5 = scmp.ge.s32.totalorder %s15_s20, 4   ;;  %s7235_s19 = smov %s7237_s21 }
 0x331   :  { %14 = sbr.rel (!%p12_p5) target bundleno = 2 (0x2), region = 93 }

</bundles_post_ra>
